<compile_context>
chip_gen: v7x
topology: tpu7x:2x2x1
jax: 0.10.0
libtpu: 0.0.40
codegen_flags: <defaults>
</compile_context>

<pallas_src>
import functools

import jax
import jax.numpy as jnp
from jax.experimental import pallas as pl
from jax.experimental.pallas import tpu as pltpu

D_IN = 1024    # per-state feature size (module is Linear(1024*2, 1024))
D_HID = 1024


def _round_up(x, m):
    return ((x + m - 1) // m) * m


def _sigmoid(x):
    # sigmoid(x) == 0.5 * tanh(0.5 * x) + 0.5 : one EUP transcendental per
    # element instead of exp + divide (halves EUP pushes on the j==0 step).
    return 0.5 * jnp.tanh(0.5 * x) + 0.5


# ----------------------------------------------------------------------------
# Hardware / capability probes (evaluated once, eagerly, outside any jit)
# ----------------------------------------------------------------------------
@functools.lru_cache(maxsize=None)
def _vmem_capacity_bytes():
    try:
        return int(pltpu.get_tpu_info().vmem_capacity_bytes)
    except Exception:
        return 64 << 20            # conservative (v7x-sized) fallback


@functools.lru_cache(maxsize=None)
def _single_buffer_supported():
    """Probe whether pipeline_mode=pl.Buffered(1) works for resident operands."""
    try:
        def _probe_kernel(x_ref, w_ref, o_ref):
            o_ref[...] = x_ref[...] + w_ref[...]

        f = pl.pallas_call(
            _probe_kernel,
            out_shape=jax.ShapeDtypeStruct((16, 128), jnp.float32),
            grid=(2,),
            in_specs=[
                pl.BlockSpec((8, 128), lambda i: (i, 0)),
                pl.BlockSpec((8, 128), lambda i: (0, 0),
                             pipeline_mode=pl.Buffered(1)),   # resident operand
            ],
            out_specs=pl.BlockSpec((8, 128), lambda i: (i, 0)),
        )
        x = jnp.arange(16 * 128, dtype=jnp.float32).reshape(16, 128)
        w = jnp.ones((8, 128), jnp.float32)
        out = jax.block_until_ready(f(x, w))
        return bool(jnp.allclose(out, x + 1.0))
    except Exception:
        return False


# ----------------------------------------------------------------------------
# Tiling / VMEM sizing
# ----------------------------------------------------------------------------
def _vmem_need(tb, tn, h_pad, single_buffer, out_bytes):
    """VMEM footprint for a given tiling (kept in sync with the BlockSpecs)."""
    res_buf = 1 if single_buffer else 2           # W1a/W1b/W2/b1/b2 buffers
    w3_buf = res_buf if tn == h_pad else 2        # resident W3 == constant index
    return int(
        res_buf * 3 * D_IN * D_HID * 2            # W1a, W1b, W2 (bf16)
        + w3_buf * D_HID * tn * 2                 # W3 tile (bf16)
        + 2 * 2 * tb * D_IN * 2                   # st0/st1 bf16 tiles x 2 bufs
        + 2 * tb * tn * out_bytes                 # out tile x 2 bufs
        + tb * D_HID * 2                          # h2 scratch (bf16)
        + (2 << 20)                               # biases + compiler headroom
    )


def _choose_tiles(batch, h_pad, budget, single_buffer, out_bytes, max_batch_tile):
    """Pick (tb, tn, B_pad): batch tile, output-feature tile, padded batch."""
    b16 = _round_up(max(batch, 1), 16)            # bf16 native (16,128) tile
    if b16 >= 256:
        # Large batch is compute-bound: make grid[0] >= 2 so the "parallel"
        # batch axis shards across both v7x TensorCores (near-free elsewhere,
        # weights stay resident).
        tb_pref = min(max_batch_tile, _round_up(max(128, b16 // 2), 16))
    else:
        # Tiny batch is weight-HBM-bound: one batch tile, do not split.
        tb_pref = b16
    tb_pref = max(16, min(tb_pref, max_batch_tile))

    tb_cands = []
    for t in (tb_pref, 512, 256, 128, 64, 32, 16):
        if t <= tb_pref and t not in tb_cands:
            tb_cands.append(t)

    # 1) Preferred: W3 fully resident -> zero W3 re-streaming, grid axis 1 == 1.
    for tb in tb_cands:
        if tb < 128 and tb != tb_pref:
            break                                  # don't shrink tb < 128 just for residency
        if _vmem_need(tb, h_pad, h_pad, single_buffer, out_bytes) <= budget:
            return tb, h_pad, _round_up(b16, tb)

    # 2) N-tile W3: widest tile first (128-wide tiles waste the 256-wide MXU
    #    on v6e/v7x and multiply per-step overhead).
    for tn in (2048, 1024, 512, 256, 128):
        if h_pad % tn:
            continue
        for tb in tb_cands:
            if _vmem_need(tb, tn, h_pad, single_buffer, out_bytes) <= budget:
                return tb, tn, _round_up(b16, tb)

    # 3) Last resort (unreachable for sane configs); vmem_limit request covers it.
    return 16, (128 if h_pad % 128 == 0 else h_pad), _round_up(b16, 16)


# ----------------------------------------------------------------------------
# Kernel
# ----------------------------------------------------------------------------
def _icm_inverse_kernel(st0_ref, st1_ref,
                        w1a_ref, w1b_ref, b1_ref,
                        w2_ref, b2_ref,
                        w3_ref, b3_ref,
                        out_ref,
                        h2_ref):
    # Recompute h1/h2 only on the first N tile of each batch tile.  Correct
    # because axis 1 is the inner "arbitrary" axis (see NOTE at top of file).
    @pl.when(pl.program_id(1) == 0)
    def _():
        # Linear(2048 -> 1024) without materializing the concat:
        # [st0 | st1] @ W1 == st0 @ W1a + st1 @ W1b
        h1 = (jnp.dot(st0_ref[...], w1a_ref[...], preferred_element_type=jnp.float32)
              + jnp.dot(st1_ref[...], w1b_ref[...], preferred_element_type=jnp.float32)
              + b1_ref[...])
        h1 = _sigmoid(h1).astype(jnp.bfloat16)     # sigmoid in f32, feed MXU in bf16

        # Linear(1024 -> 1024) + Sigmoid
        h2 = jnp.dot(h1, w2_ref[...], preferred_element_type=jnp.float32) + b2_ref[...]
        h2_ref[...] = _sigmoid(h2).astype(jnp.bfloat16)

    # Linear(1024 -> tn slice of llm_hidden_size), no activation.
    out = jnp.dot(h2_ref[...], w3_ref[...], preferred_element_type=jnp.float32) + b3_ref[...]
    out_ref[...] = out.astype(out_ref.dtype)


# ----------------------------------------------------------------------------
# Params (one-time layout conversion)
# ----------------------------------------------------------------------------
def prepare_params(params):
    """One-time conversion of PyTorch-convention params to kernel layout.

    PyTorch Linear stores W as (out, in); the kernel consumes (in, out) bf16,
    with W1 split into the st_0 / st_1 halves.  W3/b3 are padded HERE (not per
    forward call) along the output-feature axis: to a multiple of 128
    (lane-dense stores), and to a multiple of 512 for large H so wide N tiles
    always divide it.  Biases stay f32 as (1, out).
    """
    h = params["w3"].shape[0]
    quantum = 128 if h <= 4096 else 512       # H <= 4096 is always W3-resident
    h_pad = _round_up(h, quantum)

    w1t = params["w1"].T.astype(jnp.bfloat16)                          # (2048, 1024)
    w3 = jnp.pad(params["w3"].T, ((0, 0), (0, h_pad - h))).astype(jnp.bfloat16)
    b3 = jnp.pad(params["b3"], (0, h_pad - h)).reshape(1, -1).astype(jnp.float32)
    # TODO(synk): optional fp8 (e4m3) weights with per-channel scales folded into
    # the bias for the small-batch serving regime on v7x (gate behind a flag).
    return {
        "w1a": w1t[:D_IN, :],                                          # (1024, 1024) bf16
        "w1b": w1t[D_IN:, :],                                          # (1024, 1024) bf16
        "w2": params["w2"].T.astype(jnp.bfloat16),                     # (1024, 1024) bf16
        "w3": w3,                                                      # (1024, H_pad) bf16
        "b1": params["b1"].reshape(1, -1).astype(jnp.float32),
        "b2": params["b2"].reshape(1, -1).astype(jnp.float32),
        "b3": b3,                                                      # (1, H_pad) f32
        "llm_hidden_size": h,                                          # python int
    }


# ----------------------------------------------------------------------------
# Forward
# ----------------------------------------------------------------------------
@functools.partial(
    jax.jit,
    static_argnames=("tb", "tn", "b_pad", "h_out", "vmem_limit",
                     "single_buffer", "out_f32"))
def _icm_forward_padded(st_0, st_1, w1a, w1b, b1, w2, b2, w3, b3, *,
                        tb, tn, b_pad, h_out, vmem_limit, single_buffer, out_f32):
    batch = st_0.shape[0]
    h_pad = w3.shape[1]
    out_dtype = jnp.float32 if out_f32 else jnp.bfloat16
    out_bytes = 4 if out_f32 else 2

    st0 = jnp.pad(st_0, ((0, b_pad - batch), (0, 0))).astype(jnp.bfloat16)
    st1 = jnp.pad(st_1, ((0, b_pad - batch), (0, 0))).astype(jnp.bfloat16)

    grid = (b_pad // tb, h_pad // tn)

    # Resident (constant-index) operands: single-buffer when supported.
    resident_kw = {"pipeline_mode": pl.Buffered(1)} if single_buffer else {}
    w3_kw = resident_kw if tn == h_pad else {}     # W3 resident only when un-tiled

    cost = pl.CostEstimate(
        flops=2 * b_pad * (2 * D_IN * D_HID + D_HID * D_HID + D_HID * h_pad),
        transcendentals=2 * b_pad * D_HID,
        bytes_accessed=(2 * (3 * D_IN * D_HID + D_HID * h_pad)     # bf16 weights
                        + 2 * 2 * b_pad * D_IN                     # bf16 inputs
                        + out_bytes * b_pad * h_pad),              # output
    )

    out_padded = pl.pallas_call(
        _icm_inverse_kernel,
        out_shape=jax.ShapeDtypeStruct((b_pad, h_pad), out_dtype),
        grid_spec=pltpu.PrefetchScalarGridSpec(
            num_scalar_prefetch=0,
            grid=grid,
            in_specs=[
                pl.BlockSpec((tb, D_IN), lambda i, j: (i, 0)),                     # st0 tile
                pl.BlockSpec((tb, D_IN), lambda i, j: (i, 0)),                     # st1 tile
                pl.BlockSpec((D_IN, D_HID), lambda i, j: (0, 0), **resident_kw),   # W1a (resident)
                pl.BlockSpec((D_IN, D_HID), lambda i, j: (0, 0), **resident_kw),   # W1b (resident)
                pl.BlockSpec((1, D_HID), lambda i, j: (0, 0), **resident_kw),      # b1
                pl.BlockSpec((D_HID, D_HID), lambda i, j: (0, 0), **resident_kw),  # W2 (resident)
                pl.BlockSpec((1, D_HID), lambda i, j: (0, 0), **resident_kw),      # b2
                pl.BlockSpec((D_HID, tn), lambda i, j: (0, j), **w3_kw),           # W3
                pl.BlockSpec((1, tn), lambda i, j: (0, j), **w3_kw),               # b3
            ],
            out_specs=pl.BlockSpec((tb, tn), lambda i, j: (i, j)),
            scratch_shapes=[pltpu.VMEM((tb, D_HID), jnp.bfloat16)],                # cached h2
        ),
        # Axis 0 "parallel" (v7x megacore shards the batch); axis 1 must stay
        # "arbitrary" so every core sees j == 0 for its batch tiles (h2 cache).
        compiler_params=pltpu.CompilerParams(
            dimension_semantics=("parallel", "arbitrary"),
            vmem_limit_bytes=vmem_limit,
        ),
        cost_estimate=cost,
    )(st0, st1, w1a, w1b, b1, w2, b2, w3, b3)

    return out_padded[:batch, :h_out]


def icm_inverse_forward(st_0, st_1, prep, *, out_dtype=jnp.float32,
                        max_batch_tile=512):
    """st_0, st_1: [B, 1024]. prep: output of prepare_params. Returns [B, H]."""
    batch = st_0.shape[0]
    h = prep["llm_hidden_size"]
    h_pad = prep["w3"].shape[1]

    out_f32 = (out_dtype == jnp.float32)
    out_bytes = 4 if out_f32 else 2

    single_buffer = _single_buffer_supported()
    # Per-generation VMEM budget: <= 75% of physical capacity, capped at 96 MiB
    # (128 MiB parts -> 96 MiB; v7x 64 MiB parts -> 48 MiB).
    budget = min(96 << 20, (_vmem_capacity_bytes() * 3) // 4)

    tb, tn, b_pad = _choose_tiles(batch, h_pad, budget, single_buffer,
                                  out_bytes, max_batch_tile)
    vmem_limit = int(min(max(_vmem_need(tb, tn, h_pad, single_buffer, out_bytes),
                             16 << 20), budget))

    return _icm_forward_padded(
        st_0, st_1, prep["w1a"], prep["w1b"], prep["b1"], prep["w2"],
        prep["b2"], prep["w3"], prep["b3"],
        tb=tb, tn=tn, b_pad=b_pad, h_out=h, vmem_limit=vmem_limit,
        single_buffer=single_buffer, out_f32=out_f32)


# ----------------------------------------------------------------------------
# Param init + references (for the self-test)
# ----------------------------------------------------------------------------
def init_params(key, llm_hidden_size):
    """Deterministic synthetic init mirroring the PyTorch module's shapes."""
    ks = jax.random.split(key, 6)

    def uniform_like(k, shape, fan_in):
        bound = 1.0 / jnp.sqrt(fan_in)
        return jax.random.uniform(k, shape, jnp.float32, -bound, bound)

    return {
        "w1": uniform_like(ks[0], (D_HID, 2 * D_IN), 2 * D_IN),
        "b1": uniform_like(ks[1], (D_HID,), 2 * D_IN),
        "w2": uniform_like(ks[2], (D_HID, D_HID), D_HID),
        "b2": uniform_like(ks[3], (D_HID,), D_HID),
        "w3": uniform_like(ks[4], (llm_hidden_size, D_HID), D_HID),
        "b3": uniform_like(ks[5], (llm_hidden_size,), D_HID),
    }


def _reference_forward_f32(st_0, st_1, params):
    """Exact PyTorch-semantics reference in f32."""
    x = jnp.concatenate([st_0, st_1], axis=-1)
    h1 = jax.nn.sigmoid(x @ params["w1"].T + params["b1"])
    h2 = jax.nn.sigmoid(h1 @ params["w2"].T + params["b2"])
    return h2 @ params["w3"].T + params["b3"]


def _reference_forward_bf16(st_0, st_1, prep):
    """Reference with the same bf16 quantization / sigmoid form the kernel uses."""
    h = prep["llm_hidden_size"]
    st0 = st_0.astype(jnp.bfloat16)
    st1 = st_1.astype(jnp.bfloat16)
    h1 = (jnp.dot(st0, prep["w1a"], preferred_element_type=jnp.float32)
          + jnp.dot(st1, prep["w1b"], preferred_element_type=jnp.float32)
          + prep["b1"])
    h1 = _sigmoid(h1).astype(jnp.bfloat16)
    h2 = jnp.dot(h1, prep["w2"], preferred_element_type=jnp.float32) + prep["b2"]
    h2 = _sigmoid(h2).astype(jnp.bfloat16)
    out = jnp.dot(h2, prep["w3"], preferred_element_type=jnp.float32) + prep["b3"]
    return out[:, :h]


if __name__ == "__main__":
    key = jax.random.PRNGKey(0)
    k0, k1, kp = jax.random.split(key, 3)

    B = 8                 # small batch
    llm_hidden_size = 32  # small synthetic hidden size (padded to 128 inside)

    st_0 = jax.random.normal(k0, (B, D_IN), jnp.float32)
    st_1 = jax.random.normal(k1, (B, D_IN), jnp.float32)
    params = init_params(kp, llm_hidden_size)
    prep = prepare_params(params)   # one-time layout/dtype conversion + W3 padding

    out = icm_inverse_forward(st_0, st_1, prep)
    out = jax.block_until_ready(out)
    assert out.shape == (B, llm_hidden_size)
    assert out.dtype == jnp.float32

    # Tight check vs. a reference using the same bf16 quantization choices.
    ref_q = _reference_forward_bf16(st_0, st_1, prep)
    assert jnp.allclose(out, ref_q, atol=2e-3, rtol=2e-3), (
        float(jnp.max(jnp.abs(out - ref_q))))

    # Loose sanity check vs. the exact f32 PyTorch-semantics reference
    # (difference is purely bf16 weight/activation quantization).
    ref = _reference_forward_f32(st_0, st_1, params)
    assert jnp.allclose(out, ref, atol=5e-2, rtol=5e-2), (
        float(jnp.max(jnp.abs(out - ref))))

    # Second small case exercising non-multiple batch / hidden padding + slicing.
    B2, H2 = 20, 300
    st_0b = jax.random.normal(jax.random.PRNGKey(1), (B2, D_IN), jnp.float32)
    st_1b = jax.random.normal(jax.random.PRNGKey(2), (B2, D_IN), jnp.float32)
    params2 = init_params(jax.random.PRNGKey(3), H2)
    prep2 = prepare_params(params2)
    out2 = jax.block_until_ready(icm_inverse_forward(st_0b, st_1b, prep2))
    assert out2.shape == (B2, H2)
    ref2_q = _reference_forward_bf16(st_0b, st_1b, prep2)
    assert jnp.allclose(out2, ref2_q, atol=2e-3, rtol=2e-3), (
        float(jnp.max(jnp.abs(out2 - ref2_q))))

    print("KERNEL_OK")
</pallas_src>

<mosaic_0001>
module attributes {stable_mosaic.version = 11 : i64} {
  func.func @_probe_kernel(%arg0: i32, %arg1: memref<8x128xf32, #tpu.memory_space<vmem>>, %arg2: memref<8x128xf32, #tpu.memory_space<vmem>>, %arg3: memref<8x128xf32, #tpu.memory_space<vmem>>) attributes {dimension_semantics = [#tpu.dimension_semantics<arbitrary>], iteration_bounds = array<i64: 2>, scalar_prefetch = 0 : i64, scratch_operands = 0 : i64, tpu.core_type = #tpu.core_type<tc>, window_params = [{transform_indices = @transform_0, window_bounds = array<i64: 8, 128>}, {pipeline_mode = #tpu.pipeline_mode<synchronous>, transform_indices = @transform_1, window_bounds = array<i64: 8, 128>}, {transform_indices = @transform_2, window_bounds = array<i64: 8, 128>}]} {
    %c0 = arith.constant 0 : index
    %c0_0 = arith.constant 0 : index
    %0 = vector.load %arg1[%c0, %c0_0] : memref<8x128xf32, #tpu.memory_space<vmem>>, vector<8x128xf32>
    %c0_1 = arith.constant 0 : index
    %c0_2 = arith.constant 0 : index
    %1 = vector.load %arg2[%c0_1, %c0_2] : memref<8x128xf32, #tpu.memory_space<vmem>>, vector<8x128xf32>
    %2 = arith.addf %0, %1 : vector<8x128xf32>
    %c0_3 = arith.constant 0 : index
    %c0_4 = arith.constant 0 : index
    %3 = vector.load %arg3[%c0_3, %c0_4] : memref<8x128xf32, #tpu.memory_space<vmem>>, vector<8x128xf32>
    tpu.vector_store %arg3[%c0_3, %c0_4], %2 {strides = array<i32>} : memref<8x128xf32, #tpu.memory_space<vmem>>, vector<8x128xf32>,
    return
  }
  func.func @transform_0(%arg0: i32) -> (i32, i32) {
    %c0_i32 = arith.constant 0 : i32
    %c0_i32_0 = arith.constant 0 : i32
    return %arg0, %c0_i32 : i32, i32
  }
  func.func @transform_1(%arg0: i32) -> (i32, i32) {
    %c0_i32 = arith.constant 0 : i32
    %c0_i32_0 = arith.constant 0 : i32
    %c0_i32_1 = arith.constant 0 : i32
    return %c0_i32, %c0_i32_0 : i32, i32
  }
  func.func @transform_2(%arg0: i32) -> (i32, i32) {
    %c0_i32 = arith.constant 0 : i32
    %c0_i32_0 = arith.constant 0 : i32
    return %arg0, %c0_i32 : i32, i32
  }
}

module attributes {stable_mosaic.version = 11 : i64} {
  func.func @_icm_inverse_kernel(%arg0: i32, %arg1: i32, %arg2: memref<16x1024xbf16, #tpu.memory_space<vmem>>, %arg3: memref<16x1024xbf16, #tpu.memory_space<vmem>>, %arg4: memref<1024x1024xbf16, #tpu.memory_space<vmem>>, %arg5: memref<1024x1024xbf16, #tpu.memory_space<vmem>>, %arg6: memref<1x1024xf32, #tpu.memory_space<vmem>>, %arg7: memref<1024x1024xbf16, #tpu.memory_space<vmem>>, %arg8: memref<1x1024xf32, #tpu.memory_space<vmem>>, %arg9: memref<1024x128xbf16, #tpu.memory_space<vmem>>, %arg10: memref<1x128xf32, #tpu.memory_space<vmem>>, %arg11: memref<16x128xf32, #tpu.memory_space<vmem>>, %arg12: memref<16x1024xbf16, #tpu.memory_space<vmem>>) attributes {dimension_semantics = [#tpu.dimension_semantics<parallel>, #tpu.dimension_semantics<arbitrary>], iteration_bounds = array<i64: 1, 1>, scalar_prefetch = 0 : i64, scratch_operands = 1 : i64, tpu.core_type = #tpu.core_type<tc>, window_params = [{transform_indices = @transform_0, window_bounds = array<i64: 16, 1024>}, {transform_indices = @transform_1, window_bounds = array<i64: 16, 1024>}, {pipeline_mode = #tpu.pipeline_mode<synchronous>, transform_indices = @transform_2, window_bounds = array<i64: 1024, 1024>}, {pipeline_mode = #tpu.pipeline_mode<synchronous>, transform_indices = @transform_3, window_bounds = array<i64: 1024, 1024>}, {pipeline_mode = #tpu.pipeline_mode<synchronous>, transform_indices = @transform_4, window_bounds = array<i64: 1, 1024>}, {pipeline_mode = #tpu.pipeline_mode<synchronous>, transform_indices = @transform_5, window_bounds = array<i64: 1024, 1024>}, {pipeline_mode = #tpu.pipeline_mode<synchronous>, transform_indices = @transform_6, window_bounds = array<i64: 1, 1024>}, {transform_indices = @transform_7, window_bounds = array<i64: 1024, 128>}, {transform_indices = @transform_8, window_bounds = array<i64: 1, 128>}, {transform_indices = @transform_9, window_bounds = array<i64: 16, 128>}]} {
    %c0_i32 = arith.constant 0 : i32
    %0 = arith.cmpi eq, %arg1, %c0_i32 : i32
    %1 = arith.extui %0 : i1 to i32
    %c0_i32_0 = arith.constant 0 : i32
    %2 = arith.cmpi ne, %1, %c0_i32_0 : i32
    scf.if %2 {
      %c0_8 = arith.constant 0 : index
      %c0_9 = arith.constant 0 : index
      %10 = vector.load %arg2[%c0_8, %c0_9] : memref<16x1024xbf16, #tpu.memory_space<vmem>>, vector<16x1024xbf16>
      %c0_10 = arith.constant 0 : index
      %c0_11 = arith.constant 0 : index
      %11 = vector.load %arg4[%c0_10, %c0_11] : memref<1024x1024xbf16, #tpu.memory_space<vmem>>, vector<1024x1024xbf16>
      %cst_12 = arith.constant dense<0.000000e+00> : vector<16x1024xf32>
      %12 = tpu.matmul %10, %11, %cst_12 {dimension_numbers = #tpu.dot_dimension_numbers<[1], [0], [0], [1], [0, 0, 1, 1], [], []>} : vector<16x1024xbf16>, vector<1024x1024xbf16>, vector<16x1024xf32> -> vector<16x1024xf32>
      %c0_13 = arith.constant 0 : index
      %c0_14 = arith.constant 0 : index
      %13 = vector.load %arg3[%c0_13, %c0_14] : memref<16x1024xbf16, #tpu.memory_space<vmem>>, vector<16x1024xbf16>
      %c0_15 = arith.constant 0 : index
      %c0_16 = arith.constant 0 : index
      %14 = vector.load %arg5[%c0_15, %c0_16] : memref<1024x1024xbf16, #tpu.memory_space<vmem>>, vector<1024x1024xbf16>
      %cst_17 = arith.constant dense<0.000000e+00> : vector<16x1024xf32>
      %15 = tpu.matmul %13, %14, %cst_17 {dimension_numbers = #tpu.dot_dimension_numbers<[1], [0], [0], [1], [0, 0, 1, 1], [], []>} : vector<16x1024xbf16>, vector<1024x1024xbf16>, vector<16x1024xf32> -> vector<16x1024xf32>
      %16 = arith.addf %12, %15 : vector<16x1024xf32>
      %c0_18 = arith.constant 0 : index
      %c0_19 = arith.constant 0 : index
      %17 = vector.load %arg6[%c0_18, %c0_19] : memref<1x1024xf32, #tpu.memory_space<vmem>>, vector<1x1024xf32>
      %18 = vector.broadcast %17 : vector<1x1024xf32> to vector<16x1024xf32>
      %19 = arith.addf %16, %18 : vector<16x1024xf32>
      %cst_20 = arith.constant 5.000000e-01 : f32
      %20 = vector.broadcast %cst_20 : f32 to vector<16x1024xf32>
      %21 = arith.mulf %20, %19 : vector<16x1024xf32>
      %22 = math.tanh %21 : vector<16x1024xf32>
      %cst_21 = arith.constant 5.000000e-01 : f32
      %23 = vector.broadcast %cst_21 : f32 to vector<16x1024xf32>
      %24 = arith.mulf %23, %22 : vector<16x1024xf32>
      %cst_22 = arith.constant 5.000000e-01 : f32
      %25 = vector.broadcast %cst_22 : f32 to vector<16x1024xf32>
      %26 = arith.addf %24, %25 : vector<16x1024xf32>
      %27 = arith.truncf %26 : vector<16x1024xf32> to vector<16x1024xbf16>
      %c0_23 = arith.constant 0 : index
      %c0_24 = arith.constant 0 : index
      %28 = vector.load %arg7[%c0_23, %c0_24] : memref<1024x1024xbf16, #tpu.memory_space<vmem>>, vector<1024x1024xbf16>
      %cst_25 = arith.constant dense<0.000000e+00> : vector<16x1024xf32>
      %29 = tpu.matmul %27, %28, %cst_25 {dimension_numbers = #tpu.dot_dimension_numbers<[1], [0], [0], [1], [0, 0, 1, 1], [], []>} : vector<16x1024xbf16>, vector<1024x1024xbf16>, vector<16x1024xf32> -> vector<16x1024xf32>
      %c0_26 = arith.constant 0 : index
      %c0_27 = arith.constant 0 : index
      %30 = vector.load %arg8[%c0_26, %c0_27] : memref<1x1024xf32, #tpu.memory_space<vmem>>, vector<1x1024xf32>
      %31 = vector.broadcast %30 : vector<1x1024xf32> to vector<16x1024xf32>
      %32 = arith.addf %29, %31 : vector<16x1024xf32>
      %cst_28 = arith.constant 5.000000e-01 : f32
      %33 = vector.broadcast %cst_28 : f32 to vector<16x1024xf32>
      %34 = arith.mulf %33, %32 : vector<16x1024xf32>
      %35 = math.tanh %34 : vector<16x1024xf32>
      %cst_29 = arith.constant 5.000000e-01 : f32
      %36 = vector.broadcast %cst_29 : f32 to vector<16x1024xf32>
      %37 = arith.mulf %36, %35 : vector<16x1024xf32>
      %cst_30 = arith.constant 5.000000e-01 : f32
      %38 = vector.broadcast %cst_30 : f32 to vector<16x1024xf32>
      %39 = arith.addf %37, %38 : vector<16x1024xf32>
      %40 = arith.truncf %39 : vector<16x1024xf32> to vector<16x1024xbf16>
      %c0_31 = arith.constant 0 : index
      %c0_32 = arith.constant 0 : index
      %41 = vector.load %arg12[%c0_31, %c0_32] : memref<16x1024xbf16, #tpu.memory_space<vmem>>, vector<16x1024xbf16>
      tpu.vector_store %arg12[%c0_31, %c0_32], %40 {strides = array<i32>} : memref<16x1024xbf16, #tpu.memory_space<vmem>>, vector<16x1024xbf16>,
    } else {
    }
    %c0 = arith.constant 0 : index
    %c0_1 = arith.constant 0 : index
    %3 = vector.load %arg12[%c0, %c0_1] : memref<16x1024xbf16, #tpu.memory_space<vmem>>, vector<16x1024xbf16>
    %c0_2 = arith.constant 0 : index
    %c0_3 = arith.constant 0 : index
    %4 = vector.load %arg9[%c0_2, %c0_3] : memref<1024x128xbf16, #tpu.memory_space<vmem>>, vector<1024x128xbf16>
    %cst = arith.constant dense<0.000000e+00> : vector<16x128xf32>
    %5 = tpu.matmul %3, %4, %cst {dimension_numbers = #tpu.dot_dimension_numbers<[1], [0], [0], [1], [0, 0, 1, 1], [], []>} : vector<16x1024xbf16>, vector<1024x128xbf16>, vector<16x128xf32> -> vector<16x128xf32>
    %c0_4 = arith.constant 0 : index
    %c0_5 = arith.constant 0 : index
    %6 = vector.load %arg10[%c0_4, %c0_5] : memref<1x128xf32, #tpu.memory_space<vmem>>, vector<1x128xf32>
    %7 = vector.broadcast %6 : vector<1x128xf32> to vector<16x128xf32>
    %8 = arith.addf %5, %7 : vector<16x128xf32>
    %c0_6 = arith.constant 0 : index
    %c0_7 = arith.constant 0 : index
    %9 = vector.load %arg11[%c0_6, %c0_7] : memref<16x128xf32, #tpu.memory_space<vmem>>, vector<16x128xf32>
    tpu.vector_store %arg11[%c0_6, %c0_7], %8 {strides = array<i32>} : memref<16x128xf32, #tpu.memory_space<vmem>>, vector<16x128xf32>,
    return
  }
  func.func @transform_0(%arg0: i32, %arg1: i32) -> (i32, i32) {
    %c0_i32 = arith.constant 0 : i32
    %c0_i32_0 = arith.constant 0 : i32
    return %arg0, %c0_i32 : i32, i32
  }
  func.func @transform_1(%arg0: i32, %arg1: i32) -> (i32, i32) {
    %c0_i32 = arith.constant 0 : i32
    %c0_i32_0 = arith.constant 0 : i32
    return %arg0, %c0_i32 : i32, i32
  }
  func.func @transform_2(%arg0: i32, %arg1: i32) -> (i32, i32) {
    %c0_i32 = arith.constant 0 : i32
    %c0_i32_0 = arith.constant 0 : i32
    %c0_i32_1 = arith.constant 0 : i32
    return %c0_i32, %c0_i32_0 : i32, i32
  }
  func.func @transform_3(%arg0: i32, %arg1: i32) -> (i32, i32) {
    %c0_i32 = arith.constant 0 : i32
    %c0_i32_0 = arith.constant 0 : i32
    %c0_i32_1 = arith.constant 0 : i32
    return %c0_i32, %c0_i32_0 : i32, i32
  }
  func.func @transform_4(%arg0: i32, %arg1: i32) -> (i32, i32) {
    %c0_i32 = arith.constant 0 : i32
    %c0_i32_0 = arith.constant 0 : i32
    %c0_i32_1 = arith.constant 0 : i32
    return %c0_i32, %c0_i32_0 : i32, i32
  }
  func.func @transform_5(%arg0: i32, %arg1: i32) -> (i32, i32) {
    %c0_i32 = arith.constant 0 : i32
    %c0_i32_0 = arith.constant 0 : i32
    %c0_i32_1 = arith.constant 0 : i32
    return %c0_i32, %c0_i32_0 : i32, i32
  }
  func.func @transform_6(%arg0: i32, %arg1: i32) -> (i32, i32) {
    %c0_i32 = arith.constant 0 : i32
    %c0_i32_0 = arith.constant 0 : i32
    %c0_i32_1 = arith.constant 0 : i32
    return %c0_i32, %c0_i32_0 : i32, i32
  }
  func.func @transform_7(%arg0: i32, %arg1: i32) -> (i32, i32) {
    %c0_i32 = arith.constant 0 : i32
    %c0_i32_0 = arith.constant 0 : i32
    return %c0_i32, %arg1 : i32, i32
  }
  func.func @transform_8(%arg0: i32, %arg1: i32) -> (i32, i32) {
    %c0_i32 = arith.constant 0 : i32
    %c0_i32_0 = arith.constant 0 : i32
    return %c0_i32, %arg1 : i32, i32
  }
  func.func @transform_9(%arg0: i32, %arg1: i32) -> (i32, i32) {
    %c0_i32 = arith.constant 0 : i32
    return %arg0, %arg1 : i32, i32
  }
}

</mosaic_0001>

<bundles_post_ra>
// kernel: tpu_custom_call.1
= control target key start
LH: loop header
LB: loop body
LE: loop exit
PB: predicated region body
PF: predicated region fallthrough
CT: control target
= control target key end

     0   :  { %7 = vsyncpa [#allocation3], 0  ;;  %s690_s0 = inlined_call_operand.hbm [shape: f32[16,128], index: 0, kind: input, shape index: {}]   ;;  %s691_s1 = inlined_call_operand.hbm [shape: f32[8,128], index: 1, kind: input, shape index: {}]   ;;  %s692_s2 = inlined_call_operand.hbm [shape: f32[16,128], index: 2, kind: output, shape index: {}]  }
   0x1   :  { %9 = vsyncpa [#allocation3 + $0x1], 0 }
   0x2   :  { %10 = vsyncpa [#allocation6], 0 }
   0x3   :  { %11 = vsyncpa [#allocation4], 0 }
   0x4   :  { %13 = vsyncpa [#allocation4 + $0x1], 0  ;;  %s489_s9 = smov 0   ;;  %s491_s10 = smov 0  }
   0x5   :  { %s493_s11 = smov 0   ;;  %s495_s12 = smov 0  }
   0x6 LB: > { %s510_s13 = sadd.s32 4294967295, %s469_s12   ;;  %s270_s14 = sadd.s32 4294967294, %s469_s12   ;;  %s469_s12 = sphi %s495_s12, %s716_s12   ;;  %s465_s11 = sphi %s493_s11, %s715_s11   ;;  %s461_s10 = sphi %s491_s10, %s714_s10   ;;  %s457_s9 = sphi %s489_s9, %s713_s9  }
   0x7   : > { %p39_p0 = scmp.ne.s32.totalorder %s461_s10, %s457_s9  ;;  %p693_p1 = scmp.eq.s32.totalorder %s510_s13, 0 }
   0x8   : > { %p90_p3 = scmp.eq.s32.totalorder %s270_s14, 1  ;;  %p271_p5 = scmp.ge.s32.totalorder %s469_s12, 1 }
   0x9   : > { %p519_p4 = por %p693_p1, %p39_p0  ;;  %p97_p7 = scmp.lt.s32.totalorder %s469_s12, 3 }
   0xa   : > { %p524_p6 = por %p90_p3, %p39_p0  ;;  %s471_s18 = smov [#allocation5]  }
   0xb   : > { %s696_s15 = scalar_select %p519_p4, 1, 0 }
   0xc   : > { %s697_s16 = scalar_select %p524_p6, 1, 0 }
   0xd   : > { %p529_p8 = pnand %p271_p5, %p97_p7  ;;  %s110_s19 = sshll.u32 %s471_s18, 4  ;;  %s111_s19 = int_to_ptr.vmem [resolvable:$true] %s110_s19 }
   0xe   : > { %s537_s20 = sadd.s32 1, %s469_s12   ;;  %s26_s24 = sadd.s32 1, %s465_s11 }
   0xf   : > { %s698_s17 = scalar_select %p529_p8, 1, 0 }
  0x10   : > { %p292_p10 = pneg %p529_p8  ;;  %s23_s22 = ssub.s32 %s469_s12, %s537_s20 }
  0x11   : > { %p547_p12 = scmp.eq.s32.totalorder %s23_s22, 0  ;;  %s341_s27 = scalar_lea.hbm %s691_s1, 128 }
  0x12   : > { %p541_p11 = pnand %p292_p10, %p693_p1  ;;  %p342_p0 = scmp.ne.s32.totalorder %s691_s1, %s341_s27 }
  0x13   : > { %s700_s23 = scalar_select %p547_p12, 1, 0 }
  0x14   : > { %p343_p3 = pneg %p541_p11  ;;  %p348_p10 = scmp.lt.u32.totalorder %s341_s27, %s691_s1 }
  0x16   : > { %p344_p5 = pnand %p343_p3, %p342_p0 }
  0x18   : > { %p345_p7 = pneg %p344_p5 }
  0x1a   : > { %p350_p9 = pnand %p348_p10, %p345_p7 }
  0x1c   : > { %353 = shalt.err (!%p350_p9)
}
  0x1d   : > { %s354_s4 = scalar_lea.vmem %s111_s19, 128  ;;  %p362_p6 = scmp.lt.s32.totalorder %s111_s19, %s111_s19 }
  0x1e   : > { %p355_p1 = scmp.ne.s32.totalorder %s111_s19, %s354_s4  ;;  %p363_p4 = scmp.lt.s32.totalorder %s354_s4, %s354_s4 }
  0x20   : > { %p357_p2 = pnand %p355_p1, %p343_p3  ;;  %p364_p8 = por %p363_p4, %p362_p6 }
  0x22   : > { %p358_p13 = pneg %p357_p2 }
  0x24   : > { %p365_p12 = pnand %p364_p8, %p358_p13 }
  0x26   : > { %368 = shalt.err (!%p365_p12)
}
  0x27   : > { %295 = dma.hbm_to_vmem [thread:$0]  (!%p541_p11), %s691_s1, 128, %s111_s19, [#allocation6]  }
  0x28   : > { %p701_p1 = scmp.ne.s32.totalorder %s700_s23, 0  ;;  %p34_p2 = scmp.eq.s32.totalorder %s469_s12, 0 }
  0x29   : > { %p702_p4 = scmp.ne.s32.totalorder %s465_s11, %s461_s10  ;;  %p703_p6 = scmp.eq.s32.totalorder %s510_s13, 1 }
  0x2a   : > { %s573_s7 = scalar_select %p701_p1, %s465_s11, %s26_s24  }
  0x2b   : > { %p581_p8 = por %p703_p6, %p702_p4  ;;  %p305_p9 = scmp.lt.s32.totalorder %s469_s12, 2 }
  0x2c   : > { %s121_s14 = sand.u32 1, %s465_s11   ;;  %p705_p12 = pmov %p702_p4 }
  0x2d   : > { %s274_s18 = sshll.u32 %s121_s14, 3  ;;  %s275_s21 = sshll.u32 %s469_s12, 7 }
  0x2e   : > { %p35_p13 = por %p34_p2, %p705_p12  ;;  %s594_s19 = scalar_lea.hbm %s690_s0, %s275_s21 }
  0x2f   : > { %s125_s23 = scalar_lea.vmem [#allocation2], %s274_s18  ;;  %s122_s27 = scalar_lea.sflag [#allocation3], %s121_s14 }
  0x30   : > { %s132_s24 = sshll.u32 %s125_s23, 4  ;;  %p596_p11 = pnand %p305_p9, %p35_p13  ;;  %s600_s24 = int_to_ptr.vmem [resolvable:$true] %s132_s24 }
  0x31   : > { %s369_s28 = scalar_lea.hbm %s594_s19, 128  ;;  %s374_s3 = scalar_lea.hbm %s690_s0, 256 }
  0x32   : > { %p370_p0 = scmp.ne.s32.totalorder %s594_s19, %s369_s28  ;;  %p371_p3 = pneg %p596_p11 }
  0x33   : > { %p375_p10 = scmp.lt.u32.totalorder %s594_s19, %s690_s0  ;;  %p376_p1 = scmp.lt.u32.totalorder %s374_s3, %s369_s28 }
  0x34   : > { %p372_p5 = pnand %p371_p3, %p370_p0  ;;  %p378_p4 = scmp.lt.u32.totalorder %s369_s28, %s594_s19 }
  0x35   : > { %p377_p2 = por %p376_p1, %p375_p10 }
  0x36   : > { %p373_p7 = pneg %p372_p5 }
  0x37   : > { %p379_p6 = por %p378_p4, %p377_p2 }
  0x39   : > { %p380_p9 = pnand %p379_p6, %p373_p7 }
  0x3b   : > { %383 = shalt.err (!%p380_p9)
}
  0x3c   : > { %s384_s6 = scalar_lea.vmem %s600_s24, 128  ;;  %s472_s14 = smov [#allocation2]  }
  0x3d   : > { %p385_p12 = scmp.ne.s32.totalorder %s600_s24, %s384_s6  ;;  %s389_s18 = sshll.u32 %s472_s14, 4  ;;  %s390_s18 = int_to_ptr.vmem [resolvable:$false] %s389_s18 }
  0x3e   : > { %s391_s21 = scalar_lea.vmem %s390_s18, 256  ;;  %p392_p5 = scmp.lt.s32.totalorder %s600_s24, %s390_s18 }
  0x3f   : > { %p387_p13 = pnand %p385_p12, %p371_p3  ;;  %p393_p10 = scmp.lt.s32.totalorder %s391_s21, %s384_s6 }
  0x41   : > { %p388_p0 = pneg %p387_p13  ;;  %p394_p1 = por %p393_p10, %p392_p5 }
  0x43   : > { %p395_p2 = pnand %p394_p1, %p388_p0 }
  0x45   : > { %398 = shalt.err (!%p395_p2)
}
  0x46   : > { %299 = dma.hbm_to_vmem [thread:$0]  (!%p596_p11), %s594_s19, 128, %s600_s24, %s122_s27  }
  0x47   : > { %p707_p7 = scmp.ne.s32.totalorder %s698_s17, 0 }
  0x48   : > { %s630_s22 = sand.u32 (!%p707_p7), 1, %s461_s10   ;;  %p708_p3 = scmp.ne.s32.totalorder (!%p707_p7), %s696_s15, 0 }
  0x49   : > { %141 = sbr.rel (%p707_p7) target bundleno = 109 (0x6d), region = 28  ;;  %s277_s25 = sshll.u32 (!%p707_p7), %s630_s22, 3 }
  0x4a   : > { %s144_s23 = scalar_lea.sflag (!%p707_p7), [#allocation3], %s630_s22  ;;  %s147_s28 = scalar_lea.vmem (!%p707_p7), [#allocation2], %s277_s25 }
  0x50   : > { %444 = dma.done.wait (%p708_p3), %s144_s23, 128  }
  0x51   : > { %446 = vsyncadd (%p708_p3), %s144_s23, 4294967168  ;;  %p709_p4 = scmp.eq.s32.totalorder %s510_s13, 0 }
  0x53   : > { %448 = dma.done.wait (%p709_p4), [#allocation6], 128   ;;  %p710_p11 = pmov %p709_p4 }
  0x54   : > { %s171_s17 = scalar_lea.vmem [#allocation7], %s277_s25  ;;  %s281_s24 = sshll.u32 %s510_s13, 7  ;;  %v172_v0 = vld [vmem:[%s147_s28] sm:$0xff]  ;;  %v173_v1 = vld [vmem:[#allocation5] sm:$0xff] }
  0x55   : > { %450 = vsyncadd (%p710_p11), [#allocation6], 4294967168  ;;  %s190_s19 = sshll.u32 %s171_s17, 4  ;;  %v174_v2 = vadd.f32 %v173_v1, %v172_v0  ;;  %s648_s27 = scalar_lea.hbm %s692_s2, %s281_s24  ;;  %s643_s19 = int_to_ptr.vmem [resolvable:$true] %s190_s19 }
  0x56   : > { %s177_s29 = scalar_lea.sflag [#allocation4], %s630_s22  ;;  %s399_s30 = scalar_lea.vmem %s643_s19, 128 }
  0x57   : > { %175 = vst [vmem:[%s171_s17] sm:$0xff] %v174_v2  ;;  %p400_p6 = scmp.ne.s32.totalorder %s643_s19, %s399_s30  ;;  %s473_s13 = smov [#allocation7]  }
  0x58   : > { %s403_s3 = sshll.u32 %s473_s13, 4  ;;  %s404_s3 = int_to_ptr.vmem [resolvable:$false] %s403_s3 }
  0x59   : > { %p401_p9 = pnand %p400_p6, %p581_p8  ;;  %s405_s4 = scalar_lea.vmem %s404_s3, 256 }
  0x5a   : > { %p406_p13 = scmp.lt.s32.totalorder %s643_s19, %s404_s3  ;;  %p407_p0 = scmp.lt.s32.totalorder %s405_s4, %s399_s30 }
  0x5b   : > { %p402_p12 = pneg %p401_p9 }
  0x5c   : > { %p408_p5 = por %p407_p0, %p406_p13 }
  0x5e   : > { %p409_p10 = pnand %p408_p5, %p402_p12 }
  0x60   : > { %412 = shalt.err (!%p409_p10)
}
  0x61   : > { %s413_s5 = scalar_lea.hbm %s648_s27, 128  ;;  %s417_s18 = scalar_lea.hbm %s692_s2, 256 }
  0x62   : > { %p414_p1 = scmp.ne.s32.totalorder %s648_s27, %s413_s5  ;;  %p418_p3 = scmp.lt.u32.totalorder %s648_s27, %s692_s2 }
  0x63   : > { %p419_p4 = scmp.lt.u32.totalorder %s417_s18, %s413_s5  ;;  %p421_p6 = scmp.lt.u32.totalorder %s413_s5, %s648_s27 }
  0x64   : > { %p415_p2 = pnand %p414_p1, %p581_p8 }
  0x65   : > { %p420_p11 = por %p419_p4, %p418_p3 }
  0x66   : > { %p416_p7 = pneg %p415_p2 }
  0x67   : > { %p422_p9 = por %p421_p6, %p420_p11 }
  0x69   : > { %p423_p12 = pnand %p422_p9, %p416_p7 }
  0x6b   : > { %426 = shalt.err (!%p423_p12)
}
  0x6c   : > { %290 = dma.vmem_to_hbm [thread:$0]  (%p581_p8), %s643_s19, 128, %s648_s27, %s177_s29  }
  0x6d PF: > { %s202_s25 = sand.u32 1, %s457_s9   ;;  %p711_p13 = scmp.ne.s32.totalorder %s697_s16, 0 }
  0x6e   : > { %p712_p0 = scmp.ge.s32.totalorder %s469_s12, 2  ;;  %s203_s23 = scalar_lea.sflag [#allocation4], %s202_s25 }
  0x70   : > { %p301_p5 = pnand %p712_p0, %p711_p13 }
  0x72   : > { %452 = dma.done.wait (!%p301_p5), %s203_s23, 128  }
  0x73   : > { %454 = vsyncadd (!%p301_p5), %s203_s23, 4294967168  ;;  %p16_p10 = scmp.ge.s32.totalorder %s537_s20, 4   ;;  %s713_s9 = smov %s461_s10 }
  0x74   : > { %s714_s10 = smov %s465_s11  ;;  %s715_s11 = smov %s573_s7 }
  0x75   : > { %s716_s12 = smov %s537_s20  ;;  %18 = sbr.rel (!%p16_p10) target bundleno = 6 (0x6), region = 77 }
  0x7c   :  { %208 = vsyncpa [#allocation3], 1 }
  0x7d   :  { %210 = vsyncpa [#allocation3 + $0x1], 1 }
  0x7e   :  { %211 = vsyncpa [#allocation6], 1 }
  0x7f   :  { %212 = vsyncpa [#allocation4], 1 }
  0x80   :  { %214 = vsyncpa [#allocation4 + $0x1], 1 }

// kernel: _icm_forward_padded.1
= control target key start
LH: loop header
LB: loop body
LE: loop exit
PB: predicated region body
PF: predicated region fallthrough
CT: control target
= control target key end

     0   :  { %14 = vsyncpa [#allocation4], 0  ;;  %s15160_s0 = inlined_call_operand.vmem [shape: bf16[16,1024], index: 0, kind: input, shape index: {}]   ;;  %s15161_s1 = inlined_call_operand.vmem [shape: bf16[16,1024], index: 1, kind: input, shape index: {}]   ;;  %s15162_s2 = inlined_call_operand.hbm [shape: bf16[1024,1024], index: 2, kind: input, shape index: {}]   ;;  %s15163_s3 = inlined_call_operand.hbm [shape: bf16[1024,1024], index: 3, kind: input, shape index: {}]   ;;  %s15164_s4 = inlined_call_operand.hbm [shape: f32[1,1024], index: 4, kind: input, shape index: {}]   ;;  %s15165_s5 = inlined_call_operand.hbm [shape: bf16[1024,1024], index: 5, kind: input, shape index: {}]   ;;  %s15166_s6 = inlined_call_operand.hbm [shape: f32[1,1024], index: 6, kind: input, shape index: {}]   ;;  %s15167_s7 = inlined_call_operand.hbm [shape: bf16[1024,128], index: 7, kind: input, shape index: {}]   ;;  %s15168_s8 = inlined_call_operand.hbm [shape: f32[1,128], index: 8, kind: input, shape index: {}]   ;;  %s15169_s9 = inlined_call_operand.vmem [shape: f32[16,128], index: 9, kind: output, shape index: {}]  }
   0x1   :  { %15 = vsyncpa [#allocation6], 0 }
   0x2   :  { %16 = vsyncpa [#allocation9], 0 }
   0x3   :  { %17 = vsyncpa [#allocation12], 0  ;;  %s14638_s30 = smov [#allocation5]   ;;  %s14639_s11 = smov [#allocation8]  }
   0x4   :  { %s39_s10 = sshll.u32 %s14638_s30, 4  ;;  %s61_s12 = sshll.u32 %s14639_s11, 4  ;;  %s40_s10 = int_to_ptr.vmem [resolvable:$true] %s39_s10  ;;  %s14699_s12 = int_to_ptr.vmem [resolvable:$true] %s61_s12 }
   0x5   :  { %s14476_s15 = scalar_lea.hbm %s15163_s3, 65536 }
   0x6   :  { %p14477_p0 = scmp.ne.s32.totalorder %s15163_s3, %s14476_s15  ;;  %p14480_p1 = scmp.lt.u32.totalorder %s14476_s15, %s15163_s3 }
   0x8   :  { %p14482_p2 = pnand %p14480_p1, %p14477_p0 }
   0xa   :  { %14485 = shalt.err (!%p14482_p2)
}
   0xb   :  { %s14486_s20 = scalar_lea.vmem %s40_s10, 65536  ;;  %p14491_p4 = scmp.lt.s32.totalorder %s40_s10, %s40_s10 }
   0xc   :  { %p14487_p3 = scmp.ne.s32.totalorder %s40_s10, %s14486_s20  ;;  %p14492_p5 = scmp.lt.s32.totalorder %s14486_s20, %s14486_s20 }
   0xe   :  { %p14493_p6 = por %p14492_p5, %p14491_p4 }
  0x10   :  { %p14494_p7 = pnand %p14493_p6, %p14487_p3 }
  0x12   :  { %14497 = shalt.err (!%p14494_p7)
}
  0x13   :  { %s14640_s21 = smov 512   ;;  %s14641_s22 = smov 32  }
  0x14   :  { %45 = dma.hbm_to_vmem [thread:$0]  %s15163_s3, 65536, %s40_s10, [#allocation6], %s14640_s21, %s14640_s21, %s14641_s22  }
  0x15   :  { %s14498_s27 = scalar_lea.hbm %s15165_s5, 65536 }
  0x16   :  { %p14499_p8 = scmp.ne.s32.totalorder %s15165_s5, %s14498_s27  ;;  %p14502_p9 = scmp.lt.u32.totalorder %s14498_s27, %s15165_s5 }
  0x18   :  { %p14504_p10 = pnand %p14502_p9, %p14499_p8 }
  0x1a   :  { %14507 = shalt.err (!%p14504_p10)
}
  0x1b   :  { %s14508_s13 = scalar_lea.vmem %s14699_s12, 65536  ;;  %p14513_p12 = scmp.lt.s32.totalorder %s14699_s12, %s14699_s12 }
  0x1c   :  { %p14509_p11 = scmp.ne.s32.totalorder %s14699_s12, %s14508_s13  ;;  %p14514_p13 = scmp.lt.s32.totalorder %s14508_s13, %s14508_s13 }
  0x1e   :  { %p14515_p0 = por %p14514_p13, %p14513_p12 }
  0x20   :  { %p14516_p1 = pnand %p14515_p0, %p14509_p11 }
  0x22   :  { %14519 = shalt.err (!%p14516_p1)
}
  0x23   :  { %67 = dma.hbm_to_vmem [thread:$0]  %s15165_s5, 65536, %s14699_s12, [#allocation9], %s14640_s21, %s14640_s21, %s14641_s22  }
  0x24   :  { %s14642_s14 = smov [#allocation11]   ;;  %s14520_s18 = scalar_lea.hbm %s15167_s7, 8192 }
  0x25   :  { %s83_s15 = sshll.u32 %s14642_s14, 4  ;;  %p14521_p2 = scmp.ne.s32.totalorder %s15167_s7, %s14520_s18  ;;  %s84_s15 = int_to_ptr.vmem [resolvable:$true] %s83_s15 }
  0x26   :  { %p14524_p3 = scmp.lt.u32.totalorder %s14520_s18, %s15167_s7 }
  0x28   :  { %p14526_p4 = pnand %p14524_p3, %p14521_p2 }
  0x2a   :  { %14529 = shalt.err (!%p14526_p4)
}
  0x2b   :  { %s14530_s25 = scalar_lea.vmem %s84_s15, 8192  ;;  %p14535_p6 = scmp.lt.s32.totalorder %s84_s15, %s84_s15 }
  0x2c   :  { %p14531_p5 = scmp.ne.s32.totalorder %s84_s15, %s14530_s25  ;;  %p14536_p7 = scmp.lt.s32.totalorder %s14530_s25, %s14530_s25 }
  0x2e   :  { %p14537_p8 = por %p14536_p7, %p14535_p6 }
  0x30   :  { %p14538_p9 = pnand %p14537_p8, %p14531_p5 }
  0x32   :  { %14541 = shalt.err (!%p14538_p9)
}
  0x33   :  { %s14643_s5 = smov 64   ;;  %s14644_s12 = smov 4  }
  0x34   :  { %89 = dma.hbm_to_vmem [thread:$0]  %s15167_s7, 8192, %s84_s15, [#allocation12], %s14643_s5, %s14643_s5, %s14644_s12  }
  0x35   :  { %s14645_s28 = smov [#allocation3]   ;;  %s14646_s30 = smov [#allocation7]  }
  0x36   :  { %s27_s29 = sshll.u32 %s14645_s28, 4  ;;  %s52_s11 = sshll.u32 %s14646_s30, 4  ;;  %s28_s29 = int_to_ptr.vmem [resolvable:$true] %s27_s29  ;;  %s53_s11 = int_to_ptr.vmem [resolvable:$true] %s52_s11 }
  0x37   :  { %s14542_s10 = scalar_lea.hbm %s15162_s2, 65536 }
  0x38   :  { %p14543_p10 = scmp.ne.s32.totalorder %s15162_s2, %s14542_s10  ;;  %p14546_p11 = scmp.lt.u32.totalorder %s14542_s10, %s15162_s2 }
  0x3a   :  { %p14548_p12 = pnand %p14546_p11, %p14543_p10 }
  0x3c   :  { %14551 = shalt.err (!%p14548_p12)
}
  0x3d   :  { %s14552_s7 = scalar_lea.vmem %s28_s29, 65536  ;;  %p14557_p0 = scmp.lt.s32.totalorder %s28_s29, %s28_s29 }
  0x3e   :  { %p14553_p13 = scmp.ne.s32.totalorder %s28_s29, %s14552_s7  ;;  %p14558_p1 = scmp.lt.s32.totalorder %s14552_s7, %s14552_s7 }
  0x40   :  { %p14559_p2 = por %p14558_p1, %p14557_p0 }
  0x42   :  { %p14560_p3 = pnand %p14559_p2, %p14553_p13 }
  0x44   :  { %14563 = shalt.err (!%p14560_p3)
}
  0x45   :  { %33 = dma.hbm_to_vmem [thread:$0]  %s15162_s2, 65536, %s28_s29, [#allocation4], %s14640_s21, %s14640_s21, %s14641_s22  }
  0x46   :  { %s14564_s24 = scalar_lea.hbm %s15164_s4, 128 }
  0x47   :  { %p14565_p4 = scmp.ne.s32.totalorder %s15164_s4, %s14564_s24  ;;  %p14568_p5 = scmp.lt.u32.totalorder %s14564_s24, %s15164_s4 }
  0x49   :  { %p14570_p6 = pnand %p14568_p5, %p14565_p4 }
  0x4b   :  { %14573 = shalt.err (!%p14570_p6)
}
  0x4c   :  { %s14574_s27 = scalar_lea.vmem %s53_s11, 128  ;;  %p14579_p8 = scmp.lt.s32.totalorder %s53_s11, %s53_s11 }
  0x4d   :  { %p14575_p7 = scmp.ne.s32.totalorder %s53_s11, %s14574_s27  ;;  %p14580_p9 = scmp.lt.s32.totalorder %s14574_s27, %s14574_s27 }
  0x4f   :  { %p14581_p10 = por %p14580_p9, %p14579_p8 }
  0x51   :  { %p14582_p11 = pnand %p14581_p10, %p14575_p7 }
  0x53   :  { %14585 = shalt.err (!%p14582_p11)
}
  0x54   :  { %55 = dma.hbm_to_vmem [thread:$0]  %s15164_s4, 128, %s53_s11, [#allocation6]  }
  0x55   :  { %s14647_s22 = smov [#allocation10]   ;;  %s14648_s29 = smov [#allocation13]  }
  0x56   :  { %s74_s28 = sshll.u32 %s14647_s22, 4  ;;  %s96_s30 = sshll.u32 %s14648_s29, 4  ;;  %s75_s28 = int_to_ptr.vmem [resolvable:$true] %s74_s28  ;;  %s97_s30 = int_to_ptr.vmem [resolvable:$true] %s96_s30 }
  0x57   :  { %s14586_s10 = scalar_lea.hbm %s15166_s6, 128 }
  0x58   :  { %p14587_p12 = scmp.ne.s32.totalorder %s15166_s6, %s14586_s10  ;;  %p14590_p13 = scmp.lt.u32.totalorder %s14586_s10, %s15166_s6 }
  0x5a   :  { %p14592_p0 = pnand %p14590_p13, %p14587_p12 }
  0x5c   :  { %14595 = shalt.err (!%p14592_p0)
}
  0x5d   :  { %s14596_s4 = scalar_lea.vmem %s75_s28, 128  ;;  %p14601_p2 = scmp.lt.s32.totalorder %s75_s28, %s75_s28 }
  0x5e   :  { %p14597_p1 = scmp.ne.s32.totalorder %s75_s28, %s14596_s4  ;;  %p14602_p3 = scmp.lt.s32.totalorder %s14596_s4, %s14596_s4 }
  0x60   :  { %p14603_p4 = por %p14602_p3, %p14601_p2 }
  0x62   :  { %p14604_p5 = pnand %p14603_p4, %p14597_p1 }
  0x64   :  { %14607 = shalt.err (!%p14604_p5)
}
  0x65   :  { %77 = dma.hbm_to_vmem [thread:$0]  %s15166_s6, 128, %s75_s28, [#allocation9]  }
  0x66   :  { %s14608_s20 = scalar_lea.hbm %s15168_s8, 16 }
  0x67   :  { %p14609_p6 = scmp.ne.s32.totalorder %s15168_s8, %s14608_s20  ;;  %p14612_p7 = scmp.lt.u32.totalorder %s14608_s20, %s15168_s8 }
  0x69   :  { %p14614_p8 = pnand %p14612_p7, %p14609_p6 }
  0x6b   :  { %14617 = shalt.err (!%p14614_p8)
}
  0x6c   :  { %s14618_s12 = scalar_lea.vmem %s97_s30, 16  ;;  %s14622_s26 = scalar_lea.vmem %s97_s30, 32 }
  0x6d   :  { %p14619_p9 = scmp.ne.s32.totalorder %s97_s30, %s14618_s12  ;;  %p14623_p10 = scmp.lt.s32.totalorder %s97_s30, %s97_s30 }
  0x6e   :  { %p14624_p11 = scmp.lt.s32.totalorder %s14622_s26, %s14618_s12 }
  0x70   :  { %p14625_p12 = por %p14624_p11, %p14623_p10 }
  0x72   :  { %p14626_p13 = pnand %p14625_p12, %p14619_p9 }
  0x74   :  { %14629 = shalt.err (!%p14626_p13)
}
  0x75   :  { %99 = dma.hbm_to_vmem [thread:$0]  %s15168_s8, 16, %s97_s30, [#allocation12]  }
  0x76   :  { %14630 = dma.done.wait [#allocation4], 65536  }
  0x77   :  { %14631 = vsyncadd [#allocation4], 4294901760 }
  0x78   :  { %14632 = dma.done.wait [#allocation6], 65664  }
  0x79   :  { %14633 = vsyncadd [#allocation6], 4294901632 }
  0x7a   :  { %14634 = dma.done.wait [#allocation9], 65664  }
  0x7b   :  { %14635 = vsyncadd [#allocation9], 4294901632 }
  0x7c   :  { %14636 = dma.done.wait [#allocation12], 8208  }
  0x7d   :  { %14637 = vsyncadd [#allocation12], 4294959088  ;;  %v654_v0 = vld [vmem:[#allocation5] sm:$0xff]  ;;  %v655_v2 = vld [vmem:[#allocation5 + $0x8] sm:$0xff] }
  0x7e   :  { %v658_v1 = vld [vmem:[#allocation5 + $0x20] sm:$0xff]  ;;  %v659_v4 = vld [vmem:[#allocation5 + $0x28] sm:$0xff] }
  0x7f   :  { %v12464_v3 = vcombine.high %v654_v0, %v658_v1  ;;  %v12463_v5 = vcombine.low %v654_v0, %v658_v1  ;;  %v662_v6 = vld [vmem:[#allocation5 + $0x40] sm:$0xff]  ;;  %v12466_v8 = vcombine.high %v655_v2, %v659_v4  ;;  %v12465_v9 = vcombine.low %v655_v2, %v659_v4  ;;  %v663_v11 = vld [vmem:[#allocation5 + $0x48] sm:$0xff] }
  0x80   :  { %v666_v7 = vld [vmem:[#allocation5 + $0x60] sm:$0xff]  ;;  %v667_v12 = vld [vmem:[#allocation5 + $0x68] sm:$0xff] }
  0x81   :  { %v12472_v10 = vcombine.high %v662_v6, %v666_v7  ;;  %v670_v13 = vld [vmem:[#allocation5 + $0x80] sm:$0xff]  ;;  %3766 = vmatprep.subr.bf16.mxu0 %v12464_v3  ;;  %v12474_v14 = vcombine.high %v663_v11, %v667_v12  ;;  %v671_v16 = vld [vmem:[#allocation5 + $0x88] sm:$0xff]  ;;  %3938 = vmatprep.subr.bf16.mxu1 %v12466_v8  ;;  %v12471_v18 = vcombine.low %v662_v6, %v666_v7 }
  0x82   :  { %v674_v15 = vld [vmem:[#allocation5 + $0xa0] sm:$0xff]  ;;  %v675_v17 = vld [vmem:[#allocation5 + $0xa8] sm:$0xff]  ;;  %3767 = vmatpush1.bf16.msra.mxu0 %v12463_v5  ;;  %3939 = vmatpush1.bf16.msra.mxu1 %v12465_v9  ;;  %v12473_v19 = vcombine.low %v663_v11, %v667_v12 }
  0x83   :  { %3768 = vmatprep.subr.bf16.mxu0 %v12472_v10  ;;  %v12480_v20 = vcombine.high %v670_v13, %v674_v15  ;;  %3940 = vmatprep.subr.bf16.mxu1 %v12474_v14  ;;  %v12482_v21 = vcombine.high %v671_v16, %v675_v17  ;;  %v678_v22 = vld [vmem:[#allocation5 + $0xc0] sm:$0xff]  ;;  %v679_v24 = vld [vmem:[#allocation5 + $0xc8] sm:$0xff]  ;;  %v12479_v26 = vcombine.low %v670_v13, %v674_v15 }
  0x84   :  { %v682_v23 = vld [vmem:[#allocation5 + $0xe0] sm:$0xff]  ;;  %v683_v25 = vld [vmem:[#allocation5 + $0xe8] sm:$0xff]  ;;  %v12481_v27 = vcombine.low %v671_v16, %v675_v17 }
  0x85   :  { %v12488_v28 = vcombine.high %v678_v22, %v682_v23  ;;  %v12490_v29 = vcombine.high %v679_v24, %v683_v25  ;;  %v686_v30 = vld [vmem:[#allocation5 + $0x100] sm:$0xff]  ;;  %v687_v32 = vld [vmem:[#allocation5 + $0x108] sm:$0xff]  ;;  %v12487_v34 = vcombine.low %v678_v22, %v682_v23  ;;  %v12489_v35 = vcombine.low %v679_v24, %v683_v25 }
  0x86   :  { %3769 = vmatpush1.bf16.msra.mxu0 %v12471_v18  ;;  %3941 = vmatpush1.bf16.msra.mxu1 %v12473_v19  ;;  %v690_v31 = vld [vmem:[#allocation5 + $0x120] sm:$0xff]  ;;  %v691_v33 = vld [vmem:[#allocation5 + $0x128] sm:$0xff] }
  0x87   :  { %3770 = vmatprep.subr.bf16.mxu0 %v12480_v20  ;;  %3942 = vmatprep.subr.bf16.mxu1 %v12482_v21  ;;  %v12496_v36 = vcombine.high %v686_v30, %v690_v31  ;;  %v12498_v37 = vcombine.high %v687_v32, %v691_v33  ;;  %v694_v38 = vld [vmem:[#allocation5 + $0x140] sm:$0xff]  ;;  %v695_v40 = vld [vmem:[#allocation5 + $0x148] sm:$0xff]  ;;  %v12495_v42 = vcombine.low %v686_v30, %v690_v31 }
  0x88   :  { %v698_v39 = vld [vmem:[#allocation5 + $0x160] sm:$0xff]  ;;  %v699_v41 = vld [vmem:[#allocation5 + $0x168] sm:$0xff]  ;;  %v12497_v43 = vcombine.low %v687_v32, %v691_v33 }
  0x89   :  { %v12504_v44 = vcombine.high %v694_v38, %v698_v39  ;;  %v12506_v45 = vcombine.high %v695_v40, %v699_v41  ;;  %v702_v46 = vld [vmem:[#allocation5 + $0x180] sm:$0xff]  ;;  %v703_v48 = vld [vmem:[#allocation5 + $0x188] sm:$0xff]  ;;  %v12503_v50 = vcombine.low %v694_v38, %v698_v39  ;;  %v12505_v51 = vcombine.low %v695_v40, %v699_v41 }
  0x8a   :  { %3771 = vmatpush1.bf16.msra.mxu0 %v12479_v26  ;;  %3943 = vmatpush1.bf16.msra.mxu1 %v12481_v27  ;;  %v706_v47 = vld [vmem:[#allocation5 + $0x1a0] sm:$0xff]  ;;  %v707_v49 = vld [vmem:[#allocation5 + $0x1a8] sm:$0xff] }
  0x8b   :  { %3772 = vmatprep.subr.bf16.mxu0 %v12488_v28  ;;  %3944 = vmatprep.subr.bf16.mxu1 %v12490_v29  ;;  %v12512_v52 = vcombine.high %v702_v46, %v706_v47  ;;  %v14802_v53 = vld [vmem:[%s15161_s1] sm:$0xff]  ;;  %v12514_v55 = vcombine.high %v703_v48, %v707_v49  ;;  %v711_v59 = vld [vmem:[#allocation5 + $0x1c8] sm:$0xff]  ;;  %v12511_v61 = vcombine.low %v702_v46, %v706_v47 }
  0x8c   :  { %v14807_v54 = vld [vmem:[%s15161_s1 + $0x20] sm:$0xff]  ;;  %v715_v60 = vld [vmem:[#allocation5 + $0x1e8] sm:$0xff]  ;;  %v12513_v62 = vcombine.low %v703_v48, %v707_v49 }
  0x8d   :  { %v710_v56 = vld [vmem:[#allocation5 + $0x1c0] sm:$0xff]  ;;  %v14811_v58 = vcombine.high %v14802_v53, %v14807_v54  ;;  %v12522_v0 = vcombine.high %v711_v59, %v715_v60  ;;  %v719_v3 = vld [vmem:[#allocation5 + $0x208] sm:$0xff]  ;;  %v12521_v6 = vcombine.low %v711_v59, %v715_v60 }
  0x8e   :  { %3773 = vmatpush1.bf16.msra.mxu0 %v12487_v34  ;;  %3945 = vmatpush1.bf16.msra.mxu1 %v12489_v35  ;;  %v714_v57 = vld [vmem:[#allocation5 + $0x1e0] sm:$0xff]  ;;  %v723_v4 = vld [vmem:[#allocation5 + $0x228] sm:$0xff] }
  0x8f   :  { %3774 = vmatprep.subr.bf16.mxu0 %v12496_v36  ;;  %3946 = vmatprep.subr.bf16.mxu1 %v12498_v37  ;;  %v12520_v63 = vcombine.high %v710_v56, %v714_v57  ;;  %v718_v1 = vld [vmem:[#allocation5 + $0x200] sm:$0xff]  ;;  %v12519_v5 = vcombine.low %v710_v56, %v714_v57  ;;  %v12530_v8 = vcombine.high %v719_v3, %v723_v4  ;;  %v727_v11 = vld [vmem:[#allocation5 + $0x248] sm:$0xff] }
  0x90   :  { %3798 = vmatprep.mubr.bf16.mxu0 %v14811_v58  ;;  %v722_v2 = vld [vmem:[#allocation5 + $0x220] sm:$0xff]  ;;  %3970 = vmatprep.mubr.bf16.mxu1 %v14811_v58  ;;  %v731_v12 = vld [vmem:[#allocation5 + $0x268] sm:$0xff]  ;;  %v12529_v14 = vcombine.low %v719_v3, %v723_v4 }
  0x91   :  { %v12528_v7 = vcombine.high %v718_v1, %v722_v2  ;;  %v726_v9 = vld [vmem:[#allocation5 + $0x240] sm:$0xff]  ;;  %v12527_v13 = vcombine.low %v718_v1, %v722_v2  ;;  %v12538_v16 = vcombine.high %v727_v11, %v731_v12  ;;  %v735_v19 = vld [vmem:[#allocation5 + $0x288] sm:$0xff]  ;;  %v12537_v22 = vcombine.low %v727_v11, %v731_v12 }
  0x92   :  { %3775 = vmatpush1.bf16.msra.mxu0 %v12495_v42  ;;  %3947 = vmatpush1.bf16.msra.mxu1 %v12497_v43  ;;  %v730_v10 = vld [vmem:[#allocation5 + $0x260] sm:$0xff]  ;;  %v739_v20 = vld [vmem:[#allocation5 + $0x2a8] sm:$0xff] }
  0x93   :  { %3776 = vmatprep.subr.bf16.mxu0 %v12504_v44  ;;  %3948 = vmatprep.subr.bf16.mxu1 %v12506_v45  ;;  %v12536_v15 = vcombine.high %v726_v9, %v730_v10  ;;  %v734_v17 = vld [vmem:[#allocation5 + $0x280] sm:$0xff]  ;;  %v12535_v21 = vcombine.low %v726_v9, %v730_v10  ;;  %v12546_v24 = vcombine.high %v735_v19, %v739_v20  ;;  %v743_v27 = vld [vmem:[#allocation5 + $0x2c8] sm:$0xff] }
  0x94   :  { %v738_v18 = vld [vmem:[#allocation5 + $0x2a0] sm:$0xff]  ;;  %v747_v28 = vld [vmem:[#allocation5 + $0x2e8] sm:$0xff]  ;;  %v12545_v30 = vcombine.low %v735_v19, %v739_v20 }
  0x95   :  { %v12544_v23 = vcombine.high %v734_v17, %v738_v18  ;;  %v742_v25 = vld [vmem:[#allocation5 + $0x2c0] sm:$0xff]  ;;  %v12543_v29 = vcombine.low %v734_v17, %v738_v18  ;;  %v12554_v32 = vcombine.high %v743_v27, %v747_v28  ;;  %v751_v35 = vld [vmem:[#allocation5 + $0x308] sm:$0xff]  ;;  %v12553_v38 = vcombine.low %v743_v27, %v747_v28 }
  0x96   :  { %3777 = vmatpush1.bf16.msra.mxu0 %v12503_v50  ;;  %3949 = vmatpush1.bf16.msra.mxu1 %v12505_v51  ;;  %v746_v26 = vld [vmem:[#allocation5 + $0x2e0] sm:$0xff]  ;;  %v755_v36 = vld [vmem:[#allocation5 + $0x328] sm:$0xff] }
  0x97   :  { %3778 = vmatprep.subr.bf16.mxu0 %v12512_v52  ;;  %3950 = vmatprep.subr.bf16.mxu1 %v12514_v55  ;;  %v12552_v31 = vcombine.high %v742_v25, %v746_v26  ;;  %v750_v33 = vld [vmem:[#allocation5 + $0x300] sm:$0xff]  ;;  %v12551_v37 = vcombine.low %v742_v25, %v746_v26  ;;  %v12562_v40 = vcombine.high %v751_v35, %v755_v36  ;;  %v759_v43 = vld [vmem:[#allocation5 + $0x348] sm:$0xff] }
  0x98   :  { %v754_v34 = vld [vmem:[#allocation5 + $0x320] sm:$0xff]  ;;  %v763_v44 = vld [vmem:[#allocation5 + $0x368] sm:$0xff]  ;;  %v12561_v46 = vcombine.low %v751_v35, %v755_v36 }
  0x99   :  { %v12560_v39 = vcombine.high %v750_v33, %v754_v34  ;;  %v758_v41 = vld [vmem:[#allocation5 + $0x340] sm:$0xff]  ;;  %v12559_v45 = vcombine.low %v750_v33, %v754_v34  ;;  %v12570_v48 = vcombine.high %v759_v43, %v763_v44  ;;  %v767_v51 = vld [vmem:[#allocation5 + $0x388] sm:$0xff]  ;;  %v12569_v56 = vcombine.low %v759_v43, %v763_v44 }
  0x9a   :  { %3779 = vmatpush1.bf16.msra.mxu0 %v12511_v61  ;;  %3951 = vmatpush1.bf16.msra.mxu1 %v12513_v62  ;;  %v762_v42 = vld [vmem:[#allocation5 + $0x360] sm:$0xff]  ;;  %v771_v52 = vld [vmem:[#allocation5 + $0x3a8] sm:$0xff] }
  0x9b   :  { %3780 = vmatprep.subr.bf16.mxu0 %v12520_v63  ;;  %3952 = vmatprep.subr.bf16.mxu1 %v12522_v0  ;;  %v12568_v47 = vcombine.high %v758_v41, %v762_v42  ;;  %v766_v49 = vld [vmem:[#allocation5 + $0x380] sm:$0xff]  ;;  %v12567_v55 = vcombine.low %v758_v41, %v762_v42  ;;  %v12578_v59 = vcombine.high %v767_v51, %v771_v52  ;;  %v775_v62 = vld [vmem:[#allocation5 + $0x3c8] sm:$0xff] }
  0x9c   :  { %v770_v50 = vld [vmem:[#allocation5 + $0x3a0] sm:$0xff]  ;;  %v779_v63 = vld [vmem:[#allocation5 + $0x3e8] sm:$0xff]  ;;  %v12577_v1 = vcombine.low %v767_v51, %v771_v52 }
  0x9d   :  { %v12576_v57 = vcombine.high %v766_v49, %v770_v50  ;;  %v774_v60 = vld [vmem:[#allocation5 + $0x3c0] sm:$0xff]  ;;  %v12575_v0 = vcombine.low %v766_v49, %v770_v50  ;;  %v12586_v3 = vcombine.high %v775_v62, %v779_v63  ;;  %v12585_v9 = vcombine.low %v775_v62, %v779_v63  ;;  %v14822_v17 = vld [vmem:[%s15161_s1 + $0x8] sm:$0xff] }
  0x9e   :  { %3781 = vmatpush1.bf16.msra.mxu0 %v12519_v5  ;;  %3953 = vmatpush1.bf16.msra.mxu1 %v12521_v6  ;;  %v778_v61 = vld [vmem:[#allocation5 + $0x3e0] sm:$0xff]  ;;  %v783_v6 = vld [vmem:[#allocation5 + $0x408] sm:$0xff] }
  0x9f   :  { %3782 = vmatprep.subr.bf16.mxu0 %v12528_v7  ;;  %3954 = vmatprep.subr.bf16.mxu1 %v12530_v8  ;;  %v12584_v2 = vcombine.high %v774_v60, %v778_v61  ;;  %v782_v4 = vld [vmem:[#allocation5 + $0x400] sm:$0xff]  ;;  %v787_v7 = vld [vmem:[#allocation5 + $0x428] sm:$0xff]  ;;  %v12583_v8 = vcombine.low %v774_v60, %v778_v61 }
  0xa0   :  { %v786_v5 = vld [vmem:[#allocation5 + $0x420] sm:$0xff]  ;;  %v12594_v11 = vcombine.high %v783_v6, %v787_v7  ;;  %v14827_v18 = vld [vmem:[%s15161_s1 + $0x28] sm:$0xff]  ;;  %v12593_v20 = vcombine.low %v783_v6, %v787_v7 }
  0xa1   :  { %v12592_v10 = vcombine.high %v782_v4, %v786_v5  ;;  %v790_v12 = vld [vmem:[#allocation5 + $0x440] sm:$0xff]  ;;  %v12591_v19 = vcombine.low %v782_v4, %v786_v5  ;;  %v803_v25 = vld [vmem:[#allocation5 + $0x4a8] sm:$0xff] }
  0xa2   :  { %3783 = vmatpush1.bf16.msra.mxu0 %v12527_v13  ;;  %3955 = vmatpush1.bf16.msra.mxu1 %v12529_v14  ;;  %v794_v13 = vld [vmem:[#allocation5 + $0x460] sm:$0xff]  ;;  %v791_v14 = vld [vmem:[#allocation5 + $0x448] sm:$0xff] }
  0xa3   :  { %3784 = vmatprep.subr.bf16.mxu0 %v12536_v15  ;;  %3956 = vmatprep.subr.bf16.mxu1 %v12538_v16  ;;  %v14817_v15 = vcombine.low %v14802_v53, %v14807_v54  ;;  %v795_v16 = vld [vmem:[#allocation5 + $0x468] sm:$0xff]  ;;  %v798_v54 = vld [vmem:[#allocation5 + $0x480] sm:$0xff]  ;;  %v12599_v26 = vcombine.low %v790_v12, %v794_v13 }
  0xa4   :  { %v12602_v53 = vcombine.high %v791_v14, %v795_v16  ;;  %v12601_v27 = vcombine.low %v791_v14, %v795_v16  ;;  %v811_v33 = vld [vmem:[#allocation5 + $0x4e8] sm:$0xff] }
  0xa5   :  { %v819_v41 = vld [vmem:[#allocation5 + $0x528] sm:$0xff] }
  0xa6   :  { %3785 = vmatpush1.bf16.msra.mxu0 %v12535_v21  ;;  %3957 = vmatpush1.bf16.msra.mxu1 %v12537_v22  ;;  %v12600_v21 = vcombine.high %v790_v12, %v794_v13  ;;  %v802_v22 = vld [vmem:[#allocation5 + $0x4a0] sm:$0xff]  ;;  %v827_v49 = vld [vmem:[#allocation5 + $0x568] sm:$0xff] }
  0xa7   :  { %3786 = vmatprep.subr.bf16.mxu0 %v12544_v23  ;;  %3958 = vmatprep.subr.bf16.mxu1 %v12546_v24  ;;  %v799_v23 = vld [vmem:[#allocation5 + $0x488] sm:$0xff]  ;;  %v14831_v24 = vcombine.high %v14822_v17, %v14827_v18  ;;  %v12608_v28 = vcombine.high %v798_v54, %v802_v22  ;;  %v12607_v34 = vcombine.low %v798_v54, %v802_v22 }
  0xa8   :  { %v12609_v35 = vcombine.low %v799_v23, %v803_v25  ;;  %v835_v60 = vld [vmem:[#allocation5 + $0x5a8] sm:$0xff] }
  0xa9   :  { %v843_v4 = vld [vmem:[#allocation5 + $0x5e8] sm:$0xff] }
  0xaa   :  { %3787 = vmatpush1.bf16.msra.mxu0 %v12543_v29  ;;  %3959 = vmatpush1.bf16.msra.mxu1 %v12545_v30  ;;  %v806_v29 = vld [vmem:[#allocation5 + $0x4c0] sm:$0xff]  ;;  %v851_v12 = vld [vmem:[#allocation5 + $0x628] sm:$0xff] }
  0xab   :  { %3788 = vmatprep.subr.bf16.mxu0 %v12552_v31  ;;  %3960 = vmatprep.subr.bf16.mxu1 %v12554_v32  ;;  %v810_v30 = vld [vmem:[#allocation5 + $0x4e0] sm:$0xff]  ;;  %v807_v31 = vld [vmem:[#allocation5 + $0x4c8] sm:$0xff]  ;;  %v12610_v32 = vcombine.high %v799_v23, %v803_v25 }
  0xac   :  { %v12616_v36 = vcombine.high %v806_v29, %v810_v30  ;;  %v12615_v42 = vcombine.low %v806_v29, %v810_v30  ;;  %v12617_v43 = vcombine.low %v807_v31, %v811_v33  ;;  %v859_v54 = vld [vmem:[#allocation5 + $0x668] sm:$0xff] }
  0xad   :  { %v867_v30 = vld [vmem:[#allocation5 + $0x6a8] sm:$0xff] }
  0xae   :  { %3789 = vmatpush1.bf16.msra.mxu0 %v12551_v37  ;;  %3961 = vmatpush1.bf16.msra.mxu1 %v12553_v38  ;;  %v814_v37 = vld [vmem:[#allocation5 + $0x500] sm:$0xff] }
  0xaf   :  { %3790 = vmatprep.subr.bf16.mxu0 %v12560_v39  ;;  %3962 = vmatprep.subr.bf16.mxu1 %v12562_v40  ;;  %v818_v38 = vld [vmem:[#allocation5 + $0x520] sm:$0xff]  ;;  %v815_v39 = vld [vmem:[#allocation5 + $0x508] sm:$0xff]  ;;  %v12618_v40 = vcombine.high %v807_v31, %v811_v33 }
  0xb0   :  { %v12624_v44 = vcombine.high %v814_v37, %v818_v38  ;;  %v12623_v50 = vcombine.low %v814_v37, %v818_v38  ;;  %v12625_v51 = vcombine.low %v815_v39, %v819_v41  ;;  %v875_v38 = vld [vmem:[#allocation5 + $0x6e8] sm:$0xff] }
  0xb2   :  { %3791 = vmatpush1.bf16.msra.mxu0 %v12559_v45  ;;  %3963 = vmatpush1.bf16.msra.mxu1 %v12561_v46  ;;  %v822_v45 = vld [vmem:[#allocation5 + $0x540] sm:$0xff] }
  0xb3   :  { %3792 = vmatprep.subr.bf16.mxu0 %v12568_v47  ;;  %3964 = vmatprep.subr.bf16.mxu1 %v12570_v48  ;;  %v826_v46 = vld [vmem:[#allocation5 + $0x560] sm:$0xff]  ;;  %v823_v47 = vld [vmem:[#allocation5 + $0x548] sm:$0xff]  ;;  %v12626_v48 = vcombine.high %v815_v39, %v819_v41 }
  0xb4   :  { %v12632_v52 = vcombine.high %v822_v45, %v826_v46  ;;  %v12631_v61 = vcombine.low %v822_v45, %v826_v46  ;;  %v12633_v62 = vcombine.low %v823_v47, %v827_v49  ;;  %v883_v46 = vld [vmem:[#allocation5 + $0x728] sm:$0xff] }
  0xb6   :  { %3793 = vmatpush1.bf16.msra.mxu0 %v12567_v55  ;;  %3965 = vmatpush1.bf16.msra.mxu1 %v12569_v56  ;;  %v830_v55 = vld [vmem:[#allocation5 + $0x580] sm:$0xff] }
  0xb7   :  { %3794 = vmatprep.subr.bf16.mxu0 %v12576_v57  ;;  %3966 = vmatprep.subr.bf16.mxu1 %v12578_v59  ;;  %v834_v56 = vld [vmem:[#allocation5 + $0x5a0] sm:$0xff]  ;;  %v831_v57 = vld [vmem:[#allocation5 + $0x588] sm:$0xff]  ;;  %v12634_v59 = vcombine.high %v823_v47, %v827_v49 }
  0xb8   :  { %v12640_v63 = vcombine.high %v830_v55, %v834_v56  ;;  %v12639_v5 = vcombine.low %v830_v55, %v834_v56  ;;  %v12641_v6 = vcombine.low %v831_v57, %v835_v60  ;;  %v891_v56 = vld [vmem:[#allocation5 + $0x768] sm:$0xff] }
  0xba   :  { %3795 = vmatpush1.bf16.msra.mxu0 %v12575_v0  ;;  %3967 = vmatpush1.bf16.msra.mxu1 %v12577_v1  ;;  %v838_v0 = vld [vmem:[#allocation5 + $0x5c0] sm:$0xff] }
  0xbb   :  { %3796 = vmatprep.subr.bf16.mxu0 %v12584_v2  ;;  %3968 = vmatprep.subr.bf16.mxu1 %v12586_v3  ;;  %v842_v1 = vld [vmem:[#allocation5 + $0x5e0] sm:$0xff]  ;;  %v839_v2 = vld [vmem:[#allocation5 + $0x5c8] sm:$0xff]  ;;  %v12642_v3 = vcombine.high %v831_v57, %v835_v60 }
  0xbc   :  { %v12648_v7 = vcombine.high %v838_v0, %v842_v1  ;;  %v12647_v13 = vcombine.low %v838_v0, %v842_v1  ;;  %v12649_v14 = vcombine.low %v839_v2, %v843_v4  ;;  %v899_v1 = vld [vmem:[#allocation5 + $0x7a8] sm:$0xff] }
  0xbe   :  { %3797 = vmatpush1.bf16.msra.mxu0 %v12583_v8  ;;  %3969 = vmatpush1.bf16.msra.mxu1 %v12585_v9  ;;  %v846_v8 = vld [vmem:[#allocation5 + $0x600] sm:$0xff] }
  0xbf   :  { %3809 = vmatprep.subr.bf16.mxu0 %v12592_v10  ;;  %3981 = vmatprep.subr.bf16.mxu1 %v12594_v11  ;;  %v850_v9 = vld [vmem:[#allocation5 + $0x620] sm:$0xff]  ;;  %v847_v10 = vld [vmem:[#allocation5 + $0x608] sm:$0xff]  ;;  %v12650_v11 = vcombine.high %v839_v2, %v843_v4 }
  0xc0   :  { %v12656_v16 = vcombine.high %v846_v8, %v850_v9  ;;  %v12655_v22 = vcombine.low %v846_v8, %v850_v9  ;;  %v12657_v23 = vcombine.low %v847_v10, %v851_v12  ;;  %v907_v9 = vld [vmem:[#allocation5 + $0x7e8] sm:$0xff] }
  0xc1   :  { %3799 = vmatmul.mubr.bf16.vlgmr.msra.gmra.mrb[0].mxu0 %v14817_v15  ;;  %3971 = vmatmul.mubr.bf16.vlgmr.msra.gmra.mrb[0].mxu1 %v14817_v15 }
  0xc2   :  { %3810 = vmatpush1.bf16.msra.mxu0 %v12591_v19  ;;  %3982 = vmatpush1.bf16.msra.mxu1 %v12593_v20  ;;  %v854_v19 = vld [vmem:[#allocation5 + $0x640] sm:$0xff] }
  0xc3   :  { %3811 = vmatprep.subr.bf16.mxu0 %v12600_v21  ;;  %3983 = vmatprep.subr.bf16.mxu1 %v12602_v53  ;;  %v858_v20 = vld [vmem:[#allocation5 + $0x660] sm:$0xff]  ;;  %v855_v21 = vld [vmem:[#allocation5 + $0x648] sm:$0xff]  ;;  %v12658_v53 = vcombine.high %v847_v10, %v851_v12 }
  0xc4   :  { %3841 = vmatprep.mubr.bf16.mxu0 %v14831_v24  ;;  %4013 = vmatprep.mubr.bf16.mxu1 %v14831_v24  ;;  %v12664_v25 = vcombine.high %v854_v19, %v858_v20  ;;  %v12666_v29 = vcombine.high %v855_v21, %v859_v54  ;;  %v12663_v31 = vcombine.low %v854_v19, %v858_v20  ;;  %v915_v20 = vld [vmem:[#allocation5 + $0x828] sm:$0xff] }
  0xc6   :  { %3812 = vmatpush1.bf16.msra.mxu0 %v12599_v26  ;;  %3984 = vmatpush1.bf16.msra.mxu1 %v12601_v27  ;;  %v862_v26 = vld [vmem:[#allocation5 + $0x680] sm:$0xff] }
  0xc7   :  { %3813 = vmatprep.subr.bf16.mxu0 %v12608_v28  ;;  %3985 = vmatprep.subr.bf16.mxu1 %v12610_v32  ;;  %v866_v27 = vld [vmem:[#allocation5 + $0x6a0] sm:$0xff]  ;;  %v863_v28 = vld [vmem:[#allocation5 + $0x688] sm:$0xff]  ;;  %v12665_v32 = vcombine.low %v855_v21, %v859_v54 }
  0xc8   :  { %v12672_v33 = vcombine.high %v862_v26, %v866_v27  ;;  %v12674_v37 = vcombine.high %v863_v28, %v867_v30  ;;  %v12671_v39 = vcombine.low %v862_v26, %v866_v27  ;;  %v922_v54 = vld [vmem:[#allocation5 + $0x860] sm:$0xff]  ;;  %v923_v26 = vld [vmem:[#allocation5 + $0x868] sm:$0xff]  ;;  %v14840_v27 = vld [vmem:[%s15161_s1 + $0x10] sm:$0xff] }
  0xca   :  { %3814 = vmatpush1.bf16.msra.mxu0 %v12607_v34  ;;  %3986 = vmatpush1.bf16.msra.mxu1 %v12609_v35  ;;  %v870_v34 = vld [vmem:[#allocation5 + $0x6c0] sm:$0xff] }
  0xcb   :  { %3815 = vmatprep.subr.bf16.mxu0 %v12616_v36  ;;  %3987 = vmatprep.subr.bf16.mxu1 %v12618_v40  ;;  %v874_v35 = vld [vmem:[#allocation5 + $0x6e0] sm:$0xff]  ;;  %v871_v36 = vld [vmem:[#allocation5 + $0x6c8] sm:$0xff]  ;;  %v12673_v40 = vcombine.low %v863_v28, %v867_v30  ;;  %v14849_v30 = vcombine.low %v14822_v17, %v14827_v18 }
  0xcc   :  { %v12680_v41 = vcombine.high %v870_v34, %v874_v35  ;;  %v12682_v45 = vcombine.high %v871_v36, %v875_v38  ;;  %v12679_v47 = vcombine.low %v870_v34, %v874_v35  ;;  %v926_v34 = vld [vmem:[#allocation5 + $0x880] sm:$0xff] }
  0xce   :  { %3816 = vmatpush1.bf16.msra.mxu0 %v12615_v42  ;;  %3988 = vmatpush1.bf16.msra.mxu1 %v12617_v43  ;;  %v878_v42 = vld [vmem:[#allocation5 + $0x700] sm:$0xff] }
  0xcf   :  { %3817 = vmatprep.subr.bf16.mxu0 %v12624_v44  ;;  %3989 = vmatprep.subr.bf16.mxu1 %v12626_v48  ;;  %v882_v43 = vld [vmem:[#allocation5 + $0x720] sm:$0xff]  ;;  %v879_v44 = vld [vmem:[#allocation5 + $0x708] sm:$0xff]  ;;  %v12681_v48 = vcombine.low %v871_v36, %v875_v38 }
  0xd0   :  { %v12688_v49 = vcombine.high %v878_v42, %v882_v43  ;;  %v12690_v55 = vcombine.high %v879_v44, %v883_v46  ;;  %v12687_v57 = vcombine.low %v878_v42, %v882_v43  ;;  %v930_v36 = vld [vmem:[#allocation5 + $0x8a0] sm:$0xff]  ;;  %v931_v38 = vld [vmem:[#allocation5 + $0x8a8] sm:$0xff] }
  0xd1   :  { %v934_v42 = vld [vmem:[#allocation5 + $0x8c0] sm:$0xff] }
  0xd2   :  { %3818 = vmatpush1.bf16.msra.mxu0 %v12623_v50  ;;  %3990 = vmatpush1.bf16.msra.mxu1 %v12625_v51  ;;  %v886_v50 = vld [vmem:[#allocation5 + $0x740] sm:$0xff] }
  0xd3   :  { %3819 = vmatprep.subr.bf16.mxu0 %v12632_v52  ;;  %3991 = vmatprep.subr.bf16.mxu1 %v12634_v59  ;;  %v890_v51 = vld [vmem:[#allocation5 + $0x760] sm:$0xff]  ;;  %v887_v52 = vld [vmem:[#allocation5 + $0x748] sm:$0xff]  ;;  %v12689_v59 = vcombine.low %v879_v44, %v883_v46  ;;  %v12735_v46 = vcombine.low %v926_v34, %v930_v36 }
  0xd4   :  { %v12696_v60 = vcombine.high %v886_v50, %v890_v51  ;;  %v12698_v0 = vcombine.high %v887_v52, %v891_v56  ;;  %v12695_v2 = vcombine.low %v886_v50, %v890_v51  ;;  %v938_v43 = vld [vmem:[#allocation5 + $0x8e0] sm:$0xff]  ;;  %v935_v44 = vld [vmem:[#allocation5 + $0x8c8] sm:$0xff] }
  0xd5   :  { %v942_v50 = vld [vmem:[#allocation5 + $0x900] sm:$0xff] }
  0xd6   :  { %3820 = vmatpush1.bf16.msra.mxu0 %v12631_v61  ;;  %3992 = vmatpush1.bf16.msra.mxu1 %v12633_v62  ;;  %v894_v61 = vld [vmem:[#allocation5 + $0x780] sm:$0xff] }
  0xd7   :  { %3821 = vmatprep.subr.bf16.mxu0 %v12640_v63  ;;  %3993 = vmatprep.subr.bf16.mxu1 %v12642_v3  ;;  %v898_v62 = vld [vmem:[#allocation5 + $0x7a0] sm:$0xff]  ;;  %v895_v63 = vld [vmem:[#allocation5 + $0x788] sm:$0xff]  ;;  %v12697_v3 = vcombine.low %v887_v52, %v891_v56  ;;  %v12743_v56 = vcombine.low %v934_v42, %v938_v43 }
  0xd8   :  { %v12704_v4 = vcombine.high %v894_v61, %v898_v62  ;;  %v12706_v8 = vcombine.high %v895_v63, %v899_v1  ;;  %v12703_v10 = vcombine.low %v894_v61, %v898_v62  ;;  %v946_v51 = vld [vmem:[#allocation5 + $0x920] sm:$0xff]  ;;  %v943_v52 = vld [vmem:[#allocation5 + $0x908] sm:$0xff] }
  0xd9   :  { %v950_v61 = vld [vmem:[#allocation5 + $0x940] sm:$0xff] }
  0xda   :  { %3822 = vmatpush1.bf16.msra.mxu0 %v12639_v5  ;;  %3994 = vmatpush1.bf16.msra.mxu1 %v12641_v6  ;;  %v902_v5 = vld [vmem:[#allocation5 + $0x7c0] sm:$0xff] }
  0xdb   :  { %3823 = vmatprep.subr.bf16.mxu0 %v12648_v7  ;;  %3995 = vmatprep.subr.bf16.mxu1 %v12650_v11  ;;  %v906_v6 = vld [vmem:[#allocation5 + $0x7e0] sm:$0xff]  ;;  %v903_v7 = vld [vmem:[#allocation5 + $0x7c8] sm:$0xff]  ;;  %v12705_v11 = vcombine.low %v895_v63, %v899_v1  ;;  %v12751_v1 = vcombine.low %v942_v50, %v946_v51 }
  0xdc   :  { %v12712_v12 = vcombine.high %v902_v5, %v906_v6  ;;  %v12714_v19 = vcombine.high %v903_v7, %v907_v9  ;;  %v12711_v21 = vcombine.low %v902_v5, %v906_v6  ;;  %v954_v62 = vld [vmem:[#allocation5 + $0x960] sm:$0xff]  ;;  %v951_v63 = vld [vmem:[#allocation5 + $0x948] sm:$0xff] }
  0xdd   :  { %v958_v5 = vld [vmem:[#allocation5 + $0x980] sm:$0xff] }
  0xde   :  { %3824 = vmatpush1.bf16.msra.mxu0 %v12647_v13  ;;  %3996 = vmatpush1.bf16.msra.mxu1 %v12649_v14  ;;  %v910_v13 = vld [vmem:[#allocation5 + $0x800] sm:$0xff] }
  0xdf   :  { %3825 = vmatprep.subr.bf16.mxu0 %v12656_v16  ;;  %3997 = vmatprep.subr.bf16.mxu1 %v12658_v53  ;;  %v914_v14 = vld [vmem:[#allocation5 + $0x820] sm:$0xff]  ;;  %v911_v16 = vld [vmem:[#allocation5 + $0x808] sm:$0xff] }
  0xe0   :  { %v918_v53 = vld [vmem:[#allocation5 + $0x840] sm:$0xff]  ;;  %v12722_v28 = vcombine.high %v911_v16, %v915_v20 }
  0xe1   :  { %v12727_v17 = vcombine.low %v918_v53, %v922_v54  ;;  %v962_v6 = vld [vmem:[#allocation5 + $0x9a0] sm:$0xff] }
  0xe2   :  { %3826 = vmatpush1.bf16.msra.mxu0 %v12655_v22  ;;  %3998 = vmatpush1.bf16.msra.mxu1 %v12657_v23  ;;  %v12713_v22 = vcombine.low %v903_v7, %v907_v9  ;;  %v12720_v23 = vcombine.high %v910_v13, %v914_v14  ;;  %v959_v7 = vld [vmem:[#allocation5 + $0x988] sm:$0xff]  ;;  %v12759_v9 = vcombine.low %v950_v61, %v954_v62 }
  0xe3   :  { %3827 = vmatprep.subr.bf16.mxu0 %v12664_v25  ;;  %3999 = vmatprep.subr.bf16.mxu1 %v12666_v29  ;;  %v919_v25 = vld [vmem:[#allocation5 + $0x848] sm:$0xff]  ;;  %v14845_v29 = vld [vmem:[%s15161_s1 + $0x30] sm:$0xff] }
  0xe4   :  { %v12730_v35 = vcombine.high %v919_v25, %v923_v26  ;;  %v12729_v18 = vcombine.low %v919_v25, %v923_v26  ;;  %v975_v25 = vld [vmem:[#allocation5 + $0xa08] sm:$0xff] }
  0xe5   :  { %v979_v26 = vld [vmem:[#allocation5 + $0xa28] sm:$0xff] }
  0xe6   :  { %3828 = vmatpush1.bf16.msra.mxu0 %v12663_v31  ;;  %4000 = vmatpush1.bf16.msra.mxu1 %v12665_v32  ;;  %v12719_v31 = vcombine.low %v910_v13, %v914_v14  ;;  %v12721_v32 = vcombine.low %v911_v16, %v915_v20  ;;  %v966_v13 = vld [vmem:[#allocation5 + $0x9c0] sm:$0xff]  ;;  %v967_v16 = vld [vmem:[#allocation5 + $0x9c8] sm:$0xff]  ;;  %v12767_v20 = vcombine.low %v958_v5, %v962_v6 }
  0xe7   :  { %3829 = vmatprep.subr.bf16.mxu0 %v12672_v33  ;;  %4001 = vmatprep.subr.bf16.mxu1 %v12674_v37  ;;  %v12728_v33 = vcombine.high %v918_v53, %v922_v54  ;;  %v927_v37 = vld [vmem:[#allocation5 + $0x888] sm:$0xff]  ;;  %v970_v14 = vld [vmem:[#allocation5 + $0x9e0] sm:$0xff] }
  0xe8   :  { %v12776_v53 = vcombine.high %v966_v13, %v970_v14 }
  0xea   :  { %3830 = vmatpush1.bf16.msra.mxu0 %v12671_v39  ;;  %4002 = vmatpush1.bf16.msra.mxu1 %v12673_v40  ;;  %v14853_v39 = vcombine.high %v14840_v27, %v14845_v29  ;;  %v12736_v40 = vcombine.high %v926_v34, %v930_v36  ;;  %v982_v34 = vld [vmem:[#allocation5 + $0xa40] sm:$0xff]  ;;  %v983_v36 = vld [vmem:[#allocation5 + $0xa48] sm:$0xff] }
  0xeb   :  { %3831 = vmatprep.subr.bf16.mxu0 %v12680_v41  ;;  %4003 = vmatprep.subr.bf16.mxu1 %v12682_v45  ;;  %v12738_v41 = vcombine.high %v927_v37, %v931_v38  ;;  %v939_v45 = vld [vmem:[#allocation5 + $0x8e8] sm:$0xff] }
  0xee   :  { %3832 = vmatpush1.bf16.msra.mxu0 %v12679_v47  ;;  %4004 = vmatpush1.bf16.msra.mxu1 %v12681_v48  ;;  %v12737_v47 = vcombine.low %v927_v37, %v931_v38  ;;  %v12744_v48 = vcombine.high %v934_v42, %v938_v43  ;;  %v987_v37 = vld [vmem:[#allocation5 + $0xa68] sm:$0xff]  ;;  %v994_v42 = vld [vmem:[#allocation5 + $0xaa0] sm:$0xff] }
  0xef   :  { %3833 = vmatprep.subr.bf16.mxu0 %v12688_v49  ;;  %4005 = vmatprep.subr.bf16.mxu1 %v12690_v55  ;;  %v12746_v49 = vcombine.high %v935_v44, %v939_v45  ;;  %v947_v55 = vld [vmem:[#allocation5 + $0x928] sm:$0xff] }
  0xf0   :  { %v991_v43 = vld [vmem:[#allocation5 + $0xa88] sm:$0xff] }
  0xf2   :  { %3834 = vmatpush1.bf16.msra.mxu0 %v12687_v57  ;;  %4006 = vmatpush1.bf16.msra.mxu1 %v12689_v59  ;;  %v12745_v57 = vcombine.low %v935_v44, %v939_v45  ;;  %v12752_v59 = vcombine.high %v942_v50, %v946_v51  ;;  %v995_v44 = vld [vmem:[#allocation5 + $0xaa8] sm:$0xff]  ;;  %v1002_v50 = vld [vmem:[#allocation5 + $0xae0] sm:$0xff] }
  0xf3   :  { %3835 = vmatprep.subr.bf16.mxu0 %v12696_v60  ;;  %4007 = vmatprep.subr.bf16.mxu1 %v12698_v0  ;;  %v12754_v60 = vcombine.high %v943_v52, %v947_v55  ;;  %v955_v0 = vld [vmem:[#allocation5 + $0x968] sm:$0xff] }
  0xf4   :  { %v999_v51 = vld [vmem:[#allocation5 + $0xac8] sm:$0xff] }
  0xf6   :  { %3836 = vmatpush1.bf16.msra.mxu0 %v12695_v2  ;;  %4008 = vmatpush1.bf16.msra.mxu1 %v12697_v3  ;;  %v12753_v2 = vcombine.low %v943_v52, %v947_v55  ;;  %v12760_v3 = vcombine.high %v950_v61, %v954_v62  ;;  %v1003_v52 = vld [vmem:[#allocation5 + $0xae8] sm:$0xff]  ;;  %v1010_v61 = vld [vmem:[#allocation5 + $0xb20] sm:$0xff] }
  0xf7   :  { %3837 = vmatprep.subr.bf16.mxu0 %v12704_v4  ;;  %4009 = vmatprep.subr.bf16.mxu1 %v12706_v8  ;;  %v12762_v4 = vcombine.high %v951_v63, %v955_v0  ;;  %v963_v8 = vld [vmem:[#allocation5 + $0x9a8] sm:$0xff] }
  0xf8   :  { %v1007_v62 = vld [vmem:[#allocation5 + $0xb08] sm:$0xff] }
  0xfa   :  { %3838 = vmatpush1.bf16.msra.mxu0 %v12703_v10  ;;  %4010 = vmatpush1.bf16.msra.mxu1 %v12705_v11  ;;  %v12761_v10 = vcombine.low %v951_v63, %v955_v0  ;;  %v12768_v11 = vcombine.high %v958_v5, %v962_v6  ;;  %v1011_v63 = vld [vmem:[#allocation5 + $0xb28] sm:$0xff]  ;;  %v1018_v5 = vld [vmem:[#allocation5 + $0xb60] sm:$0xff] }
  0xfb   :  { %3839 = vmatprep.subr.bf16.mxu0 %v12712_v12  ;;  %4011 = vmatprep.subr.bf16.mxu1 %v12714_v19  ;;  %v12770_v12 = vcombine.high %v959_v7, %v963_v8  ;;  %v971_v19 = vld [vmem:[#allocation5 + $0x9e8] sm:$0xff] }
  0xfc   :  { %v12778_v54 = vcombine.high %v967_v16, %v971_v19  ;;  %v1015_v6 = vld [vmem:[#allocation5 + $0xb48] sm:$0xff] }
  0xfe   :  { %3840 = vmatpush1.bf16.msra.mxu0 %v12711_v21  ;;  %4012 = vmatpush1.bf16.msra.mxu1 %v12713_v22  ;;  %v12769_v21 = vcombine.low %v959_v7, %v963_v8  ;;  %v974_v22 = vld [vmem:[#allocation5 + $0xa00] sm:$0xff]  ;;  %v1019_v7 = vld [vmem:[#allocation5 + $0xb68] sm:$0xff] }
  0xff   :  { %3852 = vmatprep.subr.bf16.mxu0 %v12720_v23  ;;  %4024 = vmatprep.subr.bf16.mxu1 %v12722_v28  ;;  %v978_v23 = vld [vmem:[#allocation5 + $0xa20] sm:$0xff]  ;;  %v12775_v28 = vcombine.low %v966_v13, %v970_v14  ;;  %v1023_v14 = vld [vmem:[#allocation5 + $0xb88] sm:$0xff] }
 0x100   :  { %v12783_v38 = vcombine.low %v974_v22, %v978_v23  ;;  %v1026_v13 = vld [vmem:[#allocation5 + $0xba0] sm:$0xff] }
 0x101   :  { %3842 = vmatmul.mubr.bf16.vlgmr.msra.gmra.mrb[0].mxu0 %v14849_v30  ;;  %4014 = vmatmul.mubr.bf16.vlgmr.msra.gmra.mrb[0].mxu1 %v14849_v30 }
 0x102   :  { %3853 = vmatpush1.bf16.msra.mxu0 %v12719_v31  ;;  %4025 = vmatpush1.bf16.msra.mxu1 %v12721_v32  ;;  %v12777_v31 = vcombine.low %v967_v16, %v971_v19  ;;  %v12784_v32 = vcombine.high %v974_v22, %v978_v23  ;;  %v1027_v16 = vld [vmem:[#allocation5 + $0xba8] sm:$0xff]  ;;  %v1034_v22 = vld [vmem:[#allocation5 + $0xbe0] sm:$0xff] }
 0x103   :  { %3854 = vmatprep.subr.bf16.mxu0 %v12728_v33  ;;  %4026 = vmatprep.subr.bf16.mxu1 %v12730_v35  ;;  %v12786_v33 = vcombine.high %v975_v25, %v979_v26  ;;  %v986_v35 = vld [vmem:[#allocation5 + $0xa60] sm:$0xff]  ;;  %v1031_v23 = vld [vmem:[#allocation5 + $0xbc8] sm:$0xff] }
 0x104   :  { %3884 = vmatprep.mubr.bf16.mxu0 %v14853_v39  ;;  %4056 = vmatprep.mubr.bf16.mxu1 %v14853_v39  ;;  %v12791_v45 = vcombine.low %v982_v34, %v986_v35 }
 0x106   :  { %3855 = vmatpush1.bf16.msra.mxu0 %v12727_v17  ;;  %4027 = vmatpush1.bf16.msra.mxu1 %v12729_v18  ;;  %v12785_v17 = vcombine.low %v975_v25, %v979_v26  ;;  %v12792_v18 = vcombine.high %v982_v34, %v986_v35  ;;  %v1035_v25 = vld [vmem:[#allocation5 + $0xbe8] sm:$0xff]  ;;  %v1042_v34 = vld [vmem:[#allocation5 + $0xc20] sm:$0xff] }
 0x107   :  { %3856 = vmatprep.subr.bf16.mxu0 %v12736_v40  ;;  %4028 = vmatprep.subr.bf16.mxu1 %v12738_v41  ;;  %v12794_v40 = vcombine.high %v983_v36, %v987_v37  ;;  %v990_v41 = vld [vmem:[#allocation5 + $0xa80] sm:$0xff]  ;;  %v1039_v35 = vld [vmem:[#allocation5 + $0xc08] sm:$0xff] }
 0x108   :  { %v12799_v55 = vcombine.low %v990_v41, %v994_v42 }
 0x10a   :  { %3857 = vmatpush1.bf16.msra.mxu0 %v12735_v46  ;;  %4029 = vmatpush1.bf16.msra.mxu1 %v12737_v47  ;;  %v12793_v46 = vcombine.low %v983_v36, %v987_v37  ;;  %v12800_v47 = vcombine.high %v990_v41, %v994_v42  ;;  %v1043_v36 = vld [vmem:[#allocation5 + $0xc28] sm:$0xff]  ;;  %v1050_v41 = vld [vmem:[#allocation5 + $0xc60] sm:$0xff] }
 0x10b   :  { %3858 = vmatprep.subr.bf16.mxu0 %v12744_v48  ;;  %4030 = vmatprep.subr.bf16.mxu1 %v12746_v49  ;;  %v12802_v48 = vcombine.high %v991_v43, %v995_v44  ;;  %v998_v49 = vld [vmem:[#allocation5 + $0xac0] sm:$0xff]  ;;  %v1047_v42 = vld [vmem:[#allocation5 + $0xc48] sm:$0xff] }
 0x10c   :  { %v12807_v0 = vcombine.low %v998_v49, %v1002_v50 }
 0x10e   :  { %3859 = vmatpush1.bf16.msra.mxu0 %v12743_v56  ;;  %4031 = vmatpush1.bf16.msra.mxu1 %v12745_v57  ;;  %v12801_v56 = vcombine.low %v991_v43, %v995_v44  ;;  %v12808_v57 = vcombine.high %v998_v49, %v1002_v50  ;;  %v14861_v43 = vcombine.low %v14840_v27, %v14845_v29  ;;  %v1051_v44 = vld [vmem:[#allocation5 + $0xc68] sm:$0xff]  ;;  %v1054_v29 = vld [vmem:[#allocation5 + $0xc80] sm:$0xff] }
 0x10f   :  { %3860 = vmatprep.subr.bf16.mxu0 %v12752_v59  ;;  %4032 = vmatprep.subr.bf16.mxu1 %v12754_v60  ;;  %v12810_v59 = vcombine.high %v999_v51, %v1003_v52  ;;  %v1006_v60 = vld [vmem:[#allocation5 + $0xb00] sm:$0xff]  ;;  %v12858_v27 = vcombine.high %v1047_v42, %v1051_v44 }
 0x110   :  { %v12815_v8 = vcombine.low %v1006_v60, %v1010_v61  ;;  %v1058_v50 = vld [vmem:[#allocation5 + $0xca0] sm:$0xff] }
 0x112   :  { %3861 = vmatpush1.bf16.msra.mxu0 %v12751_v1  ;;  %4033 = vmatpush1.bf16.msra.mxu1 %v12753_v2  ;;  %v12809_v1 = vcombine.low %v999_v51, %v1003_v52  ;;  %v12816_v2 = vcombine.high %v1006_v60, %v1010_v61  ;;  %v1055_v52 = vld [vmem:[#allocation5 + $0xc88] sm:$0xff]  ;;  %v1062_v61 = vld [vmem:[#allocation5 + $0xcc0] sm:$0xff] }
 0x113   :  { %3862 = vmatprep.subr.bf16.mxu0 %v12760_v3  ;;  %4034 = vmatprep.subr.bf16.mxu1 %v12762_v4  ;;  %v12818_v3 = vcombine.high %v1007_v62, %v1011_v63  ;;  %v1014_v4 = vld [vmem:[#allocation5 + $0xb40] sm:$0xff] }
 0x114   :  { %v12823_v19 = vcombine.low %v1014_v4, %v1018_v5 }
 0x116   :  { %3863 = vmatpush1.bf16.msra.mxu0 %v12759_v9  ;;  %4035 = vmatpush1.bf16.msra.mxu1 %v12761_v10  ;;  %v12817_v9 = vcombine.low %v1007_v62, %v1011_v63  ;;  %v12824_v10 = vcombine.high %v1014_v4, %v1018_v5  ;;  %v1066_v62 = vld [vmem:[#allocation5 + $0xce0] sm:$0xff]  ;;  %v1063_v63 = vld [vmem:[#allocation5 + $0xcc8] sm:$0xff] }
 0x117   :  { %3864 = vmatprep.subr.bf16.mxu0 %v12768_v11  ;;  %4036 = vmatprep.subr.bf16.mxu1 %v12770_v12  ;;  %v12826_v11 = vcombine.high %v1015_v6, %v1019_v7  ;;  %v1022_v12 = vld [vmem:[#allocation5 + $0xb80] sm:$0xff] }
 0x118   :  { %v12831_v26 = vcombine.low %v1022_v12, %v1026_v13  ;;  %v1070_v5 = vld [vmem:[#allocation5 + $0xd00] sm:$0xff] }
 0x11a   :  { %3865 = vmatpush1.bf16.msra.mxu0 %v12767_v20  ;;  %4037 = vmatpush1.bf16.msra.mxu1 %v12769_v21  ;;  %v12825_v20 = vcombine.low %v1015_v6, %v1019_v7  ;;  %v12832_v21 = vcombine.high %v1022_v12, %v1026_v13  ;;  %v1074_v6 = vld [vmem:[#allocation5 + $0xd20] sm:$0xff]  ;;  %v1071_v7 = vld [vmem:[#allocation5 + $0xd08] sm:$0xff] }
 0x11b   :  { %3866 = vmatprep.subr.bf16.mxu0 %v12776_v53  ;;  %4038 = vmatprep.subr.bf16.mxu1 %v12778_v54  ;;  %v12834_v53 = vcombine.high %v1023_v14, %v1027_v16  ;;  %v1030_v54 = vld [vmem:[#allocation5 + $0xbc0] sm:$0xff] }
 0x11c   :  { %v12839_v37 = vcombine.low %v1030_v54, %v1034_v22  ;;  %v1078_v13 = vld [vmem:[#allocation5 + $0xd40] sm:$0xff] }
 0x11e   :  { %3867 = vmatpush1.bf16.msra.mxu0 %v12775_v28  ;;  %4039 = vmatpush1.bf16.msra.mxu1 %v12777_v31  ;;  %v12833_v28 = vcombine.low %v1023_v14, %v1027_v16  ;;  %v12840_v31 = vcombine.high %v1030_v54, %v1034_v22  ;;  %v1082_v14 = vld [vmem:[#allocation5 + $0xd60] sm:$0xff]  ;;  %v1079_v16 = vld [vmem:[#allocation5 + $0xd48] sm:$0xff] }
 0x11f   :  { %3868 = vmatprep.subr.bf16.mxu0 %v12784_v32  ;;  %4040 = vmatprep.subr.bf16.mxu1 %v12786_v33  ;;  %v12842_v32 = vcombine.high %v1031_v23, %v1035_v25  ;;  %v1038_v33 = vld [vmem:[#allocation5 + $0xc00] sm:$0xff] }
 0x120   :  { %v1086_v22 = vld [vmem:[#allocation5 + $0xd80] sm:$0xff] }
 0x122   :  { %3869 = vmatpush1.bf16.msra.mxu0 %v12783_v38  ;;  %4041 = vmatpush1.bf16.msra.mxu1 %v12785_v17  ;;  %v12841_v38 = vcombine.low %v1031_v23, %v1035_v25  ;;  %v12848_v17 = vcombine.high %v1038_v33, %v1042_v34  ;;  %v1090_v23 = vld [vmem:[#allocation5 + $0xda0] sm:$0xff]  ;;  %v1087_v25 = vld [vmem:[#allocation5 + $0xd88] sm:$0xff] }
 0x123   :  { %3870 = vmatprep.subr.bf16.mxu0 %v12792_v18  ;;  %4042 = vmatprep.subr.bf16.mxu1 %v12794_v40  ;;  %v12850_v18 = vcombine.high %v1039_v35, %v1043_v36  ;;  %v1046_v40 = vld [vmem:[#allocation5 + $0xc40] sm:$0xff] }
 0x124   :  { %v12856_v49 = vcombine.high %v1046_v40, %v1050_v41 }
 0x126   :  { %3871 = vmatpush1.bf16.msra.mxu0 %v12791_v45  ;;  %4043 = vmatpush1.bf16.msra.mxu1 %v12793_v46  ;;  %v14866_v45 = vld [vmem:[%s15161_s1 + $0x18] sm:$0xff] }
 0x127   :  { %3872 = vmatprep.subr.bf16.mxu0 %v12800_v47  ;;  %4044 = vmatprep.subr.bf16.mxu1 %v12802_v48  ;;  %v14871_v46 = vld [vmem:[%s15161_s1 + $0x38] sm:$0xff]  ;;  %v12847_v47 = vcombine.low %v1038_v33, %v1042_v34  ;;  %v12849_v48 = vcombine.low %v1039_v35, %v1043_v36  ;;  %v1094_v34 = vld [vmem:[#allocation5 + $0xdc0] sm:$0xff]  ;;  %v1095_v36 = vld [vmem:[#allocation5 + $0xdc8] sm:$0xff] }
 0x128   :  { %v14875_v51 = vcombine.high %v14866_v45, %v14871_v46  ;;  %v1098_v35 = vld [vmem:[#allocation5 + $0xde0] sm:$0xff] }
 0x12a   :  { %3873 = vmatpush1.bf16.msra.mxu0 %v12799_v55  ;;  %4045 = vmatpush1.bf16.msra.mxu1 %v12801_v56  ;;  %v1059_v55 = vld [vmem:[#allocation5 + $0xca8] sm:$0xff]  ;;  %v12855_v56 = vcombine.low %v1046_v40, %v1050_v41  ;;  %v1102_v41 = vld [vmem:[#allocation5 + $0xe00] sm:$0xff] }
 0x12b   :  { %3874 = vmatprep.subr.bf16.mxu0 %v12808_v57  ;;  %4046 = vmatprep.subr.bf16.mxu1 %v12810_v59  ;;  %v12857_v57 = vcombine.low %v1047_v42, %v1051_v44  ;;  %v12864_v59 = vcombine.high %v1054_v29, %v1058_v50  ;;  %v12866_v60 = vcombine.high %v1055_v52, %v1059_v55  ;;  %v1106_v42 = vld [vmem:[#allocation5 + $0xe20] sm:$0xff]  ;;  %v1103_v44 = vld [vmem:[#allocation5 + $0xe08] sm:$0xff] }
 0x12e   :  { %3875 = vmatpush1.bf16.msra.mxu0 %v12807_v0  ;;  %4047 = vmatpush1.bf16.msra.mxu1 %v12809_v1  ;;  %v1067_v0 = vld [vmem:[#allocation5 + $0xce8] sm:$0xff]  ;;  %v12863_v1 = vcombine.low %v1054_v29, %v1058_v50  ;;  %v1110_v50 = vld [vmem:[#allocation5 + $0xe40] sm:$0xff] }
 0x12f   :  { %3876 = vmatprep.subr.bf16.mxu0 %v12816_v2  ;;  %4048 = vmatprep.subr.bf16.mxu1 %v12818_v3  ;;  %v12865_v2 = vcombine.low %v1055_v52, %v1059_v55  ;;  %v12872_v3 = vcombine.high %v1062_v61, %v1066_v62  ;;  %v12874_v4 = vcombine.high %v1063_v63, %v1067_v0  ;;  %v1114_v52 = vld [vmem:[#allocation5 + $0xe60] sm:$0xff]  ;;  %v1111_v55 = vld [vmem:[#allocation5 + $0xe48] sm:$0xff] }
 0x132   :  { %3877 = vmatpush1.bf16.msra.mxu0 %v12815_v8  ;;  %4049 = vmatpush1.bf16.msra.mxu1 %v12817_v9  ;;  %v1075_v8 = vld [vmem:[#allocation5 + $0xd28] sm:$0xff]  ;;  %v12871_v9 = vcombine.low %v1062_v61, %v1066_v62  ;;  %v1118_v62 = vld [vmem:[#allocation5 + $0xe80] sm:$0xff] }
 0x133   :  { %3878 = vmatprep.subr.bf16.mxu0 %v12824_v10  ;;  %4050 = vmatprep.subr.bf16.mxu1 %v12826_v11  ;;  %v12873_v10 = vcombine.low %v1063_v63, %v1067_v0  ;;  %v12880_v11 = vcombine.high %v1070_v5, %v1074_v6  ;;  %v12882_v12 = vcombine.high %v1071_v7, %v1075_v8  ;;  %v1122_v63 = vld [vmem:[#allocation5 + $0xea0] sm:$0xff]  ;;  %v1119_v0 = vld [vmem:[#allocation5 + $0xe88] sm:$0xff] }
 0x136   :  { %3879 = vmatpush1.bf16.msra.mxu0 %v12823_v19  ;;  %4051 = vmatpush1.bf16.msra.mxu1 %v12825_v20  ;;  %v1083_v19 = vld [vmem:[#allocation5 + $0xd68] sm:$0xff]  ;;  %v12879_v20 = vcombine.low %v1070_v5, %v1074_v6  ;;  %v1126_v6 = vld [vmem:[#allocation5 + $0xec0] sm:$0xff] }
 0x137   :  { %3880 = vmatprep.subr.bf16.mxu0 %v12832_v21  ;;  %4052 = vmatprep.subr.bf16.mxu1 %v12834_v53  ;;  %v12881_v21 = vcombine.low %v1071_v7, %v1075_v8  ;;  %v12888_v53 = vcombine.high %v1078_v13, %v1082_v14  ;;  %v12890_v54 = vcombine.high %v1079_v16, %v1083_v19  ;;  %v1130_v7 = vld [vmem:[#allocation5 + $0xee0] sm:$0xff]  ;;  %v1127_v8 = vld [vmem:[#allocation5 + $0xec8] sm:$0xff] }
 0x13a   :  { %3881 = vmatpush1.bf16.msra.mxu0 %v12831_v26  ;;  %4053 = vmatpush1.bf16.msra.mxu1 %v12833_v28  ;;  %v1091_v26 = vld [vmem:[#allocation5 + $0xda8] sm:$0xff]  ;;  %v12887_v28 = vcombine.low %v1078_v13, %v1082_v14  ;;  %v1134_v14 = vld [vmem:[#allocation5 + $0xf00] sm:$0xff] }
 0x13b   :  { %3882 = vmatprep.subr.bf16.mxu0 %v12840_v31  ;;  %4054 = vmatprep.subr.bf16.mxu1 %v12842_v32  ;;  %v12889_v31 = vcombine.low %v1079_v16, %v1083_v19  ;;  %v12896_v32 = vcombine.high %v1086_v22, %v1090_v23  ;;  %v12898_v33 = vcombine.high %v1087_v25, %v1091_v26  ;;  %v1138_v16 = vld [vmem:[#allocation5 + $0xf20] sm:$0xff]  ;;  %v1135_v19 = vld [vmem:[#allocation5 + $0xf08] sm:$0xff] }
 0x13e   :  { %3883 = vmatpush1.bf16.msra.mxu0 %v12839_v37  ;;  %4055 = vmatpush1.bf16.msra.mxu1 %v12841_v38  ;;  %v1099_v37 = vld [vmem:[#allocation5 + $0xde8] sm:$0xff]  ;;  %v12895_v38 = vcombine.low %v1086_v22, %v1090_v23  ;;  %v1142_v23 = vld [vmem:[#allocation5 + $0xf40] sm:$0xff] }
 0x13f   :  { %3895 = vmatprep.subr.bf16.mxu0 %v12848_v17  ;;  %4067 = vmatprep.subr.bf16.mxu1 %v12850_v18  ;;  %v12897_v17 = vcombine.low %v1087_v25, %v1091_v26  ;;  %v12904_v18 = vcombine.high %v1094_v34, %v1098_v35  ;;  %v12906_v40 = vcombine.high %v1095_v36, %v1099_v37  ;;  %v1146_v25 = vld [vmem:[#allocation5 + $0xf60] sm:$0xff]  ;;  %v1143_v26 = vld [vmem:[#allocation5 + $0xf48] sm:$0xff] }
 0x141   :  { %3885 = vmatmul.mubr.bf16.vlgmr.msra.gmra.mrb[0].mxu0 %v14861_v43  ;;  %4057 = vmatmul.mubr.bf16.vlgmr.msra.gmra.mrb[0].mxu1 %v14861_v43 }
 0x142   :  { %3896 = vmatpush1.bf16.msra.mxu0 %v12847_v47  ;;  %4068 = vmatpush1.bf16.msra.mxu1 %v12849_v48  ;;  %v1107_v47 = vld [vmem:[#allocation5 + $0xe28] sm:$0xff]  ;;  %v12903_v48 = vcombine.low %v1094_v34, %v1098_v35  ;;  %v1150_v35 = vld [vmem:[#allocation5 + $0xf80] sm:$0xff] }
 0x143   :  { %3897 = vmatprep.subr.bf16.mxu0 %v12856_v49  ;;  %4069 = vmatprep.subr.bf16.mxu1 %v12858_v27  ;;  %v12905_v49 = vcombine.low %v1095_v36, %v1099_v37  ;;  %v12912_v27 = vcombine.high %v1102_v41, %v1106_v42  ;;  %v12914_v29 = vcombine.high %v1103_v44, %v1107_v47  ;;  %v1154_v36 = vld [vmem:[#allocation5 + $0xfa0] sm:$0xff]  ;;  %v1151_v37 = vld [vmem:[#allocation5 + $0xf88] sm:$0xff] }
 0x144   :  { %3927 = vmatprep.mubr.bf16.mxu0 %v14875_v51  ;;  %4099 = vmatprep.mubr.bf16.mxu1 %v14875_v51 }
 0x146   :  { %3898 = vmatpush1.bf16.msra.mxu0 %v12855_v56  ;;  %4070 = vmatpush1.bf16.msra.mxu1 %v12857_v57  ;;  %v1115_v56 = vld [vmem:[#allocation5 + $0xe68] sm:$0xff]  ;;  %v12911_v57 = vcombine.low %v1102_v41, %v1106_v42  ;;  %v1158_v42 = vld [vmem:[#allocation5 + $0xfc0] sm:$0xff] }
 0x147   :  { %3899 = vmatprep.subr.bf16.mxu0 %v12864_v59  ;;  %4071 = vmatprep.subr.bf16.mxu1 %v12866_v60  ;;  %v12913_v59 = vcombine.low %v1103_v44, %v1107_v47  ;;  %v12920_v60 = vcombine.high %v1110_v50, %v1114_v52  ;;  %v12922_v61 = vcombine.high %v1111_v55, %v1115_v56  ;;  %v1162_v44 = vld [vmem:[#allocation5 + $0xfe0] sm:$0xff]  ;;  %v1159_v47 = vld [vmem:[#allocation5 + $0xfc8] sm:$0xff] }
 0x14a   :  { %3900 = vmatpush1.bf16.msra.mxu0 %v12863_v1  ;;  %4072 = vmatpush1.bf16.msra.mxu1 %v12865_v2  ;;  %v1123_v1 = vld [vmem:[#allocation5 + $0xea8] sm:$0xff]  ;;  %v12919_v2 = vcombine.low %v1110_v50, %v1114_v52  ;;  %v656_v52 = vld [vmem:[#allocation5 + $0x10] sm:$0xff] }
 0x14b   :  { %3901 = vmatprep.subr.bf16.mxu0 %v12872_v3  ;;  %4073 = vmatprep.subr.bf16.mxu1 %v12874_v4  ;;  %v12921_v3 = vcombine.low %v1111_v55, %v1115_v56  ;;  %v12928_v4 = vcombine.high %v1118_v62, %v1122_v63  ;;  %v12930_v5 = vcombine.high %v1119_v0, %v1123_v1  ;;  %v660_v55 = vld [vmem:[#allocation5 + $0x30] sm:$0xff]  ;;  %v657_v56 = vld [vmem:[#allocation5 + $0x18] sm:$0xff] }
 0x14e   :  { %3902 = vmatpush1.bf16.msra.mxu0 %v12871_v9  ;;  %4074 = vmatpush1.bf16.msra.mxu1 %v12873_v10  ;;  %v1131_v9 = vld [vmem:[#allocation5 + $0xee8] sm:$0xff]  ;;  %v12927_v10 = vcombine.low %v1118_v62, %v1122_v63  ;;  %v664_v63 = vld [vmem:[#allocation5 + $0x50] sm:$0xff] }
 0x14f   :  { %3903 = vmatprep.subr.bf16.mxu0 %v12880_v11  ;;  %4075 = vmatprep.subr.bf16.mxu1 %v12882_v12  ;;  %v12929_v11 = vcombine.low %v1119_v0, %v1123_v1  ;;  %v12936_v12 = vcombine.high %v1126_v6, %v1130_v7  ;;  %v12938_v13 = vcombine.high %v1127_v8, %v1131_v9  ;;  %v668_v0 = vld [vmem:[#allocation5 + $0x70] sm:$0xff] }
 0x150   :  { %v14883_v1 = vcombine.low %v14866_v45, %v14871_v46  ;;  %v12475_v45 = vcombine.low %v664_v63, %v668_v0 }
 0x152   :  { %3904 = vmatpush1.bf16.msra.mxu0 %v12879_v20  ;;  %4076 = vmatpush1.bf16.msra.mxu1 %v12881_v21  ;;  %v1139_v20 = vld [vmem:[#allocation5 + $0xf28] sm:$0xff]  ;;  %v12935_v21 = vcombine.low %v1126_v6, %v1130_v7  ;;  %v12476_v6 = vcombine.high %v664_v63, %v668_v0  ;;  %v724_v63 = vld [vmem:[#allocation5 + $0x230] sm:$0xff]  ;;  %v721_v0 = vld [vmem:[#allocation5 + $0x218] sm:$0xff] }
 0x153   :  { %3905 = vmatprep.subr.bf16.mxu0 %v12888_v53  ;;  %4077 = vmatprep.subr.bf16.mxu1 %v12890_v54  ;;  %v12937_v53 = vcombine.low %v1127_v8, %v1131_v9  ;;  %v12944_v54 = vcombine.high %v1134_v14, %v1138_v16  ;;  %v12946_v22 = vcombine.high %v1135_v19, %v1139_v20  ;;  %v672_v8 = vld [vmem:[#allocation5 + $0x90] sm:$0xff] }
 0x154   :  { %v676_v9 = vld [vmem:[#allocation5 + $0xb0] sm:$0xff] }
 0x156   :  { %3906 = vmatpush1.bf16.msra.mxu0 %v12887_v28  ;;  %4078 = vmatpush1.bf16.msra.mxu1 %v12889_v31  ;;  %v1147_v28 = vld [vmem:[#allocation5 + $0xf68] sm:$0xff]  ;;  %v12943_v31 = vcombine.low %v1134_v14, %v1138_v16  ;;  %v680_v14 = vld [vmem:[#allocation5 + $0xd0] sm:$0xff] }
 0x157   :  { %3907 = vmatprep.subr.bf16.mxu0 %v12896_v32  ;;  %4079 = vmatprep.subr.bf16.mxu1 %v12898_v33  ;;  %v12945_v32 = vcombine.low %v1135_v19, %v1139_v20  ;;  %v12952_v33 = vcombine.high %v1142_v23, %v1146_v25  ;;  %v12954_v34 = vcombine.high %v1143_v26, %v1147_v28  ;;  %v684_v16 = vld [vmem:[#allocation5 + $0xf0] sm:$0xff]  ;;  %v681_v19 = vld [vmem:[#allocation5 + $0xd8] sm:$0xff] }
 0x158   :  { %v685_v20 = vld [vmem:[#allocation5 + $0xf8] sm:$0xff] }
 0x15a   :  { %3908 = vmatpush1.bf16.msra.mxu0 %v12895_v38  ;;  %4080 = vmatpush1.bf16.msra.mxu1 %v12897_v17  ;;  %v1155_v38 = vld [vmem:[#allocation5 + $0xfa8] sm:$0xff]  ;;  %v12951_v17 = vcombine.low %v1142_v23, %v1146_v25  ;;  %v688_v23 = vld [vmem:[#allocation5 + $0x110] sm:$0xff] }
 0x15b   :  { %3909 = vmatprep.subr.bf16.mxu0 %v12904_v18  ;;  %4081 = vmatprep.subr.bf16.mxu1 %v12906_v40  ;;  %v12953_v18 = vcombine.low %v1143_v26, %v1147_v28  ;;  %v12960_v40 = vcombine.high %v1150_v35, %v1154_v36  ;;  %v12962_v41 = vcombine.high %v1151_v37, %v1155_v38  ;;  %v692_v25 = vld [vmem:[#allocation5 + $0x130] sm:$0xff]  ;;  %v689_v26 = vld [vmem:[#allocation5 + $0x118] sm:$0xff] }
 0x15c   :  { %v693_v28 = vld [vmem:[#allocation5 + $0x138] sm:$0xff] }
 0x15e   :  { %3910 = vmatpush1.bf16.msra.mxu0 %v12903_v48  ;;  %4082 = vmatpush1.bf16.msra.mxu1 %v12905_v49  ;;  %v1163_v48 = vld [vmem:[#allocation5 + $0xfe8] sm:$0xff]  ;;  %v12959_v49 = vcombine.low %v1150_v35, %v1154_v36  ;;  %v700_v35 = vld [vmem:[#allocation5 + $0x170] sm:$0xff]  ;;  %v697_v36 = vld [vmem:[#allocation5 + $0x158] sm:$0xff] }
 0x15f   :  { %3911 = vmatprep.subr.bf16.mxu0 %v12912_v27  ;;  %4083 = vmatprep.subr.bf16.mxu1 %v12914_v29  ;;  %v12961_v27 = vcombine.low %v1151_v37, %v1155_v38  ;;  %v12968_v29 = vcombine.high %v1158_v42, %v1162_v44  ;;  %v12970_v50 = vcombine.high %v1159_v47, %v1163_v48  ;;  %v701_v37 = vld [vmem:[#allocation5 + $0x178] sm:$0xff] }
 0x160   :  { %v12499_v38 = vcombine.low %v688_v23, %v692_v25 }
 0x162   :  { %3912 = vmatpush1.bf16.msra.mxu0 %v12911_v57  ;;  %4084 = vmatpush1.bf16.msra.mxu1 %v12913_v59  ;;  %v661_v57 = vld [vmem:[#allocation5 + $0x38] sm:$0xff]  ;;  %v12967_v59 = vcombine.low %v1158_v42, %v1162_v44  ;;  %v708_v42 = vld [vmem:[#allocation5 + $0x1b0] sm:$0xff] }
 0x163   :  { %3913 = vmatprep.subr.bf16.mxu0 %v12920_v60  ;;  %4085 = vmatprep.subr.bf16.mxu1 %v12922_v61  ;;  %v12969_v60 = vcombine.low %v1159_v47, %v1163_v48  ;;  %v12468_v61 = vcombine.high %v656_v52, %v660_v55  ;;  %v12470_v62 = vcombine.high %v657_v56, %v661_v57  ;;  %v705_v44 = vld [vmem:[#allocation5 + $0x198] sm:$0xff] }
 0x164   :  { %v709_v47 = vld [vmem:[#allocation5 + $0x1b8] sm:$0xff] }
 0x166   :  { %3914 = vmatpush1.bf16.msra.mxu0 %v12919_v2  ;;  %4086 = vmatpush1.bf16.msra.mxu1 %v12921_v3  ;;  %v665_v2 = vld [vmem:[#allocation5 + $0x58] sm:$0xff] }
 0x167   :  { %3915 = vmatprep.subr.bf16.mxu0 %v12928_v4  ;;  %4087 = vmatprep.subr.bf16.mxu1 %v12930_v5  ;;  %v669_v3 = vld [vmem:[#allocation5 + $0x78] sm:$0xff]  ;;  %v12467_v4 = vcombine.low %v656_v52, %v660_v55  ;;  %v12469_v5 = vcombine.low %v657_v56, %v661_v57  ;;  %v716_v52 = vld [vmem:[#allocation5 + $0x1f0] sm:$0xff] }
 0x168   :  { %v12478_v7 = vcombine.high %v665_v2, %v669_v3  ;;  %v12477_v46 = vcombine.low %v665_v2, %v669_v3  ;;  %v713_v55 = vld [vmem:[#allocation5 + $0x1d8] sm:$0xff] }
 0x169   :  { %v717_v56 = vld [vmem:[#allocation5 + $0x1f8] sm:$0xff] }
 0x16a   :  { %3916 = vmatpush1.bf16.msra.mxu0 %v12927_v10  ;;  %4088 = vmatpush1.bf16.msra.mxu1 %v12929_v11  ;;  %v673_v10 = vld [vmem:[#allocation5 + $0x98] sm:$0xff] }
 0x16b   :  { %3917 = vmatprep.subr.bf16.mxu0 %v12936_v12  ;;  %4089 = vmatprep.subr.bf16.mxu1 %v12938_v13  ;;  %v677_v11 = vld [vmem:[#allocation5 + $0xb8] sm:$0xff]  ;;  %v12484_v12 = vcombine.high %v672_v8, %v676_v9 }
 0x16c   :  { %v12486_v13 = vcombine.high %v673_v10, %v677_v11  ;;  %v725_v2 = vld [vmem:[#allocation5 + $0x238] sm:$0xff] }
 0x16e   :  { %3918 = vmatpush1.bf16.msra.mxu0 %v12935_v21  ;;  %4090 = vmatpush1.bf16.msra.mxu1 %v12937_v53  ;;  %v12483_v21 = vcombine.low %v672_v8, %v676_v9  ;;  %v12485_v53 = vcombine.low %v673_v10, %v677_v11  ;;  %v732_v8 = vld [vmem:[#allocation5 + $0x270] sm:$0xff]  ;;  %v729_v9 = vld [vmem:[#allocation5 + $0x258] sm:$0xff] }
 0x16f   :  { %3919 = vmatprep.subr.bf16.mxu0 %v12944_v54  ;;  %4091 = vmatprep.subr.bf16.mxu1 %v12946_v22  ;;  %v12492_v54 = vcombine.high %v680_v14, %v684_v16  ;;  %v12494_v22 = vcombine.high %v681_v19, %v685_v20  ;;  %v733_v10 = vld [vmem:[#allocation5 + $0x278] sm:$0xff] }
 0x172   :  { %3920 = vmatpush1.bf16.msra.mxu0 %v12943_v31  ;;  %4092 = vmatpush1.bf16.msra.mxu1 %v12945_v32  ;;  %v12491_v31 = vcombine.low %v680_v14, %v684_v16  ;;  %v12493_v32 = vcombine.low %v681_v19, %v685_v20  ;;  %v740_v14 = vld [vmem:[#allocation5 + $0x2b0] sm:$0xff]  ;;  %v737_v16 = vld [vmem:[#allocation5 + $0x298] sm:$0xff] }
 0x173   :  { %3921 = vmatprep.subr.bf16.mxu0 %v12952_v33  ;;  %4093 = vmatprep.subr.bf16.mxu1 %v12954_v34  ;;  %v12500_v33 = vcombine.high %v688_v23, %v692_v25  ;;  %v696_v34 = vld [vmem:[#allocation5 + $0x150] sm:$0xff]  ;;  %v741_v19 = vld [vmem:[#allocation5 + $0x2b8] sm:$0xff] }
 0x174   :  { %v12507_v48 = vcombine.low %v696_v34, %v700_v35  ;;  %v748_v23 = vld [vmem:[#allocation5 + $0x2f0] sm:$0xff]  ;;  %v745_v25 = vld [vmem:[#allocation5 + $0x2d8] sm:$0xff] }
 0x176   :  { %3922 = vmatpush1.bf16.msra.mxu0 %v12951_v17  ;;  %4094 = vmatpush1.bf16.msra.mxu1 %v12953_v18  ;;  %v12501_v17 = vcombine.low %v689_v26, %v693_v28  ;;  %v12508_v18 = vcombine.high %v696_v34, %v700_v35  ;;  %v756_v34 = vld [vmem:[#allocation5 + $0x330] sm:$0xff]  ;;  %v753_v35 = vld [vmem:[#allocation5 + $0x318] sm:$0xff] }
 0x177   :  { %3923 = vmatprep.subr.bf16.mxu0 %v12960_v40  ;;  %4095 = vmatprep.subr.bf16.mxu1 %v12962_v41  ;;  %v12510_v40 = vcombine.high %v697_v36, %v701_v37  ;;  %v704_v41 = vld [vmem:[#allocation5 + $0x190] sm:$0xff] }
 0x178   :  { %v12515_v57 = vcombine.low %v704_v41, %v708_v42 }
 0x17a   :  { %3924 = vmatpush1.bf16.msra.mxu0 %v12959_v49  ;;  %4096 = vmatpush1.bf16.msra.mxu1 %v12961_v27  ;;  %v12509_v49 = vcombine.low %v697_v36, %v701_v37  ;;  %v12516_v27 = vcombine.high %v704_v41, %v708_v42  ;;  %v757_v36 = vld [vmem:[#allocation5 + $0x338] sm:$0xff]  ;;  %v764_v41 = vld [vmem:[#allocation5 + $0x370] sm:$0xff] }
 0x17b   :  { %3925 = vmatprep.subr.bf16.mxu0 %v12968_v29  ;;  %4097 = vmatprep.subr.bf16.mxu1 %v12970_v50  ;;  %v12518_v29 = vcombine.high %v705_v44, %v709_v47  ;;  %v712_v50 = vld [vmem:[#allocation5 + $0x1d0] sm:$0xff]  ;;  %v761_v42 = vld [vmem:[#allocation5 + $0x358] sm:$0xff] }
 0x17c   :  { %v12523_v3 = vcombine.low %v712_v50, %v716_v52 }
 0x17e   :  { %3926 = vmatpush1.bf16.msra.mxu0 %v12967_v59  ;;  %4098 = vmatpush1.bf16.msra.mxu1 %v12969_v60  ;;  %v12517_v59 = vcombine.low %v705_v44, %v709_v47  ;;  %v12524_v60 = vcombine.high %v712_v50, %v716_v52  ;;  %v765_v44 = vld [vmem:[#allocation5 + $0x378] sm:$0xff]  ;;  %v772_v50 = vld [vmem:[#allocation5 + $0x3b0] sm:$0xff] }
 0x17f   :  { %4110 = vmatprep.subr.bf16.mxu0 %v12468_v61  ;;  %4282 = vmatprep.subr.bf16.mxu1 %v12470_v62  ;;  %v12526_v61 = vcombine.high %v713_v55, %v717_v56  ;;  %v720_v62 = vld [vmem:[#allocation5 + $0x210] sm:$0xff]  ;;  %v769_v52 = vld [vmem:[#allocation5 + $0x398] sm:$0xff] }
 0x180   :  { %v12531_v11 = vcombine.low %v720_v62, %v724_v63 }
 0x181   :  { %3928 = vmatmul.mubr.bf16.vlgmr.msra.gmra.mrb[0].mxu0 %v14883_v1  ;;  %4100 = vmatmul.mubr.bf16.vlgmr.msra.gmra.mrb[0].mxu1 %v14883_v1 }
 0x182   :  { %4111 = vmatpush1.bf16.msra.mxu0 %v12467_v4  ;;  %4283 = vmatpush1.bf16.msra.mxu1 %v12469_v5  ;;  %v12525_v4 = vcombine.low %v713_v55, %v717_v56  ;;  %v12532_v5 = vcombine.high %v720_v62, %v724_v63  ;;  %v773_v55 = vld [vmem:[#allocation5 + $0x3b8] sm:$0xff]  ;;  %v780_v62 = vld [vmem:[#allocation5 + $0x3f0] sm:$0xff] }
 0x183   :  { %4112 = vmatprep.subr.bf16.mxu0 %v12476_v6  ;;  %4284 = vmatprep.subr.bf16.mxu1 %v12478_v7  ;;  %v12534_v6 = vcombine.high %v721_v0, %v725_v2  ;;  %v728_v7 = vld [vmem:[#allocation5 + $0x250] sm:$0xff]  ;;  %v777_v63 = vld [vmem:[#allocation5 + $0x3d8] sm:$0xff] }
 0x184   :  { %4142 = vmatprep.mubr.bf16.mxu0 %v14811_v58  ;;  %4314 = vmatprep.mubr.bf16.mxu1 %v14811_v58  ;;  %v12502_v58 = vcombine.high %v689_v26, %v693_v28  ;;  %v12539_v20 = vcombine.low %v728_v7, %v732_v8  ;;  %v749_v26 = vld [vmem:[#allocation5 + $0x2f8] sm:$0xff] }
 0x186   :  { %4113 = vmatpush1.bf16.msra.mxu0 %v12475_v45  ;;  %4285 = vmatpush1.bf16.msra.mxu1 %v12477_v46  ;;  %v12533_v45 = vcombine.low %v721_v0, %v725_v2  ;;  %v12540_v46 = vcombine.high %v728_v7, %v732_v8  ;;  %v781_v0 = vld [vmem:[#allocation5 + $0x3f8] sm:$0xff]  ;;  %v788_v7 = vld [vmem:[#allocation5 + $0x430] sm:$0xff] }
 0x187   :  { %4114 = vmatprep.subr.bf16.mxu0 %v12484_v12  ;;  %4286 = vmatprep.subr.bf16.mxu1 %v12486_v13  ;;  %v12542_v12 = vcombine.high %v729_v9, %v733_v10  ;;  %v736_v13 = vld [vmem:[#allocation5 + $0x290] sm:$0xff]  ;;  %v785_v8 = vld [vmem:[#allocation5 + $0x418] sm:$0xff] }
 0x188   :  { %v12547_v28 = vcombine.low %v736_v13, %v740_v14 }
 0x18a   :  { %4115 = vmatpush1.bf16.msra.mxu0 %v12483_v21  ;;  %4287 = vmatpush1.bf16.msra.mxu1 %v12485_v53  ;;  %v12541_v21 = vcombine.low %v729_v9, %v733_v10  ;;  %v12548_v53 = vcombine.high %v736_v13, %v740_v14  ;;  %v789_v9 = vld [vmem:[#allocation5 + $0x438] sm:$0xff]  ;;  %v796_v13 = vld [vmem:[#allocation5 + $0x470] sm:$0xff] }
 0x18b   :  { %4116 = vmatprep.subr.bf16.mxu0 %v12492_v54  ;;  %4288 = vmatprep.subr.bf16.mxu1 %v12494_v22  ;;  %v12550_v54 = vcombine.high %v737_v16, %v741_v19  ;;  %v744_v22 = vld [vmem:[#allocation5 + $0x2d0] sm:$0xff]  ;;  %v793_v14 = vld [vmem:[#allocation5 + $0x458] sm:$0xff] }
 0x18c   :  { %v12555_v37 = vcombine.low %v744_v22, %v748_v23 }
 0x18e   :  { %4117 = vmatpush1.bf16.msra.mxu0 %v12491_v31  ;;  %4289 = vmatpush1.bf16.msra.mxu1 %v12493_v32  ;;  %v12549_v31 = vcombine.low %v737_v16, %v741_v19  ;;  %v12556_v32 = vcombine.high %v744_v22, %v748_v23  ;;  %v797_v16 = vld [vmem:[#allocation5 + $0x478] sm:$0xff]  ;;  %v804_v22 = vld [vmem:[#allocation5 + $0x4b0] sm:$0xff] }
 0x18f   :  { %4118 = vmatprep.subr.bf16.mxu0 %v12500_v33  ;;  %4290 = vmatprep.subr.bf16.mxu1 %v12502_v58  ;;  %v12558_v33 = vcombine.high %v745_v25, %v749_v26  ;;  %v752_v58 = vld [vmem:[#allocation5 + $0x310] sm:$0xff]  ;;  %v801_v23 = vld [vmem:[#allocation5 + $0x498] sm:$0xff] }
 0x190   :  { %v12563_v47 = vcombine.low %v752_v58, %v756_v34 }
 0x192   :  { %4119 = vmatpush1.bf16.msra.mxu0 %v12499_v38  ;;  %4291 = vmatpush1.bf16.msra.mxu1 %v12501_v17  ;;  %v12557_v38 = vcombine.low %v745_v25, %v749_v26  ;;  %v12564_v17 = vcombine.high %v752_v58, %v756_v34  ;;  %v805_v25 = vld [vmem:[#allocation5 + $0x4b8] sm:$0xff]  ;;  %v812_v58 = vld [vmem:[#allocation5 + $0x4f0] sm:$0xff] }
 0x193   :  { %4120 = vmatprep.subr.bf16.mxu0 %v12508_v18  ;;  %4292 = vmatprep.subr.bf16.mxu1 %v12510_v40  ;;  %v12566_v18 = vcombine.high %v753_v35, %v757_v36  ;;  %v760_v40 = vld [vmem:[#allocation5 + $0x350] sm:$0xff]  ;;  %v809_v34 = vld [vmem:[#allocation5 + $0x4d8] sm:$0xff] }
 0x194   :  { %v12571_v56 = vcombine.low %v760_v40, %v764_v41 }
 0x196   :  { %4121 = vmatpush1.bf16.msra.mxu0 %v12507_v48  ;;  %4293 = vmatpush1.bf16.msra.mxu1 %v12509_v49  ;;  %v12565_v48 = vcombine.low %v753_v35, %v757_v36  ;;  %v12572_v49 = vcombine.high %v760_v40, %v764_v41  ;;  %v813_v35 = vld [vmem:[#allocation5 + $0x4f8] sm:$0xff] }
 0x197   :  { %4122 = vmatprep.subr.bf16.mxu0 %v12516_v27  ;;  %4294 = vmatprep.subr.bf16.mxu1 %v12518_v29  ;;  %v12574_v27 = vcombine.high %v761_v42, %v765_v44  ;;  %v768_v29 = vld [vmem:[#allocation5 + $0x390] sm:$0xff]  ;;  %v817_v40 = vld [vmem:[#allocation5 + $0x518] sm:$0xff] }
 0x198   :  { %v12579_v2 = vcombine.low %v768_v29, %v772_v50  ;;  %v821_v41 = vld [vmem:[#allocation5 + $0x538] sm:$0xff] }
 0x19a   :  { %4123 = vmatpush1.bf16.msra.mxu0 %v12515_v57  ;;  %4295 = vmatpush1.bf16.msra.mxu1 %v12517_v59  ;;  %v12573_v57 = vcombine.low %v761_v42, %v765_v44  ;;  %v12580_v59 = vcombine.high %v768_v29, %v772_v50  ;;  %v12621_v44 = vcombine.low %v809_v34, %v813_v35  ;;  %v829_v29 = vld [vmem:[#allocation5 + $0x578] sm:$0xff] }
 0x19b   :  { %4124 = vmatprep.subr.bf16.mxu0 %v12524_v60  ;;  %4296 = vmatprep.subr.bf16.mxu1 %v12526_v61  ;;  %v12582_v60 = vcombine.high %v769_v52, %v773_v55  ;;  %v776_v61 = vld [vmem:[#allocation5 + $0x3d0] sm:$0xff] }
 0x19c   :  { %v12587_v10 = vcombine.low %v776_v61, %v780_v62 }
 0x19e   :  { %4125 = vmatpush1.bf16.msra.mxu0 %v12523_v3  ;;  %4297 = vmatpush1.bf16.msra.mxu1 %v12525_v4  ;;  %v12581_v3 = vcombine.low %v769_v52, %v773_v55  ;;  %v12588_v4 = vcombine.high %v776_v61, %v780_v62  ;;  %v12629_v52 = vcombine.low %v817_v40, %v821_v41  ;;  %v837_v61 = vld [vmem:[#allocation5 + $0x5b8] sm:$0xff] }
 0x19f   :  { %4126 = vmatprep.subr.bf16.mxu0 %v12532_v5  ;;  %4298 = vmatprep.subr.bf16.mxu1 %v12534_v6  ;;  %v12590_v5 = vcombine.high %v777_v63, %v781_v0  ;;  %v784_v6 = vld [vmem:[#allocation5 + $0x410] sm:$0xff] }
 0x1a0   :  { %v12595_v19 = vcombine.low %v784_v6, %v788_v7 }
 0x1a2   :  { %4127 = vmatpush1.bf16.msra.mxu0 %v12531_v11  ;;  %4299 = vmatpush1.bf16.msra.mxu1 %v12533_v45  ;;  %v12589_v11 = vcombine.low %v777_v63, %v781_v0  ;;  %v12596_v45 = vcombine.high %v784_v6, %v788_v7  ;;  %v845_v6 = vld [vmem:[#allocation5 + $0x5f8] sm:$0xff] }
 0x1a3   :  { %4128 = vmatprep.subr.bf16.mxu0 %v12540_v46  ;;  %4300 = vmatprep.subr.bf16.mxu1 %v12542_v12  ;;  %v12598_v46 = vcombine.high %v785_v8, %v789_v9  ;;  %v792_v12 = vld [vmem:[#allocation5 + $0x450] sm:$0xff] }
 0x1a4   :  { %v12603_v26 = vcombine.low %v792_v12, %v796_v13 }
 0x1a6   :  { %4129 = vmatpush1.bf16.msra.mxu0 %v12539_v20  ;;  %4301 = vmatpush1.bf16.msra.mxu1 %v12541_v21  ;;  %v12597_v20 = vcombine.low %v785_v8, %v789_v9  ;;  %v12604_v21 = vcombine.high %v792_v12, %v796_v13  ;;  %v853_v12 = vld [vmem:[#allocation5 + $0x638] sm:$0xff] }
 0x1a7   :  { %4130 = vmatprep.subr.bf16.mxu0 %v12548_v53  ;;  %4302 = vmatprep.subr.bf16.mxu1 %v12550_v54  ;;  %v12606_v53 = vcombine.high %v793_v14, %v797_v16  ;;  %v800_v54 = vld [vmem:[#allocation5 + $0x490] sm:$0xff] }
 0x1a8   :  { %v12611_v36 = vcombine.low %v800_v54, %v804_v22 }
 0x1aa   :  { %4131 = vmatpush1.bf16.msra.mxu0 %v12547_v28  ;;  %4303 = vmatpush1.bf16.msra.mxu1 %v12549_v31  ;;  %v12605_v28 = vcombine.low %v793_v14, %v797_v16  ;;  %v12612_v31 = vcombine.high %v800_v54, %v804_v22  ;;  %v861_v54 = vld [vmem:[#allocation5 + $0x678] sm:$0xff] }
 0x1ab   :  { %4132 = vmatprep.subr.bf16.mxu0 %v12556_v32  ;;  %4304 = vmatprep.subr.bf16.mxu1 %v12558_v33  ;;  %v12614_v32 = vcombine.high %v801_v23, %v805_v25  ;;  %v808_v33 = vld [vmem:[#allocation5 + $0x4d0] sm:$0xff] }
 0x1ac   :  { %v12619_v42 = vcombine.low %v808_v33, %v812_v58 }
 0x1ae   :  { %4133 = vmatpush1.bf16.msra.mxu0 %v12555_v37  ;;  %4305 = vmatpush1.bf16.msra.mxu1 %v12557_v38  ;;  %v12620_v37 = vcombine.high %v808_v33, %v812_v58  ;;  %v12622_v38 = vcombine.high %v809_v34, %v813_v35  ;;  %v869_v33 = vld [vmem:[#allocation5 + $0x6b8] sm:$0xff] }
 0x1af   :  { %4134 = vmatprep.subr.bf16.mxu0 %v12564_v17  ;;  %4306 = vmatprep.subr.bf16.mxu1 %v12566_v18  ;;  %v816_v17 = vld [vmem:[#allocation5 + $0x510] sm:$0xff] }
 0x1b0   :  { %v820_v18 = vld [vmem:[#allocation5 + $0x530] sm:$0xff] }
 0x1b1   :  { %v12627_v50 = vcombine.low %v816_v17, %v820_v18 }
 0x1b2   :  { %4135 = vmatpush1.bf16.msra.mxu0 %v12563_v47  ;;  %4307 = vmatpush1.bf16.msra.mxu1 %v12565_v48  ;;  %v12628_v47 = vcombine.high %v816_v17, %v820_v18  ;;  %v824_v48 = vld [vmem:[#allocation5 + $0x550] sm:$0xff]  ;;  %v877_v17 = vld [vmem:[#allocation5 + $0x6f8] sm:$0xff] }
 0x1b3   :  { %4136 = vmatprep.subr.bf16.mxu0 %v12572_v49  ;;  %4308 = vmatprep.subr.bf16.mxu1 %v12574_v27  ;;  %v828_v49 = vld [vmem:[#allocation5 + $0x570] sm:$0xff]  ;;  %v825_v27 = vld [vmem:[#allocation5 + $0x558] sm:$0xff] }
 0x1b4   :  { %v12636_v55 = vcombine.high %v824_v48, %v828_v49  ;;  %v12635_v62 = vcombine.low %v824_v48, %v828_v49  ;;  %v12637_v63 = vcombine.low %v825_v27, %v829_v29  ;;  %v885_v48 = vld [vmem:[#allocation5 + $0x738] sm:$0xff] }
 0x1b6   :  { %4137 = vmatpush1.bf16.msra.mxu0 %v12571_v56  ;;  %4309 = vmatpush1.bf16.msra.mxu1 %v12573_v57  ;;  %v12638_v56 = vcombine.high %v825_v27, %v829_v29  ;;  %v832_v57 = vld [vmem:[#allocation5 + $0x590] sm:$0xff] }
 0x1b7   :  { %4138 = vmatprep.subr.bf16.mxu0 %v12580_v59  ;;  %4310 = vmatprep.subr.bf16.mxu1 %v12582_v60  ;;  %v836_v59 = vld [vmem:[#allocation5 + $0x5b0] sm:$0xff]  ;;  %v833_v60 = vld [vmem:[#allocation5 + $0x598] sm:$0xff] }
 0x1b8   :  { %v12644_v0 = vcombine.high %v832_v57, %v836_v59  ;;  %v12643_v7 = vcombine.low %v832_v57, %v836_v59  ;;  %v12645_v8 = vcombine.low %v833_v60, %v837_v61  ;;  %v893_v57 = vld [vmem:[#allocation5 + $0x778] sm:$0xff] }
 0x1ba   :  { %4139 = vmatpush1.bf16.msra.mxu0 %v12579_v2  ;;  %4311 = vmatpush1.bf16.msra.mxu1 %v12581_v3  ;;  %v12646_v2 = vcombine.high %v833_v60, %v837_v61  ;;  %v840_v3 = vld [vmem:[#allocation5 + $0x5d0] sm:$0xff] }
 0x1bb   :  { %4140 = vmatprep.subr.bf16.mxu0 %v12588_v4  ;;  %4312 = vmatprep.subr.bf16.mxu1 %v12590_v5  ;;  %v844_v4 = vld [vmem:[#allocation5 + $0x5f0] sm:$0xff]  ;;  %v841_v5 = vld [vmem:[#allocation5 + $0x5d8] sm:$0xff] }
 0x1bc   :  { %v12652_v9 = vcombine.high %v840_v3, %v844_v4  ;;  %v12651_v13 = vcombine.low %v840_v3, %v844_v4  ;;  %v12653_v14 = vcombine.low %v841_v5, %v845_v6  ;;  %v901_v3 = vld [vmem:[#allocation5 + $0x7b8] sm:$0xff] }
 0x1be   :  { %4141 = vmatpush1.bf16.msra.mxu0 %v12587_v10  ;;  %4313 = vmatpush1.bf16.msra.mxu1 %v12589_v11  ;;  %v12654_v10 = vcombine.high %v841_v5, %v845_v6  ;;  %v848_v11 = vld [vmem:[#allocation5 + $0x610] sm:$0xff] }
 0x1bf   :  { %4153 = vmatprep.subr.bf16.mxu0 %v12596_v45  ;;  %4325 = vmatprep.subr.bf16.mxu1 %v12598_v46  ;;  %v852_v45 = vld [vmem:[#allocation5 + $0x630] sm:$0xff]  ;;  %v849_v46 = vld [vmem:[#allocation5 + $0x618] sm:$0xff] }
 0x1c0   :  { %v12660_v16 = vcombine.high %v848_v11, %v852_v45  ;;  %v12659_v22 = vcombine.low %v848_v11, %v852_v45  ;;  %v909_v11 = vld [vmem:[#allocation5 + $0x7f8] sm:$0xff] }
 0x1c1   :  { %4143 = vmatmul.mubr.bf16.vlgmr.msra.gmra.mrb[4].mxu0 %v14817_v15  ;;  %4315 = vmatmul.mubr.bf16.vlgmr.msra.gmra.mrb[4].mxu1 %v14817_v15  ;;  %v12613_v15 = vcombine.low %v801_v23, %v805_v25  ;;  %v12661_v23 = vcombine.low %v849_v46, %v853_v12 }
 0x1c2   :  { %4154 = vmatpush1.bf16.msra.mxu0 %v12595_v19  ;;  %4326 = vmatpush1.bf16.msra.mxu1 %v12597_v20  ;;  %v12662_v19 = vcombine.high %v849_v46, %v853_v12  ;;  %v856_v20 = vld [vmem:[#allocation5 + $0x650] sm:$0xff] }
 0x1c3   :  { %4155 = vmatprep.subr.bf16.mxu0 %v12604_v21  ;;  %4327 = vmatprep.subr.bf16.mxu1 %v12606_v53  ;;  %v860_v21 = vld [vmem:[#allocation5 + $0x670] sm:$0xff]  ;;  %v857_v53 = vld [vmem:[#allocation5 + $0x658] sm:$0xff] }
 0x1c4   :  { %4185 = vmatprep.mubr.bf16.mxu0 %v14831_v24  ;;  %4357 = vmatprep.mubr.bf16.mxu1 %v14831_v24  ;;  %v12630_v24 = vcombine.high %v817_v40, %v821_v41  ;;  %v12668_v25 = vcombine.high %v856_v20, %v860_v21  ;;  %v12667_v58 = vcombine.low %v856_v20, %v860_v21  ;;  %v917_v20 = vld [vmem:[#allocation5 + $0x838] sm:$0xff] }
 0x1c5   :  { %v12669_v34 = vcombine.low %v857_v53, %v861_v54 }
 0x1c6   :  { %4156 = vmatpush1.bf16.msra.mxu0 %v12603_v26  ;;  %4328 = vmatpush1.bf16.msra.mxu1 %v12605_v28  ;;  %v12670_v26 = vcombine.high %v857_v53, %v861_v54  ;;  %v864_v28 = vld [vmem:[#allocation5 + $0x690] sm:$0xff] }
 0x1c7   :  { %4157 = vmatprep.subr.bf16.mxu0 %v12612_v31  ;;  %4329 = vmatprep.subr.bf16.mxu1 %v12614_v32  ;;  %v868_v31 = vld [vmem:[#allocation5 + $0x6b0] sm:$0xff]  ;;  %v865_v32 = vld [vmem:[#allocation5 + $0x698] sm:$0xff] }
 0x1c8   :  { %v12676_v35 = vcombine.high %v864_v28, %v868_v31  ;;  %v12675_v18 = vcombine.low %v864_v28, %v868_v31  ;;  %v12677_v40 = vcombine.low %v865_v32, %v869_v33  ;;  %v925_v28 = vld [vmem:[#allocation5 + $0x878] sm:$0xff] }
 0x1ca   :  { %4158 = vmatpush1.bf16.msra.mxu0 %v12611_v36  ;;  %4330 = vmatpush1.bf16.msra.mxu1 %v12613_v15  ;;  %v12678_v36 = vcombine.high %v865_v32, %v869_v33  ;;  %v872_v15 = vld [vmem:[#allocation5 + $0x6d0] sm:$0xff] }
 0x1cb   :  { %4159 = vmatprep.subr.bf16.mxu0 %v12620_v37  ;;  %4331 = vmatprep.subr.bf16.mxu1 %v12622_v38  ;;  %v876_v37 = vld [vmem:[#allocation5 + $0x6f0] sm:$0xff]  ;;  %v873_v38 = vld [vmem:[#allocation5 + $0x6d8] sm:$0xff] }
 0x1cc   :  { %v12684_v41 = vcombine.high %v872_v15, %v876_v37  ;;  %v12683_v49 = vcombine.low %v872_v15, %v876_v37  ;;  %v12685_v27 = vcombine.low %v873_v38, %v877_v17  ;;  %v933_v15 = vld [vmem:[#allocation5 + $0x8b8] sm:$0xff] }
 0x1ce   :  { %4160 = vmatpush1.bf16.msra.mxu0 %v12619_v42  ;;  %4332 = vmatpush1.bf16.msra.mxu1 %v12621_v44  ;;  %v12686_v42 = vcombine.high %v873_v38, %v877_v17  ;;  %v880_v44 = vld [vmem:[#allocation5 + $0x710] sm:$0xff] }
 0x1cf   :  { %4161 = vmatprep.subr.bf16.mxu0 %v12628_v47  ;;  %4333 = vmatprep.subr.bf16.mxu1 %v12630_v24  ;;  %v884_v47 = vld [vmem:[#allocation5 + $0x730] sm:$0xff]  ;;  %v881_v24 = vld [vmem:[#allocation5 + $0x718] sm:$0xff] }
 0x1d0   :  { %v12692_v29 = vcombine.high %v880_v44, %v884_v47  ;;  %v12691_v59 = vcombine.low %v880_v44, %v884_v47  ;;  %v12693_v60 = vcombine.low %v881_v24, %v885_v48  ;;  %v941_v44 = vld [vmem:[#allocation5 + $0x8f8] sm:$0xff] }
 0x1d2   :  { %4162 = vmatpush1.bf16.msra.mxu0 %v12627_v50  ;;  %4334 = vmatpush1.bf16.msra.mxu1 %v12629_v52  ;;  %v12694_v50 = vcombine.high %v881_v24, %v885_v48  ;;  %v888_v52 = vld [vmem:[#allocation5 + $0x750] sm:$0xff] }
 0x1d3   :  { %4163 = vmatprep.subr.bf16.mxu0 %v12636_v55  ;;  %4335 = vmatprep.subr.bf16.mxu1 %v12638_v56  ;;  %v892_v55 = vld [vmem:[#allocation5 + $0x770] sm:$0xff]  ;;  %v889_v56 = vld [vmem:[#allocation5 + $0x758] sm:$0xff] }
 0x1d4   :  { %v12700_v61 = vcombine.high %v888_v52, %v892_v55  ;;  %v12699_v4 = vcombine.low %v888_v52, %v892_v55  ;;  %v12701_v5 = vcombine.low %v889_v56, %v893_v57 }
 0x1d6   :  { %4164 = vmatpush1.bf16.msra.mxu0 %v12635_v62  ;;  %4336 = vmatpush1.bf16.msra.mxu1 %v12637_v63  ;;  %v12702_v62 = vcombine.high %v889_v56, %v893_v57  ;;  %v896_v63 = vld [vmem:[#allocation5 + $0x790] sm:$0xff] }
 0x1d7   :  { %4165 = vmatprep.subr.bf16.mxu0 %v12644_v0  ;;  %4337 = vmatprep.subr.bf16.mxu1 %v12646_v2  ;;  %v900_v0 = vld [vmem:[#allocation5 + $0x7b0] sm:$0xff]  ;;  %v897_v2 = vld [vmem:[#allocation5 + $0x798] sm:$0xff] }
 0x1d8   :  { %v12708_v6 = vcombine.high %v896_v63, %v900_v0  ;;  %v12707_v45 = vcombine.low %v896_v63, %v900_v0  ;;  %v12709_v46 = vcombine.low %v897_v2, %v901_v3  ;;  %v952_v57 = vld [vmem:[#allocation5 + $0x950] sm:$0xff] }
 0x1da   :  { %4166 = vmatpush1.bf16.msra.mxu0 %v12643_v7  ;;  %4338 = vmatpush1.bf16.msra.mxu1 %v12645_v8  ;;  %v12710_v7 = vcombine.high %v897_v2, %v901_v3  ;;  %v904_v8 = vld [vmem:[#allocation5 + $0x7d0] sm:$0xff] }
 0x1db   :  { %4167 = vmatprep.subr.bf16.mxu0 %v12652_v9  ;;  %4339 = vmatprep.subr.bf16.mxu1 %v12654_v10  ;;  %v908_v9 = vld [vmem:[#allocation5 + $0x7f0] sm:$0xff]  ;;  %v905_v10 = vld [vmem:[#allocation5 + $0x7d8] sm:$0xff] }
 0x1dc   :  { %v12716_v12 = vcombine.high %v904_v8, %v908_v9  ;;  %v12715_v21 = vcombine.low %v904_v8, %v908_v9  ;;  %v12717_v53 = vcombine.low %v905_v10, %v909_v11  ;;  %v960_v3 = vld [vmem:[#allocation5 + $0x990] sm:$0xff] }
 0x1de   :  { %4168 = vmatpush1.bf16.msra.mxu0 %v12651_v13  ;;  %4340 = vmatpush1.bf16.msra.mxu1 %v12653_v14  ;;  %v12718_v13 = vcombine.high %v905_v10, %v909_v11  ;;  %v912_v14 = vld [vmem:[#allocation5 + $0x810] sm:$0xff] }
 0x1df   :  { %4169 = vmatprep.subr.bf16.mxu0 %v12660_v16  ;;  %4341 = vmatprep.subr.bf16.mxu1 %v12662_v19  ;;  %v916_v16 = vld [vmem:[#allocation5 + $0x830] sm:$0xff]  ;;  %v913_v19 = vld [vmem:[#allocation5 + $0x818] sm:$0xff] }
 0x1e0   :  { %v12724_v54 = vcombine.high %v912_v14, %v916_v16  ;;  %v12723_v31 = vcombine.low %v912_v14, %v916_v16  ;;  %v12725_v32 = vcombine.low %v913_v19, %v917_v20  ;;  %v968_v11 = vld [vmem:[#allocation5 + $0x9d0] sm:$0xff] }
 0x1e2   :  { %4170 = vmatpush1.bf16.msra.mxu0 %v12659_v22  ;;  %4342 = vmatpush1.bf16.msra.mxu1 %v12661_v23  ;;  %v12726_v22 = vcombine.high %v913_v19, %v917_v20  ;;  %v920_v23 = vld [vmem:[#allocation5 + $0x850] sm:$0xff] }
 0x1e3   :  { %4171 = vmatprep.subr.bf16.mxu0 %v12668_v25  ;;  %4343 = vmatprep.subr.bf16.mxu1 %v12670_v26  ;;  %v924_v25 = vld [vmem:[#allocation5 + $0x870] sm:$0xff]  ;;  %v921_v26 = vld [vmem:[#allocation5 + $0x858] sm:$0xff] }
 0x1e4   :  { %v12732_v33 = vcombine.high %v920_v23, %v924_v25  ;;  %v12731_v37 = vcombine.low %v920_v23, %v924_v25  ;;  %v12733_v38 = vcombine.low %v921_v26, %v925_v28  ;;  %v976_v20 = vld [vmem:[#allocation5 + $0xa10] sm:$0xff] }
 0x1e6   :  { %4172 = vmatpush1.bf16.msra.mxu0 %v12667_v58  ;;  %4344 = vmatpush1.bf16.msra.mxu1 %v12669_v34  ;;  %v12734_v58 = vcombine.high %v921_v26, %v925_v28  ;;  %v928_v34 = vld [vmem:[#allocation5 + $0x890] sm:$0xff] }
 0x1e7   :  { %4173 = vmatprep.subr.bf16.mxu0 %v12676_v35  ;;  %4345 = vmatprep.subr.bf16.mxu1 %v12678_v36  ;;  %v932_v35 = vld [vmem:[#allocation5 + $0x8b0] sm:$0xff]  ;;  %v929_v36 = vld [vmem:[#allocation5 + $0x898] sm:$0xff] }
 0x1e8   :  { %v12740_v17 = vcombine.high %v928_v34, %v932_v35  ;;  %v12739_v47 = vcombine.low %v928_v34, %v932_v35  ;;  %v984_v28 = vld [vmem:[#allocation5 + $0xa50] sm:$0xff] }
 0x1ea   :  { %4174 = vmatpush1.bf16.msra.mxu0 %v12675_v18  ;;  %4346 = vmatpush1.bf16.msra.mxu1 %v12677_v40  ;;  %v12742_v18 = vcombine.high %v929_v36, %v933_v15  ;;  %v936_v40 = vld [vmem:[#allocation5 + $0x8d0] sm:$0xff] }
 0x1eb   :  { %4175 = vmatprep.subr.bf16.mxu0 %v12684_v41  ;;  %4347 = vmatprep.subr.bf16.mxu1 %v12686_v42  ;;  %v940_v41 = vld [vmem:[#allocation5 + $0x8f0] sm:$0xff]  ;;  %v937_v42 = vld [vmem:[#allocation5 + $0x8d8] sm:$0xff] }
 0x1ec   :  { %v12748_v24 = vcombine.high %v936_v40, %v940_v41  ;;  %v12750_v48 = vcombine.high %v937_v42, %v941_v44  ;;  %v12747_v52 = vcombine.low %v936_v40, %v940_v41  ;;  %v12749_v55 = vcombine.low %v937_v42, %v941_v44  ;;  %v1000_v44 = vld [vmem:[#allocation5 + $0xad0] sm:$0xff] }
 0x1ee   :  { %4176 = vmatpush1.bf16.msra.mxu0 %v12683_v49  ;;  %4348 = vmatpush1.bf16.msra.mxu1 %v12685_v27  ;;  %v944_v49 = vld [vmem:[#allocation5 + $0x910] sm:$0xff] }
 0x1ef   :  { %4177 = vmatprep.subr.bf16.mxu0 %v12692_v29  ;;  %4349 = vmatprep.subr.bf16.mxu1 %v12694_v50  ;;  %v948_v27 = vld [vmem:[#allocation5 + $0x930] sm:$0xff]  ;;  %v945_v29 = vld [vmem:[#allocation5 + $0x918] sm:$0xff] }
 0x1f0   :  { %v949_v50 = vld [vmem:[#allocation5 + $0x938] sm:$0xff]  ;;  %v12756_v56 = vcombine.high %v944_v49, %v948_v27 }
 0x1f1   :  { %v12757_v63 = vcombine.low %v945_v29, %v949_v50 }
 0x1f2   :  { %4178 = vmatpush1.bf16.msra.mxu0 %v12691_v59  ;;  %4350 = vmatpush1.bf16.msra.mxu1 %v12693_v60  ;;  %v956_v59 = vld [vmem:[#allocation5 + $0x970] sm:$0xff]  ;;  %v953_v60 = vld [vmem:[#allocation5 + $0x958] sm:$0xff] }
 0x1f3   :  { %4179 = vmatprep.subr.bf16.mxu0 %v12700_v61  ;;  %4351 = vmatprep.subr.bf16.mxu1 %v12702_v62  ;;  %v957_v61 = vld [vmem:[#allocation5 + $0x978] sm:$0xff]  ;;  %v12755_v62 = vcombine.low %v944_v49, %v948_v27  ;;  %v12764_v0 = vcombine.high %v952_v57, %v956_v59 }
 0x1f4   :  { %v12766_v2 = vcombine.high %v953_v60, %v957_v61  ;;  %v12765_v8 = vcombine.low %v953_v60, %v957_v61  ;;  %v1016_v61 = vld [vmem:[#allocation5 + $0xb50] sm:$0xff] }
 0x1f6   :  { %4180 = vmatpush1.bf16.msra.mxu0 %v12699_v4  ;;  %4352 = vmatpush1.bf16.msra.mxu1 %v12701_v5  ;;  %v964_v4 = vld [vmem:[#allocation5 + $0x9b0] sm:$0xff]  ;;  %v961_v5 = vld [vmem:[#allocation5 + $0x998] sm:$0xff] }
 0x1f7   :  { %4181 = vmatprep.subr.bf16.mxu0 %v12708_v6  ;;  %4353 = vmatprep.subr.bf16.mxu1 %v12710_v7  ;;  %v965_v6 = vld [vmem:[#allocation5 + $0x9b8] sm:$0xff]  ;;  %v12763_v7 = vcombine.low %v952_v57, %v956_v59  ;;  %v12772_v9 = vcombine.high %v960_v3, %v964_v4 }
 0x1f8   :  { %v12774_v10 = vcombine.high %v961_v5, %v965_v6  ;;  %v12773_v14 = vcombine.low %v961_v5, %v965_v6  ;;  %v1024_v6 = vld [vmem:[#allocation5 + $0xb90] sm:$0xff] }
 0x1fa   :  { %4182 = vmatpush1.bf16.msra.mxu0 %v12707_v45  ;;  %4354 = vmatpush1.bf16.msra.mxu1 %v12709_v46  ;;  %v972_v45 = vld [vmem:[#allocation5 + $0x9f0] sm:$0xff]  ;;  %v969_v46 = vld [vmem:[#allocation5 + $0x9d8] sm:$0xff] }
 0x1fb   :  { %4183 = vmatprep.subr.bf16.mxu0 %v12716_v12  ;;  %4355 = vmatprep.subr.bf16.mxu1 %v12718_v13  ;;  %v973_v12 = vld [vmem:[#allocation5 + $0x9f8] sm:$0xff]  ;;  %v12771_v13 = vcombine.low %v960_v3, %v964_v4  ;;  %v12780_v16 = vcombine.high %v968_v11, %v972_v45 }
 0x1fc   :  { %v12782_v19 = vcombine.high %v969_v46, %v973_v12  ;;  %v12781_v23 = vcombine.low %v969_v46, %v973_v12  ;;  %v1032_v12 = vld [vmem:[#allocation5 + $0xbd0] sm:$0xff] }
 0x1fe   :  { %4184 = vmatpush1.bf16.msra.mxu0 %v12715_v21  ;;  %4356 = vmatpush1.bf16.msra.mxu1 %v12717_v53  ;;  %v980_v21 = vld [vmem:[#allocation5 + $0xa30] sm:$0xff]  ;;  %v977_v53 = vld [vmem:[#allocation5 + $0xa18] sm:$0xff] }
 0x1ff   :  { %4196 = vmatprep.subr.bf16.mxu0 %v12724_v54  ;;  %4368 = vmatprep.subr.bf16.mxu1 %v12726_v22  ;;  %v981_v54 = vld [vmem:[#allocation5 + $0xa38] sm:$0xff]  ;;  %v12779_v22 = vcombine.low %v968_v11, %v972_v45  ;;  %v12788_v25 = vcombine.high %v976_v20, %v980_v21 }
 0x200   :  { %v12790_v26 = vcombine.high %v977_v53, %v981_v54  ;;  %v12789_v34 = vcombine.low %v977_v53, %v981_v54  ;;  %v1040_v54 = vld [vmem:[#allocation5 + $0xc10] sm:$0xff] }
 0x201   :  { %4186 = vmatmul.mubr.bf16.vlgmr.msra.gmra.mrb[4].mxu0 %v14849_v30  ;;  %4358 = vmatmul.mubr.bf16.vlgmr.msra.gmra.mrb[4].mxu1 %v14849_v30  ;;  %v12741_v30 = vcombine.low %v929_v36, %v933_v15  ;;  %v992_v15 = vld [vmem:[#allocation5 + $0xa90] sm:$0xff] }
 0x202   :  { %4197 = vmatpush1.bf16.msra.mxu0 %v12723_v31  ;;  %4369 = vmatpush1.bf16.msra.mxu1 %v12725_v32  ;;  %v988_v31 = vld [vmem:[#allocation5 + $0xa70] sm:$0xff]  ;;  %v985_v32 = vld [vmem:[#allocation5 + $0xa58] sm:$0xff] }
 0x203   :  { %4198 = vmatprep.subr.bf16.mxu0 %v12732_v33  ;;  %4370 = vmatprep.subr.bf16.mxu1 %v12734_v58  ;;  %v989_v33 = vld [vmem:[#allocation5 + $0xa78] sm:$0xff]  ;;  %v12787_v58 = vcombine.low %v976_v20, %v980_v21  ;;  %v12796_v35 = vcombine.high %v984_v28, %v988_v31 }
 0x204   :  { %4228 = vmatprep.mubr.bf16.mxu0 %v14853_v39  ;;  %4400 = vmatprep.mubr.bf16.mxu1 %v14853_v39  ;;  %v12758_v39 = vcombine.high %v945_v29, %v949_v50  ;;  %v12798_v36 = vcombine.high %v985_v32, %v989_v33  ;;  %v12797_v40 = vcombine.low %v985_v32, %v989_v33  ;;  %v1008_v50 = vld [vmem:[#allocation5 + $0xb10] sm:$0xff] }
 0x205   :  { %v1048_v33 = vld [vmem:[#allocation5 + $0xc50] sm:$0xff] }
 0x206   :  { %4199 = vmatpush1.bf16.msra.mxu0 %v12731_v37  ;;  %4371 = vmatpush1.bf16.msra.mxu1 %v12733_v38  ;;  %v996_v37 = vld [vmem:[#allocation5 + $0xab0] sm:$0xff]  ;;  %v993_v38 = vld [vmem:[#allocation5 + $0xa98] sm:$0xff] }
 0x207   :  { %4200 = vmatprep.subr.bf16.mxu0 %v12740_v17  ;;  %4372 = vmatprep.subr.bf16.mxu1 %v12742_v18  ;;  %v997_v17 = vld [vmem:[#allocation5 + $0xab8] sm:$0xff]  ;;  %v12795_v18 = vcombine.low %v984_v28, %v988_v31  ;;  %v12804_v41 = vcombine.high %v992_v15, %v996_v37 }
 0x208   :  { %v12806_v42 = vcombine.high %v993_v38, %v997_v17  ;;  %v12805_v49 = vcombine.low %v993_v38, %v997_v17  ;;  %v1056_v17 = vld [vmem:[#allocation5 + $0xc90] sm:$0xff] }
 0x20a   :  { %4201 = vmatpush1.bf16.msra.mxu0 %v12739_v47  ;;  %4373 = vmatpush1.bf16.msra.mxu1 %v12741_v30  ;;  %v1004_v47 = vld [vmem:[#allocation5 + $0xaf0] sm:$0xff]  ;;  %v1001_v30 = vld [vmem:[#allocation5 + $0xad8] sm:$0xff] }
 0x20b   :  { %4202 = vmatprep.subr.bf16.mxu0 %v12748_v24  ;;  %4374 = vmatprep.subr.bf16.mxu1 %v12750_v48  ;;  %v1005_v24 = vld [vmem:[#allocation5 + $0xaf8] sm:$0xff]  ;;  %v12803_v48 = vcombine.low %v992_v15, %v996_v37  ;;  %v12812_v27 = vcombine.high %v1000_v44, %v1004_v47 }
 0x20c   :  { %v12814_v29 = vcombine.high %v1001_v30, %v1005_v24  ;;  %v12813_v57 = vcombine.low %v1001_v30, %v1005_v24  ;;  %v1064_v24 = vld [vmem:[#allocation5 + $0xcd0] sm:$0xff] }
 0x20e   :  { %4203 = vmatpush1.bf16.msra.mxu0 %v12747_v52  ;;  %4375 = vmatpush1.bf16.msra.mxu1 %v12749_v55  ;;  %v1012_v52 = vld [vmem:[#allocation5 + $0xb30] sm:$0xff]  ;;  %v1009_v55 = vld [vmem:[#allocation5 + $0xb18] sm:$0xff] }
 0x20f   :  { %4204 = vmatprep.subr.bf16.mxu0 %v12756_v56  ;;  %4376 = vmatprep.subr.bf16.mxu1 %v12758_v39  ;;  %v1013_v56 = vld [vmem:[#allocation5 + $0xb38] sm:$0xff]  ;;  %v12811_v39 = vcombine.low %v1000_v44, %v1004_v47  ;;  %v12820_v59 = vcombine.high %v1008_v50, %v1012_v52 }
 0x210   :  { %v12822_v60 = vcombine.high %v1009_v55, %v1013_v56  ;;  %v12821_v3 = vcombine.low %v1009_v55, %v1013_v56  ;;  %v1072_v55 = vld [vmem:[#allocation5 + $0xd10] sm:$0xff] }
 0x211   :  { %v1076_v56 = vld [vmem:[#allocation5 + $0xd30] sm:$0xff] }
 0x212   :  { %4205 = vmatpush1.bf16.msra.mxu0 %v12755_v62  ;;  %4377 = vmatpush1.bf16.msra.mxu1 %v12757_v63  ;;  %v1020_v62 = vld [vmem:[#allocation5 + $0xb70] sm:$0xff]  ;;  %v1017_v63 = vld [vmem:[#allocation5 + $0xb58] sm:$0xff] }
 0x213   :  { %4206 = vmatprep.subr.bf16.mxu0 %v12764_v0  ;;  %4378 = vmatprep.subr.bf16.mxu1 %v12766_v2  ;;  %v1021_v0 = vld [vmem:[#allocation5 + $0xb78] sm:$0xff]  ;;  %v12819_v2 = vcombine.low %v1008_v50, %v1012_v52  ;;  %v12828_v4 = vcombine.high %v1016_v61, %v1020_v62 }
 0x214   :  { %v12830_v5 = vcombine.high %v1017_v63, %v1021_v0  ;;  %v12829_v11 = vcombine.low %v1017_v63, %v1021_v0  ;;  %v1084_v63 = vld [vmem:[#allocation5 + $0xd70] sm:$0xff]  ;;  %v1081_v0 = vld [vmem:[#allocation5 + $0xd58] sm:$0xff] }
 0x216   :  { %4207 = vmatpush1.bf16.msra.mxu0 %v12763_v7  ;;  %4379 = vmatpush1.bf16.msra.mxu1 %v12765_v8  ;;  %v1028_v7 = vld [vmem:[#allocation5 + $0xbb0] sm:$0xff]  ;;  %v1025_v8 = vld [vmem:[#allocation5 + $0xb98] sm:$0xff] }
 0x217   :  { %4208 = vmatprep.subr.bf16.mxu0 %v12772_v9  ;;  %4380 = vmatprep.subr.bf16.mxu1 %v12774_v10  ;;  %v1029_v9 = vld [vmem:[#allocation5 + $0xbb8] sm:$0xff]  ;;  %v12827_v10 = vcombine.low %v1016_v61, %v1020_v62  ;;  %v12836_v45 = vcombine.high %v1024_v6, %v1028_v7  ;;  %v12884_v61 = vcombine.high %v1072_v55, %v1076_v56  ;;  %v1080_v62 = vld [vmem:[#allocation5 + $0xd50] sm:$0xff] }
 0x218   :  { %v12838_v46 = vcombine.high %v1025_v8, %v1029_v9  ;;  %v12837_v20 = vcombine.low %v1025_v8, %v1029_v9  ;;  %v1092_v8 = vld [vmem:[#allocation5 + $0xdb0] sm:$0xff]  ;;  %v1089_v9 = vld [vmem:[#allocation5 + $0xd98] sm:$0xff] }
 0x21a   :  { %4209 = vmatpush1.bf16.msra.mxu0 %v12771_v13  ;;  %4381 = vmatpush1.bf16.msra.mxu1 %v12773_v14  ;;  %v1036_v13 = vld [vmem:[#allocation5 + $0xbf0] sm:$0xff]  ;;  %v1033_v14 = vld [vmem:[#allocation5 + $0xbd8] sm:$0xff] }
 0x21b   :  { %4210 = vmatprep.subr.bf16.mxu0 %v12780_v16  ;;  %4382 = vmatprep.subr.bf16.mxu1 %v12782_v19  ;;  %v1037_v16 = vld [vmem:[#allocation5 + $0xbf8] sm:$0xff]  ;;  %v12835_v19 = vcombine.low %v1024_v6, %v1028_v7  ;;  %v12844_v21 = vcombine.high %v1032_v12, %v1036_v13  ;;  %v1088_v7 = vld [vmem:[#allocation5 + $0xd90] sm:$0xff] }
 0x21c   :  { %v12846_v53 = vcombine.high %v1033_v14, %v1037_v16  ;;  %v12845_v28 = vcombine.low %v1033_v14, %v1037_v16  ;;  %v1100_v14 = vld [vmem:[#allocation5 + $0xdf0] sm:$0xff]  ;;  %v1097_v16 = vld [vmem:[#allocation5 + $0xdd8] sm:$0xff] }
 0x21e   :  { %4211 = vmatpush1.bf16.msra.mxu0 %v12779_v22  ;;  %4383 = vmatpush1.bf16.msra.mxu1 %v12781_v23  ;;  %v1044_v22 = vld [vmem:[#allocation5 + $0xc30] sm:$0xff]  ;;  %v1041_v23 = vld [vmem:[#allocation5 + $0xc18] sm:$0xff] }
 0x21f   :  { %4212 = vmatprep.subr.bf16.mxu0 %v12788_v25  ;;  %4384 = vmatprep.subr.bf16.mxu1 %v12790_v26  ;;  %v1045_v25 = vld [vmem:[#allocation5 + $0xc38] sm:$0xff]  ;;  %v12843_v26 = vcombine.low %v1032_v12, %v1036_v13  ;;  %v12852_v31 = vcombine.high %v1040_v54, %v1044_v22  ;;  %v1096_v13 = vld [vmem:[#allocation5 + $0xdd0] sm:$0xff] }
 0x220   :  { %v12854_v32 = vcombine.high %v1041_v23, %v1045_v25  ;;  %v12853_v15 = vcombine.low %v1041_v23, %v1045_v25  ;;  %v1108_v23 = vld [vmem:[#allocation5 + $0xe30] sm:$0xff]  ;;  %v1105_v25 = vld [vmem:[#allocation5 + $0xe18] sm:$0xff] }
 0x222   :  { %4213 = vmatpush1.bf16.msra.mxu0 %v12787_v58  ;;  %4385 = vmatpush1.bf16.msra.mxu1 %v12789_v34  ;;  %v1052_v58 = vld [vmem:[#allocation5 + $0xc70] sm:$0xff]  ;;  %v1049_v34 = vld [vmem:[#allocation5 + $0xc58] sm:$0xff] }
 0x223   :  { %4214 = vmatprep.subr.bf16.mxu0 %v12796_v35  ;;  %4386 = vmatprep.subr.bf16.mxu1 %v12798_v36  ;;  %v1053_v35 = vld [vmem:[#allocation5 + $0xc78] sm:$0xff]  ;;  %v12851_v36 = vcombine.low %v1040_v54, %v1044_v22  ;;  %v12860_v37 = vcombine.high %v1048_v33, %v1052_v58  ;;  %v1104_v22 = vld [vmem:[#allocation5 + $0xe10] sm:$0xff] }
 0x224   :  { %v12862_v38 = vcombine.high %v1049_v34, %v1053_v35  ;;  %v12861_v44 = vcombine.low %v1049_v34, %v1053_v35  ;;  %v1116_v34 = vld [vmem:[#allocation5 + $0xe70] sm:$0xff]  ;;  %v1113_v35 = vld [vmem:[#allocation5 + $0xe58] sm:$0xff] }
 0x226   :  { %4215 = vmatpush1.bf16.msra.mxu0 %v12795_v18  ;;  %4387 = vmatpush1.bf16.msra.mxu1 %v12797_v40  ;;  %v1060_v18 = vld [vmem:[#allocation5 + $0xcb0] sm:$0xff]  ;;  %v1057_v40 = vld [vmem:[#allocation5 + $0xc98] sm:$0xff] }
 0x227   :  { %4216 = vmatprep.subr.bf16.mxu0 %v12804_v41  ;;  %4388 = vmatprep.subr.bf16.mxu1 %v12806_v42  ;;  %v1061_v41 = vld [vmem:[#allocation5 + $0xcb8] sm:$0xff]  ;;  %v12859_v42 = vcombine.low %v1048_v33, %v1052_v58  ;;  %v12868_v47 = vcombine.high %v1056_v17, %v1060_v18  ;;  %v1112_v58 = vld [vmem:[#allocation5 + $0xe50] sm:$0xff] }
 0x228   :  { %v12870_v30 = vcombine.high %v1057_v40, %v1061_v41 }
 0x22a   :  { %4217 = vmatpush1.bf16.msra.mxu0 %v12803_v48  ;;  %4389 = vmatpush1.bf16.msra.mxu1 %v12805_v49  ;;  %v1068_v48 = vld [vmem:[#allocation5 + $0xcf0] sm:$0xff]  ;;  %v1065_v49 = vld [vmem:[#allocation5 + $0xcd8] sm:$0xff] }
 0x22b   :  { %4218 = vmatprep.subr.bf16.mxu0 %v12812_v27  ;;  %4390 = vmatprep.subr.bf16.mxu1 %v12814_v29  ;;  %v1069_v27 = vld [vmem:[#allocation5 + $0xcf8] sm:$0xff]  ;;  %v12867_v29 = vcombine.low %v1056_v17, %v1060_v18  ;;  %v12876_v50 = vcombine.high %v1064_v24, %v1068_v48  ;;  %v1120_v18 = vld [vmem:[#allocation5 + $0xe90] sm:$0xff] }
 0x22c   :  { %v12878_v52 = vcombine.high %v1065_v49, %v1069_v27 }
 0x22e   :  { %4219 = vmatpush1.bf16.msra.mxu0 %v12811_v39  ;;  %4391 = vmatpush1.bf16.msra.mxu1 %v12813_v57  ;;  %v1073_v39 = vld [vmem:[#allocation5 + $0xd18] sm:$0xff] }
 0x22f   :  { %4220 = vmatprep.subr.bf16.mxu0 %v12820_v59  ;;  %4392 = vmatprep.subr.bf16.mxu1 %v12822_v60  ;;  %v1077_v57 = vld [vmem:[#allocation5 + $0xd38] sm:$0xff]  ;;  %v12875_v59 = vcombine.low %v1064_v24, %v1068_v48  ;;  %v12877_v60 = vcombine.low %v1065_v49, %v1069_v27  ;;  %v1128_v48 = vld [vmem:[#allocation5 + $0xed0] sm:$0xff] }
 0x230   :  { %v1132_v49 = vld [vmem:[#allocation5 + $0xef0] sm:$0xff]  ;;  %v1129_v27 = vld [vmem:[#allocation5 + $0xed8] sm:$0xff] }
 0x232   :  { %4221 = vmatpush1.bf16.msra.mxu0 %v12819_v2  ;;  %4393 = vmatpush1.bf16.msra.mxu1 %v12821_v3  ;;  %v1085_v2 = vld [vmem:[#allocation5 + $0xd78] sm:$0xff]  ;;  %v12883_v3 = vcombine.low %v1072_v55, %v1076_v56  ;;  %v1136_v56 = vld [vmem:[#allocation5 + $0xf10] sm:$0xff] }
 0x233   :  { %4222 = vmatprep.subr.bf16.mxu0 %v12828_v4  ;;  %4394 = vmatprep.subr.bf16.mxu1 %v12830_v5  ;;  %v12885_v4 = vcombine.low %v1073_v39, %v1077_v57  ;;  %v12892_v5 = vcombine.high %v1080_v62, %v1084_v63  ;;  %v12894_v6 = vcombine.high %v1081_v0, %v1085_v2 }
 0x236   :  { %4223 = vmatpush1.bf16.msra.mxu0 %v12827_v10  ;;  %4395 = vmatpush1.bf16.msra.mxu1 %v12829_v11  ;;  %v1093_v10 = vld [vmem:[#allocation5 + $0xdb8] sm:$0xff]  ;;  %v12891_v11 = vcombine.low %v1080_v62, %v1084_v63  ;;  %v1144_v63 = vld [vmem:[#allocation5 + $0xf50] sm:$0xff] }
 0x237   :  { %4224 = vmatprep.subr.bf16.mxu0 %v12836_v45  ;;  %4396 = vmatprep.subr.bf16.mxu1 %v12838_v46  ;;  %v12893_v45 = vcombine.low %v1081_v0, %v1085_v2  ;;  %v12900_v46 = vcombine.high %v1088_v7, %v1092_v8  ;;  %v12902_v12 = vcombine.high %v1089_v9, %v1093_v10  ;;  %v1148_v0 = vld [vmem:[#allocation5 + $0xf70] sm:$0xff]  ;;  %v1145_v2 = vld [vmem:[#allocation5 + $0xf58] sm:$0xff] }
 0x23a   :  { %4225 = vmatpush1.bf16.msra.mxu0 %v12835_v19  ;;  %4397 = vmatpush1.bf16.msra.mxu1 %v12837_v20  ;;  %v1101_v19 = vld [vmem:[#allocation5 + $0xdf8] sm:$0xff]  ;;  %v12899_v20 = vcombine.low %v1088_v7, %v1092_v8  ;;  %v1152_v8 = vld [vmem:[#allocation5 + $0xf90] sm:$0xff] }
 0x23b   :  { %4226 = vmatprep.subr.bf16.mxu0 %v12844_v21  ;;  %4398 = vmatprep.subr.bf16.mxu1 %v12846_v53  ;;  %v12901_v21 = vcombine.low %v1089_v9, %v1093_v10  ;;  %v12908_v53 = vcombine.high %v1096_v13, %v1100_v14  ;;  %v12910_v54 = vcombine.high %v1097_v16, %v1101_v19  ;;  %v1156_v9 = vld [vmem:[#allocation5 + $0xfb0] sm:$0xff]  ;;  %v1153_v10 = vld [vmem:[#allocation5 + $0xf98] sm:$0xff] }
 0x23e   :  { %4227 = vmatpush1.bf16.msra.mxu0 %v12843_v26  ;;  %4399 = vmatpush1.bf16.msra.mxu1 %v12845_v28  ;;  %v1109_v26 = vld [vmem:[#allocation5 + $0xe38] sm:$0xff]  ;;  %v12907_v28 = vcombine.low %v1096_v13, %v1100_v14  ;;  %v1160_v14 = vld [vmem:[#allocation5 + $0xfd0] sm:$0xff] }
 0x23f   :  { %4239 = vmatprep.subr.bf16.mxu0 %v12852_v31  ;;  %4411 = vmatprep.subr.bf16.mxu1 %v12854_v32  ;;  %v12909_v31 = vcombine.low %v1097_v16, %v1101_v19  ;;  %v12916_v32 = vcombine.high %v1104_v22, %v1108_v23  ;;  %v12918_v33 = vcombine.high %v1105_v25, %v1109_v26  ;;  %v1164_v16 = vld [vmem:[#allocation5 + $0xff0] sm:$0xff]  ;;  %v1161_v19 = vld [vmem:[#allocation5 + $0xfd8] sm:$0xff] }
 0x241   :  { %4229 = vmatmul.mubr.bf16.vlgmr.msra.gmra.mrb[4].mxu0 %v14861_v43  ;;  %4401 = vmatmul.mubr.bf16.vlgmr.msra.gmra.mrb[4].mxu1 %v14861_v43  ;;  %v12869_v43 = vcombine.low %v1057_v40, %v1061_v41  ;;  %v1124_v40 = vld [vmem:[#allocation5 + $0xeb0] sm:$0xff]  ;;  %v1121_v41 = vld [vmem:[#allocation5 + $0xe98] sm:$0xff] }
 0x242   :  { %4240 = vmatpush1.bf16.msra.mxu0 %v12851_v36  ;;  %4412 = vmatpush1.bf16.msra.mxu1 %v12853_v15  ;;  %v1117_v36 = vld [vmem:[#allocation5 + $0xe78] sm:$0xff]  ;;  %v12915_v15 = vcombine.low %v1104_v22, %v1108_v23  ;;  %v134_v23 = vld [vmem:[#allocation3] sm:$0xff] }
 0x243   :  { %4241 = vmatprep.subr.bf16.mxu0 %v12860_v37  ;;  %4413 = vmatprep.subr.bf16.mxu1 %v12862_v38  ;;  %v12917_v37 = vcombine.low %v1105_v25, %v1109_v26  ;;  %v12924_v38 = vcombine.high %v1112_v58, %v1116_v34  ;;  %v12926_v17 = vcombine.high %v1113_v35, %v1117_v36  ;;  %v138_v25 = vld [vmem:[#allocation3 + $0x20] sm:$0xff]  ;;  %v135_v26 = vld [vmem:[#allocation3 + $0x8] sm:$0xff] }
 0x244   :  { %4271 = vmatprep.mubr.bf16.mxu0 %v14875_v51  ;;  %4443 = vmatprep.mubr.bf16.mxu1 %v14875_v51  ;;  %v12886_v51 = vcombine.high %v1073_v39, %v1077_v57  ;;  %v1140_v39 = vld [vmem:[#allocation5 + $0xf30] sm:$0xff]  ;;  %v1137_v57 = vld [vmem:[#allocation5 + $0xf18] sm:$0xff] }
 0x246   :  { %4242 = vmatpush1.bf16.msra.mxu0 %v12859_v42  ;;  %4414 = vmatpush1.bf16.msra.mxu1 %v12861_v44  ;;  %v1125_v42 = vld [vmem:[#allocation5 + $0xeb8] sm:$0xff]  ;;  %v12923_v44 = vcombine.low %v1112_v58, %v1116_v34  ;;  %v142_v34 = vld [vmem:[#allocation3 + $0x40] sm:$0xff] }
 0x247   :  { %4243 = vmatprep.subr.bf16.mxu0 %v12868_v47  ;;  %4415 = vmatprep.subr.bf16.mxu1 %v12870_v30  ;;  %v12925_v47 = vcombine.low %v1113_v35, %v1117_v36  ;;  %v12932_v30 = vcombine.high %v1120_v18, %v1124_v40  ;;  %v12934_v24 = vcombine.high %v1121_v41, %v1125_v42  ;;  %v146_v35 = vld [vmem:[#allocation3 + $0x60] sm:$0xff]  ;;  %v143_v36 = vld [vmem:[#allocation3 + $0x48] sm:$0xff] }
 0x24a   :  { %4244 = vmatpush1.bf16.msra.mxu0 %v12867_v29  ;;  %4416 = vmatpush1.bf16.msra.mxu1 %v12869_v43  ;;  %v1133_v29 = vld [vmem:[#allocation5 + $0xef8] sm:$0xff]  ;;  %v12931_v43 = vcombine.low %v1120_v18, %v1124_v40  ;;  %v12992_v40 = vcombine.high %v142_v34, %v146_v35 }
 0x24b   :  { %4245 = vmatprep.subr.bf16.mxu0 %v12876_v50  ;;  %4417 = vmatprep.subr.bf16.mxu1 %v12878_v52  ;;  %v12933_v50 = vcombine.low %v1121_v41, %v1125_v42  ;;  %v12940_v52 = vcombine.high %v1128_v48, %v1132_v49  ;;  %v12942_v55 = vcombine.high %v1129_v27, %v1133_v29  ;;  %v150_v42 = vld [vmem:[#allocation3 + $0x80] sm:$0xff] }
 0x24e   :  { %4246 = vmatpush1.bf16.msra.mxu0 %v12875_v59  ;;  %4418 = vmatpush1.bf16.msra.mxu1 %v12877_v60  ;;  %v1141_v59 = vld [vmem:[#allocation5 + $0xf38] sm:$0xff]  ;;  %v12939_v60 = vcombine.low %v1128_v48, %v1132_v49  ;;  %v12991_v48 = vcombine.low %v142_v34, %v146_v35 }
 0x24f   :  { %4247 = vmatprep.subr.bf16.mxu0 %v12884_v61  ;;  %4419 = vmatprep.subr.bf16.mxu1 %v12886_v51  ;;  %v12941_v61 = vcombine.low %v1129_v27, %v1133_v29  ;;  %v12948_v51 = vcombine.high %v1136_v56, %v1140_v39  ;;  %v12950_v62 = vcombine.high %v1137_v57, %v1141_v59 }
 0x252   :  { %4248 = vmatpush1.bf16.msra.mxu0 %v12883_v3  ;;  %4420 = vmatpush1.bf16.msra.mxu1 %v12885_v4  ;;  %v1149_v3 = vld [vmem:[#allocation5 + $0xf78] sm:$0xff]  ;;  %v12947_v4 = vcombine.low %v1136_v56, %v1140_v39 }
 0x253   :  { %4249 = vmatprep.subr.bf16.mxu0 %v12892_v5  ;;  %4421 = vmatprep.subr.bf16.mxu1 %v12894_v6  ;;  %v12949_v5 = vcombine.low %v1137_v57, %v1141_v59  ;;  %v12956_v6 = vcombine.high %v1144_v63, %v1148_v0  ;;  %v12958_v7 = vcombine.high %v1145_v2, %v1149_v3  ;;  %v166_v59 = vld [vmem:[#allocation3 + $0x100] sm:$0xff] }
 0x256   :  { %4250 = vmatpush1.bf16.msra.mxu0 %v12891_v11  ;;  %4422 = vmatpush1.bf16.msra.mxu1 %v12893_v45  ;;  %v1157_v11 = vld [vmem:[#allocation5 + $0xfb8] sm:$0xff]  ;;  %v12955_v45 = vcombine.low %v1144_v63, %v1148_v0 }
 0x257   :  { %4251 = vmatprep.subr.bf16.mxu0 %v12900_v46  ;;  %4423 = vmatprep.subr.bf16.mxu1 %v12902_v12  ;;  %v12957_v46 = vcombine.low %v1145_v2, %v1149_v3  ;;  %v12964_v12 = vcombine.high %v1152_v8, %v1156_v9  ;;  %v12966_v13 = vcombine.high %v1153_v10, %v1157_v11  ;;  %v174_v3 = vld [vmem:[#allocation3 + $0x140] sm:$0xff] }
 0x25a   :  { %4252 = vmatpush1.bf16.msra.mxu0 %v12899_v20  ;;  %4424 = vmatpush1.bf16.msra.mxu1 %v12901_v21  ;;  %v1165_v20 = vld [vmem:[#allocation5 + $0xff8] sm:$0xff]  ;;  %v12963_v21 = vcombine.low %v1152_v8, %v1156_v9 }
 0x25b   :  { %4253 = vmatprep.subr.bf16.mxu0 %v12908_v53  ;;  %4425 = vmatprep.subr.bf16.mxu1 %v12910_v54  ;;  %v12965_v53 = vcombine.low %v1153_v10, %v1157_v11  ;;  %v12972_v54 = vcombine.high %v1160_v14, %v1164_v16  ;;  %v12974_v22 = vcombine.high %v1161_v19, %v1165_v20  ;;  %v182_v11 = vld [vmem:[#allocation3 + $0x180] sm:$0xff] }
 0x25e   :  { %4254 = vmatpush1.bf16.msra.mxu0 %v12907_v28  ;;  %4426 = vmatpush1.bf16.msra.mxu1 %v12909_v31  ;;  %v139_v28 = vld [vmem:[#allocation3 + $0x28] sm:$0xff]  ;;  %v12971_v31 = vcombine.low %v1160_v14, %v1164_v16 }
 0x25f   :  { %4255 = vmatprep.subr.bf16.mxu0 %v12916_v32  ;;  %4427 = vmatprep.subr.bf16.mxu1 %v12918_v33  ;;  %v12973_v32 = vcombine.low %v1161_v19, %v1165_v20  ;;  %v12984_v33 = vcombine.high %v134_v23, %v138_v25  ;;  %v12986_v58 = vcombine.high %v135_v26, %v139_v28  ;;  %v190_v20 = vld [vmem:[#allocation3 + $0x1c0] sm:$0xff] }
 0x260   :  { %v12985_v18 = vcombine.low %v135_v26, %v139_v28  ;;  %v198_v28 = vld [vmem:[#allocation3 + $0x200] sm:$0xff] }
 0x262   :  { %4256 = vmatpush1.bf16.msra.mxu0 %v12915_v15  ;;  %4428 = vmatpush1.bf16.msra.mxu1 %v12917_v37  ;;  %v147_v15 = vld [vmem:[#allocation3 + $0x68] sm:$0xff]  ;;  %v14904_v37 = vld [vmem:[%s15160_s0] sm:$0xff] }
 0x263   :  { %4257 = vmatprep.subr.bf16.mxu0 %v12924_v38  ;;  %4429 = vmatprep.subr.bf16.mxu1 %v12926_v17  ;;  %v14909_v38 = vld [vmem:[%s15160_s0 + $0x20] sm:$0xff]  ;;  %v12983_v17 = vcombine.low %v134_v23, %v138_v25  ;;  %v12994_v41 = vcombine.high %v143_v36, %v147_v15  ;;  %v12993_v49 = vcombine.low %v143_v36, %v147_v15 }
 0x264   :  { %v206_v15 = vld [vmem:[#allocation3 + $0x240] sm:$0xff] }
 0x266   :  { %4258 = vmatpush1.bf16.msra.mxu0 %v12923_v44  ;;  %4430 = vmatpush1.bf16.msra.mxu1 %v12925_v47  ;;  %v154_v44 = vld [vmem:[#allocation3 + $0xa0] sm:$0xff]  ;;  %v14913_v47 = vcombine.high %v14904_v37, %v14909_v38 }
 0x267   :  { %4259 = vmatprep.subr.bf16.mxu0 %v12932_v30  ;;  %4431 = vmatprep.subr.bf16.mxu1 %v12934_v24  ;;  %v151_v30 = vld [vmem:[#allocation3 + $0x88] sm:$0xff]  ;;  %v13000_v27 = vcombine.high %v150_v42, %v154_v44  ;;  %v12999_v56 = vcombine.low %v150_v42, %v154_v44 }
 0x268   :  { %v155_v24 = vld [vmem:[#allocation3 + $0xa8] sm:$0xff] }
 0x269   :  { %v13002_v29 = vcombine.high %v151_v30, %v155_v24 }
 0x26a   :  { %4260 = vmatpush1.bf16.msra.mxu0 %v12931_v43  ;;  %4432 = vmatpush1.bf16.msra.mxu1 %v12933_v50  ;;  %v158_v43 = vld [vmem:[#allocation3 + $0xc0] sm:$0xff] }
 0x26b   :  { %4261 = vmatprep.subr.bf16.mxu0 %v12940_v52  ;;  %4433 = vmatprep.subr.bf16.mxu1 %v12942_v55  ;;  %v162_v50 = vld [vmem:[#allocation3 + $0xe0] sm:$0xff]  ;;  %v159_v52 = vld [vmem:[#allocation3 + $0xc8] sm:$0xff] }
 0x26c   :  { %v163_v55 = vld [vmem:[#allocation3 + $0xe8] sm:$0xff]  ;;  %v13008_v39 = vcombine.high %v158_v43, %v162_v50 }
 0x26d   :  { %v13010_v57 = vcombine.high %v159_v52, %v163_v55  ;;  %v13009_v63 = vcombine.low %v159_v52, %v163_v55  ;;  %v222_v55 = vld [vmem:[#allocation3 + $0x2c0] sm:$0xff] }
 0x26e   :  { %4262 = vmatpush1.bf16.msra.mxu0 %v12939_v60  ;;  %4434 = vmatpush1.bf16.msra.mxu1 %v12941_v61  ;;  %v170_v60 = vld [vmem:[#allocation3 + $0x120] sm:$0xff]  ;;  %v167_v61 = vld [vmem:[#allocation3 + $0x108] sm:$0xff] }
 0x26f   :  { %4263 = vmatprep.subr.bf16.mxu0 %v12948_v51  ;;  %4435 = vmatprep.subr.bf16.mxu1 %v12950_v62  ;;  %v171_v51 = vld [vmem:[#allocation3 + $0x128] sm:$0xff]  ;;  %v13007_v62 = vcombine.low %v158_v43, %v162_v50  ;;  %v13016_v0 = vcombine.high %v166_v59, %v170_v60 }
 0x270   :  { %v13018_v2 = vcombine.high %v167_v61, %v171_v51  ;;  %v13017_v8 = vcombine.low %v167_v61, %v171_v51  ;;  %v230_v51 = vld [vmem:[#allocation3 + $0x300] sm:$0xff] }
 0x272   :  { %4264 = vmatpush1.bf16.msra.mxu0 %v12947_v4  ;;  %4436 = vmatpush1.bf16.msra.mxu1 %v12949_v5  ;;  %v178_v4 = vld [vmem:[#allocation3 + $0x160] sm:$0xff]  ;;  %v175_v5 = vld [vmem:[#allocation3 + $0x148] sm:$0xff] }
 0x273   :  { %4265 = vmatprep.subr.bf16.mxu0 %v12956_v6  ;;  %4437 = vmatprep.subr.bf16.mxu1 %v12958_v7  ;;  %v179_v6 = vld [vmem:[#allocation3 + $0x168] sm:$0xff]  ;;  %v13015_v7 = vcombine.low %v166_v59, %v170_v60  ;;  %v13024_v9 = vcombine.high %v174_v3, %v178_v4 }
 0x274   :  { %v13026_v10 = vcombine.high %v175_v5, %v179_v6  ;;  %v13025_v14 = vcombine.low %v175_v5, %v179_v6  ;;  %v238_v6 = vld [vmem:[#allocation3 + $0x340] sm:$0xff] }
 0x276   :  { %4266 = vmatpush1.bf16.msra.mxu0 %v12955_v45  ;;  %4438 = vmatpush1.bf16.msra.mxu1 %v12957_v46  ;;  %v186_v45 = vld [vmem:[#allocation3 + $0x1a0] sm:$0xff]  ;;  %v183_v46 = vld [vmem:[#allocation3 + $0x188] sm:$0xff] }
 0x277   :  { %4267 = vmatprep.subr.bf16.mxu0 %v12964_v12  ;;  %4439 = vmatprep.subr.bf16.mxu1 %v12966_v13  ;;  %v187_v12 = vld [vmem:[#allocation3 + $0x1a8] sm:$0xff]  ;;  %v13023_v13 = vcombine.low %v174_v3, %v178_v4  ;;  %v13032_v16 = vcombine.high %v182_v11, %v186_v45 }
 0x278   :  { %v13034_v19 = vcombine.high %v183_v46, %v187_v12  ;;  %v13033_v23 = vcombine.low %v183_v46, %v187_v12  ;;  %v246_v12 = vld [vmem:[#allocation3 + $0x380] sm:$0xff] }
 0x27a   :  { %4268 = vmatpush1.bf16.msra.mxu0 %v12963_v21  ;;  %4440 = vmatpush1.bf16.msra.mxu1 %v12965_v53  ;;  %v194_v21 = vld [vmem:[#allocation3 + $0x1e0] sm:$0xff]  ;;  %v191_v53 = vld [vmem:[#allocation3 + $0x1c8] sm:$0xff] }
 0x27b   :  { %4269 = vmatprep.subr.bf16.mxu0 %v12972_v54  ;;  %4441 = vmatprep.subr.bf16.mxu1 %v12974_v22  ;;  %v195_v54 = vld [vmem:[#allocation3 + $0x1e8] sm:$0xff]  ;;  %v13031_v22 = vcombine.low %v182_v11, %v186_v45  ;;  %v13040_v25 = vcombine.high %v190_v20, %v194_v21 }
 0x27c   :  { %v13042_v26 = vcombine.high %v191_v53, %v195_v54  ;;  %v13041_v34 = vcombine.low %v191_v53, %v195_v54  ;;  %v254_v54 = vld [vmem:[#allocation3 + $0x3c0] sm:$0xff] }
 0x27e   :  { %4270 = vmatpush1.bf16.msra.mxu0 %v12971_v31  ;;  %4442 = vmatpush1.bf16.msra.mxu1 %v12973_v32  ;;  %v202_v31 = vld [vmem:[#allocation3 + $0x220] sm:$0xff]  ;;  %v199_v32 = vld [vmem:[#allocation3 + $0x208] sm:$0xff] }
 0x27f   :  { %7054 = vmatprep.subr.bf16.mxu0 %v12984_v33  ;;  %7226 = vmatprep.subr.bf16.mxu1 %v12986_v58  ;;  %v203_v33 = vld [vmem:[#allocation3 + $0x228] sm:$0xff]  ;;  %v13039_v58 = vcombine.low %v190_v20, %v194_v21  ;;  %v13048_v35 = vcombine.high %v198_v28, %v202_v31 }
 0x280   :  { %v13050_v36 = vcombine.high %v199_v32, %v203_v33  ;;  %v13049_v42 = vcombine.low %v199_v32, %v203_v33  ;;  %v262_v33 = vld [vmem:[#allocation3 + $0x400] sm:$0xff] }
 0x281   :  { %4272 = vmatmul.mubr.bf16.vlgmr.msra.gmra.mrb[4].mxu0 %v14883_v1  ;;  %4444 = vmatmul.mubr.bf16.vlgmr.msra.gmra.mrb[4].mxu1 %v14883_v1  ;;  %v13001_v1 = vcombine.low %v151_v30, %v155_v24  ;;  %v214_v24 = vld [vmem:[#allocation3 + $0x280] sm:$0xff] }
 0x282   :  { %7055 = vmatpush1.bf16.msra.mxu0 %v12983_v17  ;;  %7227 = vmatpush1.bf16.msra.mxu1 %v12985_v18  ;;  %v210_v17 = vld [vmem:[#allocation3 + $0x260] sm:$0xff]  ;;  %v207_v18 = vld [vmem:[#allocation3 + $0x248] sm:$0xff] }
 0x283   :  { %7056 = vmatprep.subr.bf16.mxu0 %v12992_v40  ;;  %7228 = vmatprep.subr.bf16.mxu1 %v12994_v41  ;;  %v211_v40 = vld [vmem:[#allocation3 + $0x268] sm:$0xff]  ;;  %v13047_v41 = vcombine.low %v198_v28, %v202_v31  ;;  %v13056_v44 = vcombine.high %v206_v15, %v210_v17 }
 0x284   :  { %7086 = vmatprep.mubr.bf16.mxu0 %v14913_v47  ;;  %7258 = vmatprep.mubr.bf16.mxu1 %v14913_v47  ;;  %v13058_v30 = vcombine.high %v207_v18, %v211_v40  ;;  %v13057_v43 = vcombine.low %v207_v18, %v211_v40  ;;  %v270_v40 = vld [vmem:[#allocation3 + $0x440] sm:$0xff] }
 0x286   :  { %7057 = vmatpush1.bf16.msra.mxu0 %v12991_v48  ;;  %7229 = vmatpush1.bf16.msra.mxu1 %v12993_v49  ;;  %v218_v48 = vld [vmem:[#allocation3 + $0x2a0] sm:$0xff]  ;;  %v215_v49 = vld [vmem:[#allocation3 + $0x288] sm:$0xff] }
 0x287   :  { %7058 = vmatprep.subr.bf16.mxu0 %v13000_v27  ;;  %7230 = vmatprep.subr.bf16.mxu1 %v13002_v29  ;;  %v219_v27 = vld [vmem:[#allocation3 + $0x2a8] sm:$0xff]  ;;  %v13055_v29 = vcombine.low %v206_v15, %v210_v17  ;;  %v13064_v50 = vcombine.high %v214_v24, %v218_v48 }
 0x288   :  { %v13066_v52 = vcombine.high %v215_v49, %v219_v27  ;;  %v13065_v59 = vcombine.low %v215_v49, %v219_v27 }
 0x28a   :  { %7059 = vmatpush1.bf16.msra.mxu0 %v12999_v56  ;;  %7231 = vmatpush1.bf16.msra.mxu1 %v13001_v1  ;;  %v226_v56 = vld [vmem:[#allocation3 + $0x2e0] sm:$0xff]  ;;  %v223_v1 = vld [vmem:[#allocation3 + $0x2c8] sm:$0xff] }
 0x28b   :  { %7060 = vmatprep.subr.bf16.mxu0 %v13008_v39  ;;  %7232 = vmatprep.subr.bf16.mxu1 %v13010_v57  ;;  %v227_v39 = vld [vmem:[#allocation3 + $0x2e8] sm:$0xff]  ;;  %v13063_v57 = vcombine.low %v214_v24, %v218_v48  ;;  %v13072_v60 = vcombine.high %v222_v55, %v226_v56 }
 0x28c   :  { %v13074_v61 = vcombine.high %v223_v1, %v227_v39  ;;  %v13073_v3 = vcombine.low %v223_v1, %v227_v39  ;;  %v14926_v24 = vld [vmem:[%s15160_s0 + $0x8] sm:$0xff] }
 0x28d   :  { %v14931_v48 = vld [vmem:[%s15160_s0 + $0x28] sm:$0xff] }
 0x28e   :  { %7061 = vmatpush1.bf16.msra.mxu0 %v13007_v62  ;;  %7233 = vmatpush1.bf16.msra.mxu1 %v13009_v63  ;;  %v234_v62 = vld [vmem:[#allocation3 + $0x320] sm:$0xff]  ;;  %v231_v63 = vld [vmem:[#allocation3 + $0x308] sm:$0xff] }
 0x28f   :  { %7062 = vmatprep.subr.bf16.mxu0 %v13016_v0  ;;  %7234 = vmatprep.subr.bf16.mxu1 %v13018_v2  ;;  %v235_v0 = vld [vmem:[#allocation3 + $0x328] sm:$0xff]  ;;  %v13071_v2 = vcombine.low %v222_v55, %v226_v56  ;;  %v13080_v4 = vcombine.high %v230_v51, %v234_v62 }
 0x290   :  { %v13082_v5 = vcombine.high %v231_v63, %v235_v0  ;;  %v13081_v11 = vcombine.low %v231_v63, %v235_v0  ;;  %v283_v55 = vld [vmem:[#allocation3 + $0x4a8] sm:$0xff] }
 0x292   :  { %7063 = vmatpush1.bf16.msra.mxu0 %v13015_v7  ;;  %7235 = vmatpush1.bf16.msra.mxu1 %v13017_v8  ;;  %v242_v7 = vld [vmem:[#allocation3 + $0x360] sm:$0xff]  ;;  %v239_v8 = vld [vmem:[#allocation3 + $0x348] sm:$0xff] }
 0x293   :  { %7064 = vmatprep.subr.bf16.mxu0 %v13024_v9  ;;  %7236 = vmatprep.subr.bf16.mxu1 %v13026_v10  ;;  %v243_v9 = vld [vmem:[#allocation3 + $0x368] sm:$0xff]  ;;  %v13079_v10 = vcombine.low %v230_v51, %v234_v62  ;;  %v13088_v45 = vcombine.high %v238_v6, %v242_v7 }
 0x294   :  { %v13090_v46 = vcombine.high %v239_v8, %v243_v9  ;;  %v13089_v20 = vcombine.low %v239_v8, %v243_v9  ;;  %v291_v51 = vld [vmem:[#allocation3 + $0x4e8] sm:$0xff] }
 0x296   :  { %7065 = vmatpush1.bf16.msra.mxu0 %v13023_v13  ;;  %7237 = vmatpush1.bf16.msra.mxu1 %v13025_v14  ;;  %v250_v13 = vld [vmem:[#allocation3 + $0x3a0] sm:$0xff]  ;;  %v247_v14 = vld [vmem:[#allocation3 + $0x388] sm:$0xff] }
 0x297   :  { %7066 = vmatprep.subr.bf16.mxu0 %v13032_v16  ;;  %7238 = vmatprep.subr.bf16.mxu1 %v13034_v19  ;;  %v251_v16 = vld [vmem:[#allocation3 + $0x3a8] sm:$0xff]  ;;  %v13087_v19 = vcombine.low %v238_v6, %v242_v7  ;;  %v13096_v21 = vcombine.high %v246_v12, %v250_v13 }
 0x298   :  { %v13098_v53 = vcombine.high %v247_v14, %v251_v16  ;;  %v13097_v28 = vcombine.low %v247_v14, %v251_v16  ;;  %v299_v6 = vld [vmem:[#allocation3 + $0x528] sm:$0xff] }
 0x29a   :  { %7067 = vmatpush1.bf16.msra.mxu0 %v13031_v22  ;;  %7239 = vmatpush1.bf16.msra.mxu1 %v13033_v23  ;;  %v258_v22 = vld [vmem:[#allocation3 + $0x3e0] sm:$0xff]  ;;  %v255_v23 = vld [vmem:[#allocation3 + $0x3c8] sm:$0xff] }
 0x29b   :  { %7068 = vmatprep.subr.bf16.mxu0 %v13040_v25  ;;  %7240 = vmatprep.subr.bf16.mxu1 %v13042_v26  ;;  %v259_v25 = vld [vmem:[#allocation3 + $0x3e8] sm:$0xff]  ;;  %v13095_v26 = vcombine.low %v246_v12, %v250_v13  ;;  %v13104_v31 = vcombine.high %v254_v54, %v258_v22 }
 0x29c   :  { %v13106_v32 = vcombine.high %v255_v23, %v259_v25  ;;  %v13105_v15 = vcombine.low %v255_v23, %v259_v25  ;;  %v307_v12 = vld [vmem:[#allocation3 + $0x568] sm:$0xff] }
 0x29e   :  { %7069 = vmatpush1.bf16.msra.mxu0 %v13039_v58  ;;  %7241 = vmatpush1.bf16.msra.mxu1 %v13041_v34  ;;  %v266_v58 = vld [vmem:[#allocation3 + $0x420] sm:$0xff]  ;;  %v263_v34 = vld [vmem:[#allocation3 + $0x408] sm:$0xff] }
 0x29f   :  { %7070 = vmatprep.subr.bf16.mxu0 %v13048_v35  ;;  %7242 = vmatprep.subr.bf16.mxu1 %v13050_v36  ;;  %v267_v35 = vld [vmem:[#allocation3 + $0x428] sm:$0xff]  ;;  %v13103_v36 = vcombine.low %v254_v54, %v258_v22  ;;  %v13112_v17 = vcombine.high %v262_v33, %v266_v58  ;;  %v13111_v49 = vcombine.low %v262_v33, %v266_v58 }
 0x2a0   :  { %v13114_v18 = vcombine.high %v263_v34, %v267_v35  ;;  %v13113_v27 = vcombine.low %v263_v34, %v267_v35  ;;  %v315_v54 = vld [vmem:[#allocation3 + $0x5a8] sm:$0xff] }
 0x2a1   :  { %v323_v33 = vld [vmem:[#allocation3 + $0x5e8] sm:$0xff] }
 0x2a2   :  { %7071 = vmatpush1.bf16.msra.mxu0 %v13047_v41  ;;  %7243 = vmatpush1.bf16.msra.mxu1 %v13049_v42  ;;  %v274_v41 = vld [vmem:[#allocation3 + $0x460] sm:$0xff]  ;;  %v271_v42 = vld [vmem:[#allocation3 + $0x448] sm:$0xff] }
 0x2a3   :  { %7072 = vmatprep.subr.bf16.mxu0 %v13056_v44  ;;  %7244 = vmatprep.subr.bf16.mxu1 %v13058_v30  ;;  %v14921_v44 = vcombine.low %v14904_v37, %v14909_v38  ;;  %v275_v30 = vld [vmem:[#allocation3 + $0x468] sm:$0xff]  ;;  %v278_v38 = vld [vmem:[#allocation3 + $0x480] sm:$0xff]  ;;  %v13119_v56 = vcombine.low %v270_v40, %v274_v41 }
 0x2a4   :  { %v13122_v37 = vcombine.high %v271_v42, %v275_v30  ;;  %v13121_v1 = vcombine.low %v271_v42, %v275_v30 }
 0x2a6   :  { %7073 = vmatpush1.bf16.msra.mxu0 %v13055_v29  ;;  %7245 = vmatpush1.bf16.msra.mxu1 %v13057_v43  ;;  %v13120_v29 = vcombine.high %v270_v40, %v274_v41  ;;  %v282_v43 = vld [vmem:[#allocation3 + $0x4a0] sm:$0xff]  ;;  %v331_v40 = vld [vmem:[#allocation3 + $0x628] sm:$0xff] }
 0x2a7   :  { %7074 = vmatprep.subr.bf16.mxu0 %v13064_v50  ;;  %7246 = vmatprep.subr.bf16.mxu1 %v13066_v52  ;;  %v14935_v50 = vcombine.high %v14926_v24, %v14931_v48  ;;  %v279_v52 = vld [vmem:[#allocation3 + $0x488] sm:$0xff]  ;;  %v13128_v39 = vcombine.high %v278_v38, %v282_v43  ;;  %v13127_v62 = vcombine.low %v278_v38, %v282_v43 }
 0x2a8   :  { %v13129_v63 = vcombine.low %v279_v52, %v283_v55  ;;  %v339_v38 = vld [vmem:[#allocation3 + $0x668] sm:$0xff] }
 0x2aa   :  { %7075 = vmatpush1.bf16.msra.mxu0 %v13063_v57  ;;  %7247 = vmatpush1.bf16.msra.mxu1 %v13065_v59  ;;  %v13130_v57 = vcombine.high %v279_v52, %v283_v55  ;;  %v286_v59 = vld [vmem:[#allocation3 + $0x4c0] sm:$0xff] }
 0x2ab   :  { %7076 = vmatprep.subr.bf16.mxu0 %v13072_v60  ;;  %7248 = vmatprep.subr.bf16.mxu1 %v13074_v61  ;;  %v290_v60 = vld [vmem:[#allocation3 + $0x4e0] sm:$0xff]  ;;  %v287_v61 = vld [vmem:[#allocation3 + $0x4c8] sm:$0xff] }
 0x2ac   :  { %v13136_v0 = vcombine.high %v286_v59, %v290_v60  ;;  %v13135_v7 = vcombine.low %v286_v59, %v290_v60  ;;  %v13137_v8 = vcombine.low %v287_v61, %v291_v51  ;;  %v347_v59 = vld [vmem:[#allocation3 + $0x6a8] sm:$0xff] }
 0x2ae   :  { %7077 = vmatpush1.bf16.msra.mxu0 %v13071_v2  ;;  %7249 = vmatpush1.bf16.msra.mxu1 %v13073_v3  ;;  %v13138_v2 = vcombine.high %v287_v61, %v291_v51  ;;  %v294_v3 = vld [vmem:[#allocation3 + $0x500] sm:$0xff] }
 0x2af   :  { %7078 = vmatprep.subr.bf16.mxu0 %v13080_v4  ;;  %7250 = vmatprep.subr.bf16.mxu1 %v13082_v5  ;;  %v298_v4 = vld [vmem:[#allocation3 + $0x520] sm:$0xff]  ;;  %v295_v5 = vld [vmem:[#allocation3 + $0x508] sm:$0xff] }
 0x2b0   :  { %v13144_v9 = vcombine.high %v294_v3, %v298_v4  ;;  %v13143_v13 = vcombine.low %v294_v3, %v298_v4  ;;  %v13145_v14 = vcombine.low %v295_v5, %v299_v6  ;;  %v355_v3 = vld [vmem:[#allocation3 + $0x6e8] sm:$0xff] }
 0x2b2   :  { %7079 = vmatpush1.bf16.msra.mxu0 %v13079_v10  ;;  %7251 = vmatpush1.bf16.msra.mxu1 %v13081_v11  ;;  %v13146_v10 = vcombine.high %v295_v5, %v299_v6  ;;  %v302_v11 = vld [vmem:[#allocation3 + $0x540] sm:$0xff] }
 0x2b3   :  { %7080 = vmatprep.subr.bf16.mxu0 %v13088_v45  ;;  %7252 = vmatprep.subr.bf16.mxu1 %v13090_v46  ;;  %v306_v45 = vld [vmem:[#allocation3 + $0x560] sm:$0xff]  ;;  %v303_v46 = vld [vmem:[#allocation3 + $0x548] sm:$0xff] }
 0x2b4   :  { %v13152_v16 = vcombine.high %v302_v11, %v306_v45  ;;  %v13151_v22 = vcombine.low %v302_v11, %v306_v45  ;;  %v13153_v23 = vcombine.low %v303_v46, %v307_v12  ;;  %v363_v11 = vld [vmem:[#allocation3 + $0x728] sm:$0xff] }
 0x2b6   :  { %7081 = vmatpush1.bf16.msra.mxu0 %v13087_v19  ;;  %7253 = vmatpush1.bf16.msra.mxu1 %v13089_v20  ;;  %v13154_v19 = vcombine.high %v303_v46, %v307_v12  ;;  %v310_v20 = vld [vmem:[#allocation3 + $0x580] sm:$0xff] }
 0x2b7   :  { %7082 = vmatprep.subr.bf16.mxu0 %v13096_v21  ;;  %7254 = vmatprep.subr.bf16.mxu1 %v13098_v53  ;;  %v314_v21 = vld [vmem:[#allocation3 + $0x5a0] sm:$0xff]  ;;  %v311_v53 = vld [vmem:[#allocation3 + $0x588] sm:$0xff] }
 0x2b8   :  { %v13160_v25 = vcombine.high %v310_v20, %v314_v21  ;;  %v13159_v58 = vcombine.low %v310_v20, %v314_v21  ;;  %v13161_v34 = vcombine.low %v311_v53, %v315_v54  ;;  %v371_v20 = vld [vmem:[#allocation3 + $0x768] sm:$0xff] }
 0x2ba   :  { %7083 = vmatpush1.bf16.msra.mxu0 %v13095_v26  ;;  %7255 = vmatpush1.bf16.msra.mxu1 %v13097_v28  ;;  %v13162_v26 = vcombine.high %v311_v53, %v315_v54  ;;  %v318_v28 = vld [vmem:[#allocation3 + $0x5c0] sm:$0xff] }
 0x2bb   :  { %7084 = vmatprep.subr.bf16.mxu0 %v13104_v31  ;;  %7256 = vmatprep.subr.bf16.mxu1 %v13106_v32  ;;  %v322_v31 = vld [vmem:[#allocation3 + $0x5e0] sm:$0xff]  ;;  %v319_v32 = vld [vmem:[#allocation3 + $0x5c8] sm:$0xff] }
 0x2bc   :  { %v13168_v35 = vcombine.high %v318_v28, %v322_v31  ;;  %v13167_v41 = vcombine.low %v318_v28, %v322_v31  ;;  %v13169_v42 = vcombine.low %v319_v32, %v323_v33  ;;  %v379_v28 = vld [vmem:[#allocation3 + $0x7a8] sm:$0xff] }
 0x2be   :  { %7085 = vmatpush1.bf16.msra.mxu0 %v13103_v36  ;;  %7257 = vmatpush1.bf16.msra.mxu1 %v13105_v15  ;;  %v13170_v36 = vcombine.high %v319_v32, %v323_v33  ;;  %v326_v15 = vld [vmem:[#allocation3 + $0x600] sm:$0xff] }
 0x2bf   :  { %7097 = vmatprep.subr.bf16.mxu0 %v13112_v17  ;;  %7269 = vmatprep.subr.bf16.mxu1 %v13114_v18  ;;  %v330_v17 = vld [vmem:[#allocation3 + $0x620] sm:$0xff]  ;;  %v327_v18 = vld [vmem:[#allocation3 + $0x608] sm:$0xff] }
 0x2c0   :  { %v13176_v30 = vcombine.high %v326_v15, %v330_v17  ;;  %v13175_v43 = vcombine.low %v326_v15, %v330_v17  ;;  %v13177_v52 = vcombine.low %v327_v18, %v331_v40  ;;  %v387_v15 = vld [vmem:[#allocation3 + $0x7e8] sm:$0xff] }
 0x2c1   :  { %7087 = vmatmul.mubr.bf16.vlgmr.msra.gmra.mrb[0].mxu0 %v14921_v44  ;;  %7259 = vmatmul.mubr.bf16.vlgmr.msra.gmra.mrb[0].mxu1 %v14921_v44 }
 0x2c2   :  { %7098 = vmatpush1.bf16.msra.mxu0 %v13111_v49  ;;  %7270 = vmatpush1.bf16.msra.mxu1 %v13113_v27  ;;  %v13178_v49 = vcombine.high %v327_v18, %v331_v40  ;;  %v334_v27 = vld [vmem:[#allocation3 + $0x640] sm:$0xff] }
 0x2c3   :  { %7099 = vmatprep.subr.bf16.mxu0 %v13120_v29  ;;  %7271 = vmatprep.subr.bf16.mxu1 %v13122_v37  ;;  %v338_v29 = vld [vmem:[#allocation3 + $0x660] sm:$0xff]  ;;  %v335_v37 = vld [vmem:[#allocation3 + $0x648] sm:$0xff] }
 0x2c4   :  { %7129 = vmatprep.mubr.bf16.mxu0 %v14935_v50  ;;  %7301 = vmatprep.mubr.bf16.mxu1 %v14935_v50  ;;  %v13184_v55 = vcombine.high %v334_v27, %v338_v29  ;;  %v13183_v60 = vcombine.low %v334_v27, %v338_v29  ;;  %v13185_v61 = vcombine.low %v335_v37, %v339_v38  ;;  %v395_v27 = vld [vmem:[#allocation3 + $0x828] sm:$0xff] }
 0x2c6   :  { %7100 = vmatpush1.bf16.msra.mxu0 %v13119_v56  ;;  %7272 = vmatpush1.bf16.msra.mxu1 %v13121_v1  ;;  %v13186_v56 = vcombine.high %v335_v37, %v339_v38  ;;  %v342_v1 = vld [vmem:[#allocation3 + $0x680] sm:$0xff] }
 0x2c7   :  { %7101 = vmatprep.subr.bf16.mxu0 %v13128_v39  ;;  %7273 = vmatprep.subr.bf16.mxu1 %v13130_v57  ;;  %v346_v39 = vld [vmem:[#allocation3 + $0x6a0] sm:$0xff]  ;;  %v343_v57 = vld [vmem:[#allocation3 + $0x688] sm:$0xff] }
 0x2c8   :  { %v13192_v51 = vcombine.high %v342_v1, %v346_v39  ;;  %v13191_v4 = vcombine.low %v342_v1, %v346_v39  ;;  %v13193_v5 = vcombine.low %v343_v57, %v347_v59  ;;  %v14943_v1 = vcombine.low %v14926_v24, %v14931_v48  ;;  %v403_v39 = vld [vmem:[#allocation3 + $0x868] sm:$0xff]  ;;  %v406_v48 = vld [vmem:[#allocation3 + $0x880] sm:$0xff] }
 0x2ca   :  { %7102 = vmatpush1.bf16.msra.mxu0 %v13127_v62  ;;  %7274 = vmatpush1.bf16.msra.mxu1 %v13129_v63  ;;  %v13194_v62 = vcombine.high %v343_v57, %v347_v59  ;;  %v350_v63 = vld [vmem:[#allocation3 + $0x6c0] sm:$0xff]  ;;  %v14948_v57 = vld [vmem:[%s15160_s0 + $0x10] sm:$0xff] }
 0x2cb   :  { %7103 = vmatprep.subr.bf16.mxu0 %v13136_v0  ;;  %7275 = vmatprep.subr.bf16.mxu1 %v13138_v2  ;;  %v354_v0 = vld [vmem:[#allocation3 + $0x6e0] sm:$0xff]  ;;  %v351_v2 = vld [vmem:[#allocation3 + $0x6c8] sm:$0xff]  ;;  %v14953_v59 = vld [vmem:[%s15160_s0 + $0x30] sm:$0xff] }
 0x2cc   :  { %v13200_v6 = vcombine.high %v350_v63, %v354_v0  ;;  %v13199_v45 = vcombine.low %v350_v63, %v354_v0  ;;  %v13201_v46 = vcombine.low %v351_v2, %v355_v3  ;;  %v14957_v63 = vcombine.high %v14948_v57, %v14953_v59  ;;  %v407_v0 = vld [vmem:[#allocation3 + $0x888] sm:$0xff] }
 0x2ce   :  { %7104 = vmatpush1.bf16.msra.mxu0 %v13135_v7  ;;  %7276 = vmatpush1.bf16.msra.mxu1 %v13137_v8  ;;  %v13202_v7 = vcombine.high %v351_v2, %v355_v3  ;;  %v358_v8 = vld [vmem:[#allocation3 + $0x700] sm:$0xff]  ;;  %v411_v2 = vld [vmem:[#allocation3 + $0x8a8] sm:$0xff] }
 0x2cf   :  { %7105 = vmatprep.subr.bf16.mxu0 %v13144_v9  ;;  %7277 = vmatprep.subr.bf16.mxu1 %v13146_v10  ;;  %v362_v9 = vld [vmem:[#allocation3 + $0x720] sm:$0xff]  ;;  %v359_v10 = vld [vmem:[#allocation3 + $0x708] sm:$0xff] }
 0x2d0   :  { %v13208_v12 = vcombine.high %v358_v8, %v362_v9  ;;  %v13207_v21 = vcombine.low %v358_v8, %v362_v9  ;;  %v13209_v53 = vcombine.low %v359_v10, %v363_v11  ;;  %v418_v8 = vld [vmem:[#allocation3 + $0x8e0] sm:$0xff]  ;;  %v415_v9 = vld [vmem:[#allocation3 + $0x8c8] sm:$0xff] }
 0x2d2   :  { %7106 = vmatpush1.bf16.msra.mxu0 %v13143_v13  ;;  %7278 = vmatpush1.bf16.msra.mxu1 %v13145_v14  ;;  %v13210_v13 = vcombine.high %v359_v10, %v363_v11  ;;  %v366_v14 = vld [vmem:[#allocation3 + $0x740] sm:$0xff]  ;;  %v419_v10 = vld [vmem:[#allocation3 + $0x8e8] sm:$0xff] }
 0x2d3   :  { %7107 = vmatprep.subr.bf16.mxu0 %v13152_v16  ;;  %7279 = vmatprep.subr.bf16.mxu1 %v13154_v19  ;;  %v370_v16 = vld [vmem:[#allocation3 + $0x760] sm:$0xff]  ;;  %v367_v19 = vld [vmem:[#allocation3 + $0x748] sm:$0xff] }
 0x2d4   :  { %v13216_v54 = vcombine.high %v366_v14, %v370_v16  ;;  %v13215_v31 = vcombine.low %v366_v14, %v370_v16  ;;  %v13217_v32 = vcombine.low %v367_v19, %v371_v20  ;;  %v426_v14 = vld [vmem:[#allocation3 + $0x920] sm:$0xff]  ;;  %v423_v16 = vld [vmem:[#allocation3 + $0x908] sm:$0xff] }
 0x2d6   :  { %7108 = vmatpush1.bf16.msra.mxu0 %v13151_v22  ;;  %7280 = vmatpush1.bf16.msra.mxu1 %v13153_v23  ;;  %v13218_v22 = vcombine.high %v367_v19, %v371_v20  ;;  %v374_v23 = vld [vmem:[#allocation3 + $0x780] sm:$0xff]  ;;  %v427_v19 = vld [vmem:[#allocation3 + $0x928] sm:$0xff] }
 0x2d7   :  { %7109 = vmatprep.subr.bf16.mxu0 %v13160_v25  ;;  %7281 = vmatprep.subr.bf16.mxu1 %v13162_v26  ;;  %v378_v25 = vld [vmem:[#allocation3 + $0x7a0] sm:$0xff]  ;;  %v375_v26 = vld [vmem:[#allocation3 + $0x788] sm:$0xff] }
 0x2d8   :  { %v13224_v33 = vcombine.high %v374_v23, %v378_v25  ;;  %v13223_v17 = vcombine.low %v374_v23, %v378_v25  ;;  %v13225_v18 = vcombine.low %v375_v26, %v379_v28  ;;  %v434_v23 = vld [vmem:[#allocation3 + $0x960] sm:$0xff]  ;;  %v431_v25 = vld [vmem:[#allocation3 + $0x948] sm:$0xff] }
 0x2da   :  { %7110 = vmatpush1.bf16.msra.mxu0 %v13159_v58  ;;  %7282 = vmatpush1.bf16.msra.mxu1 %v13161_v34  ;;  %v13226_v58 = vcombine.high %v375_v26, %v379_v28  ;;  %v382_v34 = vld [vmem:[#allocation3 + $0x7c0] sm:$0xff]  ;;  %v435_v26 = vld [vmem:[#allocation3 + $0x968] sm:$0xff] }
 0x2db   :  { %7111 = vmatprep.subr.bf16.mxu0 %v13168_v35  ;;  %7283 = vmatprep.subr.bf16.mxu1 %v13170_v36  ;;  %v386_v35 = vld [vmem:[#allocation3 + $0x7e0] sm:$0xff]  ;;  %v383_v36 = vld [vmem:[#allocation3 + $0x7c8] sm:$0xff] }
 0x2dc   :  { %v13232_v40 = vcombine.high %v382_v34, %v386_v35  ;;  %v13231_v29 = vcombine.low %v382_v34, %v386_v35  ;;  %v13233_v37 = vcombine.low %v383_v36, %v387_v15  ;;  %v442_v34 = vld [vmem:[#allocation3 + $0x9a0] sm:$0xff]  ;;  %v439_v35 = vld [vmem:[#allocation3 + $0x988] sm:$0xff] }
 0x2de   :  { %7112 = vmatpush1.bf16.msra.mxu0 %v13167_v41  ;;  %7284 = vmatpush1.bf16.msra.mxu1 %v13169_v42  ;;  %v13234_v41 = vcombine.high %v383_v36, %v387_v15  ;;  %v390_v42 = vld [vmem:[#allocation3 + $0x800] sm:$0xff]  ;;  %v443_v36 = vld [vmem:[#allocation3 + $0x9a8] sm:$0xff] }
 0x2df   :  { %7113 = vmatprep.subr.bf16.mxu0 %v13176_v30  ;;  %7285 = vmatprep.subr.bf16.mxu1 %v13178_v49  ;;  %v394_v30 = vld [vmem:[#allocation3 + $0x820] sm:$0xff]  ;;  %v391_v49 = vld [vmem:[#allocation3 + $0x808] sm:$0xff] }
 0x2e0   :  { %v13240_v38 = vcombine.high %v390_v42, %v394_v30 }
 0x2e2   :  { %7114 = vmatpush1.bf16.msra.mxu0 %v13175_v43  ;;  %7286 = vmatpush1.bf16.msra.mxu1 %v13177_v52  ;;  %v13242_v43 = vcombine.high %v391_v49, %v395_v27  ;;  %v398_v52 = vld [vmem:[#allocation3 + $0x840] sm:$0xff] }
 0x2e3   :  { %7115 = vmatprep.subr.bf16.mxu0 %v13184_v55  ;;  %7287 = vmatprep.subr.bf16.mxu1 %v13186_v56  ;;  %v402_v55 = vld [vmem:[#allocation3 + $0x860] sm:$0xff]  ;;  %v399_v56 = vld [vmem:[#allocation3 + $0x848] sm:$0xff] }
 0x2e4   :  { %v13250_v24 = vcombine.high %v399_v56, %v403_v39  ;;  %v13247_v3 = vcombine.low %v398_v52, %v402_v55 }
 0x2e6   :  { %7116 = vmatpush1.bf16.msra.mxu0 %v13183_v60  ;;  %7288 = vmatpush1.bf16.msra.mxu1 %v13185_v61  ;;  %v13239_v60 = vcombine.low %v390_v42, %v394_v30  ;;  %v13241_v61 = vcombine.low %v391_v49, %v395_v27  ;;  %v450_v42 = vld [vmem:[#allocation3 + $0x9e0] sm:$0xff]  ;;  %v447_v30 = vld [vmem:[#allocation3 + $0x9c8] sm:$0xff] }
 0x2e7   :  { %7117 = vmatprep.subr.bf16.mxu0 %v13192_v51  ;;  %7289 = vmatprep.subr.bf16.mxu1 %v13194_v62  ;;  %v13248_v51 = vcombine.high %v398_v52, %v402_v55  ;;  %v410_v62 = vld [vmem:[#allocation3 + $0x8a0] sm:$0xff]  ;;  %v451_v49 = vld [vmem:[#allocation3 + $0x9e8] sm:$0xff] }
 0x2e8   :  { %v13255_v11 = vcombine.low %v406_v48, %v410_v62  ;;  %v458_v52 = vld [vmem:[#allocation3 + $0xa20] sm:$0xff]  ;;  %v455_v55 = vld [vmem:[#allocation3 + $0xa08] sm:$0xff] }
 0x2ea   :  { %7118 = vmatpush1.bf16.msra.mxu0 %v13191_v4  ;;  %7290 = vmatpush1.bf16.msra.mxu1 %v13193_v5  ;;  %v13249_v4 = vcombine.low %v399_v56, %v403_v39  ;;  %v13256_v5 = vcombine.high %v406_v48, %v410_v62  ;;  %v459_v56 = vld [vmem:[#allocation3 + $0xa28] sm:$0xff]  ;;  %v466_v48 = vld [vmem:[#allocation3 + $0xa60] sm:$0xff] }
 0x2eb   :  { %7119 = vmatprep.subr.bf16.mxu0 %v13200_v6  ;;  %7291 = vmatprep.subr.bf16.mxu1 %v13202_v7  ;;  %v13258_v6 = vcombine.high %v407_v0, %v411_v2  ;;  %v414_v7 = vld [vmem:[#allocation3 + $0x8c0] sm:$0xff]  ;;  %v463_v62 = vld [vmem:[#allocation3 + $0xa48] sm:$0xff] }
 0x2ec   :  { %v13263_v20 = vcombine.low %v414_v7, %v418_v8 }
 0x2ee   :  { %7120 = vmatpush1.bf16.msra.mxu0 %v13199_v45  ;;  %7292 = vmatpush1.bf16.msra.mxu1 %v13201_v46  ;;  %v13257_v45 = vcombine.low %v407_v0, %v411_v2  ;;  %v13264_v46 = vcombine.high %v414_v7, %v418_v8  ;;  %v467_v0 = vld [vmem:[#allocation3 + $0xa68] sm:$0xff]  ;;  %v474_v7 = vld [vmem:[#allocation3 + $0xaa0] sm:$0xff] }
 0x2ef   :  { %7121 = vmatprep.subr.bf16.mxu0 %v13208_v12  ;;  %7293 = vmatprep.subr.bf16.mxu1 %v13210_v13  ;;  %v13266_v12 = vcombine.high %v415_v9, %v419_v10  ;;  %v422_v13 = vld [vmem:[#allocation3 + $0x900] sm:$0xff]  ;;  %v471_v8 = vld [vmem:[#allocation3 + $0xa88] sm:$0xff] }
 0x2f0   :  { %v13271_v28 = vcombine.low %v422_v13, %v426_v14 }
 0x2f2   :  { %7122 = vmatpush1.bf16.msra.mxu0 %v13207_v21  ;;  %7294 = vmatpush1.bf16.msra.mxu1 %v13209_v53  ;;  %v13265_v21 = vcombine.low %v415_v9, %v419_v10  ;;  %v13272_v53 = vcombine.high %v422_v13, %v426_v14  ;;  %v475_v9 = vld [vmem:[#allocation3 + $0xaa8] sm:$0xff]  ;;  %v482_v13 = vld [vmem:[#allocation3 + $0xae0] sm:$0xff] }
 0x2f3   :  { %7123 = vmatprep.subr.bf16.mxu0 %v13216_v54  ;;  %7295 = vmatprep.subr.bf16.mxu1 %v13218_v22  ;;  %v13274_v54 = vcombine.high %v423_v16, %v427_v19  ;;  %v430_v22 = vld [vmem:[#allocation3 + $0x940] sm:$0xff]  ;;  %v479_v14 = vld [vmem:[#allocation3 + $0xac8] sm:$0xff] }
 0x2f4   :  { %v13279_v15 = vcombine.low %v430_v22, %v434_v23 }
 0x2f6   :  { %7124 = vmatpush1.bf16.msra.mxu0 %v13215_v31  ;;  %7296 = vmatpush1.bf16.msra.mxu1 %v13217_v32  ;;  %v13273_v31 = vcombine.low %v423_v16, %v427_v19  ;;  %v13280_v32 = vcombine.high %v430_v22, %v434_v23  ;;  %v483_v16 = vld [vmem:[#allocation3 + $0xae8] sm:$0xff]  ;;  %v490_v22 = vld [vmem:[#allocation3 + $0xb20] sm:$0xff] }
 0x2f7   :  { %7125 = vmatprep.subr.bf16.mxu0 %v13224_v33  ;;  %7297 = vmatprep.subr.bf16.mxu1 %v13226_v58  ;;  %v13282_v33 = vcombine.high %v431_v25, %v435_v26  ;;  %v438_v58 = vld [vmem:[#allocation3 + $0x980] sm:$0xff]  ;;  %v487_v23 = vld [vmem:[#allocation3 + $0xb08] sm:$0xff] }
 0x2f8   :  { %v13287_v27 = vcombine.low %v438_v58, %v442_v34 }
 0x2fa   :  { %7126 = vmatpush1.bf16.msra.mxu0 %v13223_v17  ;;  %7298 = vmatpush1.bf16.msra.mxu1 %v13225_v18  ;;  %v13281_v17 = vcombine.low %v431_v25, %v435_v26  ;;  %v13288_v18 = vcombine.high %v438_v58, %v442_v34  ;;  %v491_v25 = vld [vmem:[#allocation3 + $0xb28] sm:$0xff]  ;;  %v498_v58 = vld [vmem:[#allocation3 + $0xb60] sm:$0xff] }
 0x2fb   :  { %7127 = vmatprep.subr.bf16.mxu0 %v13232_v40  ;;  %7299 = vmatprep.subr.bf16.mxu1 %v13234_v41  ;;  %v13290_v40 = vcombine.high %v439_v35, %v443_v36  ;;  %v446_v41 = vld [vmem:[#allocation3 + $0x9c0] sm:$0xff]  ;;  %v495_v34 = vld [vmem:[#allocation3 + $0xb48] sm:$0xff] }
 0x2fc   :  { %v13295_v39 = vcombine.low %v446_v41, %v450_v42 }
 0x2fe   :  { %7128 = vmatpush1.bf16.msra.mxu0 %v13231_v29  ;;  %7300 = vmatpush1.bf16.msra.mxu1 %v13233_v37  ;;  %v13289_v29 = vcombine.low %v439_v35, %v443_v36  ;;  %v13296_v37 = vcombine.high %v446_v41, %v450_v42  ;;  %v499_v35 = vld [vmem:[#allocation3 + $0xb68] sm:$0xff]  ;;  %v506_v41 = vld [vmem:[#allocation3 + $0xba0] sm:$0xff] }
 0x2ff   :  { %7140 = vmatprep.subr.bf16.mxu0 %v13240_v38  ;;  %7312 = vmatprep.subr.bf16.mxu1 %v13242_v43  ;;  %v13298_v38 = vcombine.high %v447_v30, %v451_v49  ;;  %v454_v43 = vld [vmem:[#allocation3 + $0xa00] sm:$0xff]  ;;  %v503_v42 = vld [vmem:[#allocation3 + $0xb88] sm:$0xff] }
 0x300   :  { %v13303_v2 = vcombine.low %v454_v43, %v458_v52 }
 0x301   :  { %7130 = vmatmul.mubr.bf16.vlgmr.msra.gmra.mrb[0].mxu0 %v14943_v1  ;;  %7302 = vmatmul.mubr.bf16.vlgmr.msra.gmra.mrb[0].mxu1 %v14943_v1 }
 0x302   :  { %7141 = vmatpush1.bf16.msra.mxu0 %v13239_v60  ;;  %7313 = vmatpush1.bf16.msra.mxu1 %v13241_v61  ;;  %v13297_v60 = vcombine.low %v447_v30, %v451_v49  ;;  %v13304_v61 = vcombine.high %v454_v43, %v458_v52  ;;  %v507_v30 = vld [vmem:[#allocation3 + $0xba8] sm:$0xff]  ;;  %v514_v43 = vld [vmem:[#allocation3 + $0xbe0] sm:$0xff] }
 0x303   :  { %7142 = vmatprep.subr.bf16.mxu0 %v13248_v51  ;;  %7314 = vmatprep.subr.bf16.mxu1 %v13250_v24  ;;  %v13306_v51 = vcombine.high %v455_v55, %v459_v56  ;;  %v462_v24 = vld [vmem:[#allocation3 + $0xa40] sm:$0xff]  ;;  %v511_v52 = vld [vmem:[#allocation3 + $0xbc8] sm:$0xff] }
 0x304   :  { %7172 = vmatprep.mubr.bf16.mxu0 %v14957_v63  ;;  %7344 = vmatprep.mubr.bf16.mxu1 %v14957_v63  ;;  %v13311_v10 = vcombine.low %v462_v24, %v466_v48 }
 0x306   :  { %7143 = vmatpush1.bf16.msra.mxu0 %v13247_v3  ;;  %7315 = vmatpush1.bf16.msra.mxu1 %v13249_v4  ;;  %v13305_v3 = vcombine.low %v455_v55, %v459_v56  ;;  %v13312_v4 = vcombine.high %v462_v24, %v466_v48  ;;  %v515_v55 = vld [vmem:[#allocation3 + $0xbe8] sm:$0xff]  ;;  %v522_v24 = vld [vmem:[#allocation3 + $0xc20] sm:$0xff] }
 0x307   :  { %7144 = vmatprep.subr.bf16.mxu0 %v13256_v5  ;;  %7316 = vmatprep.subr.bf16.mxu1 %v13258_v6  ;;  %v13314_v5 = vcombine.high %v463_v62, %v467_v0  ;;  %v470_v6 = vld [vmem:[#allocation3 + $0xa80] sm:$0xff]  ;;  %v519_v48 = vld [vmem:[#allocation3 + $0xc08] sm:$0xff] }
 0x308   :  { %v13319_v19 = vcombine.low %v470_v6, %v474_v7 }
 0x30a   :  { %7145 = vmatpush1.bf16.msra.mxu0 %v13255_v11  ;;  %7317 = vmatpush1.bf16.msra.mxu1 %v13257_v45  ;;  %v13313_v11 = vcombine.low %v463_v62, %v467_v0  ;;  %v13320_v45 = vcombine.high %v470_v6, %v474_v7  ;;  %v523_v62 = vld [vmem:[#allocation3 + $0xc28] sm:$0xff]  ;;  %v530_v6 = vld [vmem:[#allocation3 + $0xc60] sm:$0xff] }
 0x30b   :  { %7146 = vmatprep.subr.bf16.mxu0 %v13264_v46  ;;  %7318 = vmatprep.subr.bf16.mxu1 %v13266_v12  ;;  %v13322_v46 = vcombine.high %v471_v8, %v475_v9  ;;  %v478_v12 = vld [vmem:[#allocation3 + $0xac0] sm:$0xff]  ;;  %v527_v7 = vld [vmem:[#allocation3 + $0xc48] sm:$0xff] }
 0x30c   :  { %v13327_v26 = vcombine.low %v478_v12, %v482_v13 }
 0x30e   :  { %7147 = vmatpush1.bf16.msra.mxu0 %v13263_v20  ;;  %7319 = vmatpush1.bf16.msra.mxu1 %v13265_v21  ;;  %v13321_v20 = vcombine.low %v471_v8, %v475_v9  ;;  %v13328_v21 = vcombine.high %v478_v12, %v482_v13  ;;  %v14965_v8 = vcombine.low %v14948_v57, %v14953_v59  ;;  %v531_v9 = vld [vmem:[#allocation3 + $0xc68] sm:$0xff]  ;;  %v534_v59 = vld [vmem:[#allocation3 + $0xc80] sm:$0xff] }
 0x30f   :  { %7148 = vmatprep.subr.bf16.mxu0 %v13272_v53  ;;  %7320 = vmatprep.subr.bf16.mxu1 %v13274_v54  ;;  %v13330_v53 = vcombine.high %v479_v14, %v483_v16  ;;  %v486_v54 = vld [vmem:[#allocation3 + $0xb00] sm:$0xff]  ;;  %v13378_v57 = vcombine.high %v527_v7, %v531_v9 }
 0x310   :  { %v13335_v36 = vcombine.low %v486_v54, %v490_v22  ;;  %v538_v13 = vld [vmem:[#allocation3 + $0xca0] sm:$0xff] }
 0x312   :  { %7149 = vmatpush1.bf16.msra.mxu0 %v13271_v28  ;;  %7321 = vmatpush1.bf16.msra.mxu1 %v13273_v31  ;;  %v13329_v28 = vcombine.low %v479_v14, %v483_v16  ;;  %v13336_v31 = vcombine.high %v486_v54, %v490_v22  ;;  %v535_v16 = vld [vmem:[#allocation3 + $0xc88] sm:$0xff]  ;;  %v542_v22 = vld [vmem:[#allocation3 + $0xcc0] sm:$0xff] }
 0x313   :  { %7150 = vmatprep.subr.bf16.mxu0 %v13280_v32  ;;  %7322 = vmatprep.subr.bf16.mxu1 %v13282_v33  ;;  %v13338_v32 = vcombine.high %v487_v23, %v491_v25  ;;  %v494_v33 = vld [vmem:[#allocation3 + $0xb40] sm:$0xff] }
 0x314   :  { %v13343_v49 = vcombine.low %v494_v33, %v498_v58 }
 0x316   :  { %7151 = vmatpush1.bf16.msra.mxu0 %v13279_v15  ;;  %7323 = vmatpush1.bf16.msra.mxu1 %v13281_v17  ;;  %v13337_v15 = vcombine.low %v487_v23, %v491_v25  ;;  %v13344_v17 = vcombine.high %v494_v33, %v498_v58  ;;  %v546_v23 = vld [vmem:[#allocation3 + $0xce0] sm:$0xff]  ;;  %v543_v25 = vld [vmem:[#allocation3 + $0xcc8] sm:$0xff] }
 0x317   :  { %7152 = vmatprep.subr.bf16.mxu0 %v13288_v18  ;;  %7324 = vmatprep.subr.bf16.mxu1 %v13290_v40  ;;  %v13346_v18 = vcombine.high %v495_v34, %v499_v35  ;;  %v502_v40 = vld [vmem:[#allocation3 + $0xb80] sm:$0xff] }
 0x318   :  { %v13351_v56 = vcombine.low %v502_v40, %v506_v41  ;;  %v550_v58 = vld [vmem:[#allocation3 + $0xd00] sm:$0xff] }
 0x31a   :  { %7153 = vmatpush1.bf16.msra.mxu0 %v13287_v27  ;;  %7325 = vmatpush1.bf16.msra.mxu1 %v13289_v29  ;;  %v13345_v27 = vcombine.low %v495_v34, %v499_v35  ;;  %v13352_v29 = vcombine.high %v502_v40, %v506_v41  ;;  %v554_v34 = vld [vmem:[#allocation3 + $0xd20] sm:$0xff]  ;;  %v551_v35 = vld [vmem:[#allocation3 + $0xd08] sm:$0xff] }
 0x31b   :  { %7154 = vmatprep.subr.bf16.mxu0 %v13296_v37  ;;  %7326 = vmatprep.subr.bf16.mxu1 %v13298_v38  ;;  %v13354_v37 = vcombine.high %v503_v42, %v507_v30  ;;  %v510_v38 = vld [vmem:[#allocation3 + $0xbc0] sm:$0xff] }
 0x31c   :  { %v13359_v0 = vcombine.low %v510_v38, %v514_v43  ;;  %v558_v41 = vld [vmem:[#allocation3 + $0xd40] sm:$0xff] }
 0x31e   :  { %7155 = vmatpush1.bf16.msra.mxu0 %v13295_v39  ;;  %7327 = vmatpush1.bf16.msra.mxu1 %v13297_v60  ;;  %v13353_v39 = vcombine.low %v503_v42, %v507_v30  ;;  %v13360_v60 = vcombine.high %v510_v38, %v514_v43  ;;  %v562_v42 = vld [vmem:[#allocation3 + $0xd60] sm:$0xff]  ;;  %v559_v30 = vld [vmem:[#allocation3 + $0xd48] sm:$0xff] }
 0x31f   :  { %7156 = vmatprep.subr.bf16.mxu0 %v13304_v61  ;;  %7328 = vmatprep.subr.bf16.mxu1 %v13306_v51  ;;  %v13362_v61 = vcombine.high %v511_v52, %v515_v55  ;;  %v518_v51 = vld [vmem:[#allocation3 + $0xc00] sm:$0xff] }
 0x320   :  { %v566_v43 = vld [vmem:[#allocation3 + $0xd80] sm:$0xff] }
 0x322   :  { %7157 = vmatpush1.bf16.msra.mxu0 %v13303_v2  ;;  %7329 = vmatpush1.bf16.msra.mxu1 %v13305_v3  ;;  %v13361_v2 = vcombine.low %v511_v52, %v515_v55  ;;  %v13368_v3 = vcombine.high %v518_v51, %v522_v24  ;;  %v570_v52 = vld [vmem:[#allocation3 + $0xda0] sm:$0xff]  ;;  %v567_v55 = vld [vmem:[#allocation3 + $0xd88] sm:$0xff] }
 0x323   :  { %7158 = vmatprep.subr.bf16.mxu0 %v13312_v4  ;;  %7330 = vmatprep.subr.bf16.mxu1 %v13314_v5  ;;  %v13370_v4 = vcombine.high %v519_v48, %v523_v62  ;;  %v526_v5 = vld [vmem:[#allocation3 + $0xc40] sm:$0xff] }
 0x324   :  { %v13376_v12 = vcombine.high %v526_v5, %v530_v6 }
 0x326   :  { %7159 = vmatpush1.bf16.msra.mxu0 %v13311_v10  ;;  %7331 = vmatpush1.bf16.msra.mxu1 %v13313_v11  ;;  %v14970_v10 = vld [vmem:[%s15160_s0 + $0x18] sm:$0xff] }
 0x327   :  { %7160 = vmatprep.subr.bf16.mxu0 %v13320_v45  ;;  %7332 = vmatprep.subr.bf16.mxu1 %v13322_v46  ;;  %v14975_v11 = vld [vmem:[%s15160_s0 + $0x38] sm:$0xff]  ;;  %v13367_v45 = vcombine.low %v518_v51, %v522_v24  ;;  %v13369_v46 = vcombine.low %v519_v48, %v523_v62  ;;  %v574_v24 = vld [vmem:[#allocation3 + $0xdc0] sm:$0xff]  ;;  %v575_v62 = vld [vmem:[#allocation3 + $0xdc8] sm:$0xff] }
 0x328   :  { %v14979_v14 = vcombine.high %v14970_v10, %v14975_v11  ;;  %v578_v48 = vld [vmem:[#allocation3 + $0xde0] sm:$0xff] }
 0x32a   :  { %7161 = vmatpush1.bf16.msra.mxu0 %v13319_v19  ;;  %7333 = vmatpush1.bf16.msra.mxu1 %v13321_v20  ;;  %v539_v19 = vld [vmem:[#allocation3 + $0xca8] sm:$0xff]  ;;  %v13375_v20 = vcombine.low %v526_v5, %v530_v6  ;;  %v582_v6 = vld [vmem:[#allocation3 + $0xe00] sm:$0xff] }
 0x32b   :  { %7162 = vmatprep.subr.bf16.mxu0 %v13328_v21  ;;  %7334 = vmatprep.subr.bf16.mxu1 %v13330_v53  ;;  %v13377_v21 = vcombine.low %v527_v7, %v531_v9  ;;  %v13384_v53 = vcombine.high %v534_v59, %v538_v13  ;;  %v13386_v54 = vcombine.high %v535_v16, %v539_v19  ;;  %v586_v7 = vld [vmem:[#allocation3 + $0xe20] sm:$0xff]  ;;  %v583_v9 = vld [vmem:[#allocation3 + $0xe08] sm:$0xff] }
 0x32e   :  { %7163 = vmatpush1.bf16.msra.mxu0 %v13327_v26  ;;  %7335 = vmatpush1.bf16.msra.mxu1 %v13329_v28  ;;  %v547_v26 = vld [vmem:[#allocation3 + $0xce8] sm:$0xff]  ;;  %v13383_v28 = vcombine.low %v534_v59, %v538_v13  ;;  %v590_v13 = vld [vmem:[#allocation3 + $0xe40] sm:$0xff] }
 0x32f   :  { %7164 = vmatprep.subr.bf16.mxu0 %v13336_v31  ;;  %7336 = vmatprep.subr.bf16.mxu1 %v13338_v32  ;;  %v13385_v31 = vcombine.low %v535_v16, %v539_v19  ;;  %v13392_v32 = vcombine.high %v542_v22, %v546_v23  ;;  %v13394_v33 = vcombine.high %v543_v25, %v547_v26  ;;  %v594_v16 = vld [vmem:[#allocation3 + $0xe60] sm:$0xff]  ;;  %v591_v19 = vld [vmem:[#allocation3 + $0xe48] sm:$0xff] }
 0x332   :  { %7165 = vmatpush1.bf16.msra.mxu0 %v13335_v36  ;;  %7337 = vmatpush1.bf16.msra.mxu1 %v13337_v15  ;;  %v555_v36 = vld [vmem:[#allocation3 + $0xd28] sm:$0xff]  ;;  %v13391_v15 = vcombine.low %v542_v22, %v546_v23  ;;  %v598_v23 = vld [vmem:[#allocation3 + $0xe80] sm:$0xff] }
 0x333   :  { %7166 = vmatprep.subr.bf16.mxu0 %v13344_v17  ;;  %7338 = vmatprep.subr.bf16.mxu1 %v13346_v18  ;;  %v13393_v17 = vcombine.low %v543_v25, %v547_v26  ;;  %v13400_v18 = vcombine.high %v550_v58, %v554_v34  ;;  %v13402_v40 = vcombine.high %v551_v35, %v555_v36  ;;  %v602_v25 = vld [vmem:[#allocation3 + $0xea0] sm:$0xff]  ;;  %v599_v26 = vld [vmem:[#allocation3 + $0xe88] sm:$0xff] }
 0x336   :  { %7167 = vmatpush1.bf16.msra.mxu0 %v13343_v49  ;;  %7339 = vmatpush1.bf16.msra.mxu1 %v13345_v27  ;;  %v563_v49 = vld [vmem:[#allocation3 + $0xd68] sm:$0xff]  ;;  %v13399_v27 = vcombine.low %v550_v58, %v554_v34  ;;  %v606_v34 = vld [vmem:[#allocation3 + $0xec0] sm:$0xff] }
 0x337   :  { %7168 = vmatprep.subr.bf16.mxu0 %v13352_v29  ;;  %7340 = vmatprep.subr.bf16.mxu1 %v13354_v37  ;;  %v13401_v29 = vcombine.low %v551_v35, %v555_v36  ;;  %v13408_v37 = vcombine.high %v558_v41, %v562_v42  ;;  %v13410_v38 = vcombine.high %v559_v30, %v563_v49  ;;  %v610_v35 = vld [vmem:[#allocation3 + $0xee0] sm:$0xff]  ;;  %v607_v36 = vld [vmem:[#allocation3 + $0xec8] sm:$0xff] }
 0x33a   :  { %7169 = vmatpush1.bf16.msra.mxu0 %v13351_v56  ;;  %7341 = vmatpush1.bf16.msra.mxu1 %v13353_v39  ;;  %v571_v56 = vld [vmem:[#allocation3 + $0xda8] sm:$0xff]  ;;  %v13407_v39 = vcombine.low %v558_v41, %v562_v42  ;;  %v614_v42 = vld [vmem:[#allocation3 + $0xf00] sm:$0xff] }
 0x33b   :  { %7170 = vmatprep.subr.bf16.mxu0 %v13360_v60  ;;  %7342 = vmatprep.subr.bf16.mxu1 %v13362_v61  ;;  %v13409_v60 = vcombine.low %v559_v30, %v563_v49  ;;  %v13416_v61 = vcombine.high %v566_v43, %v570_v52  ;;  %v13418_v51 = vcombine.high %v567_v55, %v571_v56  ;;  %v618_v30 = vld [vmem:[#allocation3 + $0xf20] sm:$0xff]  ;;  %v615_v49 = vld [vmem:[#allocation3 + $0xf08] sm:$0xff] }
 0x33e   :  { %7171 = vmatpush1.bf16.msra.mxu0 %v13359_v0  ;;  %7343 = vmatpush1.bf16.msra.mxu1 %v13361_v2  ;;  %v579_v0 = vld [vmem:[#allocation3 + $0xde8] sm:$0xff]  ;;  %v13415_v2 = vcombine.low %v566_v43, %v570_v52  ;;  %v622_v52 = vld [vmem:[#allocation3 + $0xf40] sm:$0xff] }
 0x33f   :  { %7183 = vmatprep.subr.bf16.mxu0 %v13368_v3  ;;  %7355 = vmatprep.subr.bf16.mxu1 %v13370_v4  ;;  %v13417_v3 = vcombine.low %v567_v55, %v571_v56  ;;  %v13424_v4 = vcombine.high %v574_v24, %v578_v48  ;;  %v13426_v5 = vcombine.high %v575_v62, %v579_v0  ;;  %v626_v55 = vld [vmem:[#allocation3 + $0xf60] sm:$0xff]  ;;  %v623_v56 = vld [vmem:[#allocation3 + $0xf48] sm:$0xff] }
 0x341   :  { %7173 = vmatmul.mubr.bf16.vlgmr.msra.gmra.mrb[0].mxu0 %v14965_v8  ;;  %7345 = vmatmul.mubr.bf16.vlgmr.msra.gmra.mrb[0].mxu1 %v14965_v8 }
 0x342   :  { %7184 = vmatpush1.bf16.msra.mxu0 %v13367_v45  ;;  %7356 = vmatpush1.bf16.msra.mxu1 %v13369_v46  ;;  %v587_v45 = vld [vmem:[#allocation3 + $0xe28] sm:$0xff]  ;;  %v13423_v46 = vcombine.low %v574_v24, %v578_v48  ;;  %v630_v48 = vld [vmem:[#allocation3 + $0xf80] sm:$0xff] }
 0x343   :  { %7185 = vmatprep.subr.bf16.mxu0 %v13376_v12  ;;  %7357 = vmatprep.subr.bf16.mxu1 %v13378_v57  ;;  %v13425_v12 = vcombine.low %v575_v62, %v579_v0  ;;  %v13432_v57 = vcombine.high %v582_v6, %v586_v7  ;;  %v13434_v59 = vcombine.high %v583_v9, %v587_v45  ;;  %v634_v62 = vld [vmem:[#allocation3 + $0xfa0] sm:$0xff]  ;;  %v631_v0 = vld [vmem:[#allocation3 + $0xf88] sm:$0xff] }
 0x344   :  { %7215 = vmatprep.mubr.bf16.mxu0 %v14979_v14  ;;  %7387 = vmatprep.mubr.bf16.mxu1 %v14979_v14 }
 0x346   :  { %7186 = vmatpush1.bf16.msra.mxu0 %v13375_v20  ;;  %7358 = vmatpush1.bf16.msra.mxu1 %v13377_v21  ;;  %v595_v20 = vld [vmem:[#allocation3 + $0xe68] sm:$0xff]  ;;  %v13431_v21 = vcombine.low %v582_v6, %v586_v7  ;;  %v638_v7 = vld [vmem:[#allocation3 + $0xfc0] sm:$0xff] }
 0x347   :  { %7187 = vmatprep.subr.bf16.mxu0 %v13384_v53  ;;  %7359 = vmatprep.subr.bf16.mxu1 %v13386_v54  ;;  %v13433_v53 = vcombine.low %v583_v9, %v587_v45  ;;  %v13440_v54 = vcombine.high %v590_v13, %v594_v16  ;;  %v13442_v22 = vcombine.high %v591_v19, %v595_v20  ;;  %v642_v9 = vld [vmem:[#allocation3 + $0xfe0] sm:$0xff]  ;;  %v639_v45 = vld [vmem:[#allocation3 + $0xfc8] sm:$0xff] }
 0x34a   :  { %7188 = vmatpush1.bf16.msra.mxu0 %v13383_v28  ;;  %7360 = vmatpush1.bf16.msra.mxu1 %v13385_v31  ;;  %v603_v28 = vld [vmem:[#allocation3 + $0xea8] sm:$0xff]  ;;  %v13439_v31 = vcombine.low %v590_v13, %v594_v16  ;;  %v136_v16 = vld [vmem:[#allocation3 + $0x10] sm:$0xff] }
 0x34b   :  { %7189 = vmatprep.subr.bf16.mxu0 %v13392_v32  ;;  %7361 = vmatprep.subr.bf16.mxu1 %v13394_v33  ;;  %v13441_v32 = vcombine.low %v591_v19, %v595_v20  ;;  %v13448_v33 = vcombine.high %v598_v23, %v602_v25  ;;  %v13450_v58 = vcombine.high %v599_v26, %v603_v28  ;;  %v140_v19 = vld [vmem:[#allocation3 + $0x30] sm:$0xff]  ;;  %v137_v20 = vld [vmem:[#allocation3 + $0x18] sm:$0xff] }
 0x34e   :  { %7190 = vmatpush1.bf16.msra.mxu0 %v13391_v15  ;;  %7362 = vmatpush1.bf16.msra.mxu1 %v13393_v17  ;;  %v611_v15 = vld [vmem:[#allocation3 + $0xee8] sm:$0xff]  ;;  %v13447_v17 = vcombine.low %v598_v23, %v602_v25  ;;  %v144_v25 = vld [vmem:[#allocation3 + $0x50] sm:$0xff] }
 0x34f   :  { %7191 = vmatprep.subr.bf16.mxu0 %v13400_v18  ;;  %7363 = vmatprep.subr.bf16.mxu1 %v13402_v40  ;;  %v13449_v18 = vcombine.low %v599_v26, %v603_v28  ;;  %v13456_v40 = vcombine.high %v606_v34, %v610_v35  ;;  %v13458_v41 = vcombine.high %v607_v36, %v611_v15  ;;  %v148_v26 = vld [vmem:[#allocation3 + $0x70] sm:$0xff] }
 0x350   :  { %v14987_v28 = vcombine.low %v14970_v10, %v14975_v11  ;;  %v12995_v10 = vcombine.low %v144_v25, %v148_v26 }
 0x352   :  { %7192 = vmatpush1.bf16.msra.mxu0 %v13399_v27  ;;  %7364 = vmatpush1.bf16.msra.mxu1 %v13401_v29  ;;  %v619_v27 = vld [vmem:[#allocation3 + $0xf28] sm:$0xff]  ;;  %v13455_v29 = vcombine.low %v606_v34, %v610_v35  ;;  %v12996_v34 = vcombine.high %v144_v25, %v148_v26  ;;  %v204_v25 = vld [vmem:[#allocation3 + $0x230] sm:$0xff]  ;;  %v201_v26 = vld [vmem:[#allocation3 + $0x218] sm:$0xff] }
 0x353   :  { %7193 = vmatprep.subr.bf16.mxu0 %v13408_v37  ;;  %7365 = vmatprep.subr.bf16.mxu1 %v13410_v38  ;;  %v13457_v37 = vcombine.low %v607_v36, %v611_v15  ;;  %v13464_v38 = vcombine.high %v614_v42, %v618_v30  ;;  %v13466_v43 = vcombine.high %v615_v49, %v619_v27  ;;  %v152_v36 = vld [vmem:[#allocation3 + $0x90] sm:$0xff] }
 0x354   :  { %v156_v15 = vld [vmem:[#allocation3 + $0xb0] sm:$0xff] }
 0x356   :  { %7194 = vmatpush1.bf16.msra.mxu0 %v13407_v39  ;;  %7366 = vmatpush1.bf16.msra.mxu1 %v13409_v60  ;;  %v627_v39 = vld [vmem:[#allocation3 + $0xf68] sm:$0xff]  ;;  %v13463_v60 = vcombine.low %v614_v42, %v618_v30  ;;  %v160_v42 = vld [vmem:[#allocation3 + $0xd0] sm:$0xff] }
 0x357   :  { %7195 = vmatprep.subr.bf16.mxu0 %v13416_v61  ;;  %7367 = vmatprep.subr.bf16.mxu1 %v13418_v51  ;;  %v13465_v61 = vcombine.low %v615_v49, %v619_v27  ;;  %v13472_v51 = vcombine.high %v622_v52, %v626_v55  ;;  %v13474_v24 = vcombine.high %v623_v56, %v627_v39  ;;  %v164_v30 = vld [vmem:[#allocation3 + $0xf0] sm:$0xff]  ;;  %v161_v49 = vld [vmem:[#allocation3 + $0xd8] sm:$0xff] }
 0x358   :  { %v165_v27 = vld [vmem:[#allocation3 + $0xf8] sm:$0xff] }
 0x35a   :  { %7196 = vmatpush1.bf16.msra.mxu0 %v13415_v2  ;;  %7368 = vmatpush1.bf16.msra.mxu1 %v13417_v3  ;;  %v635_v2 = vld [vmem:[#allocation3 + $0xfa8] sm:$0xff]  ;;  %v13471_v3 = vcombine.low %v622_v52, %v626_v55  ;;  %v168_v52 = vld [vmem:[#allocation3 + $0x110] sm:$0xff] }
 0x35b   :  { %7197 = vmatprep.subr.bf16.mxu0 %v13424_v4  ;;  %7369 = vmatprep.subr.bf16.mxu1 %v13426_v5  ;;  %v13473_v4 = vcombine.low %v623_v56, %v627_v39  ;;  %v13480_v5 = vcombine.high %v630_v48, %v634_v62  ;;  %v13482_v6 = vcombine.high %v631_v0, %v635_v2  ;;  %v172_v55 = vld [vmem:[#allocation3 + $0x130] sm:$0xff]  ;;  %v169_v56 = vld [vmem:[#allocation3 + $0x118] sm:$0xff] }
 0x35c   :  { %v173_v39 = vld [vmem:[#allocation3 + $0x138] sm:$0xff] }
 0x35e   :  { %7198 = vmatpush1.bf16.msra.mxu0 %v13423_v46  ;;  %7370 = vmatpush1.bf16.msra.mxu1 %v13425_v12  ;;  %v643_v46 = vld [vmem:[#allocation3 + $0xfe8] sm:$0xff]  ;;  %v13479_v12 = vcombine.low %v630_v48, %v634_v62  ;;  %v180_v48 = vld [vmem:[#allocation3 + $0x170] sm:$0xff]  ;;  %v177_v62 = vld [vmem:[#allocation3 + $0x158] sm:$0xff] }
 0x35f   :  { %7199 = vmatprep.subr.bf16.mxu0 %v13432_v57  ;;  %7371 = vmatprep.subr.bf16.mxu1 %v13434_v59  ;;  %v13481_v57 = vcombine.low %v631_v0, %v635_v2  ;;  %v13488_v59 = vcombine.high %v638_v7, %v642_v9  ;;  %v13490_v13 = vcombine.high %v639_v45, %v643_v46  ;;  %v181_v0 = vld [vmem:[#allocation3 + $0x178] sm:$0xff] }
 0x360   :  { %v13019_v2 = vcombine.low %v168_v52, %v172_v55 }
 0x362   :  { %7200 = vmatpush1.bf16.msra.mxu0 %v13431_v21  ;;  %7372 = vmatpush1.bf16.msra.mxu1 %v13433_v53  ;;  %v141_v21 = vld [vmem:[#allocation3 + $0x38] sm:$0xff]  ;;  %v13487_v53 = vcombine.low %v638_v7, %v642_v9  ;;  %v188_v7 = vld [vmem:[#allocation3 + $0x1b0] sm:$0xff] }
 0x363   :  { %7201 = vmatprep.subr.bf16.mxu0 %v13440_v54  ;;  %7373 = vmatprep.subr.bf16.mxu1 %v13442_v22  ;;  %v13489_v54 = vcombine.low %v639_v45, %v643_v46  ;;  %v12988_v22 = vcombine.high %v136_v16, %v140_v19  ;;  %v12990_v23 = vcombine.high %v137_v20, %v141_v21  ;;  %v185_v9 = vld [vmem:[#allocation3 + $0x198] sm:$0xff] }
 0x364   :  { %v189_v45 = vld [vmem:[#allocation3 + $0x1b8] sm:$0xff] }
 0x366   :  { %7202 = vmatpush1.bf16.msra.mxu0 %v13439_v31  ;;  %7374 = vmatpush1.bf16.msra.mxu1 %v13441_v32  ;;  %v145_v31 = vld [vmem:[#allocation3 + $0x58] sm:$0xff] }
 0x367   :  { %7203 = vmatprep.subr.bf16.mxu0 %v13448_v33  ;;  %7375 = vmatprep.subr.bf16.mxu1 %v13450_v58  ;;  %v149_v32 = vld [vmem:[#allocation3 + $0x78] sm:$0xff]  ;;  %v12987_v33 = vcombine.low %v136_v16, %v140_v19  ;;  %v12989_v58 = vcombine.low %v137_v20, %v141_v21  ;;  %v196_v16 = vld [vmem:[#allocation3 + $0x1f0] sm:$0xff] }
 0x368   :  { %v12998_v35 = vcombine.high %v145_v31, %v149_v32  ;;  %v12997_v11 = vcombine.low %v145_v31, %v149_v32  ;;  %v193_v19 = vld [vmem:[#allocation3 + $0x1d8] sm:$0xff] }
 0x369   :  { %v197_v20 = vld [vmem:[#allocation3 + $0x1f8] sm:$0xff] }
 0x36a   :  { %7204 = vmatpush1.bf16.msra.mxu0 %v13447_v17  ;;  %7376 = vmatpush1.bf16.msra.mxu1 %v13449_v18  ;;  %v153_v17 = vld [vmem:[#allocation3 + $0x98] sm:$0xff] }
 0x36b   :  { %7205 = vmatprep.subr.bf16.mxu0 %v13456_v40  ;;  %7377 = vmatprep.subr.bf16.mxu1 %v13458_v41  ;;  %v157_v18 = vld [vmem:[#allocation3 + $0xb8] sm:$0xff]  ;;  %v13004_v40 = vcombine.high %v152_v36, %v156_v15 }
 0x36c   :  { %v13006_v41 = vcombine.high %v153_v17, %v157_v18  ;;  %v205_v31 = vld [vmem:[#allocation3 + $0x238] sm:$0xff] }
 0x36e   :  { %7206 = vmatpush1.bf16.msra.mxu0 %v13455_v29  ;;  %7378 = vmatpush1.bf16.msra.mxu1 %v13457_v37  ;;  %v13003_v29 = vcombine.low %v152_v36, %v156_v15  ;;  %v13005_v37 = vcombine.low %v153_v17, %v157_v18  ;;  %v212_v36 = vld [vmem:[#allocation3 + $0x270] sm:$0xff]  ;;  %v209_v15 = vld [vmem:[#allocation3 + $0x258] sm:$0xff] }
 0x36f   :  { %7207 = vmatprep.subr.bf16.mxu0 %v13464_v38  ;;  %7379 = vmatprep.subr.bf16.mxu1 %v13466_v43  ;;  %v13012_v38 = vcombine.high %v160_v42, %v164_v30  ;;  %v13014_v43 = vcombine.high %v161_v49, %v165_v27  ;;  %v213_v17 = vld [vmem:[#allocation3 + $0x278] sm:$0xff] }
 0x372   :  { %7208 = vmatpush1.bf16.msra.mxu0 %v13463_v60  ;;  %7380 = vmatpush1.bf16.msra.mxu1 %v13465_v61  ;;  %v13011_v60 = vcombine.low %v160_v42, %v164_v30  ;;  %v13013_v61 = vcombine.low %v161_v49, %v165_v27  ;;  %v220_v42 = vld [vmem:[#allocation3 + $0x2b0] sm:$0xff]  ;;  %v217_v30 = vld [vmem:[#allocation3 + $0x298] sm:$0xff] }
 0x373   :  { %7209 = vmatprep.subr.bf16.mxu0 %v13472_v51  ;;  %7381 = vmatprep.subr.bf16.mxu1 %v13474_v24  ;;  %v13020_v51 = vcombine.high %v168_v52, %v172_v55  ;;  %v176_v24 = vld [vmem:[#allocation3 + $0x150] sm:$0xff]  ;;  %v221_v49 = vld [vmem:[#allocation3 + $0x2b8] sm:$0xff] }
 0x374   :  { %v13027_v46 = vcombine.low %v176_v24, %v180_v48  ;;  %v228_v52 = vld [vmem:[#allocation3 + $0x2f0] sm:$0xff]  ;;  %v225_v55 = vld [vmem:[#allocation3 + $0x2d8] sm:$0xff] }
 0x376   :  { %7210 = vmatpush1.bf16.msra.mxu0 %v13471_v3  ;;  %7382 = vmatpush1.bf16.msra.mxu1 %v13473_v4  ;;  %v13021_v3 = vcombine.low %v169_v56, %v173_v39  ;;  %v13028_v4 = vcombine.high %v176_v24, %v180_v48  ;;  %v236_v24 = vld [vmem:[#allocation3 + $0x330] sm:$0xff]  ;;  %v233_v48 = vld [vmem:[#allocation3 + $0x318] sm:$0xff] }
 0x377   :  { %7211 = vmatprep.subr.bf16.mxu0 %v13480_v5  ;;  %7383 = vmatprep.subr.bf16.mxu1 %v13482_v6  ;;  %v13030_v5 = vcombine.high %v177_v62, %v181_v0  ;;  %v184_v6 = vld [vmem:[#allocation3 + $0x190] sm:$0xff] }
 0x378   :  { %v13035_v21 = vcombine.low %v184_v6, %v188_v7 }
 0x37a   :  { %7212 = vmatpush1.bf16.msra.mxu0 %v13479_v12  ;;  %7384 = vmatpush1.bf16.msra.mxu1 %v13481_v57  ;;  %v13029_v12 = vcombine.low %v177_v62, %v181_v0  ;;  %v13036_v57 = vcombine.high %v184_v6, %v188_v7  ;;  %v237_v62 = vld [vmem:[#allocation3 + $0x338] sm:$0xff]  ;;  %v244_v6 = vld [vmem:[#allocation3 + $0x370] sm:$0xff] }
 0x37b   :  { %7213 = vmatprep.subr.bf16.mxu0 %v13488_v59  ;;  %7385 = vmatprep.subr.bf16.mxu1 %v13490_v13  ;;  %v13038_v59 = vcombine.high %v185_v9, %v189_v45  ;;  %v192_v13 = vld [vmem:[#allocation3 + $0x1d0] sm:$0xff]  ;;  %v241_v7 = vld [vmem:[#allocation3 + $0x358] sm:$0xff] }
 0x37c   :  { %v13043_v32 = vcombine.low %v192_v13, %v196_v16 }
 0x37e   :  { %7214 = vmatpush1.bf16.msra.mxu0 %v13487_v53  ;;  %7386 = vmatpush1.bf16.msra.mxu1 %v13489_v54  ;;  %v13037_v53 = vcombine.low %v185_v9, %v189_v45  ;;  %v13044_v54 = vcombine.high %v192_v13, %v196_v16  ;;  %v245_v9 = vld [vmem:[#allocation3 + $0x378] sm:$0xff]  ;;  %v252_v13 = vld [vmem:[#allocation3 + $0x3b0] sm:$0xff] }
 0x37f   :  { %7398 = vmatprep.subr.bf16.mxu0 %v12988_v22  ;;  %7570 = vmatprep.subr.bf16.mxu1 %v12990_v23  ;;  %v13046_v22 = vcombine.high %v193_v19, %v197_v20  ;;  %v200_v23 = vld [vmem:[#allocation3 + $0x210] sm:$0xff]  ;;  %v249_v16 = vld [vmem:[#allocation3 + $0x398] sm:$0xff] }
 0x380   :  { %v13051_v18 = vcombine.low %v200_v23, %v204_v25 }
 0x381   :  { %7216 = vmatmul.mubr.bf16.vlgmr.msra.gmra.mrb[0].mxu0 %v14987_v28  ;;  %7388 = vmatmul.mubr.bf16.vlgmr.msra.gmra.mrb[0].mxu1 %v14987_v28 }
 0x382   :  { %7399 = vmatpush1.bf16.msra.mxu0 %v12987_v33  ;;  %7571 = vmatpush1.bf16.msra.mxu1 %v12989_v58  ;;  %v13045_v33 = vcombine.low %v193_v19, %v197_v20  ;;  %v13052_v58 = vcombine.high %v200_v23, %v204_v25  ;;  %v253_v19 = vld [vmem:[#allocation3 + $0x3b8] sm:$0xff]  ;;  %v260_v23 = vld [vmem:[#allocation3 + $0x3f0] sm:$0xff] }
 0x383   :  { %7400 = vmatprep.subr.bf16.mxu0 %v12996_v34  ;;  %7572 = vmatprep.subr.bf16.mxu1 %v12998_v35  ;;  %v13054_v34 = vcombine.high %v201_v26, %v205_v31  ;;  %v208_v35 = vld [vmem:[#allocation3 + $0x250] sm:$0xff]  ;;  %v257_v25 = vld [vmem:[#allocation3 + $0x3d8] sm:$0xff] }
 0x384   :  { %7430 = vmatprep.mubr.bf16.mxu0 %v14913_v47  ;;  %7602 = vmatprep.mubr.bf16.mxu1 %v14913_v47  ;;  %v13022_v47 = vcombine.high %v169_v56, %v173_v39  ;;  %v13059_v27 = vcombine.low %v208_v35, %v212_v36  ;;  %v229_v56 = vld [vmem:[#allocation3 + $0x2f8] sm:$0xff] }
 0x386   :  { %7401 = vmatpush1.bf16.msra.mxu0 %v12995_v10  ;;  %7573 = vmatpush1.bf16.msra.mxu1 %v12997_v11  ;;  %v13053_v10 = vcombine.low %v201_v26, %v205_v31  ;;  %v13060_v11 = vcombine.high %v208_v35, %v212_v36  ;;  %v261_v26 = vld [vmem:[#allocation3 + $0x3f8] sm:$0xff]  ;;  %v268_v35 = vld [vmem:[#allocation3 + $0x430] sm:$0xff] }
 0x387   :  { %7402 = vmatprep.subr.bf16.mxu0 %v13004_v40  ;;  %7574 = vmatprep.subr.bf16.mxu1 %v13006_v41  ;;  %v13062_v40 = vcombine.high %v209_v15, %v213_v17  ;;  %v216_v41 = vld [vmem:[#allocation3 + $0x290] sm:$0xff]  ;;  %v265_v36 = vld [vmem:[#allocation3 + $0x418] sm:$0xff] }
 0x388   :  { %v13067_v39 = vcombine.low %v216_v41, %v220_v42 }
 0x38a   :  { %7403 = vmatpush1.bf16.msra.mxu0 %v13003_v29  ;;  %7575 = vmatpush1.bf16.msra.mxu1 %v13005_v37  ;;  %v13061_v29 = vcombine.low %v209_v15, %v213_v17  ;;  %v13068_v37 = vcombine.high %v216_v41, %v220_v42  ;;  %v269_v15 = vld [vmem:[#allocation3 + $0x438] sm:$0xff]  ;;  %v276_v41 = vld [vmem:[#allocation3 + $0x470] sm:$0xff] }
 0x38b   :  { %7404 = vmatprep.subr.bf16.mxu0 %v13012_v38  ;;  %7576 = vmatprep.subr.bf16.mxu1 %v13014_v43  ;;  %v13070_v38 = vcombine.high %v217_v30, %v221_v49  ;;  %v224_v43 = vld [vmem:[#allocation3 + $0x2d0] sm:$0xff]  ;;  %v273_v42 = vld [vmem:[#allocation3 + $0x458] sm:$0xff] }
 0x38c   :  { %v13075_v0 = vcombine.low %v224_v43, %v228_v52 }
 0x38e   :  { %7405 = vmatpush1.bf16.msra.mxu0 %v13011_v60  ;;  %7577 = vmatpush1.bf16.msra.mxu1 %v13013_v61  ;;  %v13069_v60 = vcombine.low %v217_v30, %v221_v49  ;;  %v13076_v61 = vcombine.high %v224_v43, %v228_v52  ;;  %v277_v30 = vld [vmem:[#allocation3 + $0x478] sm:$0xff]  ;;  %v284_v43 = vld [vmem:[#allocation3 + $0x4b0] sm:$0xff] }
 0x38f   :  { %7406 = vmatprep.subr.bf16.mxu0 %v13020_v51  ;;  %7578 = vmatprep.subr.bf16.mxu1 %v13022_v47  ;;  %v13078_v51 = vcombine.high %v225_v55, %v229_v56  ;;  %v232_v47 = vld [vmem:[#allocation3 + $0x310] sm:$0xff]  ;;  %v281_v52 = vld [vmem:[#allocation3 + $0x498] sm:$0xff] }
 0x390   :  { %v13083_v45 = vcombine.low %v232_v47, %v236_v24 }
 0x392   :  { %7407 = vmatpush1.bf16.msra.mxu0 %v13019_v2  ;;  %7579 = vmatpush1.bf16.msra.mxu1 %v13021_v3  ;;  %v13077_v2 = vcombine.low %v225_v55, %v229_v56  ;;  %v13084_v3 = vcombine.high %v232_v47, %v236_v24  ;;  %v285_v55 = vld [vmem:[#allocation3 + $0x4b8] sm:$0xff]  ;;  %v292_v47 = vld [vmem:[#allocation3 + $0x4f0] sm:$0xff] }
 0x393   :  { %7408 = vmatprep.subr.bf16.mxu0 %v13028_v4  ;;  %7580 = vmatprep.subr.bf16.mxu1 %v13030_v5  ;;  %v13086_v4 = vcombine.high %v233_v48, %v237_v62  ;;  %v240_v5 = vld [vmem:[#allocation3 + $0x350] sm:$0xff]  ;;  %v289_v24 = vld [vmem:[#allocation3 + $0x4d8] sm:$0xff] }
 0x394   :  { %v13091_v20 = vcombine.low %v240_v5, %v244_v6 }
 0x396   :  { %7409 = vmatpush1.bf16.msra.mxu0 %v13027_v46  ;;  %7581 = vmatpush1.bf16.msra.mxu1 %v13029_v12  ;;  %v13085_v46 = vcombine.low %v233_v48, %v237_v62  ;;  %v13092_v12 = vcombine.high %v240_v5, %v244_v6  ;;  %v293_v48 = vld [vmem:[#allocation3 + $0x4f8] sm:$0xff] }
 0x397   :  { %7410 = vmatprep.subr.bf16.mxu0 %v13036_v57  ;;  %7582 = vmatprep.subr.bf16.mxu1 %v13038_v59  ;;  %v13094_v57 = vcombine.high %v241_v7, %v245_v9  ;;  %v248_v59 = vld [vmem:[#allocation3 + $0x390] sm:$0xff]  ;;  %v297_v5 = vld [vmem:[#allocation3 + $0x518] sm:$0xff] }
 0x398   :  { %v13099_v31 = vcombine.low %v248_v59, %v252_v13  ;;  %v301_v6 = vld [vmem:[#allocation3 + $0x538] sm:$0xff] }
 0x39a   :  { %7411 = vmatpush1.bf16.msra.mxu0 %v13035_v21  ;;  %7583 = vmatpush1.bf16.msra.mxu1 %v13037_v53  ;;  %v13093_v21 = vcombine.low %v241_v7, %v245_v9  ;;  %v13100_v53 = vcombine.high %v248_v59, %v252_v13  ;;  %v13141_v9 = vcombine.low %v289_v24, %v293_v48  ;;  %v309_v59 = vld [vmem:[#allocation3 + $0x578] sm:$0xff] }
 0x39b   :  { %7412 = vmatprep.subr.bf16.mxu0 %v13044_v54  ;;  %7584 = vmatprep.subr.bf16.mxu1 %v13046_v22  ;;  %v13102_v54 = vcombine.high %v249_v16, %v253_v19  ;;  %v256_v22 = vld [vmem:[#allocation3 + $0x3d0] sm:$0xff] }
 0x39c   :  { %v13107_v17 = vcombine.low %v256_v22, %v260_v23 }
 0x39e   :  { %7413 = vmatpush1.bf16.msra.mxu0 %v13043_v32  ;;  %7585 = vmatpush1.bf16.msra.mxu1 %v13045_v33  ;;  %v13101_v32 = vcombine.low %v249_v16, %v253_v19  ;;  %v13108_v33 = vcombine.high %v256_v22, %v260_v23  ;;  %v13149_v16 = vcombine.low %v297_v5, %v301_v6  ;;  %v317_v22 = vld [vmem:[#allocation3 + $0x5b8] sm:$0xff] }
 0x39f   :  { %7414 = vmatprep.subr.bf16.mxu0 %v13052_v58  ;;  %7586 = vmatprep.subr.bf16.mxu1 %v13054_v34  ;;  %v13110_v58 = vcombine.high %v257_v25, %v261_v26  ;;  %v264_v34 = vld [vmem:[#allocation3 + $0x410] sm:$0xff] }
 0x3a0   :  { %v13115_v49 = vcombine.low %v264_v34, %v268_v35 }
 0x3a2   :  { %7415 = vmatpush1.bf16.msra.mxu0 %v13051_v18  ;;  %7587 = vmatpush1.bf16.msra.mxu1 %v13053_v10  ;;  %v13109_v18 = vcombine.low %v257_v25, %v261_v26  ;;  %v13116_v10 = vcombine.high %v264_v34, %v268_v35  ;;  %v325_v34 = vld [vmem:[#allocation3 + $0x5f8] sm:$0xff] }
 0x3a3   :  { %7416 = vmatprep.subr.bf16.mxu0 %v13060_v11  ;;  %7588 = vmatprep.subr.bf16.mxu1 %v13062_v40  ;;  %v13118_v11 = vcombine.high %v265_v36, %v269_v15  ;;  %v272_v40 = vld [vmem:[#allocation3 + $0x450] sm:$0xff] }
 0x3a4   :  { %v13123_v56 = vcombine.low %v272_v40, %v276_v41 }
 0x3a6   :  { %7417 = vmatpush1.bf16.msra.mxu0 %v13059_v27  ;;  %7589 = vmatpush1.bf16.msra.mxu1 %v13061_v29  ;;  %v13117_v27 = vcombine.low %v265_v36, %v269_v15  ;;  %v13124_v29 = vcombine.high %v272_v40, %v276_v41  ;;  %v333_v40 = vld [vmem:[#allocation3 + $0x638] sm:$0xff] }
 0x3a7   :  { %7418 = vmatprep.subr.bf16.mxu0 %v13068_v37  ;;  %7590 = vmatprep.subr.bf16.mxu1 %v13070_v38  ;;  %v13126_v37 = vcombine.high %v273_v42, %v277_v30  ;;  %v280_v38 = vld [vmem:[#allocation3 + $0x490] sm:$0xff] }
 0x3a8   :  { %v13131_v62 = vcombine.low %v280_v38, %v284_v43 }
 0x3aa   :  { %7419 = vmatpush1.bf16.msra.mxu0 %v13067_v39  ;;  %7591 = vmatpush1.bf16.msra.mxu1 %v13069_v60  ;;  %v13125_v39 = vcombine.low %v273_v42, %v277_v30  ;;  %v13132_v60 = vcombine.high %v280_v38, %v284_v43  ;;  %v341_v38 = vld [vmem:[#allocation3 + $0x678] sm:$0xff] }
 0x3ab   :  { %7420 = vmatprep.subr.bf16.mxu0 %v13076_v61  ;;  %7592 = vmatprep.subr.bf16.mxu1 %v13078_v51  ;;  %v13134_v61 = vcombine.high %v281_v52, %v285_v55  ;;  %v288_v51 = vld [vmem:[#allocation3 + $0x4d0] sm:$0xff] }
 0x3ac   :  { %v13139_v7 = vcombine.low %v288_v51, %v292_v47 }
 0x3ae   :  { %7421 = vmatpush1.bf16.msra.mxu0 %v13075_v0  ;;  %7593 = vmatpush1.bf16.msra.mxu1 %v13077_v2  ;;  %v13140_v0 = vcombine.high %v288_v51, %v292_v47  ;;  %v13142_v2 = vcombine.high %v289_v24, %v293_v48  ;;  %v349_v51 = vld [vmem:[#allocation3 + $0x6b8] sm:$0xff] }
 0x3af   :  { %7422 = vmatprep.subr.bf16.mxu0 %v13084_v3  ;;  %7594 = vmatprep.subr.bf16.mxu1 %v13086_v4  ;;  %v296_v3 = vld [vmem:[#allocation3 + $0x510] sm:$0xff] }
 0x3b0   :  { %v300_v4 = vld [vmem:[#allocation3 + $0x530] sm:$0xff] }
 0x3b1   :  { %v13147_v13 = vcombine.low %v296_v3, %v300_v4 }
 0x3b2   :  { %7423 = vmatpush1.bf16.msra.mxu0 %v13083_v45  ;;  %7595 = vmatpush1.bf16.msra.mxu1 %v13085_v46  ;;  %v13148_v45 = vcombine.high %v296_v3, %v300_v4  ;;  %v304_v46 = vld [vmem:[#allocation3 + $0x550] sm:$0xff]  ;;  %v357_v3 = vld [vmem:[#allocation3 + $0x6f8] sm:$0xff] }
 0x3b3   :  { %7424 = vmatprep.subr.bf16.mxu0 %v13092_v12  ;;  %7596 = vmatprep.subr.bf16.mxu1 %v13094_v57  ;;  %v308_v12 = vld [vmem:[#allocation3 + $0x570] sm:$0xff]  ;;  %v305_v57 = vld [vmem:[#allocation3 + $0x558] sm:$0xff] }
 0x3b4   :  { %v13156_v19 = vcombine.high %v304_v46, %v308_v12  ;;  %v13155_v23 = vcombine.low %v304_v46, %v308_v12  ;;  %v13157_v25 = vcombine.low %v305_v57, %v309_v59  ;;  %v365_v46 = vld [vmem:[#allocation3 + $0x738] sm:$0xff] }
 0x3b6   :  { %7425 = vmatpush1.bf16.msra.mxu0 %v13091_v20  ;;  %7597 = vmatpush1.bf16.msra.mxu1 %v13093_v21  ;;  %v13158_v20 = vcombine.high %v305_v57, %v309_v59  ;;  %v312_v21 = vld [vmem:[#allocation3 + $0x590] sm:$0xff] }
 0x3b7   :  { %7426 = vmatprep.subr.bf16.mxu0 %v13100_v53  ;;  %7598 = vmatprep.subr.bf16.mxu1 %v13102_v54  ;;  %v316_v53 = vld [vmem:[#allocation3 + $0x5b0] sm:$0xff]  ;;  %v313_v54 = vld [vmem:[#allocation3 + $0x598] sm:$0xff] }
 0x3b8   :  { %v13164_v26 = vcombine.high %v312_v21, %v316_v53  ;;  %v13163_v35 = vcombine.low %v312_v21, %v316_v53  ;;  %v13165_v36 = vcombine.low %v313_v54, %v317_v22  ;;  %v373_v21 = vld [vmem:[#allocation3 + $0x778] sm:$0xff] }
 0x3ba   :  { %7427 = vmatpush1.bf16.msra.mxu0 %v13099_v31  ;;  %7599 = vmatpush1.bf16.msra.mxu1 %v13101_v32  ;;  %v13166_v31 = vcombine.high %v313_v54, %v317_v22  ;;  %v320_v32 = vld [vmem:[#allocation3 + $0x5d0] sm:$0xff] }
 0x3bb   :  { %7428 = vmatprep.subr.bf16.mxu0 %v13108_v33  ;;  %7600 = vmatprep.subr.bf16.mxu1 %v13110_v58  ;;  %v324_v33 = vld [vmem:[#allocation3 + $0x5f0] sm:$0xff]  ;;  %v321_v58 = vld [vmem:[#allocation3 + $0x5d8] sm:$0xff] }
 0x3bc   :  { %v13172_v15 = vcombine.high %v320_v32, %v324_v33  ;;  %v13171_v41 = vcombine.low %v320_v32, %v324_v33  ;;  %v13173_v42 = vcombine.low %v321_v58, %v325_v34  ;;  %v381_v32 = vld [vmem:[#allocation3 + $0x7b8] sm:$0xff] }
 0x3be   :  { %7429 = vmatpush1.bf16.msra.mxu0 %v13107_v17  ;;  %7601 = vmatpush1.bf16.msra.mxu1 %v13109_v18  ;;  %v13174_v17 = vcombine.high %v321_v58, %v325_v34  ;;  %v328_v18 = vld [vmem:[#allocation3 + $0x610] sm:$0xff] }
 0x3bf   :  { %7441 = vmatprep.subr.bf16.mxu0 %v13116_v10  ;;  %7613 = vmatprep.subr.bf16.mxu1 %v13118_v11  ;;  %v332_v10 = vld [vmem:[#allocation3 + $0x630] sm:$0xff]  ;;  %v329_v11 = vld [vmem:[#allocation3 + $0x618] sm:$0xff] }
 0x3c0   :  { %v13180_v30 = vcombine.high %v328_v18, %v332_v10  ;;  %v13179_v43 = vcombine.low %v328_v18, %v332_v10  ;;  %v389_v18 = vld [vmem:[#allocation3 + $0x7f8] sm:$0xff] }
 0x3c1   :  { %7431 = vmatmul.mubr.bf16.vlgmr.msra.gmra.mrb[4].mxu0 %v14921_v44  ;;  %7603 = vmatmul.mubr.bf16.vlgmr.msra.gmra.mrb[4].mxu1 %v14921_v44  ;;  %v13133_v44 = vcombine.low %v281_v52, %v285_v55  ;;  %v13181_v52 = vcombine.low %v329_v11, %v333_v40 }
 0x3c2   :  { %7442 = vmatpush1.bf16.msra.mxu0 %v13115_v49  ;;  %7614 = vmatpush1.bf16.msra.mxu1 %v13117_v27  ;;  %v13182_v49 = vcombine.high %v329_v11, %v333_v40  ;;  %v336_v27 = vld [vmem:[#allocation3 + $0x650] sm:$0xff] }
 0x3c3   :  { %7443 = vmatprep.subr.bf16.mxu0 %v13124_v29  ;;  %7615 = vmatprep.subr.bf16.mxu1 %v13126_v37  ;;  %v340_v29 = vld [vmem:[#allocation3 + $0x670] sm:$0xff]  ;;  %v337_v37 = vld [vmem:[#allocation3 + $0x658] sm:$0xff] }
 0x3c4   :  { %7473 = vmatprep.mubr.bf16.mxu0 %v14935_v50  ;;  %7645 = vmatprep.mubr.bf16.mxu1 %v14935_v50  ;;  %v13150_v50 = vcombine.high %v297_v5, %v301_v6  ;;  %v13188_v55 = vcombine.high %v336_v27, %v340_v29  ;;  %v13187_v47 = vcombine.low %v336_v27, %v340_v29  ;;  %v397_v27 = vld [vmem:[#allocation3 + $0x838] sm:$0xff] }
 0x3c5   :  { %v13189_v24 = vcombine.low %v337_v37, %v341_v38 }
 0x3c6   :  { %7444 = vmatpush1.bf16.msra.mxu0 %v13123_v56  ;;  %7616 = vmatpush1.bf16.msra.mxu1 %v13125_v39  ;;  %v13190_v56 = vcombine.high %v337_v37, %v341_v38  ;;  %v344_v39 = vld [vmem:[#allocation3 + $0x690] sm:$0xff] }
 0x3c7   :  { %7445 = vmatprep.subr.bf16.mxu0 %v13132_v60  ;;  %7617 = vmatprep.subr.bf16.mxu1 %v13134_v61  ;;  %v348_v60 = vld [vmem:[#allocation3 + $0x6b0] sm:$0xff]  ;;  %v345_v61 = vld [vmem:[#allocation3 + $0x698] sm:$0xff] }
 0x3c8   :  { %v13196_v48 = vcombine.high %v344_v39, %v348_v60  ;;  %v13195_v4 = vcombine.low %v344_v39, %v348_v60  ;;  %v13197_v5 = vcombine.low %v345_v61, %v349_v51  ;;  %v405_v39 = vld [vmem:[#allocation3 + $0x878] sm:$0xff] }
 0x3ca   :  { %7446 = vmatpush1.bf16.msra.mxu0 %v13131_v62  ;;  %7618 = vmatpush1.bf16.msra.mxu1 %v13133_v44  ;;  %v13198_v62 = vcombine.high %v345_v61, %v349_v51  ;;  %v352_v44 = vld [vmem:[#allocation3 + $0x6d0] sm:$0xff] }
 0x3cb   :  { %7447 = vmatprep.subr.bf16.mxu0 %v13140_v0  ;;  %7619 = vmatprep.subr.bf16.mxu1 %v13142_v2  ;;  %v356_v0 = vld [vmem:[#allocation3 + $0x6f0] sm:$0xff]  ;;  %v353_v2 = vld [vmem:[#allocation3 + $0x6d8] sm:$0xff] }
 0x3cc   :  { %v13204_v6 = vcombine.high %v352_v44, %v356_v0  ;;  %v13203_v12 = vcombine.low %v352_v44, %v356_v0  ;;  %v13205_v57 = vcombine.low %v353_v2, %v357_v3  ;;  %v413_v44 = vld [vmem:[#allocation3 + $0x8b8] sm:$0xff] }
 0x3ce   :  { %7448 = vmatpush1.bf16.msra.mxu0 %v13139_v7  ;;  %7620 = vmatpush1.bf16.msra.mxu1 %v13141_v9  ;;  %v13206_v7 = vcombine.high %v353_v2, %v357_v3  ;;  %v360_v9 = vld [vmem:[#allocation3 + $0x710] sm:$0xff] }
 0x3cf   :  { %7449 = vmatprep.subr.bf16.mxu0 %v13148_v45  ;;  %7621 = vmatprep.subr.bf16.mxu1 %v13150_v50  ;;  %v364_v45 = vld [vmem:[#allocation3 + $0x730] sm:$0xff]  ;;  %v361_v50 = vld [vmem:[#allocation3 + $0x718] sm:$0xff] }
 0x3d0   :  { %v13212_v59 = vcombine.high %v360_v9, %v364_v45  ;;  %v13211_v53 = vcombine.low %v360_v9, %v364_v45  ;;  %v13213_v54 = vcombine.low %v361_v50, %v365_v46  ;;  %v421_v9 = vld [vmem:[#allocation3 + $0x8f8] sm:$0xff] }
 0x3d2   :  { %7450 = vmatpush1.bf16.msra.mxu0 %v13147_v13  ;;  %7622 = vmatpush1.bf16.msra.mxu1 %v13149_v16  ;;  %v13214_v13 = vcombine.high %v361_v50, %v365_v46  ;;  %v368_v16 = vld [vmem:[#allocation3 + $0x750] sm:$0xff] }
 0x3d3   :  { %7451 = vmatprep.subr.bf16.mxu0 %v13156_v19  ;;  %7623 = vmatprep.subr.bf16.mxu1 %v13158_v20  ;;  %v372_v19 = vld [vmem:[#allocation3 + $0x770] sm:$0xff]  ;;  %v369_v20 = vld [vmem:[#allocation3 + $0x758] sm:$0xff] }
 0x3d4   :  { %v13220_v22 = vcombine.high %v368_v16, %v372_v19  ;;  %v13219_v33 = vcombine.low %v368_v16, %v372_v19  ;;  %v13221_v58 = vcombine.low %v369_v20, %v373_v21 }
 0x3d6   :  { %7452 = vmatpush1.bf16.msra.mxu0 %v13155_v23  ;;  %7624 = vmatpush1.bf16.msra.mxu1 %v13157_v25  ;;  %v13222_v23 = vcombine.high %v369_v20, %v373_v21  ;;  %v376_v25 = vld [vmem:[#allocation3 + $0x790] sm:$0xff] }
 0x3d7   :  { %7453 = vmatprep.subr.bf16.mxu0 %v13164_v26  ;;  %7625 = vmatprep.subr.bf16.mxu1 %v13166_v31  ;;  %v380_v26 = vld [vmem:[#allocation3 + $0x7b0] sm:$0xff]  ;;  %v377_v31 = vld [vmem:[#allocation3 + $0x798] sm:$0xff] }
 0x3d8   :  { %v13228_v34 = vcombine.high %v376_v25, %v380_v26  ;;  %v13227_v10 = vcombine.low %v376_v25, %v380_v26  ;;  %v13229_v11 = vcombine.low %v377_v31, %v381_v32  ;;  %v432_v21 = vld [vmem:[#allocation3 + $0x950] sm:$0xff] }
 0x3da   :  { %7454 = vmatpush1.bf16.msra.mxu0 %v13163_v35  ;;  %7626 = vmatpush1.bf16.msra.mxu1 %v13165_v36  ;;  %v13230_v35 = vcombine.high %v377_v31, %v381_v32  ;;  %v384_v36 = vld [vmem:[#allocation3 + $0x7d0] sm:$0xff] }
 0x3db   :  { %7455 = vmatprep.subr.bf16.mxu0 %v13172_v15  ;;  %7627 = vmatprep.subr.bf16.mxu1 %v13174_v17  ;;  %v388_v15 = vld [vmem:[#allocation3 + $0x7f0] sm:$0xff]  ;;  %v385_v17 = vld [vmem:[#allocation3 + $0x7d8] sm:$0xff] }
 0x3dc   :  { %v13236_v40 = vcombine.high %v384_v36, %v388_v15  ;;  %v13235_v29 = vcombine.low %v384_v36, %v388_v15  ;;  %v13237_v37 = vcombine.low %v385_v17, %v389_v18  ;;  %v440_v32 = vld [vmem:[#allocation3 + $0x990] sm:$0xff] }
 0x3de   :  { %7456 = vmatpush1.bf16.msra.mxu0 %v13171_v41  ;;  %7628 = vmatpush1.bf16.msra.mxu1 %v13173_v42  ;;  %v13238_v41 = vcombine.high %v385_v17, %v389_v18  ;;  %v392_v42 = vld [vmem:[#allocation3 + $0x810] sm:$0xff] }
 0x3df   :  { %7457 = vmatprep.subr.bf16.mxu0 %v13180_v30  ;;  %7629 = vmatprep.subr.bf16.mxu1 %v13182_v49  ;;  %v396_v30 = vld [vmem:[#allocation3 + $0x830] sm:$0xff]  ;;  %v393_v49 = vld [vmem:[#allocation3 + $0x818] sm:$0xff] }
 0x3e0   :  { %v13244_v38 = vcombine.high %v392_v42, %v396_v30  ;;  %v13243_v60 = vcombine.low %v392_v42, %v396_v30  ;;  %v13245_v61 = vcombine.low %v393_v49, %v397_v27  ;;  %v448_v18 = vld [vmem:[#allocation3 + $0x9d0] sm:$0xff] }
 0x3e2   :  { %7458 = vmatpush1.bf16.msra.mxu0 %v13179_v43  ;;  %7630 = vmatpush1.bf16.msra.mxu1 %v13181_v52  ;;  %v13246_v43 = vcombine.high %v393_v49, %v397_v27  ;;  %v400_v52 = vld [vmem:[#allocation3 + $0x850] sm:$0xff] }
 0x3e3   :  { %7459 = vmatprep.subr.bf16.mxu0 %v13188_v55  ;;  %7631 = vmatprep.subr.bf16.mxu1 %v13190_v56  ;;  %v404_v55 = vld [vmem:[#allocation3 + $0x870] sm:$0xff]  ;;  %v401_v56 = vld [vmem:[#allocation3 + $0x858] sm:$0xff] }
 0x3e4   :  { %v13252_v51 = vcombine.high %v400_v52, %v404_v55  ;;  %v13251_v0 = vcombine.low %v400_v52, %v404_v55  ;;  %v13253_v2 = vcombine.low %v401_v56, %v405_v39  ;;  %v456_v27 = vld [vmem:[#allocation3 + $0xa10] sm:$0xff] }
 0x3e6   :  { %7460 = vmatpush1.bf16.msra.mxu0 %v13187_v47  ;;  %7632 = vmatpush1.bf16.msra.mxu1 %v13189_v24  ;;  %v13254_v47 = vcombine.high %v401_v56, %v405_v39  ;;  %v408_v24 = vld [vmem:[#allocation3 + $0x890] sm:$0xff] }
 0x3e7   :  { %7461 = vmatprep.subr.bf16.mxu0 %v13196_v48  ;;  %7633 = vmatprep.subr.bf16.mxu1 %v13198_v62  ;;  %v412_v48 = vld [vmem:[#allocation3 + $0x8b0] sm:$0xff]  ;;  %v409_v62 = vld [vmem:[#allocation3 + $0x898] sm:$0xff] }
 0x3e8   :  { %v13260_v3 = vcombine.high %v408_v24, %v412_v48  ;;  %v13259_v45 = vcombine.low %v408_v24, %v412_v48  ;;  %v464_v39 = vld [vmem:[#allocation3 + $0xa50] sm:$0xff] }
 0x3ea   :  { %7462 = vmatpush1.bf16.msra.mxu0 %v13195_v4  ;;  %7634 = vmatpush1.bf16.msra.mxu1 %v13197_v5  ;;  %v13262_v4 = vcombine.high %v409_v62, %v413_v44  ;;  %v416_v5 = vld [vmem:[#allocation3 + $0x8d0] sm:$0xff] }
 0x3eb   :  { %7463 = vmatprep.subr.bf16.mxu0 %v13204_v6  ;;  %7635 = vmatprep.subr.bf16.mxu1 %v13206_v7  ;;  %v420_v6 = vld [vmem:[#allocation3 + $0x8f0] sm:$0xff]  ;;  %v417_v7 = vld [vmem:[#allocation3 + $0x8d8] sm:$0xff] }
 0x3ec   :  { %v13268_v50 = vcombine.high %v416_v5, %v420_v6  ;;  %v13270_v46 = vcombine.high %v417_v7, %v421_v9  ;;  %v13267_v16 = vcombine.low %v416_v5, %v420_v6  ;;  %v13269_v19 = vcombine.low %v417_v7, %v421_v9  ;;  %v480_v9 = vld [vmem:[#allocation3 + $0xad0] sm:$0xff] }
 0x3ee   :  { %7464 = vmatpush1.bf16.msra.mxu0 %v13203_v12  ;;  %7636 = vmatpush1.bf16.msra.mxu1 %v13205_v57  ;;  %v424_v12 = vld [vmem:[#allocation3 + $0x910] sm:$0xff] }
 0x3ef   :  { %7465 = vmatprep.subr.bf16.mxu0 %v13212_v59  ;;  %7637 = vmatprep.subr.bf16.mxu1 %v13214_v13  ;;  %v428_v57 = vld [vmem:[#allocation3 + $0x930] sm:$0xff]  ;;  %v425_v59 = vld [vmem:[#allocation3 + $0x918] sm:$0xff] }
 0x3f0   :  { %v429_v13 = vld [vmem:[#allocation3 + $0x938] sm:$0xff]  ;;  %v13276_v20 = vcombine.high %v424_v12, %v428_v57 }
 0x3f1   :  { %v13277_v25 = vcombine.low %v425_v59, %v429_v13 }
 0x3f2   :  { %7466 = vmatpush1.bf16.msra.mxu0 %v13211_v53  ;;  %7638 = vmatpush1.bf16.msra.mxu1 %v13213_v54  ;;  %v436_v53 = vld [vmem:[#allocation3 + $0x970] sm:$0xff]  ;;  %v433_v54 = vld [vmem:[#allocation3 + $0x958] sm:$0xff] }
 0x3f3   :  { %7467 = vmatprep.subr.bf16.mxu0 %v13220_v22  ;;  %7639 = vmatprep.subr.bf16.mxu1 %v13222_v23  ;;  %v437_v22 = vld [vmem:[#allocation3 + $0x978] sm:$0xff]  ;;  %v13275_v23 = vcombine.low %v424_v12, %v428_v57  ;;  %v13284_v26 = vcombine.high %v432_v21, %v436_v53 }
 0x3f4   :  { %v13286_v31 = vcombine.high %v433_v54, %v437_v22  ;;  %v13285_v36 = vcombine.low %v433_v54, %v437_v22  ;;  %v496_v22 = vld [vmem:[#allocation3 + $0xb50] sm:$0xff] }
 0x3f6   :  { %7468 = vmatpush1.bf16.msra.mxu0 %v13219_v33  ;;  %7640 = vmatpush1.bf16.msra.mxu1 %v13221_v58  ;;  %v444_v33 = vld [vmem:[#allocation3 + $0x9b0] sm:$0xff]  ;;  %v441_v58 = vld [vmem:[#allocation3 + $0x998] sm:$0xff] }
 0x3f7   :  { %7469 = vmatprep.subr.bf16.mxu0 %v13228_v34  ;;  %7641 = vmatprep.subr.bf16.mxu1 %v13230_v35  ;;  %v445_v34 = vld [vmem:[#allocation3 + $0x9b8] sm:$0xff]  ;;  %v13283_v35 = vcombine.low %v432_v21, %v436_v53  ;;  %v13292_v15 = vcombine.high %v440_v32, %v444_v33 }
 0x3f8   :  { %v13294_v17 = vcombine.high %v441_v58, %v445_v34  ;;  %v13293_v42 = vcombine.low %v441_v58, %v445_v34  ;;  %v504_v34 = vld [vmem:[#allocation3 + $0xb90] sm:$0xff] }
 0x3fa   :  { %7470 = vmatpush1.bf16.msra.mxu0 %v13227_v10  ;;  %7642 = vmatpush1.bf16.msra.mxu1 %v13229_v11  ;;  %v452_v10 = vld [vmem:[#allocation3 + $0x9f0] sm:$0xff]  ;;  %v449_v11 = vld [vmem:[#allocation3 + $0x9d8] sm:$0xff] }
 0x3fb   :  { %7471 = vmatprep.subr.bf16.mxu0 %v13236_v40  ;;  %7643 = vmatprep.subr.bf16.mxu1 %v13238_v41  ;;  %v453_v40 = vld [vmem:[#allocation3 + $0x9f8] sm:$0xff]  ;;  %v13291_v41 = vcombine.low %v440_v32, %v444_v33  ;;  %v13300_v30 = vcombine.high %v448_v18, %v452_v10 }
 0x3fc   :  { %v13302_v49 = vcombine.high %v449_v11, %v453_v40  ;;  %v13301_v52 = vcombine.low %v449_v11, %v453_v40  ;;  %v512_v40 = vld [vmem:[#allocation3 + $0xbd0] sm:$0xff] }
 0x3fe   :  { %7472 = vmatpush1.bf16.msra.mxu0 %v13235_v29  ;;  %7644 = vmatpush1.bf16.msra.mxu1 %v13237_v37  ;;  %v460_v29 = vld [vmem:[#allocation3 + $0xa30] sm:$0xff]  ;;  %v457_v37 = vld [vmem:[#allocation3 + $0xa18] sm:$0xff] }
 0x3ff   :  { %7484 = vmatprep.subr.bf16.mxu0 %v13244_v38  ;;  %7656 = vmatprep.subr.bf16.mxu1 %v13246_v43  ;;  %v461_v38 = vld [vmem:[#allocation3 + $0xa38] sm:$0xff]  ;;  %v13299_v43 = vcombine.low %v448_v18, %v452_v10  ;;  %v13308_v55 = vcombine.high %v456_v27, %v460_v29 }
 0x400   :  { %v13310_v56 = vcombine.high %v457_v37, %v461_v38  ;;  %v13309_v24 = vcombine.low %v457_v37, %v461_v38  ;;  %v520_v38 = vld [vmem:[#allocation3 + $0xc10] sm:$0xff] }
 0x401   :  { %7474 = vmatmul.mubr.bf16.vlgmr.msra.gmra.mrb[4].mxu0 %v14943_v1  ;;  %7646 = vmatmul.mubr.bf16.vlgmr.msra.gmra.mrb[4].mxu1 %v14943_v1  ;;  %v13261_v1 = vcombine.low %v409_v62, %v413_v44  ;;  %v472_v44 = vld [vmem:[#allocation3 + $0xa90] sm:$0xff] }
 0x402   :  { %7485 = vmatpush1.bf16.msra.mxu0 %v13243_v60  ;;  %7657 = vmatpush1.bf16.msra.mxu1 %v13245_v61  ;;  %v468_v60 = vld [vmem:[#allocation3 + $0xa70] sm:$0xff]  ;;  %v465_v61 = vld [vmem:[#allocation3 + $0xa58] sm:$0xff] }
 0x403   :  { %7486 = vmatprep.subr.bf16.mxu0 %v13252_v51  ;;  %7658 = vmatprep.subr.bf16.mxu1 %v13254_v47  ;;  %v469_v51 = vld [vmem:[#allocation3 + $0xa78] sm:$0xff]  ;;  %v13307_v47 = vcombine.low %v456_v27, %v460_v29  ;;  %v13316_v48 = vcombine.high %v464_v39, %v468_v60 }
 0x404   :  { %7516 = vmatprep.mubr.bf16.mxu0 %v14957_v63  ;;  %7688 = vmatprep.mubr.bf16.mxu1 %v14957_v63  ;;  %v13278_v63 = vcombine.high %v425_v59, %v429_v13  ;;  %v13318_v62 = vcombine.high %v465_v61, %v469_v51  ;;  %v13317_v5 = vcombine.low %v465_v61, %v469_v51  ;;  %v488_v13 = vld [vmem:[#allocation3 + $0xb10] sm:$0xff] }
 0x405   :  { %v528_v51 = vld [vmem:[#allocation3 + $0xc50] sm:$0xff] }
 0x406   :  { %7487 = vmatpush1.bf16.msra.mxu0 %v13251_v0  ;;  %7659 = vmatpush1.bf16.msra.mxu1 %v13253_v2  ;;  %v476_v0 = vld [vmem:[#allocation3 + $0xab0] sm:$0xff]  ;;  %v473_v2 = vld [vmem:[#allocation3 + $0xa98] sm:$0xff] }
 0x407   :  { %7488 = vmatprep.subr.bf16.mxu0 %v13260_v3  ;;  %7660 = vmatprep.subr.bf16.mxu1 %v13262_v4  ;;  %v477_v3 = vld [vmem:[#allocation3 + $0xab8] sm:$0xff]  ;;  %v13315_v4 = vcombine.low %v464_v39, %v468_v60  ;;  %v13324_v6 = vcombine.high %v472_v44, %v476_v0 }
 0x408   :  { %v13326_v7 = vcombine.high %v473_v2, %v477_v3  ;;  %v13325_v12 = vcombine.low %v473_v2, %v477_v3  ;;  %v536_v3 = vld [vmem:[#allocation3 + $0xc90] sm:$0xff] }
 0x40a   :  { %7489 = vmatpush1.bf16.msra.mxu0 %v13259_v45  ;;  %7661 = vmatpush1.bf16.msra.mxu1 %v13261_v1  ;;  %v484_v45 = vld [vmem:[#allocation3 + $0xaf0] sm:$0xff]  ;;  %v481_v1 = vld [vmem:[#allocation3 + $0xad8] sm:$0xff] }
 0x40b   :  { %7490 = vmatprep.subr.bf16.mxu0 %v13268_v50  ;;  %7662 = vmatprep.subr.bf16.mxu1 %v13270_v46  ;;  %v485_v50 = vld [vmem:[#allocation3 + $0xaf8] sm:$0xff]  ;;  %v13323_v46 = vcombine.low %v472_v44, %v476_v0  ;;  %v13332_v57 = vcombine.high %v480_v9, %v484_v45 }
 0x40c   :  { %v13334_v59 = vcombine.high %v481_v1, %v485_v50  ;;  %v13333_v21 = vcombine.low %v481_v1, %v485_v50  ;;  %v544_v50 = vld [vmem:[#allocation3 + $0xcd0] sm:$0xff] }
 0x40e   :  { %7491 = vmatpush1.bf16.msra.mxu0 %v13267_v16  ;;  %7663 = vmatpush1.bf16.msra.mxu1 %v13269_v19  ;;  %v492_v16 = vld [vmem:[#allocation3 + $0xb30] sm:$0xff]  ;;  %v489_v19 = vld [vmem:[#allocation3 + $0xb18] sm:$0xff] }
 0x40f   :  { %7492 = vmatprep.subr.bf16.mxu0 %v13276_v20  ;;  %7664 = vmatprep.subr.bf16.mxu1 %v13278_v63  ;;  %v493_v20 = vld [vmem:[#allocation3 + $0xb38] sm:$0xff]  ;;  %v13331_v63 = vcombine.low %v480_v9, %v484_v45  ;;  %v13340_v53 = vcombine.high %v488_v13, %v492_v16 }
 0x410   :  { %v13342_v54 = vcombine.high %v489_v19, %v493_v20  ;;  %v13341_v32 = vcombine.low %v489_v19, %v493_v20  ;;  %v552_v20 = vld [vmem:[#allocation3 + $0xd10] sm:$0xff] }
 0x412   :  { %7493 = vmatpush1.bf16.msra.mxu0 %v13275_v23  ;;  %7665 = vmatpush1.bf16.msra.mxu1 %v13277_v25  ;;  %v500_v23 = vld [vmem:[#allocation3 + $0xb70] sm:$0xff]  ;;  %v497_v25 = vld [vmem:[#allocation3 + $0xb58] sm:$0xff] }
 0x413   :  { %7494 = vmatprep.subr.bf16.mxu0 %v13284_v26  ;;  %7666 = vmatprep.subr.bf16.mxu1 %v13286_v31  ;;  %v501_v26 = vld [vmem:[#allocation3 + $0xb78] sm:$0xff]  ;;  %v13339_v31 = vcombine.low %v488_v13, %v492_v16  ;;  %v13348_v33 = vcombine.high %v496_v22, %v500_v23 }
 0x414   :  { %v13350_v58 = vcombine.high %v497_v25, %v501_v26  ;;  %v13349_v18 = vcombine.low %v497_v25, %v501_v26  ;;  %v560_v26 = vld [vmem:[#allocation3 + $0xd50] sm:$0xff] }
 0x416   :  { %7495 = vmatpush1.bf16.msra.mxu0 %v13283_v35  ;;  %7667 = vmatpush1.bf16.msra.mxu1 %v13285_v36  ;;  %v508_v35 = vld [vmem:[#allocation3 + $0xbb0] sm:$0xff]  ;;  %v505_v36 = vld [vmem:[#allocation3 + $0xb98] sm:$0xff] }
 0x417   :  { %7496 = vmatprep.subr.bf16.mxu0 %v13292_v15  ;;  %7668 = vmatprep.subr.bf16.mxu1 %v13294_v17  ;;  %v509_v15 = vld [vmem:[#allocation3 + $0xbb8] sm:$0xff]  ;;  %v13347_v17 = vcombine.low %v496_v22, %v500_v23  ;;  %v13356_v10 = vcombine.high %v504_v34, %v508_v35 }
 0x418   :  { %v13358_v11 = vcombine.high %v505_v36, %v509_v15  ;;  %v13357_v27 = vcombine.low %v505_v36, %v509_v15 }
 0x41a   :  { %7497 = vmatpush1.bf16.msra.mxu0 %v13291_v41  ;;  %7669 = vmatpush1.bf16.msra.mxu1 %v13293_v42  ;;  %v516_v41 = vld [vmem:[#allocation3 + $0xbf0] sm:$0xff]  ;;  %v513_v42 = vld [vmem:[#allocation3 + $0xbd8] sm:$0xff] }
 0x41b   :  { %7498 = vmatprep.subr.bf16.mxu0 %v13300_v30  ;;  %7670 = vmatprep.subr.bf16.mxu1 %v13302_v49  ;;  %v517_v30 = vld [vmem:[#allocation3 + $0xbf8] sm:$0xff]  ;;  %v13355_v49 = vcombine.low %v504_v34, %v508_v35  ;;  %v13364_v29 = vcombine.high %v512_v40, %v516_v41  ;;  %v7742_v35 = vld [vmem:[#allocation7] sm:$0xff] }
 0x41c   :  { %v13366_v37 = vcombine.high %v513_v42, %v517_v30  ;;  %v13365_v39 = vcombine.low %v513_v42, %v517_v30  ;;  %v569_v30 = vld [vmem:[#allocation3 + $0xd98] sm:$0xff] }
 0x41e   :  { %7499 = vmatpush1.bf16.msra.mxu0 %v13299_v43  ;;  %7671 = vmatpush1.bf16.msra.mxu1 %v13301_v52  ;;  %v524_v43 = vld [vmem:[#allocation3 + $0xc30] sm:$0xff]  ;;  %v521_v52 = vld [vmem:[#allocation3 + $0xc18] sm:$0xff] }
 0x41f   :  { %7500 = vmatprep.subr.bf16.mxu0 %v13308_v55  ;;  %7672 = vmatprep.subr.bf16.mxu1 %v13310_v56  ;;  %v525_v55 = vld [vmem:[#allocation3 + $0xc38] sm:$0xff]  ;;  %v13363_v56 = vcombine.low %v512_v40, %v516_v41  ;;  %v13372_v60 = vcombine.high %v520_v38, %v524_v43  ;;  %v568_v40 = vld [vmem:[#allocation3 + $0xd90] sm:$0xff] }
 0x420   :  { %v13374_v61 = vcombine.high %v521_v52, %v525_v55  ;;  %v13373_v44 = vcombine.low %v521_v52, %v525_v55  ;;  %v572_v41 = vld [vmem:[#allocation3 + $0xdb0] sm:$0xff] }
 0x421   :  { %v13420_v52 = vcombine.high %v568_v40, %v572_v41  ;;  %v576_v55 = vld [vmem:[#allocation3 + $0xdd0] sm:$0xff] }
 0x422   :  { %7501 = vmatpush1.bf16.msra.mxu0 %v13307_v47  ;;  %7673 = vmatpush1.bf16.msra.mxu1 %v13309_v24  ;;  %v532_v47 = vld [vmem:[#allocation3 + $0xc70] sm:$0xff]  ;;  %v529_v24 = vld [vmem:[#allocation3 + $0xc58] sm:$0xff] }
 0x423   :  { %7502 = vmatprep.subr.bf16.mxu0 %v13316_v48  ;;  %7674 = vmatprep.subr.bf16.mxu1 %v13318_v62  ;;  %v533_v48 = vld [vmem:[#allocation3 + $0xc78] sm:$0xff]  ;;  %v13371_v62 = vcombine.low %v520_v38, %v524_v43  ;;  %v13380_v0 = vcombine.high %v528_v51, %v532_v47 }
 0x424   :  { %v13382_v2 = vcombine.high %v529_v24, %v533_v48  ;;  %v13381_v9 = vcombine.low %v529_v24, %v533_v48 }
 0x426   :  { %7503 = vmatpush1.bf16.msra.mxu0 %v13315_v4  ;;  %7675 = vmatpush1.bf16.msra.mxu1 %v13317_v5  ;;  %v540_v4 = vld [vmem:[#allocation3 + $0xcb0] sm:$0xff]  ;;  %v537_v5 = vld [vmem:[#allocation3 + $0xc98] sm:$0xff] }
 0x427   :  { %7504 = vmatprep.subr.bf16.mxu0 %v13324_v6  ;;  %7676 = vmatprep.subr.bf16.mxu1 %v13326_v7  ;;  %v541_v6 = vld [vmem:[#allocation3 + $0xcb8] sm:$0xff]  ;;  %v13379_v7 = vcombine.low %v528_v51, %v532_v47  ;;  %v13388_v45 = vcombine.high %v536_v3, %v540_v4  ;;  %v13387_v13 = vcombine.low %v536_v3, %v540_v4 }
 0x428   :  { %v13390_v1 = vcombine.high %v537_v5, %v541_v6  ;;  %v581_v51 = vld [vmem:[#allocation3 + $0xdf8] sm:$0xff] }
 0x42a   :  { %7505 = vmatpush1.bf16.msra.mxu0 %v13323_v46  ;;  %7677 = vmatpush1.bf16.msra.mxu1 %v13325_v12  ;;  %v548_v46 = vld [vmem:[#allocation3 + $0xcf0] sm:$0xff]  ;;  %v545_v12 = vld [vmem:[#allocation3 + $0xcd8] sm:$0xff] }
 0x42b   :  { %7506 = vmatprep.subr.bf16.mxu0 %v13332_v57  ;;  %7678 = vmatprep.subr.bf16.mxu1 %v13334_v59  ;;  %v549_v57 = vld [vmem:[#allocation3 + $0xcf8] sm:$0xff]  ;;  %v7744_v59 = vlaneseq  ;;  %v13396_v16 = vcombine.high %v544_v50, %v548_v46  ;;  %v13395_v22 = vcombine.low %v544_v50, %v548_v46 }
 0x42c   :  { %v13398_v19 = vcombine.high %v545_v12, %v549_v57  ;;  %v13397_v23 = vcombine.low %v545_v12, %v549_v57 }
 0x42e   :  { %7507 = vmatpush1.bf16.msra.mxu0 %v13331_v63  ;;  %7679 = vmatpush1.bf16.msra.mxu1 %v13333_v21  ;;  %v556_v63 = vld [vmem:[#allocation3 + $0xd30] sm:$0xff]  ;;  %v553_v21 = vld [vmem:[#allocation3 + $0xd18] sm:$0xff] }
 0x42f   :  { %7508 = vmatprep.subr.bf16.mxu0 %v13340_v53  ;;  %7680 = vmatprep.subr.bf16.mxu1 %v13342_v54  ;;  %v557_v53 = vld [vmem:[#allocation3 + $0xd38] sm:$0xff]  ;;  %v15005_v54 = vshrl.u32 %v7744_v59, 7  ;;  %v13403_v34 = vcombine.low %v552_v20, %v556_v63 }
 0x430   :  { %v13406_v25 = vcombine.high %v553_v21, %v557_v53 }
 0x431   :  { %v7754_v36 = vsub.s32 2, %v15005_v54  ;;  %v7750_v15 = vsub.s32 1, %v15005_v54 }
 0x432   :  { %7509 = vmatpush1.bf16.msra.mxu0 %v13339_v31  ;;  %7681 = vmatpush1.bf16.msra.mxu1 %v13341_v32  ;;  %v564_v31 = vld [vmem:[#allocation3 + $0xd70] sm:$0xff]  ;;  %v7746_v32 = vsub.s32 0, %v15005_v54 }
 0x433   :  { %7510 = vmatprep.subr.bf16.mxu0 %v13348_v33  ;;  %7682 = vmatprep.subr.bf16.mxu1 %v13350_v58  ;;  %v561_v33 = vld [vmem:[#allocation3 + $0xd58] sm:$0xff] }
 0x434   :  { %v565_v58 = vld [vmem:[#allocation3 + $0xd78] sm:$0xff]  ;;  %v7747_v42 = vrot.slane %v7742_v35, %v7746_v32 }
 0x435   :  { %v13413_v43 = vcombine.low %v561_v33, %v565_v58 }
 0x436   :  { %7511 = vmatpush1.bf16.msra.mxu0 %v13347_v17  ;;  %7683 = vmatpush1.bf16.msra.mxu1 %v13349_v18  ;;  %v13405_v17 = vcombine.low %v553_v21, %v557_v53  ;;  %v7758_v18 = vsub.s32 3, %v15005_v54  ;;  %v585_v21 = vld [vmem:[#allocation3 + $0xe18] sm:$0xff] }
 0x437   :  { %7512 = vmatprep.subr.bf16.mxu0 %v13356_v10  ;;  %7684 = vmatprep.subr.bf16.mxu1 %v13358_v11  ;;  %v13412_v10 = vcombine.high %v560_v26, %v564_v31  ;;  %v13414_v11 = vcombine.high %v561_v33, %v565_v58  ;;  %v589_v53 = vld [vmem:[#allocation3 + $0xe38] sm:$0xff]  ;;  %v592_v58 = vld [vmem:[#allocation3 + $0xe50] sm:$0xff] }
 0x438   :  { %v7759_v38 = vrot.slane %v7742_v35, %v7758_v18  ;;  %v13438_v33 = vcombine.high %v585_v21, %v589_v53 }
 0x43a   :  { %7513 = vmatpush1.bf16.msra.mxu0 %v13355_v49  ;;  %7685 = vmatpush1.bf16.msra.mxu1 %v13357_v27  ;;  %v573_v49 = vld [vmem:[#allocation3 + $0xdb8] sm:$0xff]  ;;  %v7755_v27 = vrot.slane %v7742_v35, %v7754_v36 }
 0x43b   :  { %7514 = vmatprep.subr.bf16.mxu0 %v13364_v29  ;;  %7686 = vmatprep.subr.bf16.mxu1 %v13366_v37  ;;  %v7751_v29 = vrot.slane %v7742_v35, %v7750_v15  ;;  %v13411_v37 = vcombine.low %v560_v26, %v564_v31  ;;  %v13421_v4 = vcombine.low %v569_v30, %v573_v49  ;;  %v593_v35 = vld [vmem:[#allocation3 + $0xe58] sm:$0xff] }
 0x43e   :  { %7515 = vmatpush1.bf16.msra.mxu0 %v13363_v56  ;;  %7687 = vmatpush1.bf16.msra.mxu1 %v13365_v39  ;;  %v580_v56 = vld [vmem:[#allocation3 + $0xdf0] sm:$0xff] }
 0x43f   :  { %7527 = vmatprep.subr.bf16.mxu0 %v13372_v60  ;;  %7699 = vmatprep.subr.bf16.mxu1 %v13374_v61  ;;  %v13422_v60 = vcombine.high %v569_v30, %v573_v49  ;;  %v577_v61 = vld [vmem:[#allocation3 + $0xdd8] sm:$0xff]  ;;  %v604_v30 = vld [vmem:[#allocation3 + $0xeb0] sm:$0xff] }
 0x440   :  { %v13430_v50 = vcombine.high %v577_v61, %v581_v51  ;;  %v601_v49 = vld [vmem:[#allocation3 + $0xe98] sm:$0xff] }
 0x441   :  { %7517 = vmatmul.mubr.bf16.vlgmr.msra.gmra.mrb[4].mxu0 %v14965_v8  ;;  %7689 = vmatmul.mubr.bf16.vlgmr.msra.gmra.mrb[4].mxu1 %v14965_v8  ;;  %v13389_v8 = vcombine.low %v537_v5, %v541_v6  ;;  %v13428_v5 = vcombine.high %v576_v55, %v580_v56 }
 0x442   :  { %7528 = vmatpush1.bf16.msra.mxu0 %v13371_v62  ;;  %7700 = vmatpush1.bf16.msra.mxu1 %v13373_v44  ;;  %v13419_v62 = vcombine.low %v568_v40, %v572_v41 }
 0x443   :  { %7529 = vmatprep.subr.bf16.mxu0 %v13380_v0  ;;  %7701 = vmatprep.subr.bf16.mxu1 %v13382_v2 }
 0x444   :  { %7559 = vmatprep.mubr.bf16.mxu0 %v14979_v14  ;;  %7731 = vmatprep.mubr.bf16.mxu1 %v14979_v14  ;;  %v13404_v14 = vcombine.high %v552_v20, %v556_v63 }
 0x446   :  { %7530 = vmatpush1.bf16.msra.mxu0 %v13379_v7  ;;  %7702 = vmatpush1.bf16.msra.mxu1 %v13381_v9 }
 0x447   :  { %7531 = vmatprep.subr.bf16.mxu0 %v13388_v45  ;;  %7703 = vmatprep.subr.bf16.mxu1 %v13390_v1 }
 0x44a   :  { %7532 = vmatpush1.bf16.msra.mxu0 %v13387_v13  ;;  %7704 = vmatpush1.bf16.msra.mxu1 %v13389_v8  ;;  %v584_v8 = vld [vmem:[#allocation3 + $0xe10] sm:$0xff] }
 0x44b   :  { %7533 = vmatprep.subr.bf16.mxu0 %v13396_v16  ;;  %7705 = vmatprep.subr.bf16.mxu1 %v13398_v19  ;;  %v588_v16 = vld [vmem:[#allocation3 + $0xe30] sm:$0xff] }
 0x44c   :  { %v13436_v26 = vcombine.high %v584_v8, %v588_v16 }
 0x44e   :  { %7534 = vmatpush1.bf16.msra.mxu0 %v13395_v22  ;;  %7706 = vmatpush1.bf16.msra.mxu1 %v13397_v23  ;;  %v13427_v23 = vcombine.low %v576_v55, %v580_v56  ;;  %v608_v56 = vld [vmem:[#allocation3 + $0xed0] sm:$0xff] }
 0x44f   :  { %7535 = vmatprep.subr.bf16.mxu0 %v13404_v14  ;;  %7707 = vmatprep.subr.bf16.mxu1 %v13406_v25  ;;  %v13429_v25 = vcombine.low %v577_v61, %v581_v51  ;;  %v609_v61 = vld [vmem:[#allocation3 + $0xed8] sm:$0xff] }
 0x450   :  { %v613_v51 = vld [vmem:[#allocation3 + $0xef8] sm:$0xff] }
 0x452   :  { %7536 = vmatpush1.bf16.msra.mxu0 %v13403_v34  ;;  %7708 = vmatpush1.bf16.msra.mxu1 %v13405_v17  ;;  %v596_v34 = vld [vmem:[#allocation3 + $0xe70] sm:$0xff]  ;;  %v597_v17 = vld [vmem:[#allocation3 + $0xe78] sm:$0xff] }
 0x453   :  { %7537 = vmatprep.subr.bf16.mxu0 %v13412_v10  ;;  %7709 = vmatprep.subr.bf16.mxu1 %v13414_v11  ;;  %v13435_v10 = vcombine.low %v584_v8, %v588_v16  ;;  %v13437_v11 = vcombine.low %v585_v21, %v589_v53  ;;  %v13444_v40 = vcombine.high %v592_v58, %v596_v34 }
 0x454   :  { %v7217_v39 = vpop.f32.mrb[0].mxu0  ;;  %v7389_v24 = vpop.f32.mrb[0].mxu1  ;;  %v13446_v41 = vcombine.high %v593_v35, %v597_v17 }
 0x455   :  { %v7784_v47 = vadd.f32 %v7747_v42, %v7217_v39  ;;  %v7219_v48 = vpop.f32.mrb[1].mxu0  ;;  %v7786_v44 = vadd.f32 %v7755_v27, %v7389_v24  ;;  %v7391_v2 = vpop.f32.mrb[1].mxu1  ;;  %v612_v39 = vld [vmem:[#allocation3 + $0xef0] sm:$0xff] }
 0x456   :  { %v7785_v0 = vadd.f32 %v7751_v29, %v7219_v48  ;;  %v7221_v3 = vpop.f32.mrb[2].mxu0  ;;  %7538 = vmatpush1.bf16.msra.mxu0 %v13411_v37  ;;  %v7787_v7 = vadd.f32 %v7759_v38, %v7391_v2  ;;  %v7393_v45 = vpop.f32.mrb[2].mxu1  ;;  %7710 = vmatpush1.bf16.msra.mxu1 %v13413_v43  ;;  %v13460_v2 = vcombine.high %v608_v56, %v612_v39 }
 0x457   :  { %v7800_v6 = vmul.f32 0.5, %v7784_v47  ;;  %v7792_v9 = vadd.f32 %v7747_v42, %v7221_v3  ;;  %v7223_v1 = vpop.f32.mrb[3].mxu0  ;;  %7539 = vmatprep.subr.bf16.mxu0 %v13420_v52  ;;  %v7802_v46 = vmul.f32 0.5, %v7786_v44  ;;  %v7794_v57 = vadd.f32 %v7755_v27, %v7393_v45  ;;  %v7395_v13 = vpop.f32.mrb[3].mxu1  ;;  %7711 = vmatprep.subr.bf16.mxu1 %v13422_v60  ;;  %v600_v42 = vld [vmem:[#allocation3 + $0xe90] sm:$0xff]  ;;  %v605_v27 = vld [vmem:[#allocation3 + $0xeb8] sm:$0xff] }
 0x458   :  { %v7801_v12 = vmul.f32 0.5, %v7785_v0  ;;  %v7793_v59 = vadd.f32 %v7751_v29, %v7223_v1  ;;  %v7803_v19 = vmul.f32 0.5, %v7787_v7  ;;  %v7795_v63 = vadd.f32 %v7759_v38, %v7395_v13  ;;  %v616_v7 = vld [vmem:[#allocation3 + $0xf10] sm:$0xff] }
 0x459   :  { %14411 = vtanh.f32 %v7800_v6  ;;  %v7808_v20 = vmul.f32 0.5, %v7792_v9  ;;  %v7810_v22 = vmul.f32 0.5, %v7794_v57  ;;  %v13443_v29 = vcombine.low %v592_v58, %v596_v34  ;;  %v620_v9 = vld [vmem:[#allocation3 + $0xf30] sm:$0xff]  ;;  %v621_v57 = vld [vmem:[#allocation3 + $0xf38] sm:$0xff] }
 0x45a   :  { %14413 = vtanh.f32 %v7802_v46  ;;  %7540 = vmatpush1.bf16.msra.mxu0 %v13419_v62  ;;  %v7809_v14 = vmul.f32 0.5, %v7793_v59  ;;  %7712 = vmatpush1.bf16.msra.mxu1 %v13421_v4  ;;  %v7811_v31 = vmul.f32 0.5, %v7795_v63  ;;  %v13445_v38 = vcombine.low %v593_v35, %v597_v17  ;;  %v625_v35 = vld [vmem:[#allocation3 + $0xf58] sm:$0xff] }
 0x45b   :  { %14415 = vtanh.f32 %v7801_v12  ;;  %7541 = vmatprep.subr.bf16.mxu0 %v13428_v5  ;;  %7713 = vmatprep.subr.bf16.mxu1 %v13430_v50  ;;  %v13452_v43 = vcombine.high %v600_v42, %v604_v30  ;;  %v13454_v55 = vcombine.high %v601_v49, %v605_v27  ;;  %v13451_v48 = vcombine.low %v600_v42, %v604_v30  ;;  %v617_v12 = vld [vmem:[#allocation3 + $0xf18] sm:$0xff] }
 0x45c   :  { %14417 = vtanh.f32 %v7803_v19  ;;  %v13453_v0 = vcombine.low %v601_v49, %v605_v27  ;;  %v13462_v6 = vcombine.high %v609_v61, %v613_v51  ;;  %v13459_v46 = vcombine.low %v608_v56, %v612_v39  ;;  %v629_v17 = vld [vmem:[#allocation3 + $0xf78] sm:$0xff]  ;;  %v632_v49 = vld [vmem:[#allocation3 + $0xf90] sm:$0xff] }
 0x45d   :  { %14419 = vtanh.f32 %v7808_v20  ;;  %v13461_v19 = vcombine.low %v609_v61, %v613_v51  ;;  %v13468_v53 = vcombine.high %v616_v7, %v620_v9  ;;  %v13478_v30 = vcombine.high %v625_v35, %v629_v17  ;;  %v636_v27 = vld [vmem:[#allocation3 + $0xfb0] sm:$0xff]  ;;  %v645_v61 = vld [vmem:[#allocation3 + $0xff8] sm:$0xff] }
 0x45e   :  { %14421 = vtanh.f32 %v7810_v22  ;;  %7542 = vmatpush1.bf16.msra.mxu0 %v13427_v23  ;;  %7714 = vmatpush1.bf16.msra.mxu1 %v13429_v25  ;;  %v13470_v25 = vcombine.high %v617_v12, %v621_v57  ;;  %v640_v56 = vld [vmem:[#allocation3 + $0xfd0] sm:$0xff]  ;;  %v13483_v51 = vcombine.low %v632_v49, %v636_v27 }
 0x45f   :  { %14423 = vtanh.f32 %v7809_v14  ;;  %7543 = vmatprep.subr.bf16.mxu0 %v13436_v26  ;;  %7715 = vmatprep.subr.bf16.mxu1 %v13438_v33  ;;  %v624_v26 = vld [vmem:[#allocation3 + $0xf50] sm:$0xff] }
 0x460   :  { %14425 = vtanh.f32 %v7811_v31  ;;  %v628_v31 = vld [vmem:[#allocation3 + $0xf70] sm:$0xff] }
 0x461   :  { %v13476_v42 = vcombine.high %v624_v26, %v628_v31  ;;  %v644_v39 = vld [vmem:[#allocation3 + $0xff0] sm:$0xff] }
 0x462   :  { %7544 = vmatpush1.bf16.msra.mxu0 %v13435_v10  ;;  %7716 = vmatpush1.bf16.msra.mxu1 %v13437_v11  ;;  %v13467_v11 = vcombine.low %v616_v7, %v620_v9  ;;  %v7880_v7 = vld [vmem:[#allocation8 + $0x40] sm:$0xff] }
 0x463   :  { %v14412_v37 = vpop.eup %14411  ;;  %7545 = vmatprep.subr.bf16.mxu0 %v13444_v40  ;;  %7717 = vmatprep.subr.bf16.mxu1 %v13446_v41  ;;  %v13469_v41 = vcombine.low %v617_v12, %v621_v57  ;;  %v7884_v9 = vld [vmem:[#allocation8 + $0x60] sm:$0xff] }
 0x464   :  { %v14414_v52 = vpop.eup %14413  ;;  %v7832_v24 = vmul.f32 0.5, %v14412_v37  ;;  %v637_v37 = vld [vmem:[#allocation3 + $0xfb8] sm:$0xff]  ;;  %v13504_v12 = vcombine.high %v7880_v7, %v7884_v9  ;;  %v7888_v57 = vld [vmem:[#allocation8 + $0x80] sm:$0xff] }
 0x465   :  { %v14416_v60 = vpop.eup %14415  ;;  %v7834_v44 = vmul.f32 0.5, %v14414_v52  ;;  %v13484_v52 = vcombine.high %v632_v49, %v636_v27  ;;  %v7912_v27 = vld [vmem:[#allocation8 + $0x140] sm:$0xff] }
 0x466   :  { %v14418_v47 = vpop.eup %14417  ;;  %7546 = vmatpush1.bf16.msra.mxu0 %v13443_v29  ;;  %7718 = vmatpush1.bf16.msra.mxu1 %v13445_v38  ;;  %v7833_v4 = vmul.f32 0.5, %v14416_v60  ;;  %v7848_v13 = vadd.f32 0.5, %v7832_v24  ;;  %v633_v29 = vld [vmem:[#allocation3 + $0xf98] sm:$0xff]  ;;  %v13475_v38 = vcombine.low %v624_v26, %v628_v31  ;;  %v13492_v24 = vcombine.high %v640_v56, %v644_v39 }
 0x467   :  { %v14420_v62 = vpop.eup %14419  ;;  %7547 = vmatprep.subr.bf16.mxu0 %v13452_v43  ;;  %7719 = vmatprep.subr.bf16.mxu1 %v13454_v55  ;;  %v7835_v1 = vmul.f32 0.5, %v14418_v47  ;;  %v7850_v20 = vadd.f32 0.5, %v7834_v44  ;;  %v13477_v43 = vcombine.low %v625_v35, %v629_v17  ;;  %v13486_v55 = vcombine.high %v633_v29, %v637_v37  ;;  %v641_v60 = vld [vmem:[#allocation3 + $0xfd8] sm:$0xff]  ;;  %v7876_v44 = vld [vmem:[#allocation8 + $0x20] sm:$0xff]  ;;  %v7905_v17 = vld [vmem:[#allocation8 + $0x108] sm:$0xff] }
 0x468   :  { %v14422_v3 = vpop.eup %14421  ;;  %v7840_v5 = vmul.f32 0.5, %v14420_v62  ;;  %v7849_v22 = vadd.f32 0.5, %v7833_v4  ;;  %v13485_v47 = vcombine.low %v633_v29, %v637_v37  ;;  %v7872_v62 = vld [vmem:[#allocation8] sm:$0xff]  ;;  %v13493_v4 = vcombine.low %v641_v60, %v645_v61  ;;  %v7913_v37 = vld [vmem:[#allocation8 + $0x148] sm:$0xff] }
 0x469   :  { %v14424_v45 = vpop.eup %14423  ;;  %v7842_v50 = vmul.f32 0.5, %v14422_v3  ;;  %v7851_v33 = vadd.f32 0.5, %v7835_v1  ;;  %v13491_v3 = vcombine.low %v640_v56, %v644_v39  ;;  %v7881_v1 = vld [vmem:[#allocation8 + $0x48] sm:$0xff]  ;;  %v7908_v35 = vld [vmem:[#allocation8 + $0x120] sm:$0xff] }
 0x46a   :  { %v14426_v59 = vpop.eup %14425  ;;  %v7856_v8 = vadd.f32 0.5, %v7840_v5  ;;  %v7841_v16 = vmul.f32 0.5, %v14424_v45  ;;  %7548 = vmatpush1.bf16.msra.mxu0 %v13451_v48  ;;  %7720 = vmatpush1.bf16.msra.mxu1 %v13453_v0  ;;  %v13494_v48 = vcombine.high %v641_v60, %v645_v61  ;;  %v7873_v0 = vld [vmem:[#allocation8 + $0x8] sm:$0xff]  ;;  %v13496_v5 = vcombine.high %v7872_v62, %v7876_v44  ;;  %v7916_v29 = vld [vmem:[#allocation8 + $0x160] sm:$0xff] }
 0x46b   :  { %v7858_v63 = vadd.f32 0.5, %v7842_v50  ;;  %v7843_v21 = vmul.f32 0.5, %v14426_v59  ;;  %7549 = vmatprep.subr.bf16.mxu0 %v13460_v2  ;;  %7721 = vmatprep.subr.bf16.mxu1 %v13462_v6  ;;  %v7877_v2 = vld [vmem:[#allocation8 + $0x28] sm:$0xff]  ;;  %v13495_v45 = vcombine.low %v7872_v62, %v7876_v44  ;;  %v7892_v59 = vld [vmem:[#allocation8 + $0xa0] sm:$0xff] }
 0x46c   :  { %v15019_v23 = vpack.c.bf16 %v7856_v8, %v7848_v13  ;;  %v7857_v14 = vadd.f32 0.5, %v7841_v16  ;;  %v13498_v6 = vcombine.high %v7873_v0, %v7877_v2  ;;  %v7885_v50 = vld [vmem:[#allocation8 + $0x68] sm:$0xff]  ;;  %v13511_v26 = vcombine.low %v7888_v57, %v7892_v59  ;;  %v7920_v39 = vld [vmem:[#allocation8 + $0x180] sm:$0xff] }
 0x46d   :  { %v15021_v58 = vpack.c.bf16 %v7858_v63, %v7850_v20  ;;  %v7859_v34 = vadd.f32 0.5, %v7843_v21  ;;  %v13506_v13 = vcombine.high %v7881_v1, %v7885_v50  ;;  %v7889_v8 = vld [vmem:[#allocation8 + $0x88] sm:$0xff]  ;;  %v13505_v20 = vcombine.low %v7881_v1, %v7885_v50  ;;  %v7924_v60 = vld [vmem:[#allocation8 + $0x1a0] sm:$0xff] }
 0x46e   :  { %v15023_v10 = vpack.c.bf16 %v7857_v14, %v7849_v22  ;;  %7550 = vmatpush1.bf16.msra.mxu0 %v13459_v46  ;;  %7722 = vmatpush1.bf16.msra.mxu1 %v13461_v19  ;;  %v13497_v46 = vcombine.low %v7873_v0, %v7877_v2  ;;  %v7893_v16 = vld [vmem:[#allocation8 + $0xa8] sm:$0xff]  ;;  %v13503_v19 = vcombine.low %v7880_v7, %v7884_v9  ;;  %v7900_v22 = vld [vmem:[#allocation8 + $0xe0] sm:$0xff] }
 0x46f   :  { %v15025_v40 = vpack.c.bf16 %v7859_v34, %v7851_v33  ;;  %7551 = vmatprep.subr.bf16.mxu0 %v13468_v53  ;;  %7723 = vmatprep.subr.bf16.mxu1 %v13470_v25  ;;  %v13512_v63 = vcombine.high %v7888_v57, %v7892_v59  ;;  %v13514_v21 = vcombine.high %v7889_v8, %v7893_v16  ;;  %v7896_v53 = vld [vmem:[#allocation8 + $0xc0] sm:$0xff]  ;;  %v7897_v14 = vld [vmem:[#allocation8 + $0xc8] sm:$0xff] }
 0x470   :  { %v7901_v25 = vld [vmem:[#allocation8 + $0xe8] sm:$0xff]  ;;  %v13520_v31 = vcombine.high %v7896_v53, %v7900_v22  ;;  %v7904_v34 = vld [vmem:[#allocation8 + $0x100] sm:$0xff] }
 0x471   :  { %v13522_v33 = vcombine.high %v7897_v14, %v7901_v25  ;;  %v7921_v61 = vld [vmem:[#allocation8 + $0x188] sm:$0xff]  ;;  %v7928_v44 = vld [vmem:[#allocation8 + $0x1c0] sm:$0xff] }
 0x472   :  { %7552 = vmatpush1.bf16.msra.mxu0 %v13467_v11  ;;  %7724 = vmatpush1.bf16.msra.mxu1 %v13469_v41  ;;  %v7909_v11 = vld [vmem:[#allocation8 + $0x128] sm:$0xff]  ;;  %v13519_v41 = vcombine.low %v7896_v53, %v7900_v22  ;;  %v7932_v0 = vld [vmem:[#allocation8 + $0x1e0] sm:$0xff] }
 0x473   :  { %7553 = vmatprep.subr.bf16.mxu0 %v13476_v42  ;;  %7725 = vmatprep.subr.bf16.mxu1 %v13478_v30  ;;  %v13521_v42 = vcombine.low %v7897_v14, %v7901_v25  ;;  %v13528_v30 = vcombine.high %v7904_v34, %v7908_v35  ;;  %v13530_v49 = vcombine.high %v7905_v17, %v7909_v11  ;;  %v7929_v2 = vld [vmem:[#allocation8 + $0x1c8] sm:$0xff]  ;;  %v7936_v9 = vld [vmem:[#allocation8 + $0x200] sm:$0xff] }
 0x474   :  { %v7937_v1 = vld [vmem:[#allocation8 + $0x208] sm:$0xff]  ;;  %v7952_v22 = vld [vmem:[#allocation8 + $0x280] sm:$0xff] }
 0x475   :  { %v7941_v50 = vld [vmem:[#allocation8 + $0x228] sm:$0xff]  ;;  %v7956_v14 = vld [vmem:[#allocation8 + $0x2a0] sm:$0xff] }
 0x476   :  { %7554 = vmatpush1.bf16.msra.mxu0 %v13475_v38  ;;  %7726 = vmatpush1.bf16.msra.mxu1 %v13477_v43  ;;  %v7917_v38 = vld [vmem:[#allocation8 + $0x168] sm:$0xff]  ;;  %v13527_v43 = vcombine.low %v7904_v34, %v7908_v35  ;;  %v13562_v59 = vcombine.high %v7937_v1, %v7941_v50  ;;  %v7960_v35 = vld [vmem:[#allocation8 + $0x2c0] sm:$0xff] }
 0x477   :  { %7555 = vmatprep.subr.bf16.mxu0 %v13484_v52  ;;  %7727 = vmatprep.subr.bf16.mxu1 %v13486_v55  ;;  %v13529_v52 = vcombine.low %v7905_v17, %v7909_v11  ;;  %v13536_v55 = vcombine.high %v7912_v27, %v7916_v29  ;;  %v13538_v56 = vcombine.high %v7913_v37, %v7917_v38  ;;  %v7953_v25 = vld [vmem:[#allocation8 + $0x288] sm:$0xff]  ;;  %v7964_v17 = vld [vmem:[#allocation8 + $0x2e0] sm:$0xff] }
 0x478   :  { %v7961_v11 = vld [vmem:[#allocation8 + $0x2c8] sm:$0xff] }
 0x47a   :  { %7556 = vmatpush1.bf16.msra.mxu0 %v13483_v51  ;;  %7728 = vmatpush1.bf16.msra.mxu1 %v13485_v47  ;;  %v7925_v51 = vld [vmem:[#allocation8 + $0x1a8] sm:$0xff]  ;;  %v13535_v47 = vcombine.low %v7912_v27, %v7916_v29  ;;  %v7968_v29 = vld [vmem:[#allocation8 + $0x300] sm:$0xff] }
 0x47b   :  { %7557 = vmatprep.subr.bf16.mxu0 %v13492_v24  ;;  %7729 = vmatprep.subr.bf16.mxu1 %v13494_v48  ;;  %v13537_v24 = vcombine.low %v7913_v37, %v7917_v38  ;;  %v13544_v48 = vcombine.high %v7920_v39, %v7924_v60  ;;  %v13546_v62 = vcombine.high %v7921_v61, %v7925_v51  ;;  %v7972_v37 = vld [vmem:[#allocation8 + $0x320] sm:$0xff]  ;;  %v7969_v38 = vld [vmem:[#allocation8 + $0x308] sm:$0xff] }
 0x47e   :  { %7558 = vmatpush1.bf16.msra.mxu0 %v13491_v3  ;;  %7730 = vmatpush1.bf16.msra.mxu1 %v13493_v4  ;;  %v7933_v3 = vld [vmem:[#allocation8 + $0x1e8] sm:$0xff]  ;;  %v13543_v4 = vcombine.low %v7920_v39, %v7924_v60  ;;  %v7976_v60 = vld [vmem:[#allocation8 + $0x340] sm:$0xff] }
 0x47f   :  { %10986 = vmatprep.subr.bf16.mxu0 %v13496_v5  ;;  %11158 = vmatprep.subr.bf16.mxu1 %v13498_v6  ;;  %v13545_v5 = vcombine.low %v7921_v61, %v7925_v51  ;;  %v13552_v6 = vcombine.high %v7928_v44, %v7932_v0  ;;  %v13554_v7 = vcombine.high %v7929_v2, %v7933_v3  ;;  %v7980_v61 = vld [vmem:[#allocation8 + $0x360] sm:$0xff]  ;;  %v7977_v51 = vld [vmem:[#allocation8 + $0x348] sm:$0xff] }
 0x481   :  { %7560 = vmatmul.mubr.bf16.vlgmr.msra.gmra.mrb[4].mxu0 %v14987_v28  ;;  %7732 = vmatmul.mubr.bf16.vlgmr.msra.gmra.mrb[4].mxu1 %v14987_v28  ;;  %v13513_v28 = vcombine.low %v7889_v8, %v7893_v16  ;;  %v7948_v8 = vld [vmem:[#allocation8 + $0x260] sm:$0xff]  ;;  %v7945_v16 = vld [vmem:[#allocation8 + $0x248] sm:$0xff] }
 0x482   :  { %10987 = vmatpush1.bf16.msra.mxu0 %v13495_v45  ;;  %11018 = vmatprep.mubr.bf16.mxu0 %v15023_v10  ;;  %v7940_v45 = vld [vmem:[#allocation8 + $0x220] sm:$0xff] }
 0x483   :  { %11159 = vmatpush1.bf16.msra.mxu1 %v13497_v46  ;;  %11190 = vmatprep.mubr.bf16.mxu1 %v15023_v10  ;;  %v13551_v46 = vcombine.low %v7928_v44, %v7932_v0  ;;  %v13560_v57 = vcombine.high %v7936_v9, %v7940_v45  ;;  %v7984_v0 = vld [vmem:[#allocation8 + $0x380] sm:$0xff] }
 0x484   :  { %10988 = vmatprep.subr.bf16.mxu0 %v13504_v12  ;;  %11160 = vmatprep.subr.bf16.mxu1 %v13506_v13  ;;  %v13553_v12 = vcombine.low %v7929_v2, %v7933_v3  ;;  %v7944_v13 = vld [vmem:[#allocation8 + $0x240] sm:$0xff]  ;;  %v7985_v3 = vld [vmem:[#allocation8 + $0x388] sm:$0xff] }
 0x485   :  { %v7988_v2 = vld [vmem:[#allocation8 + $0x3a0] sm:$0xff] }
 0x486   :  { %10989 = vmatpush1.bf16.msra.mxu0 %v13503_v19  ;;  %v7949_v19 = vld [vmem:[#allocation8 + $0x268] sm:$0xff] }
 0x487   :  { %11161 = vmatpush1.bf16.msra.mxu1 %v13505_v20  ;;  %10990 = vmatprep.subr.bf16.mxu0 %v13512_v63  ;;  %v13559_v20 = vcombine.low %v7936_v9, %v7940_v45  ;;  %v13561_v63 = vcombine.low %v7937_v1, %v7941_v50  ;;  %v13570_v53 = vcombine.high %v7945_v16, %v7949_v19  ;;  %v7992_v45 = vld [vmem:[#allocation8 + $0x3c0] sm:$0xff]  ;;  %v7993_v50 = vld [vmem:[#allocation8 + $0x3c8] sm:$0xff] }
 0x488   :  { %11162 = vmatprep.subr.bf16.mxu1 %v13514_v21  ;;  %v13568_v21 = vcombine.high %v7944_v13, %v7948_v8  ;;  %v7996_v1 = vld [vmem:[#allocation8 + $0x3e0] sm:$0xff] }
 0x48a   :  { %10991 = vmatpush1.bf16.msra.mxu0 %v13511_v26  ;;  %v7957_v26 = vld [vmem:[#allocation8 + $0x2a8] sm:$0xff] }
 0x48b   :  { %11163 = vmatpush1.bf16.msra.mxu1 %v13513_v28  ;;  %10992 = vmatprep.subr.bf16.mxu0 %v13520_v31  ;;  %v13567_v28 = vcombine.low %v7944_v13, %v7948_v8  ;;  %v13569_v31 = vcombine.low %v7945_v16, %v7949_v19  ;;  %v13578_v34 = vcombine.high %v7953_v25, %v7957_v26  ;;  %v8000_v8 = vld [vmem:[#allocation8 + $0x400] sm:$0xff]  ;;  %v8001_v19 = vld [vmem:[#allocation8 + $0x408] sm:$0xff] }
 0x48c   :  { %11164 = vmatprep.subr.bf16.mxu1 %v13522_v33  ;;  %v13576_v33 = vcombine.high %v7952_v22, %v7956_v14  ;;  %v8004_v16 = vld [vmem:[#allocation8 + $0x420] sm:$0xff] }
 0x48e   :  { %10993 = vmatpush1.bf16.msra.mxu0 %v13519_v41  ;;  %v7965_v41 = vld [vmem:[#allocation8 + $0x2e8] sm:$0xff] }
 0x48f   :  { %11165 = vmatpush1.bf16.msra.mxu1 %v13521_v42  ;;  %10994 = vmatprep.subr.bf16.mxu0 %v13528_v30  ;;  %v13575_v42 = vcombine.low %v7952_v22, %v7956_v14  ;;  %v13577_v30 = vcombine.low %v7953_v25, %v7957_v26  ;;  %v13586_v27 = vcombine.high %v7961_v11, %v7965_v41  ;;  %v8008_v14 = vld [vmem:[#allocation8 + $0x440] sm:$0xff] }
 0x490   :  { %11166 = vmatprep.subr.bf16.mxu1 %v13530_v49  ;;  %v13584_v49 = vcombine.high %v7960_v35, %v7964_v17  ;;  %v8012_v25 = vld [vmem:[#allocation8 + $0x460] sm:$0xff]  ;;  %v13623_v26 = vcombine.low %v8000_v8, %v8004_v16 }
 0x492   :  { %10995 = vmatpush1.bf16.msra.mxu0 %v13527_v43  ;;  %v7973_v43 = vld [vmem:[#allocation8 + $0x328] sm:$0xff] }
 0x493   :  { %11167 = vmatpush1.bf16.msra.mxu1 %v13529_v52  ;;  %10996 = vmatprep.subr.bf16.mxu0 %v13536_v55  ;;  %v13583_v52 = vcombine.low %v7960_v35, %v7964_v17  ;;  %v13585_v55 = vcombine.low %v7961_v11, %v7965_v41  ;;  %v13594_v39 = vcombine.high %v7969_v38, %v7973_v43  ;;  %v8016_v35 = vld [vmem:[#allocation8 + $0x480] sm:$0xff]  ;;  %v8017_v41 = vld [vmem:[#allocation8 + $0x488] sm:$0xff] }
 0x494   :  { %11168 = vmatprep.subr.bf16.mxu1 %v13538_v56  ;;  %v13592_v56 = vcombine.high %v7968_v29, %v7972_v37  ;;  %v8020_v17 = vld [vmem:[#allocation8 + $0x4a0] sm:$0xff] }
 0x496   :  { %10997 = vmatpush1.bf16.msra.mxu0 %v13535_v47  ;;  %v7981_v47 = vld [vmem:[#allocation8 + $0x368] sm:$0xff] }
 0x497   :  { %11169 = vmatpush1.bf16.msra.mxu1 %v13537_v24  ;;  %10998 = vmatprep.subr.bf16.mxu0 %v13544_v48  ;;  %v13591_v24 = vcombine.low %v7968_v29, %v7972_v37  ;;  %v13593_v48 = vcombine.low %v7969_v38, %v7973_v43  ;;  %v13602_v44 = vcombine.high %v7977_v51, %v7981_v47  ;;  %v8024_v37 = vld [vmem:[#allocation8 + $0x4c0] sm:$0xff]  ;;  %v8025_v43 = vld [vmem:[#allocation8 + $0x4c8] sm:$0xff] }
 0x498   :  { %11170 = vmatprep.subr.bf16.mxu1 %v13546_v62  ;;  %v13600_v62 = vcombine.high %v7976_v60, %v7980_v61  ;;  %v8028_v38 = vld [vmem:[#allocation8 + $0x4e0] sm:$0xff] }
 0x49a   :  { %10999 = vmatpush1.bf16.msra.mxu0 %v13543_v4  ;;  %v7989_v4 = vld [vmem:[#allocation8 + $0x3a8] sm:$0xff] }
 0x49b   :  { %11171 = vmatpush1.bf16.msra.mxu1 %v13545_v5  ;;  %11000 = vmatprep.subr.bf16.mxu0 %v13552_v6  ;;  %v13599_v5 = vcombine.low %v7976_v60, %v7980_v61  ;;  %v13601_v6 = vcombine.low %v7977_v51, %v7981_v47  ;;  %v13610_v9 = vcombine.high %v7985_v3, %v7989_v4  ;;  %v8032_v61 = vld [vmem:[#allocation8 + $0x500] sm:$0xff]  ;;  %v8033_v47 = vld [vmem:[#allocation8 + $0x508] sm:$0xff] }
 0x49c   :  { %11172 = vmatprep.subr.bf16.mxu1 %v13554_v7  ;;  %v13608_v7 = vcombine.high %v7984_v0, %v7988_v2  ;;  %v8036_v51 = vld [vmem:[#allocation8 + $0x520] sm:$0xff] }
 0x49e   :  { %11001 = vmatpush1.bf16.msra.mxu0 %v13551_v46  ;;  %v7997_v46 = vld [vmem:[#allocation8 + $0x3e8] sm:$0xff] }
 0x49f   :  { %11173 = vmatpush1.bf16.msra.mxu1 %v13553_v12  ;;  %11002 = vmatprep.subr.bf16.mxu0 %v13560_v57  ;;  %v13607_v12 = vcombine.low %v7984_v0, %v7988_v2  ;;  %v13609_v57 = vcombine.low %v7985_v3, %v7989_v4  ;;  %v13618_v13 = vcombine.high %v7993_v50, %v7997_v46  ;;  %v8040_v2 = vld [vmem:[#allocation8 + $0x540] sm:$0xff]  ;;  %v8041_v4 = vld [vmem:[#allocation8 + $0x548] sm:$0xff] }
 0x4a0   :  { %11174 = vmatprep.subr.bf16.mxu1 %v13562_v59  ;;  %v13616_v59 = vcombine.high %v7992_v45, %v7996_v1  ;;  %v8044_v3 = vld [vmem:[#allocation8 + $0x560] sm:$0xff] }
 0x4a2   :  { %11003 = vmatpush1.bf16.msra.mxu0 %v13559_v20  ;;  %v8005_v20 = vld [vmem:[#allocation8 + $0x428] sm:$0xff] }
 0x4a3   :  { %11175 = vmatpush1.bf16.msra.mxu1 %v13561_v63  ;;  %11004 = vmatprep.subr.bf16.mxu0 %v13568_v21  ;;  %v13615_v63 = vcombine.low %v7992_v45, %v7996_v1  ;;  %v13617_v21 = vcombine.low %v7993_v50, %v7997_v46  ;;  %v13626_v22 = vcombine.high %v8001_v19, %v8005_v20  ;;  %v8048_v1 = vld [vmem:[#allocation8 + $0x580] sm:$0xff]  ;;  %v8049_v46 = vld [vmem:[#allocation8 + $0x588] sm:$0xff] }
 0x4a4   :  { %11176 = vmatprep.subr.bf16.mxu1 %v13570_v53  ;;  %v13624_v53 = vcombine.high %v8000_v8, %v8004_v16  ;;  %v8052_v50 = vld [vmem:[#allocation8 + $0x5a0] sm:$0xff] }
 0x4a5   :  { %v8056_v16 = vld [vmem:[#allocation8 + $0x5c0] sm:$0xff] }
 0x4a6   :  { %11005 = vmatpush1.bf16.msra.mxu0 %v13567_v28  ;;  %v8009_v28 = vld [vmem:[#allocation8 + $0x448] sm:$0xff] }
 0x4a7   :  { %11177 = vmatpush1.bf16.msra.mxu1 %v13569_v31  ;;  %11006 = vmatprep.subr.bf16.mxu0 %v13576_v33  ;;  %v8013_v31 = vld [vmem:[#allocation8 + $0x468] sm:$0xff]  ;;  %v13625_v33 = vcombine.low %v8001_v19, %v8005_v20  ;;  %v8060_v19 = vld [vmem:[#allocation8 + $0x5e0] sm:$0xff] }
 0x4a8   :  { %11178 = vmatprep.subr.bf16.mxu1 %v13578_v34  ;;  %v13632_v34 = vcombine.high %v8008_v14, %v8012_v25  ;;  %v13634_v11 = vcombine.high %v8009_v28, %v8013_v31  ;;  %v8057_v20 = vld [vmem:[#allocation8 + $0x5c8] sm:$0xff] }
 0x4aa   :  { %11007 = vmatpush1.bf16.msra.mxu0 %v13575_v42  ;;  %v8021_v42 = vld [vmem:[#allocation8 + $0x4a8] sm:$0xff] }
 0x4ab   :  { %11179 = vmatpush1.bf16.msra.mxu1 %v13577_v30  ;;  %11008 = vmatprep.subr.bf16.mxu0 %v13584_v49  ;;  %v13631_v30 = vcombine.low %v8008_v14, %v8012_v25  ;;  %v13633_v49 = vcombine.low %v8009_v28, %v8013_v31  ;;  %v13642_v29 = vcombine.high %v8017_v41, %v8021_v42  ;;  %v8064_v25 = vld [vmem:[#allocation8 + $0x600] sm:$0xff]  ;;  %v8065_v28 = vld [vmem:[#allocation8 + $0x608] sm:$0xff] }
 0x4ac   :  { %11180 = vmatprep.subr.bf16.mxu1 %v13586_v27  ;;  %v13640_v27 = vcombine.high %v8016_v35, %v8020_v17  ;;  %v8069_v31 = vld [vmem:[#allocation8 + $0x628] sm:$0xff] }
 0x4ae   :  { %11009 = vmatpush1.bf16.msra.mxu0 %v13583_v52  ;;  %v8029_v52 = vld [vmem:[#allocation8 + $0x4e8] sm:$0xff] }
 0x4af   :  { %11181 = vmatpush1.bf16.msra.mxu1 %v13585_v55  ;;  %11010 = vmatprep.subr.bf16.mxu0 %v13592_v56  ;;  %v13639_v55 = vcombine.low %v8016_v35, %v8020_v17  ;;  %v13641_v56 = vcombine.low %v8017_v41, %v8021_v42  ;;  %v13650_v60 = vcombine.high %v8025_v43, %v8029_v52  ;;  %v8076_v41 = vld [vmem:[#allocation8 + $0x660] sm:$0xff]  ;;  %v8073_v42 = vld [vmem:[#allocation8 + $0x648] sm:$0xff] }
 0x4b0   :  { %11182 = vmatprep.subr.bf16.mxu1 %v13594_v39  ;;  %v13648_v39 = vcombine.high %v8024_v37, %v8028_v38  ;;  %v13690_v17 = vcombine.high %v8065_v28, %v8069_v31 }
 0x4b2   :  { %11011 = vmatpush1.bf16.msra.mxu0 %v13591_v24  ;;  %v8037_v24 = vld [vmem:[#allocation8 + $0x528] sm:$0xff] }
 0x4b3   :  { %11183 = vmatpush1.bf16.msra.mxu1 %v13593_v48  ;;  %11012 = vmatprep.subr.bf16.mxu0 %v13600_v62  ;;  %v13647_v48 = vcombine.low %v8024_v37, %v8028_v38  ;;  %v13649_v62 = vcombine.low %v8025_v43, %v8029_v52  ;;  %v13658_v0 = vcombine.high %v8033_v47, %v8037_v24  ;;  %v8080_v38 = vld [vmem:[#allocation8 + $0x680] sm:$0xff]  ;;  %v8081_v52 = vld [vmem:[#allocation8 + $0x688] sm:$0xff] }
 0x4b4   :  { %11184 = vmatprep.subr.bf16.mxu1 %v13602_v44  ;;  %v13656_v44 = vcombine.high %v8032_v61, %v8036_v51  ;;  %v8084_v43 = vld [vmem:[#allocation8 + $0x6a0] sm:$0xff] }
 0x4b6   :  { %11013 = vmatpush1.bf16.msra.mxu0 %v13599_v5  ;;  %v8045_v5 = vld [vmem:[#allocation8 + $0x568] sm:$0xff] }
 0x4b7   :  { %11185 = vmatpush1.bf16.msra.mxu1 %v13601_v6  ;;  %11014 = vmatprep.subr.bf16.mxu0 %v13608_v7  ;;  %v13655_v6 = vcombine.low %v8032_v61, %v8036_v51  ;;  %v13657_v7 = vcombine.low %v8033_v47, %v8037_v24  ;;  %v13666_v45 = vcombine.high %v8041_v4, %v8045_v5  ;;  %v8088_v51 = vld [vmem:[#allocation8 + $0x6c0] sm:$0xff]  ;;  %v8089_v24 = vld [vmem:[#allocation8 + $0x6c8] sm:$0xff] }
 0x4b8   :  { %11186 = vmatprep.subr.bf16.mxu1 %v13610_v9  ;;  %v13664_v9 = vcombine.high %v8040_v2, %v8044_v3  ;;  %v8092_v47 = vld [vmem:[#allocation8 + $0x6e0] sm:$0xff] }
 0x4ba   :  { %11015 = vmatpush1.bf16.msra.mxu0 %v13607_v12  ;;  %v8053_v12 = vld [vmem:[#allocation8 + $0x5a8] sm:$0xff] }
 0x4bb   :  { %11187 = vmatpush1.bf16.msra.mxu1 %v13609_v57  ;;  %11016 = vmatprep.subr.bf16.mxu0 %v13616_v59  ;;  %v13663_v57 = vcombine.low %v8040_v2, %v8044_v3  ;;  %v13665_v59 = vcombine.low %v8041_v4, %v8045_v5  ;;  %v13674_v8 = vcombine.high %v8049_v46, %v8053_v12  ;;  %v8096_v3 = vld [vmem:[#allocation8 + $0x700] sm:$0xff]  ;;  %v8097_v5 = vld [vmem:[#allocation8 + $0x708] sm:$0xff] }
 0x4bc   :  { %11188 = vmatprep.subr.bf16.mxu1 %v13618_v13  ;;  %v13672_v13 = vcombine.high %v8048_v1, %v8052_v50  ;;  %v8100_v4 = vld [vmem:[#allocation8 + $0x720] sm:$0xff] }
 0x4be   :  { %11017 = vmatpush1.bf16.msra.mxu0 %v13615_v63  ;;  %v8061_v63 = vld [vmem:[#allocation8 + $0x5e8] sm:$0xff] }
 0x4bf   :  { %11189 = vmatpush1.bf16.msra.mxu1 %v13617_v21  ;;  %11029 = vmatprep.subr.bf16.mxu0 %v13624_v53  ;;  %v13671_v21 = vcombine.low %v8048_v1, %v8052_v50  ;;  %v13673_v53 = vcombine.low %v8049_v46, %v8053_v12  ;;  %v13682_v14 = vcombine.high %v8057_v20, %v8061_v63  ;;  %v8104_v50 = vld [vmem:[#allocation8 + $0x740] sm:$0xff]  ;;  %v8105_v12 = vld [vmem:[#allocation8 + $0x748] sm:$0xff] }
 0x4c0   :  { %11201 = vmatprep.subr.bf16.mxu1 %v13626_v22  ;;  %v13680_v22 = vcombine.high %v8056_v16, %v8060_v19  ;;  %v8108_v46 = vld [vmem:[#allocation8 + $0x760] sm:$0xff] }
 0x4c1   :  { %11019 = vmatmul.mubr.bf16.vlgmr.msra.gmra.mrb[8].mxu0 %v15019_v23 }
 0x4c2   :  { %11191 = vmatmul.mubr.bf16.vlgmr.msra.gmra.mrb[8].mxu1 %v15019_v23  ;;  %11030 = vmatpush1.bf16.msra.mxu0 %v13623_v26  ;;  %v8068_v26 = vld [vmem:[#allocation8 + $0x620] sm:$0xff] }
 0x4c3   :  { %11061 = vmatprep.mubr.bf16.mxu0 %v15025_v40  ;;  %11202 = vmatpush1.bf16.msra.mxu1 %v13625_v33  ;;  %v13679_v33 = vcombine.low %v8056_v16, %v8060_v19  ;;  %v13688_v35 = vcombine.high %v8064_v25, %v8068_v26  ;;  %v8112_v19 = vld [vmem:[#allocation8 + $0x780] sm:$0xff] }
 0x4c4   :  { %11233 = vmatprep.mubr.bf16.mxu1 %v15025_v40  ;;  %11031 = vmatprep.subr.bf16.mxu0 %v13632_v34  ;;  %v13681_v34 = vcombine.low %v8057_v20, %v8061_v63  ;;  %v8116_v20 = vld [vmem:[#allocation8 + $0x7a0] sm:$0xff]  ;;  %v8113_v63 = vld [vmem:[#allocation8 + $0x788] sm:$0xff] }
 0x4c5   :  { %11203 = vmatprep.subr.bf16.mxu1 %v13634_v11  ;;  %v8072_v11 = vld [vmem:[#allocation8 + $0x640] sm:$0xff] }
 0x4c6   :  { %11032 = vmatpush1.bf16.msra.mxu0 %v13631_v30  ;;  %v8077_v30 = vld [vmem:[#allocation8 + $0x668] sm:$0xff] }
 0x4c7   :  { %11204 = vmatpush1.bf16.msra.mxu1 %v13633_v49  ;;  %11033 = vmatprep.subr.bf16.mxu0 %v13640_v27  ;;  %v13687_v49 = vcombine.low %v8064_v25, %v8068_v26  ;;  %v13689_v27 = vcombine.low %v8065_v28, %v8069_v31  ;;  %v13698_v37 = vcombine.high %v8073_v42, %v8077_v30  ;;  %v8120_v26 = vld [vmem:[#allocation8 + $0x7c0] sm:$0xff]  ;;  %v8121_v31 = vld [vmem:[#allocation8 + $0x7c8] sm:$0xff] }
 0x4c8   :  { %11205 = vmatprep.subr.bf16.mxu1 %v13642_v29  ;;  %v13696_v29 = vcombine.high %v8072_v11, %v8076_v41  ;;  %v8124_v28 = vld [vmem:[#allocation8 + $0x7e0] sm:$0xff] }
 0x4ca   :  { %11034 = vmatpush1.bf16.msra.mxu0 %v13639_v55  ;;  %v8085_v55 = vld [vmem:[#allocation8 + $0x6a8] sm:$0xff] }
 0x4cb   :  { %11206 = vmatpush1.bf16.msra.mxu1 %v13641_v56  ;;  %11035 = vmatprep.subr.bf16.mxu0 %v13648_v39  ;;  %v13695_v56 = vcombine.low %v8072_v11, %v8076_v41  ;;  %v13697_v39 = vcombine.low %v8073_v42, %v8077_v30  ;;  %v13706_v61 = vcombine.high %v8081_v52, %v8085_v55  ;;  %v8128_v41 = vld [vmem:[#allocation8 + $0x800] sm:$0xff]  ;;  %v8129_v30 = vld [vmem:[#allocation8 + $0x808] sm:$0xff] }
 0x4cc   :  { %11207 = vmatprep.subr.bf16.mxu1 %v13650_v60  ;;  %v13704_v60 = vcombine.high %v8080_v38, %v8084_v43  ;;  %v8132_v42 = vld [vmem:[#allocation8 + $0x820] sm:$0xff] }
 0x4ce   :  { %11036 = vmatpush1.bf16.msra.mxu0 %v13647_v48  ;;  %v8093_v48 = vld [vmem:[#allocation8 + $0x6e8] sm:$0xff] }
 0x4cf   :  { %11208 = vmatpush1.bf16.msra.mxu1 %v13649_v62  ;;  %11037 = vmatprep.subr.bf16.mxu0 %v13656_v44  ;;  %v13703_v62 = vcombine.low %v8080_v38, %v8084_v43  ;;  %v13705_v44 = vcombine.low %v8081_v52, %v8085_v55  ;;  %v13714_v2 = vcombine.high %v8089_v24, %v8093_v48  ;;  %v8136_v43 = vld [vmem:[#allocation8 + $0x840] sm:$0xff]  ;;  %v8137_v55 = vld [vmem:[#allocation8 + $0x848] sm:$0xff] }
 0x4d0   :  { %11209 = vmatprep.subr.bf16.mxu1 %v13658_v0  ;;  %v13712_v0 = vcombine.high %v8088_v51, %v8092_v47  ;;  %v8140_v52 = vld [vmem:[#allocation8 + $0x860] sm:$0xff] }
 0x4d2   :  { %11038 = vmatpush1.bf16.msra.mxu0 %v13655_v6  ;;  %v8101_v6 = vld [vmem:[#allocation8 + $0x728] sm:$0xff] }
 0x4d3   :  { %11210 = vmatpush1.bf16.msra.mxu1 %v13657_v7  ;;  %11039 = vmatprep.subr.bf16.mxu0 %v13664_v9  ;;  %v13711_v7 = vcombine.low %v8088_v51, %v8092_v47  ;;  %v13713_v9 = vcombine.low %v8089_v24, %v8093_v48  ;;  %v13722_v1 = vcombine.high %v8097_v5, %v8101_v6  ;;  %v8144_v47 = vld [vmem:[#allocation8 + $0x880] sm:$0xff]  ;;  %v8145_v48 = vld [vmem:[#allocation8 + $0x888] sm:$0xff] }
 0x4d4   :  { %11211 = vmatprep.subr.bf16.mxu1 %v13666_v45  ;;  %v13720_v45 = vcombine.high %v8096_v3, %v8100_v4  ;;  %v8148_v24 = vld [vmem:[#allocation8 + $0x8a0] sm:$0xff] }
 0x4d6   :  { %11040 = vmatpush1.bf16.msra.mxu0 %v13663_v57  ;;  %v8109_v57 = vld [vmem:[#allocation8 + $0x768] sm:$0xff] }
 0x4d7   :  { %11212 = vmatpush1.bf16.msra.mxu1 %v13665_v59  ;;  %11041 = vmatprep.subr.bf16.mxu0 %v13672_v13  ;;  %v13719_v59 = vcombine.low %v8096_v3, %v8100_v4  ;;  %v13721_v13 = vcombine.low %v8097_v5, %v8101_v6  ;;  %v13730_v16 = vcombine.high %v8105_v12, %v8109_v57  ;;  %v8152_v4 = vld [vmem:[#allocation8 + $0x8c0] sm:$0xff]  ;;  %v8153_v6 = vld [vmem:[#allocation8 + $0x8c8] sm:$0xff] }
 0x4d8   :  { %11213 = vmatprep.subr.bf16.mxu1 %v13674_v8  ;;  %v13728_v8 = vcombine.high %v8104_v50, %v8108_v46  ;;  %v8156_v5 = vld [vmem:[#allocation8 + $0x8e0] sm:$0xff] }
 0x4da   :  { %11042 = vmatpush1.bf16.msra.mxu0 %v13671_v21  ;;  %v8117_v21 = vld [vmem:[#allocation8 + $0x7a8] sm:$0xff] }
 0x4db   :  { %11214 = vmatpush1.bf16.msra.mxu1 %v13673_v53  ;;  %11043 = vmatprep.subr.bf16.mxu0 %v13680_v22  ;;  %v13727_v53 = vcombine.low %v8104_v50, %v8108_v46  ;;  %v13729_v22 = vcombine.low %v8105_v12, %v8109_v57  ;;  %v13738_v25 = vcombine.high %v8113_v63, %v8117_v21  ;;  %v8160_v46 = vld [vmem:[#allocation8 + $0x900] sm:$0xff]  ;;  %v8161_v57 = vld [vmem:[#allocation8 + $0x908] sm:$0xff] }
 0x4dc   :  { %11215 = vmatprep.subr.bf16.mxu1 %v13682_v14  ;;  %v13736_v14 = vcombine.high %v8112_v19, %v8116_v20  ;;  %v8164_v12 = vld [vmem:[#allocation8 + $0x920] sm:$0xff] }
 0x4de   :  { %11044 = vmatpush1.bf16.msra.mxu0 %v13679_v33  ;;  %v8125_v33 = vld [vmem:[#allocation8 + $0x7e8] sm:$0xff] }
 0x4df   :  { %11216 = vmatpush1.bf16.msra.mxu1 %v13681_v34  ;;  %11045 = vmatprep.subr.bf16.mxu0 %v13688_v35  ;;  %v13735_v34 = vcombine.low %v8112_v19, %v8116_v20  ;;  %v13737_v35 = vcombine.low %v8113_v63, %v8117_v21  ;;  %v13746_v11 = vcombine.high %v8121_v31, %v8125_v33  ;;  %v8168_v20 = vld [vmem:[#allocation8 + $0x940] sm:$0xff]  ;;  %v8169_v21 = vld [vmem:[#allocation8 + $0x948] sm:$0xff] }
 0x4e0   :  { %11217 = vmatprep.subr.bf16.mxu1 %v13690_v17  ;;  %v13744_v17 = vcombine.high %v8120_v26, %v8124_v28  ;;  %v8172_v63 = vld [vmem:[#allocation8 + $0x960] sm:$0xff] }
 0x4e2   :  { %11046 = vmatpush1.bf16.msra.mxu0 %v13687_v49  ;;  %v8133_v49 = vld [vmem:[#allocation8 + $0x828] sm:$0xff] }
 0x4e3   :  { %11218 = vmatpush1.bf16.msra.mxu1 %v13689_v27  ;;  %11047 = vmatprep.subr.bf16.mxu0 %v13696_v29  ;;  %v13743_v27 = vcombine.low %v8120_v26, %v8124_v28  ;;  %v13745_v29 = vcombine.low %v8121_v31, %v8125_v33  ;;  %v13754_v38 = vcombine.high %v8129_v30, %v8133_v49  ;;  %v8176_v28 = vld [vmem:[#allocation8 + $0x980] sm:$0xff]  ;;  %v8177_v33 = vld [vmem:[#allocation8 + $0x988] sm:$0xff] }
 0x4e4   :  { %11219 = vmatprep.subr.bf16.mxu1 %v13698_v37  ;;  %v13752_v37 = vcombine.high %v8128_v41, %v8132_v42  ;;  %v8180_v31 = vld [vmem:[#allocation8 + $0x9a0] sm:$0xff] }
 0x4e6   :  { %11048 = vmatpush1.bf16.msra.mxu0 %v13695_v56  ;;  %v8141_v56 = vld [vmem:[#allocation8 + $0x868] sm:$0xff] }
 0x4e7   :  { %11220 = vmatpush1.bf16.msra.mxu1 %v13697_v39  ;;  %11049 = vmatprep.subr.bf16.mxu0 %v13704_v60  ;;  %v13751_v39 = vcombine.low %v8128_v41, %v8132_v42  ;;  %v13753_v60 = vcombine.low %v8129_v30, %v8133_v49  ;;  %v13762_v51 = vcombine.high %v8137_v55, %v8141_v56  ;;  %v8184_v42 = vld [vmem:[#allocation8 + $0x9c0] sm:$0xff]  ;;  %v8185_v49 = vld [vmem:[#allocation8 + $0x9c8] sm:$0xff] }
 0x4e8   :  { %11221 = vmatprep.subr.bf16.mxu1 %v13706_v61  ;;  %v13760_v61 = vcombine.high %v8136_v43, %v8140_v52  ;;  %v8188_v30 = vld [vmem:[#allocation8 + $0x9e0] sm:$0xff] }
 0x4ea   :  { %11050 = vmatpush1.bf16.msra.mxu0 %v13703_v62  ;;  %v8149_v62 = vld [vmem:[#allocation8 + $0x8a8] sm:$0xff] }
 0x4eb   :  { %11222 = vmatpush1.bf16.msra.mxu1 %v13705_v44  ;;  %11051 = vmatprep.subr.bf16.mxu0 %v13712_v0  ;;  %v13759_v44 = vcombine.low %v8136_v43, %v8140_v52  ;;  %v13761_v0 = vcombine.low %v8137_v55, %v8141_v56  ;;  %v13770_v3 = vcombine.high %v8145_v48, %v8149_v62  ;;  %v8192_v52 = vld [vmem:[#allocation8 + $0xa00] sm:$0xff]  ;;  %v8193_v56 = vld [vmem:[#allocation8 + $0xa08] sm:$0xff] }
 0x4ec   :  { %11223 = vmatprep.subr.bf16.mxu1 %v13714_v2  ;;  %v13768_v2 = vcombine.high %v8144_v47, %v8148_v24  ;;  %v8196_v55 = vld [vmem:[#allocation8 + $0xa20] sm:$0xff] }
 0x4ee   :  { %11052 = vmatpush1.bf16.msra.mxu0 %v13711_v7  ;;  %v8157_v7 = vld [vmem:[#allocation8 + $0x8e8] sm:$0xff] }
 0x4ef   :  { %11224 = vmatpush1.bf16.msra.mxu1 %v13713_v9  ;;  %11053 = vmatprep.subr.bf16.mxu0 %v13720_v45  ;;  %v13767_v9 = vcombine.low %v8144_v47, %v8148_v24  ;;  %v13769_v45 = vcombine.low %v8145_v48, %v8149_v62  ;;  %v13778_v50 = vcombine.high %v8153_v6, %v8157_v7  ;;  %v8200_v24 = vld [vmem:[#allocation8 + $0xa40] sm:$0xff]  ;;  %v8201_v62 = vld [vmem:[#allocation8 + $0xa48] sm:$0xff] }
 0x4f0   :  { %11225 = vmatprep.subr.bf16.mxu1 %v13722_v1  ;;  %v13776_v1 = vcombine.high %v8152_v4, %v8156_v5  ;;  %v8204_v48 = vld [vmem:[#allocation8 + $0xa60] sm:$0xff] }
 0x4f2   :  { %11054 = vmatpush1.bf16.msra.mxu0 %v13719_v59  ;;  %v8165_v59 = vld [vmem:[#allocation8 + $0x928] sm:$0xff] }
 0x4f3   :  { %11226 = vmatpush1.bf16.msra.mxu1 %v13721_v13  ;;  %11055 = vmatprep.subr.bf16.mxu0 %v13728_v8  ;;  %v13775_v13 = vcombine.low %v8152_v4, %v8156_v5  ;;  %v13777_v8 = vcombine.low %v8153_v6, %v8157_v7  ;;  %v13786_v19 = vcombine.high %v8161_v57, %v8165_v59  ;;  %v8208_v5 = vld [vmem:[#allocation8 + $0xa80] sm:$0xff]  ;;  %v8209_v7 = vld [vmem:[#allocation8 + $0xa88] sm:$0xff] }
 0x4f4   :  { %11227 = vmatprep.subr.bf16.mxu1 %v13730_v16  ;;  %v13784_v16 = vcombine.high %v8160_v46, %v8164_v12  ;;  %v8212_v6 = vld [vmem:[#allocation8 + $0xaa0] sm:$0xff] }
 0x4f6   :  { %11056 = vmatpush1.bf16.msra.mxu0 %v13727_v53  ;;  %v8173_v53 = vld [vmem:[#allocation8 + $0x968] sm:$0xff] }
 0x4f7   :  { %11228 = vmatpush1.bf16.msra.mxu1 %v13729_v22  ;;  %11057 = vmatprep.subr.bf16.mxu0 %v13736_v14  ;;  %v13783_v22 = vcombine.low %v8160_v46, %v8164_v12  ;;  %v13785_v14 = vcombine.low %v8161_v57, %v8165_v59  ;;  %v13794_v26 = vcombine.high %v8169_v21, %v8173_v53  ;;  %v8216_v12 = vld [vmem:[#allocation8 + $0xac0] sm:$0xff]  ;;  %v8217_v59 = vld [vmem:[#allocation8 + $0xac8] sm:$0xff] }
 0x4f8   :  { %11229 = vmatprep.subr.bf16.mxu1 %v13738_v25  ;;  %v13792_v25 = vcombine.high %v8168_v20, %v8172_v63  ;;  %v8220_v57 = vld [vmem:[#allocation8 + $0xae0] sm:$0xff] }
 0x4fa   :  { %11058 = vmatpush1.bf16.msra.mxu0 %v13735_v34  ;;  %v8181_v34 = vld [vmem:[#allocation8 + $0x9a8] sm:$0xff] }
 0x4fb   :  { %11230 = vmatpush1.bf16.msra.mxu1 %v13737_v35  ;;  %11059 = vmatprep.subr.bf16.mxu0 %v13744_v17  ;;  %v13791_v35 = vcombine.low %v8168_v20, %v8172_v63  ;;  %v13793_v17 = vcombine.low %v8169_v21, %v8173_v53  ;;  %v13802_v41 = vcombine.high %v8177_v33, %v8181_v34  ;;  %v8224_v63 = vld [vmem:[#allocation8 + $0xb00] sm:$0xff]  ;;  %v8225_v53 = vld [vmem:[#allocation8 + $0xb08] sm:$0xff] }
 0x4fc   :  { %11231 = vmatprep.subr.bf16.mxu1 %v13746_v11  ;;  %v13800_v11 = vcombine.high %v8176_v28, %v8180_v31  ;;  %v8228_v21 = vld [vmem:[#allocation8 + $0xb20] sm:$0xff] }
 0x4fe   :  { %11060 = vmatpush1.bf16.msra.mxu0 %v13743_v27  ;;  %v8189_v27 = vld [vmem:[#allocation8 + $0x9e8] sm:$0xff] }
 0x4ff   :  { %11232 = vmatpush1.bf16.msra.mxu1 %v13745_v29  ;;  %11072 = vmatprep.subr.bf16.mxu0 %v13752_v37  ;;  %v13799_v29 = vcombine.low %v8176_v28, %v8180_v31  ;;  %v13801_v37 = vcombine.low %v8177_v33, %v8181_v34  ;;  %v13810_v43 = vcombine.high %v8185_v49, %v8189_v27  ;;  %v8232_v31 = vld [vmem:[#allocation8 + $0xb40] sm:$0xff]  ;;  %v8233_v34 = vld [vmem:[#allocation8 + $0xb48] sm:$0xff] }
 0x500   :  { %11244 = vmatprep.subr.bf16.mxu1 %v13754_v38  ;;  %v13808_v38 = vcombine.high %v8184_v42, %v8188_v30  ;;  %v8236_v33 = vld [vmem:[#allocation8 + $0xb60] sm:$0xff] }
 0x501   :  { %11062 = vmatmul.mubr.bf16.vlgmr.msra.gmra.mrb[8].mxu0 %v15021_v58 }
 0x502   :  { %11234 = vmatmul.mubr.bf16.vlgmr.msra.gmra.mrb[8].mxu1 %v15021_v58  ;;  %11073 = vmatpush1.bf16.msra.mxu0 %v13751_v39  ;;  %v8197_v39 = vld [vmem:[#allocation8 + $0xa28] sm:$0xff] }
 0x503   :  { %11245 = vmatpush1.bf16.msra.mxu1 %v13753_v60  ;;  %11074 = vmatprep.subr.bf16.mxu0 %v13760_v61  ;;  %v13807_v60 = vcombine.low %v8184_v42, %v8188_v30  ;;  %v13809_v61 = vcombine.low %v8185_v49, %v8189_v27  ;;  %v13818_v47 = vcombine.high %v8193_v56, %v8197_v39  ;;  %v8240_v30 = vld [vmem:[#allocation8 + $0xb80] sm:$0xff]  ;;  %v8241_v27 = vld [vmem:[#allocation8 + $0xb88] sm:$0xff] }
 0x504   :  { %11246 = vmatprep.subr.bf16.mxu1 %v13762_v51  ;;  %v13816_v51 = vcombine.high %v8192_v52, %v8196_v55  ;;  %v8244_v49 = vld [vmem:[#allocation8 + $0xba0] sm:$0xff] }
 0x506   :  { %11075 = vmatpush1.bf16.msra.mxu0 %v13759_v44  ;;  %v8205_v44 = vld [vmem:[#allocation8 + $0xa68] sm:$0xff] }
 0x507   :  { %11247 = vmatpush1.bf16.msra.mxu1 %v13761_v0  ;;  %11076 = vmatprep.subr.bf16.mxu0 %v13768_v2  ;;  %v13815_v0 = vcombine.low %v8192_v52, %v8196_v55  ;;  %v13817_v2 = vcombine.low %v8193_v56, %v8197_v39  ;;  %v13826_v4 = vcombine.high %v8201_v62, %v8205_v44  ;;  %v8248_v55 = vld [vmem:[#allocation8 + $0xbc0] sm:$0xff]  ;;  %v8249_v39 = vld [vmem:[#allocation8 + $0xbc8] sm:$0xff] }
 0x508   :  { %11248 = vmatprep.subr.bf16.mxu1 %v13770_v3  ;;  %v13824_v3 = vcombine.high %v8200_v24, %v8204_v48  ;;  %v8252_v56 = vld [vmem:[#allocation8 + $0xbe0] sm:$0xff] }
 0x50a   :  { %11077 = vmatpush1.bf16.msra.mxu0 %v13767_v9  ;;  %v8213_v9 = vld [vmem:[#allocation8 + $0xaa8] sm:$0xff] }
 0x50b   :  { %11249 = vmatpush1.bf16.msra.mxu1 %v13769_v45  ;;  %11078 = vmatprep.subr.bf16.mxu0 %v13776_v1  ;;  %v13823_v45 = vcombine.low %v8200_v24, %v8204_v48  ;;  %v13825_v1 = vcombine.low %v8201_v62, %v8205_v44  ;;  %v13834_v46 = vcombine.high %v8209_v7, %v8213_v9  ;;  %v15037_v48 = vld [vmem:[#allocation8 + $0xc00] sm:$0xff]  ;;  %v15041_v44 = vld [vmem:[#allocation8 + $0xc08] sm:$0xff] }
 0x50c   :  { %11250 = vmatprep.subr.bf16.mxu1 %v13778_v50  ;;  %v13832_v50 = vcombine.high %v8208_v5, %v8212_v6  ;;  %v15039_v62 = vld [vmem:[#allocation8 + $0xc20] sm:$0xff] }
 0x50e   :  { %11079 = vmatpush1.bf16.msra.mxu0 %v13775_v13  ;;  %v8221_v13 = vld [vmem:[#allocation8 + $0xae8] sm:$0xff] }
 0x50f   :  { %11251 = vmatpush1.bf16.msra.mxu1 %v13777_v8  ;;  %11080 = vmatprep.subr.bf16.mxu0 %v13784_v16  ;;  %v13831_v8 = vcombine.low %v8208_v5, %v8212_v6  ;;  %v13833_v16 = vcombine.low %v8209_v7, %v8213_v9  ;;  %v13842_v20 = vcombine.high %v8217_v59, %v8221_v13  ;;  %v7762_v6 = vsub.s32 4, %v15005_v54 }
 0x510   :  { %11252 = vmatprep.subr.bf16.mxu1 %v13786_v19  ;;  %v13840_v19 = vcombine.high %v8216_v12, %v8220_v57  ;;  %v7770_v7 = vsub.s32 6, %v15005_v54  ;;  %v7766_v9 = vsub.s32 5, %v15005_v54 }
 0x512   :  { %11081 = vmatpush1.bf16.msra.mxu0 %v13783_v22  ;;  %v8229_v22 = vld [vmem:[#allocation8 + $0xb28] sm:$0xff] }
 0x513   :  { %11253 = vmatpush1.bf16.msra.mxu1 %v13785_v14  ;;  %11082 = vmatprep.subr.bf16.mxu0 %v13792_v25  ;;  %v13839_v14 = vcombine.low %v8216_v12, %v8220_v57  ;;  %v13841_v25 = vcombine.low %v8217_v59, %v8221_v13  ;;  %v13850_v28 = vcombine.high %v8225_v53, %v8229_v22 }
 0x514   :  { %11254 = vmatprep.subr.bf16.mxu1 %v13794_v26  ;;  %v13848_v26 = vcombine.high %v8224_v63, %v8228_v21 }
 0x516   :  { %11083 = vmatpush1.bf16.msra.mxu0 %v13791_v35  ;;  %v8237_v35 = vld [vmem:[#allocation8 + $0xb68] sm:$0xff] }
 0x517   :  { %11255 = vmatpush1.bf16.msra.mxu1 %v13793_v17  ;;  %11084 = vmatprep.subr.bf16.mxu0 %v13800_v11  ;;  %v13847_v17 = vcombine.low %v8224_v63, %v8228_v21  ;;  %v13849_v11 = vcombine.low %v8225_v53, %v8229_v22  ;;  %v13858_v42 = vcombine.high %v8233_v34, %v8237_v35 }
 0x518   :  { %11256 = vmatprep.subr.bf16.mxu1 %v13802_v41  ;;  %v13856_v41 = vcombine.high %v8232_v31, %v8236_v33 }
 0x51a   :  { %11085 = vmatpush1.bf16.msra.mxu0 %v13799_v29  ;;  %v8245_v29 = vld [vmem:[#allocation8 + $0xba8] sm:$0xff] }
 0x51b   :  { %11257 = vmatpush1.bf16.msra.mxu1 %v13801_v37  ;;  %11086 = vmatprep.subr.bf16.mxu0 %v13808_v38  ;;  %v13855_v37 = vcombine.low %v8232_v31, %v8236_v33  ;;  %v13857_v38 = vcombine.low %v8233_v34, %v8237_v35  ;;  %v13866_v52 = vcombine.high %v8241_v27, %v8245_v29 }
 0x51c   :  { %11258 = vmatprep.subr.bf16.mxu1 %v13810_v43  ;;  %v13864_v43 = vcombine.high %v8240_v30, %v8244_v49 }
 0x51e   :  { %11087 = vmatpush1.bf16.msra.mxu0 %v13807_v60  ;;  %v8253_v60 = vld [vmem:[#allocation8 + $0xbe8] sm:$0xff] }
 0x51f   :  { %11259 = vmatpush1.bf16.msra.mxu1 %v13809_v61  ;;  %11088 = vmatprep.subr.bf16.mxu0 %v13816_v51  ;;  %v13863_v61 = vcombine.low %v8240_v30, %v8244_v49  ;;  %v13865_v51 = vcombine.low %v8241_v27, %v8245_v29  ;;  %v13874_v24 = vcombine.high %v8249_v39, %v8253_v60 }
 0x520   :  { %11260 = vmatprep.subr.bf16.mxu1 %v13818_v47  ;;  %v13872_v47 = vcombine.high %v8248_v55, %v8252_v56 }
 0x522   :  { %11089 = vmatpush1.bf16.msra.mxu0 %v13815_v0  ;;  %v15043_v0 = vld [vmem:[#allocation8 + $0xc28] sm:$0xff] }
 0x523   :  { %11261 = vmatpush1.bf16.msra.mxu1 %v13817_v2  ;;  %11090 = vmatprep.subr.bf16.mxu0 %v13824_v3  ;;  %v13871_v2 = vcombine.low %v8248_v55, %v8252_v56  ;;  %v13873_v3 = vcombine.low %v8249_v39, %v8253_v60  ;;  %v13882_v5 = vcombine.high %v15041_v44, %v15043_v0 }
 0x524   :  { %11262 = vmatprep.subr.bf16.mxu1 %v13826_v4  ;;  %v13880_v4 = vcombine.high %v15037_v48, %v15039_v62 }
 0x526   :  { %11091 = vmatpush1.bf16.msra.mxu0 %v13823_v45  ;;  %v7774_v45 = vsub.s32 7, %v15005_v54 }
 0x527   :  { %11263 = vmatpush1.bf16.msra.mxu1 %v13825_v1  ;;  %11092 = vmatprep.subr.bf16.mxu0 %v13832_v50  ;;  %v14475_v1 = vld [vmem:[#allocation7] sm:$0xff] }
 0x528   :  { %11264 = vmatprep.subr.bf16.mxu1 %v13834_v46  ;;  %v7763_v50 = vrot.slane %v14475_v1, %v7762_v6  ;;  %v7771_v46 = vrot.slane %v14475_v1, %v7770_v7  ;;  %v7767_v12 = vrot.slane %v14475_v1, %v7766_v9  ;;  %v7775_v57 = vrot.slane %v14475_v1, %v7774_v45 }
 0x52a   :  { %11093 = vmatpush1.bf16.msra.mxu0 %v13831_v8 }
 0x52b   :  { %11265 = vmatpush1.bf16.msra.mxu1 %v13833_v16  ;;  %11094 = vmatprep.subr.bf16.mxu0 %v13840_v19 }
 0x52c   :  { %11266 = vmatprep.subr.bf16.mxu1 %v13842_v20 }
 0x52e   :  { %11095 = vmatpush1.bf16.msra.mxu0 %v13839_v14 }
 0x52f   :  { %11267 = vmatpush1.bf16.msra.mxu1 %v13841_v25  ;;  %11096 = vmatprep.subr.bf16.mxu0 %v13848_v26 }
 0x530   :  { %11268 = vmatprep.subr.bf16.mxu1 %v13850_v28 }
 0x532   :  { %11097 = vmatpush1.bf16.msra.mxu0 %v13847_v17 }
 0x533   :  { %11269 = vmatpush1.bf16.msra.mxu1 %v13849_v11  ;;  %11098 = vmatprep.subr.bf16.mxu0 %v13856_v41 }
 0x534   :  { %11270 = vmatprep.subr.bf16.mxu1 %v13858_v42 }
 0x536   :  { %11099 = vmatpush1.bf16.msra.mxu0 %v13855_v37 }
 0x537   :  { %11271 = vmatpush1.bf16.msra.mxu1 %v13857_v38  ;;  %11100 = vmatprep.subr.bf16.mxu0 %v13864_v43 }
 0x538   :  { %11272 = vmatprep.subr.bf16.mxu1 %v13866_v52 }
 0x53a   :  { %11101 = vmatpush1.bf16.msra.mxu0 %v13863_v61 }
 0x53b   :  { %11273 = vmatpush1.bf16.msra.mxu1 %v13865_v51  ;;  %11102 = vmatprep.subr.bf16.mxu0 %v13872_v47 }
 0x53c   :  { %11274 = vmatprep.subr.bf16.mxu1 %v13874_v24 }
 0x53e   :  { %11103 = vmatpush1.bf16.msra.mxu0 %v13871_v2 }
 0x53f   :  { %11275 = vmatpush1.bf16.msra.mxu1 %v13873_v3  ;;  %11115 = vmatprep.subr.bf16.mxu0 %v13880_v4 }
 0x540   :  { %11287 = vmatprep.subr.bf16.mxu1 %v13882_v5 }
 0x554   :  { %v7561_v59 = vpop.f32.mrb[4].mxu0  ;;  %v7733_v8 = vpop.f32.mrb[4].mxu1 }
 0x555   :  { %v7788_v13 = vadd.f32 %v7763_v50, %v7561_v59  ;;  %v7563_v16 = vpop.f32.mrb[5].mxu0  ;;  %v7790_v19 = vadd.f32 %v7771_v46, %v7733_v8  ;;  %v7735_v63 = vpop.f32.mrb[5].mxu1  ;;  %v8264_v59 = vld [vmem:[#allocation8 + $0xc40] sm:$0xff] }
 0x556   :  { %v7789_v20 = vadd.f32 %v7767_v12, %v7563_v16  ;;  %v7565_v21 = vpop.f32.mrb[6].mxu0  ;;  %v7791_v22 = vadd.f32 %v7775_v57, %v7735_v63  ;;  %v7737_v25 = vpop.f32.mrb[6].mxu1  ;;  %v8269_v63 = vld [vmem:[#allocation8 + $0xc68] sm:$0xff] }
 0x557   :  { %v7804_v53 = vmul.f32 0.5, %v7788_v13  ;;  %v7796_v14 = vadd.f32 %v7763_v50, %v7565_v21  ;;  %v7567_v26 = vpop.f32.mrb[7].mxu0  ;;  %v7806_v28 = vmul.f32 0.5, %v7790_v19  ;;  %v7798_v33 = vadd.f32 %v7771_v46, %v7737_v25  ;;  %v7739_v35 = vpop.f32.mrb[7].mxu1  ;;  %v8268_v19 = vld [vmem:[#allocation8 + $0xc60] sm:$0xff] }
 0x558   :  { %v7805_v31 = vmul.f32 0.5, %v7789_v20  ;;  %v7797_v34 = vadd.f32 %v7767_v12, %v7567_v26  ;;  %v7807_v17 = vmul.f32 0.5, %v7791_v22  ;;  %v7799_v41 = vadd.f32 %v7775_v57, %v7739_v35  ;;  %v8265_v20 = vld [vmem:[#allocation8 + $0xc48] sm:$0xff]  ;;  %v8272_v25 = vld [vmem:[#allocation8 + $0xc80] sm:$0xff] }
 0x559   :  { %14427 = vtanh.f32 %v7804_v53  ;;  %v7812_v11 = vmul.f32 0.5, %v7796_v14  ;;  %v7814_v42 = vmul.f32 0.5, %v7798_v33  ;;  %v13879_v53 = vcombine.low %v15037_v48, %v15039_v62  ;;  %v8273_v33 = vld [vmem:[#allocation8 + $0xc88] sm:$0xff]  ;;  %v8280_v35 = vld [vmem:[#allocation8 + $0xcc0] sm:$0xff] }
 0x55a   :  { %14429 = vtanh.f32 %v7806_v28  ;;  %v7813_v30 = vmul.f32 0.5, %v7797_v34  ;;  %v7815_v49 = vmul.f32 0.5, %v7799_v41  ;;  %v13881_v22 = vcombine.low %v15041_v44, %v15043_v0  ;;  %v8277_v34 = vld [vmem:[#allocation8 + $0xca8] sm:$0xff] }
 0x55b   :  { %14431 = vtanh.f32 %v7805_v31  ;;  %v13888_v26 = vcombine.high %v8264_v59, %v8268_v19  ;;  %v13890_v28 = vcombine.high %v8265_v20, %v8269_v63  ;;  %v8276_v31 = vld [vmem:[#allocation8 + $0xca0] sm:$0xff]  ;;  %v13887_v48 = vcombine.low %v8264_v59, %v8268_v19  ;;  %v8285_v41 = vld [vmem:[#allocation8 + $0xce8] sm:$0xff] }
 0x55c   :  { %14433 = vtanh.f32 %v7807_v17  ;;  %v13889_v62 = vcombine.low %v8265_v20, %v8269_v63  ;;  %v13896_v44 = vcombine.high %v8272_v25, %v8276_v31  ;;  %v13898_v0 = vcombine.high %v8273_v33, %v8277_v34  ;;  %v8284_v17 = vld [vmem:[#allocation8 + $0xce0] sm:$0xff]  ;;  %v8313_v63 = vld [vmem:[#allocation8 + $0xdc8] sm:$0xff] }
 0x55d   :  { %14435 = vtanh.f32 %v7812_v11  ;;  %v8281_v11 = vld [vmem:[#allocation8 + $0xcc8] sm:$0xff]  ;;  %v8312_v19 = vld [vmem:[#allocation8 + $0xdc0] sm:$0xff] }
 0x55e   :  { %14437 = vtanh.f32 %v7814_v42  ;;  %v13895_v42 = vcombine.low %v8272_v25, %v8276_v31  ;;  %v8316_v20 = vld [vmem:[#allocation8 + $0xde0] sm:$0xff] }
 0x55f   :  { %14439 = vtanh.f32 %v7813_v30  ;;  %v13897_v30 = vcombine.low %v8273_v33, %v8277_v34  ;;  %v8320_v31 = vld [vmem:[#allocation8 + $0xe00] sm:$0xff]  ;;  %v8321_v34 = vld [vmem:[#allocation8 + $0xe08] sm:$0xff] }
 0x560   :  { %14441 = vtanh.f32 %v7815_v49  ;;  %v13904_v49 = vcombine.high %v8280_v35, %v8284_v17  ;;  %v8324_v33 = vld [vmem:[#allocation8 + $0xe20] sm:$0xff] }
 0x563   :  { %v14428_v27 = vpop.eup %14427 }
 0x564   :  { %v14430_v29 = vpop.eup %14429  ;;  %v7836_v43 = vmul.f32 0.5, %v14428_v27  ;;  %v13906_v27 = vcombine.high %v8281_v11, %v8285_v41 }
 0x565   :  { %v14432_v37 = vpop.eup %14431  ;;  %v7838_v55 = vmul.f32 0.5, %v14430_v29  ;;  %v8288_v29 = vld [vmem:[#allocation8 + $0xd00] sm:$0xff] }
 0x566   :  { %v14434_v38 = vpop.eup %14433  ;;  %v7837_v39 = vmul.f32 0.5, %v14432_v37  ;;  %v7852_v2 = vadd.f32 0.5, %v7836_v43  ;;  %v8292_v37 = vld [vmem:[#allocation8 + $0xd20] sm:$0xff]  ;;  %v8293_v43 = vld [vmem:[#allocation8 + $0xd28] sm:$0xff] }
 0x567   :  { %v14436_v52 = vpop.eup %14435  ;;  %v7839_v51 = vmul.f32 0.5, %v14434_v38  ;;  %v7854_v5 = vadd.f32 0.5, %v7838_v55  ;;  %v8289_v38 = vld [vmem:[#allocation8 + $0xd08] sm:$0xff]  ;;  %v13905_v55 = vcombine.low %v8281_v11, %v8285_v41  ;;  %v8332_v11 = vld [vmem:[#allocation8 + $0xe60] sm:$0xff] }
 0x568   :  { %v14438_v56 = vpop.eup %14437  ;;  %v7844_v60 = vmul.f32 0.5, %v14436_v52  ;;  %v7853_v46 = vadd.f32 0.5, %v7837_v39  ;;  %v13903_v52 = vcombine.low %v8280_v35, %v8284_v17  ;;  %v13914_v39 = vcombine.high %v8289_v38, %v8293_v43  ;;  %v8328_v17 = vld [vmem:[#allocation8 + $0xe40] sm:$0xff]  ;;  %v8329_v41 = vld [vmem:[#allocation8 + $0xe48] sm:$0xff] }
 0x569   :  { %v14440_v61 = vpop.eup %14439  ;;  %v7846_v47 = vmul.f32 0.5, %v14438_v56  ;;  %v7855_v13 = vadd.f32 0.5, %v7839_v51  ;;  %v13912_v56 = vcombine.high %v8288_v29, %v8292_v37  ;;  %v8297_v51 = vld [vmem:[#allocation8 + $0xd48] sm:$0xff] }
 0x56a   :  { %v14442_v24 = vpop.eup %14441  ;;  %v7860_v3 = vadd.f32 0.5, %v7844_v60  ;;  %v7845_v4 = vmul.f32 0.5, %v14440_v61  ;;  %v8296_v60 = vld [vmem:[#allocation8 + $0xd40] sm:$0xff] }
 0x56b   :  { %v7862_v1 = vadd.f32 0.5, %v7846_v47  ;;  %v7847_v50 = vmul.f32 0.5, %v14442_v24  ;;  %v8300_v61 = vld [vmem:[#allocation8 + $0xd60] sm:$0xff]  ;;  %v8301_v47 = vld [vmem:[#allocation8 + $0xd68] sm:$0xff]  ;;  %v13911_v24 = vcombine.low %v8288_v29, %v8292_v37 }
 0x56c   :  { %v15061_v12 = vpack.c.bf16 %v7860_v3, %v7852_v2  ;;  %v7861_v57 = vadd.f32 0.5, %v7845_v4  ;;  %v13913_v2 = vcombine.low %v8289_v38, %v8293_v43  ;;  %v13920_v3 = vcombine.high %v8296_v60, %v8300_v61  ;;  %v8336_v37 = vld [vmem:[#allocation8 + $0xe80] sm:$0xff]  ;;  %v8337_v43 = vld [vmem:[#allocation8 + $0xe88] sm:$0xff] }
 0x56d   :  { %v15063_v8 = vpack.c.bf16 %v7862_v1, %v7854_v5  ;;  %v7863_v16 = vadd.f32 0.5, %v7847_v50  ;;  %v13922_v4 = vcombine.high %v8297_v51, %v8301_v47  ;;  %v8304_v5 = vld [vmem:[#allocation8 + $0xd80] sm:$0xff]  ;;  %v8305_v50 = vld [vmem:[#allocation8 + $0xd88] sm:$0xff]  ;;  %v13921_v59 = vcombine.low %v8297_v51, %v8301_v47 }
 0x56e   :  { %v15065_v21 = vpack.c.bf16 %v7861_v57, %v7853_v46  ;;  %v8308_v1 = vld [vmem:[#allocation8 + $0xda0] sm:$0xff]  ;;  %v8309_v46 = vld [vmem:[#allocation8 + $0xda8] sm:$0xff]  ;;  %v13919_v57 = vcombine.low %v8296_v60, %v8300_v61 }
 0x56f   :  { %v15071_v14 = vpack.c.bf16 %v7863_v16, %v7855_v13  ;;  %v13928_v13 = vcombine.high %v8304_v5, %v8308_v1  ;;  %v13930_v16 = vcombine.high %v8305_v50, %v8309_v46  ;;  %v13929_v25 = vcombine.low %v8305_v50, %v8309_v46  ;;  %v8340_v38 = vld [vmem:[#allocation8 + $0xea0] sm:$0xff]  ;;  %v8345_v47 = vld [vmem:[#allocation8 + $0xec8] sm:$0xff] }
 0x570   :  { %11104 = vmatprep.mubr.bf16.mxu0 %v15065_v21  ;;  %11276 = vmatprep.mubr.bf16.mxu1 %v15065_v21  ;;  %v8344_v61 = vld [vmem:[#allocation8 + $0xec0] sm:$0xff]  ;;  %v8353_v46 = vld [vmem:[#allocation8 + $0xf08] sm:$0xff] }
 0x571   :  { %11105 = vmatmul.mubr.bf16.vlgmr.msra.gmra.mrb[8].mxu0 %v15061_v12  ;;  %11277 = vmatmul.mubr.bf16.vlgmr.msra.gmra.mrb[8].mxu1 %v15061_v12  ;;  %v8348_v51 = vld [vmem:[#allocation8 + $0xee0] sm:$0xff] }
 0x572   :  { %11116 = vmatpush1.bf16.msra.mxu0 %v13879_v53  ;;  %11288 = vmatpush1.bf16.msra.mxu1 %v13881_v22  ;;  %v8317_v53 = vld [vmem:[#allocation8 + $0xde8] sm:$0xff]  ;;  %v13927_v22 = vcombine.low %v8304_v5, %v8308_v1  ;;  %v8352_v1 = vld [vmem:[#allocation8 + $0xf00] sm:$0xff] }
 0x573   :  { %11147 = vmatprep.mubr.bf16.mxu0 %v15071_v14  ;;  %11319 = vmatprep.mubr.bf16.mxu1 %v15071_v14  ;;  %v8356_v50 = vld [vmem:[#allocation8 + $0xf20] sm:$0xff] }
 0x574   :  { %11117 = vmatprep.subr.bf16.mxu0 %v13888_v26  ;;  %11289 = vmatprep.subr.bf16.mxu1 %v13890_v28  ;;  %v13936_v26 = vcombine.high %v8312_v19, %v8316_v20  ;;  %v13938_v28 = vcombine.high %v8313_v63, %v8317_v53 }
 0x576   :  { %11118 = vmatpush1.bf16.msra.mxu0 %v13887_v48  ;;  %11290 = vmatpush1.bf16.msra.mxu1 %v13889_v62  ;;  %v8325_v48 = vld [vmem:[#allocation8 + $0xe28] sm:$0xff]  ;;  %v13935_v62 = vcombine.low %v8312_v19, %v8316_v20  ;;  %v8360_v20 = vld [vmem:[#allocation8 + $0xf40] sm:$0xff] }
 0x577   :  { %11119 = vmatprep.subr.bf16.mxu0 %v13896_v44  ;;  %11291 = vmatprep.subr.bf16.mxu1 %v13898_v0  ;;  %v13937_v44 = vcombine.low %v8313_v63, %v8317_v53  ;;  %v13944_v0 = vcombine.high %v8320_v31, %v8324_v33  ;;  %v13946_v35 = vcombine.high %v8321_v34, %v8325_v48  ;;  %v8364_v63 = vld [vmem:[#allocation8 + $0xf60] sm:$0xff]  ;;  %v8361_v53 = vld [vmem:[#allocation8 + $0xf48] sm:$0xff] }
 0x57a   :  { %11120 = vmatpush1.bf16.msra.mxu0 %v13895_v42  ;;  %11292 = vmatpush1.bf16.msra.mxu1 %v13897_v30  ;;  %v8333_v42 = vld [vmem:[#allocation8 + $0xe68] sm:$0xff]  ;;  %v13943_v30 = vcombine.low %v8320_v31, %v8324_v33  ;;  %v8368_v33 = vld [vmem:[#allocation8 + $0xf80] sm:$0xff] }
 0x57b   :  { %11121 = vmatprep.subr.bf16.mxu0 %v13904_v49  ;;  %11293 = vmatprep.subr.bf16.mxu1 %v13906_v27  ;;  %v13945_v49 = vcombine.low %v8321_v34, %v8325_v48  ;;  %v13952_v27 = vcombine.high %v8328_v17, %v8332_v11  ;;  %v13954_v29 = vcombine.high %v8329_v41, %v8333_v42  ;;  %v8372_v34 = vld [vmem:[#allocation8 + $0xfa0] sm:$0xff]  ;;  %v8369_v48 = vld [vmem:[#allocation8 + $0xf88] sm:$0xff] }
 0x57e   :  { %11122 = vmatpush1.bf16.msra.mxu0 %v13903_v52  ;;  %11294 = vmatpush1.bf16.msra.mxu1 %v13905_v55  ;;  %v8341_v52 = vld [vmem:[#allocation8 + $0xea8] sm:$0xff]  ;;  %v13951_v55 = vcombine.low %v8328_v17, %v8332_v11  ;;  %v8376_v11 = vld [vmem:[#allocation8 + $0xfc0] sm:$0xff] }
 0x57f   :  { %11123 = vmatprep.subr.bf16.mxu0 %v13912_v56  ;;  %11295 = vmatprep.subr.bf16.mxu1 %v13914_v39  ;;  %v13953_v56 = vcombine.low %v8329_v41, %v8333_v42  ;;  %v13960_v39 = vcombine.high %v8336_v37, %v8340_v38  ;;  %v13962_v60 = vcombine.high %v8337_v43, %v8341_v52  ;;  %v8380_v41 = vld [vmem:[#allocation8 + $0xfe0] sm:$0xff]  ;;  %v8377_v42 = vld [vmem:[#allocation8 + $0xfc8] sm:$0xff] }
 0x582   :  { %11124 = vmatpush1.bf16.msra.mxu0 %v13911_v24  ;;  %11296 = vmatpush1.bf16.msra.mxu1 %v13913_v2  ;;  %v8349_v24 = vld [vmem:[#allocation8 + $0xee8] sm:$0xff]  ;;  %v13959_v2 = vcombine.low %v8336_v37, %v8340_v38  ;;  %v7874_v38 = vld [vmem:[#allocation8 + $0x10] sm:$0xff] }
 0x583   :  { %11125 = vmatprep.subr.bf16.mxu0 %v13920_v3  ;;  %11297 = vmatprep.subr.bf16.mxu1 %v13922_v4  ;;  %v13961_v3 = vcombine.low %v8337_v43, %v8341_v52  ;;  %v13968_v4 = vcombine.high %v8344_v61, %v8348_v51  ;;  %v13970_v5 = vcombine.high %v8345_v47, %v8349_v24  ;;  %v7878_v43 = vld [vmem:[#allocation8 + $0x30] sm:$0xff]  ;;  %v7875_v52 = vld [vmem:[#allocation8 + $0x18] sm:$0xff] }
 0x586   :  { %11126 = vmatpush1.bf16.msra.mxu0 %v13919_v57  ;;  %11298 = vmatpush1.bf16.msra.mxu1 %v13921_v59  ;;  %v8357_v57 = vld [vmem:[#allocation8 + $0xf28] sm:$0xff]  ;;  %v13967_v59 = vcombine.low %v8344_v61, %v8348_v51  ;;  %v7882_v51 = vld [vmem:[#allocation8 + $0x50] sm:$0xff] }
 0x587   :  { %11127 = vmatprep.subr.bf16.mxu0 %v13928_v13  ;;  %11299 = vmatprep.subr.bf16.mxu1 %v13930_v16  ;;  %v13969_v13 = vcombine.low %v8345_v47, %v8349_v24  ;;  %v13976_v16 = vcombine.high %v8352_v1, %v8356_v50  ;;  %v13978_v19 = vcombine.high %v8353_v46, %v8357_v57  ;;  %v7886_v47 = vld [vmem:[#allocation8 + $0x70] sm:$0xff]  ;;  %v7883_v24 = vld [vmem:[#allocation8 + $0x58] sm:$0xff] }
 0x58a   :  { %11128 = vmatpush1.bf16.msra.mxu0 %v13927_v22  ;;  %11300 = vmatpush1.bf16.msra.mxu1 %v13929_v25  ;;  %v8365_v22 = vld [vmem:[#allocation8 + $0xf68] sm:$0xff]  ;;  %v13975_v25 = vcombine.low %v8352_v1, %v8356_v50  ;;  %v7890_v50 = vld [vmem:[#allocation8 + $0x90] sm:$0xff] }
 0x58b   :  { %11129 = vmatprep.subr.bf16.mxu0 %v13936_v26  ;;  %11301 = vmatprep.subr.bf16.mxu1 %v13938_v28  ;;  %v13977_v26 = vcombine.low %v8353_v46, %v8357_v57  ;;  %v13984_v28 = vcombine.high %v8360_v20, %v8364_v63  ;;  %v13986_v31 = vcombine.high %v8361_v53, %v8365_v22  ;;  %v7894_v46 = vld [vmem:[#allocation8 + $0xb0] sm:$0xff]  ;;  %v7891_v57 = vld [vmem:[#allocation8 + $0x98] sm:$0xff] }
 0x58e   :  { %11130 = vmatpush1.bf16.msra.mxu0 %v13935_v62  ;;  %11302 = vmatpush1.bf16.msra.mxu1 %v13937_v44  ;;  %v8373_v62 = vld [vmem:[#allocation8 + $0xfa8] sm:$0xff]  ;;  %v13983_v44 = vcombine.low %v8360_v20, %v8364_v63  ;;  %v7898_v63 = vld [vmem:[#allocation8 + $0xd0] sm:$0xff] }
 0x58f   :  { %11131 = vmatprep.subr.bf16.mxu0 %v13944_v0  ;;  %11303 = vmatprep.subr.bf16.mxu1 %v13946_v35  ;;  %v13985_v0 = vcombine.low %v8361_v53, %v8365_v22  ;;  %v13992_v35 = vcombine.high %v8368_v33, %v8372_v34  ;;  %v13994_v17 = vcombine.high %v8369_v48, %v8373_v62  ;;  %v7902_v53 = vld [vmem:[#allocation8 + $0xf0] sm:$0xff]  ;;  %v7899_v22 = vld [vmem:[#allocation8 + $0xd8] sm:$0xff] }
 0x592   :  { %11132 = vmatpush1.bf16.msra.mxu0 %v13943_v30  ;;  %11304 = vmatpush1.bf16.msra.mxu1 %v13945_v49  ;;  %v8381_v30 = vld [vmem:[#allocation8 + $0xfe8] sm:$0xff]  ;;  %v13991_v49 = vcombine.low %v8368_v33, %v8372_v34  ;;  %v7906_v34 = vld [vmem:[#allocation8 + $0x110] sm:$0xff] }
 0x593   :  { %11133 = vmatprep.subr.bf16.mxu0 %v13952_v27  ;;  %11305 = vmatprep.subr.bf16.mxu1 %v13954_v29  ;;  %v13993_v27 = vcombine.low %v8369_v48, %v8373_v62  ;;  %v14000_v29 = vcombine.high %v8376_v11, %v8380_v41  ;;  %v14002_v37 = vcombine.high %v8377_v42, %v8381_v30  ;;  %v7910_v48 = vld [vmem:[#allocation8 + $0x130] sm:$0xff]  ;;  %v7911_v62 = vld [vmem:[#allocation8 + $0x138] sm:$0xff] }
 0x596   :  { %11134 = vmatpush1.bf16.msra.mxu0 %v13951_v55  ;;  %11306 = vmatpush1.bf16.msra.mxu1 %v13953_v56  ;;  %v7879_v55 = vld [vmem:[#allocation8 + $0x38] sm:$0xff]  ;;  %v13999_v56 = vcombine.low %v8376_v11, %v8380_v41  ;;  %v7914_v11 = vld [vmem:[#allocation8 + $0x150] sm:$0xff] }
 0x597   :  { %11135 = vmatprep.subr.bf16.mxu0 %v13960_v39  ;;  %11307 = vmatprep.subr.bf16.mxu1 %v13962_v60  ;;  %v14001_v39 = vcombine.low %v8377_v42, %v8381_v30  ;;  %v13500_v60 = vcombine.high %v7874_v38, %v7878_v43  ;;  %v13502_v61 = vcombine.high %v7875_v52, %v7879_v55  ;;  %v7918_v41 = vld [vmem:[#allocation8 + $0x170] sm:$0xff]  ;;  %v7915_v42 = vld [vmem:[#allocation8 + $0x158] sm:$0xff] }
 0x598   :  { %v7919_v30 = vld [vmem:[#allocation8 + $0x178] sm:$0xff] }
 0x59a   :  { %11136 = vmatpush1.bf16.msra.mxu0 %v13959_v2  ;;  %11308 = vmatpush1.bf16.msra.mxu1 %v13961_v3  ;;  %v7887_v2 = vld [vmem:[#allocation8 + $0x78] sm:$0xff]  ;;  %v13499_v3 = vcombine.low %v7874_v38, %v7878_v43  ;;  %v7922_v38 = vld [vmem:[#allocation8 + $0x190] sm:$0xff] }
 0x59b   :  { %11137 = vmatprep.subr.bf16.mxu0 %v13968_v4  ;;  %11309 = vmatprep.subr.bf16.mxu1 %v13970_v5  ;;  %v13501_v4 = vcombine.low %v7875_v52, %v7879_v55  ;;  %v13508_v5 = vcombine.high %v7882_v51, %v7886_v47  ;;  %v13510_v1 = vcombine.high %v7883_v24, %v7887_v2  ;;  %v7926_v43 = vld [vmem:[#allocation8 + $0x1b0] sm:$0xff]  ;;  %v7923_v52 = vld [vmem:[#allocation8 + $0x198] sm:$0xff] }
 0x59c   :  { %v7927_v55 = vld [vmem:[#allocation8 + $0x1b8] sm:$0xff] }
 0x59e   :  { %11138 = vmatpush1.bf16.msra.mxu0 %v13967_v59  ;;  %11310 = vmatpush1.bf16.msra.mxu1 %v13969_v13  ;;  %v7895_v59 = vld [vmem:[#allocation8 + $0xb8] sm:$0xff]  ;;  %v13507_v13 = vcombine.low %v7882_v51, %v7886_v47  ;;  %v7930_v51 = vld [vmem:[#allocation8 + $0x1d0] sm:$0xff] }
 0x59f   :  { %11139 = vmatprep.subr.bf16.mxu0 %v13976_v16  ;;  %11311 = vmatprep.subr.bf16.mxu1 %v13978_v19  ;;  %v13509_v16 = vcombine.low %v7883_v24, %v7887_v2  ;;  %v13516_v19 = vcombine.high %v7890_v50, %v7894_v46  ;;  %v13518_v20 = vcombine.high %v7891_v57, %v7895_v59  ;;  %v7934_v47 = vld [vmem:[#allocation8 + $0x1f0] sm:$0xff]  ;;  %v7931_v24 = vld [vmem:[#allocation8 + $0x1d8] sm:$0xff] }
 0x5a0   :  { %v7935_v2 = vld [vmem:[#allocation8 + $0x1f8] sm:$0xff] }
 0x5a2   :  { %11140 = vmatpush1.bf16.msra.mxu0 %v13975_v25  ;;  %11312 = vmatpush1.bf16.msra.mxu1 %v13977_v26  ;;  %v7903_v25 = vld [vmem:[#allocation8 + $0xf8] sm:$0xff]  ;;  %v13515_v26 = vcombine.low %v7890_v50, %v7894_v46  ;;  %v7938_v50 = vld [vmem:[#allocation8 + $0x210] sm:$0xff] }
 0x5a3   :  { %11141 = vmatprep.subr.bf16.mxu0 %v13984_v28  ;;  %11313 = vmatprep.subr.bf16.mxu1 %v13986_v31  ;;  %v13517_v28 = vcombine.low %v7891_v57, %v7895_v59  ;;  %v13524_v31 = vcombine.high %v7898_v63, %v7902_v53  ;;  %v13526_v33 = vcombine.high %v7899_v22, %v7903_v25  ;;  %v7942_v46 = vld [vmem:[#allocation8 + $0x230] sm:$0xff]  ;;  %v7939_v57 = vld [vmem:[#allocation8 + $0x218] sm:$0xff] }
 0x5a4   :  { %v7943_v59 = vld [vmem:[#allocation8 + $0x238] sm:$0xff] }
 0x5a6   :  { %11142 = vmatpush1.bf16.msra.mxu0 %v13983_v44  ;;  %11314 = vmatpush1.bf16.msra.mxu1 %v13985_v0  ;;  %v13523_v44 = vcombine.low %v7898_v63, %v7902_v53  ;;  %v13525_v0 = vcombine.low %v7899_v22, %v7903_v25  ;;  %v7946_v63 = vld [vmem:[#allocation8 + $0x250] sm:$0xff]  ;;  %v7947_v22 = vld [vmem:[#allocation8 + $0x258] sm:$0xff] }
 0x5a7   :  { %11143 = vmatprep.subr.bf16.mxu0 %v13992_v35  ;;  %11315 = vmatprep.subr.bf16.mxu1 %v13994_v17  ;;  %v13532_v35 = vcombine.high %v7906_v34, %v7910_v48  ;;  %v7950_v53 = vld [vmem:[#allocation8 + $0x270] sm:$0xff]  ;;  %v7951_v25 = vld [vmem:[#allocation8 + $0x278] sm:$0xff] }
 0x5aa   :  { %11144 = vmatpush1.bf16.msra.mxu0 %v13991_v49  ;;  %11316 = vmatpush1.bf16.msra.mxu1 %v13993_v27  ;;  %v13531_v49 = vcombine.low %v7906_v34, %v7910_v48  ;;  %v7954_v34 = vld [vmem:[#allocation8 + $0x290] sm:$0xff] }
 0x5ab   :  { %11145 = vmatprep.subr.bf16.mxu0 %v14000_v29  ;;  %11317 = vmatprep.subr.bf16.mxu1 %v14002_v37  ;;  %v13540_v29 = vcombine.high %v7914_v11, %v7918_v41  ;;  %v13542_v37 = vcombine.high %v7915_v42, %v7919_v30  ;;  %v7958_v48 = vld [vmem:[#allocation8 + $0x2b0] sm:$0xff] }
 0x5ae   :  { %11146 = vmatpush1.bf16.msra.mxu0 %v13999_v56  ;;  %11318 = vmatpush1.bf16.msra.mxu1 %v14001_v39  ;;  %v13539_v56 = vcombine.low %v7914_v11, %v7918_v41  ;;  %v13541_v39 = vcombine.low %v7915_v42, %v7919_v30  ;;  %v7962_v11 = vld [vmem:[#allocation8 + $0x2d0] sm:$0xff]  ;;  %v7963_v42 = vld [vmem:[#allocation8 + $0x2d8] sm:$0xff] }
 0x5af   :  { %11330 = vmatprep.subr.bf16.mxu0 %v13500_v60  ;;  %11502 = vmatprep.subr.bf16.mxu1 %v13502_v61  ;;  %v13548_v60 = vcombine.high %v7922_v38, %v7926_v43  ;;  %v13550_v61 = vcombine.high %v7923_v52, %v7927_v55  ;;  %v7966_v41 = vld [vmem:[#allocation8 + $0x2f0] sm:$0xff]  ;;  %v7967_v30 = vld [vmem:[#allocation8 + $0x2f8] sm:$0xff] }
 0x5b1   :  { %11148 = vmatmul.mubr.bf16.vlgmr.msra.gmra.mrb[8].mxu0 %v15063_v8  ;;  %11320 = vmatmul.mubr.bf16.vlgmr.msra.gmra.mrb[8].mxu1 %v15063_v8 }
 0x5b2   :  { %11331 = vmatpush1.bf16.msra.mxu0 %v13499_v3  ;;  %11362 = vmatprep.mubr.bf16.mxu0 %v15023_v10  ;;  %v13547_v3 = vcombine.low %v7922_v38, %v7926_v43  ;;  %v7970_v38 = vld [vmem:[#allocation8 + $0x310] sm:$0xff] }
 0x5b3   :  { %11503 = vmatpush1.bf16.msra.mxu1 %v13501_v4  ;;  %11534 = vmatprep.mubr.bf16.mxu1 %v15023_v10  ;;  %v7907_v10 = vld [vmem:[#allocation8 + $0x118] sm:$0xff]  ;;  %v13549_v4 = vcombine.low %v7923_v52, %v7927_v55  ;;  %v7974_v43 = vld [vmem:[#allocation8 + $0x330] sm:$0xff] }
 0x5b4   :  { %11332 = vmatprep.subr.bf16.mxu0 %v13508_v5  ;;  %11504 = vmatprep.subr.bf16.mxu1 %v13510_v1  ;;  %v13534_v17 = vcombine.high %v7907_v10, %v7911_v62  ;;  %v13533_v27 = vcombine.low %v7907_v10, %v7911_v62  ;;  %v13556_v5 = vcombine.high %v7930_v51, %v7934_v47  ;;  %v7955_v10 = vld [vmem:[#allocation8 + $0x298] sm:$0xff] }
 0x5b5   :  { %v13558_v1 = vcombine.high %v7931_v24, %v7935_v2  ;;  %v7959_v62 = vld [vmem:[#allocation8 + $0x2b8] sm:$0xff] }
 0x5b6   :  { %11333 = vmatpush1.bf16.msra.mxu0 %v13507_v13  ;;  %v13555_v13 = vcombine.low %v7930_v51, %v7934_v47  ;;  %v7971_v52 = vld [vmem:[#allocation8 + $0x318] sm:$0xff]  ;;  %v7978_v51 = vld [vmem:[#allocation8 + $0x350] sm:$0xff] }
 0x5b7   :  { %11505 = vmatpush1.bf16.msra.mxu1 %v13509_v16  ;;  %11334 = vmatprep.subr.bf16.mxu0 %v13516_v19  ;;  %v13557_v16 = vcombine.low %v7931_v24, %v7935_v2  ;;  %v13564_v19 = vcombine.high %v7938_v50, %v7942_v46  ;;  %v7975_v55 = vld [vmem:[#allocation8 + $0x338] sm:$0xff]  ;;  %v7982_v47 = vld [vmem:[#allocation8 + $0x370] sm:$0xff] }
 0x5b8   :  { %11506 = vmatprep.subr.bf16.mxu1 %v13518_v20  ;;  %v13566_v20 = vcombine.high %v7939_v57, %v7943_v59  ;;  %v7979_v24 = vld [vmem:[#allocation8 + $0x358] sm:$0xff] }
 0x5b9   :  { %v7983_v2 = vld [vmem:[#allocation8 + $0x378] sm:$0xff] }
 0x5ba   :  { %11335 = vmatpush1.bf16.msra.mxu0 %v13515_v26  ;;  %v13563_v26 = vcombine.low %v7938_v50, %v7942_v46  ;;  %v7986_v50 = vld [vmem:[#allocation8 + $0x390] sm:$0xff] }
 0x5bb   :  { %11507 = vmatpush1.bf16.msra.mxu1 %v13517_v28  ;;  %11336 = vmatprep.subr.bf16.mxu0 %v13524_v31  ;;  %v13565_v28 = vcombine.low %v7939_v57, %v7943_v59  ;;  %v13572_v31 = vcombine.high %v7946_v63, %v7950_v53  ;;  %v7990_v46 = vld [vmem:[#allocation8 + $0x3b0] sm:$0xff]  ;;  %v7987_v57 = vld [vmem:[#allocation8 + $0x398] sm:$0xff] }
 0x5bc   :  { %11508 = vmatprep.subr.bf16.mxu1 %v13526_v33  ;;  %v13574_v33 = vcombine.high %v7947_v22, %v7951_v25  ;;  %v7991_v59 = vld [vmem:[#allocation8 + $0x3b8] sm:$0xff] }
 0x5be   :  { %11337 = vmatpush1.bf16.msra.mxu0 %v13523_v44  ;;  %v13571_v44 = vcombine.low %v7946_v63, %v7950_v53  ;;  %v7994_v63 = vld [vmem:[#allocation8 + $0x3d0] sm:$0xff] }
 0x5bf   :  { %11509 = vmatpush1.bf16.msra.mxu1 %v13525_v0  ;;  %11338 = vmatprep.subr.bf16.mxu0 %v13532_v35  ;;  %v13573_v0 = vcombine.low %v7947_v22, %v7951_v25  ;;  %v13580_v35 = vcombine.high %v7954_v34, %v7958_v48  ;;  %v7998_v53 = vld [vmem:[#allocation8 + $0x3f0] sm:$0xff]  ;;  %v7995_v22 = vld [vmem:[#allocation8 + $0x3d8] sm:$0xff] }
 0x5c0   :  { %11510 = vmatprep.subr.bf16.mxu1 %v13534_v17  ;;  %v13582_v17 = vcombine.high %v7955_v10, %v7959_v62  ;;  %v7999_v25 = vld [vmem:[#allocation8 + $0x3f8] sm:$0xff] }
 0x5c2   :  { %11339 = vmatpush1.bf16.msra.mxu0 %v13531_v49  ;;  %v13579_v49 = vcombine.low %v7954_v34, %v7958_v48  ;;  %v8002_v34 = vld [vmem:[#allocation8 + $0x410] sm:$0xff] }
 0x5c3   :  { %11511 = vmatpush1.bf16.msra.mxu1 %v13533_v27  ;;  %11340 = vmatprep.subr.bf16.mxu0 %v13540_v29  ;;  %v13581_v27 = vcombine.low %v7955_v10, %v7959_v62  ;;  %v13588_v29 = vcombine.high %v7962_v11, %v7966_v41  ;;  %v8006_v48 = vld [vmem:[#allocation8 + $0x430] sm:$0xff]  ;;  %v8003_v10 = vld [vmem:[#allocation8 + $0x418] sm:$0xff] }
 0x5c4   :  { %11512 = vmatprep.subr.bf16.mxu1 %v13542_v37  ;;  %v13590_v37 = vcombine.high %v7963_v42, %v7967_v30  ;;  %v8007_v62 = vld [vmem:[#allocation8 + $0x438] sm:$0xff] }
 0x5c6   :  { %11341 = vmatpush1.bf16.msra.mxu0 %v13539_v56  ;;  %v13587_v56 = vcombine.low %v7962_v11, %v7966_v41  ;;  %v8010_v11 = vld [vmem:[#allocation8 + $0x450] sm:$0xff] }
 0x5c7   :  { %11513 = vmatpush1.bf16.msra.mxu1 %v13541_v39  ;;  %11342 = vmatprep.subr.bf16.mxu0 %v13548_v60  ;;  %v13589_v39 = vcombine.low %v7963_v42, %v7967_v30  ;;  %v13596_v60 = vcombine.high %v7970_v38, %v7974_v43  ;;  %v8014_v41 = vld [vmem:[#allocation8 + $0x470] sm:$0xff]  ;;  %v13627_v42 = vcombine.low %v8002_v34, %v8006_v48  ;;  %v8011_v30 = vld [vmem:[#allocation8 + $0x458] sm:$0xff] }
 0x5c8   :  { %11514 = vmatprep.subr.bf16.mxu1 %v13550_v61  ;;  %v13598_v61 = vcombine.high %v7971_v52, %v7975_v55 }
 0x5ca   :  { %11343 = vmatpush1.bf16.msra.mxu0 %v13547_v3  ;;  %v13595_v3 = vcombine.low %v7970_v38, %v7974_v43  ;;  %v8022_v38 = vld [vmem:[#allocation8 + $0x4b0] sm:$0xff] }
 0x5cb   :  { %11515 = vmatpush1.bf16.msra.mxu1 %v13549_v4  ;;  %11344 = vmatprep.subr.bf16.mxu0 %v13556_v5  ;;  %v13597_v4 = vcombine.low %v7971_v52, %v7975_v55  ;;  %v13604_v5 = vcombine.high %v7978_v51, %v7982_v47  ;;  %v8019_v52 = vld [vmem:[#allocation8 + $0x498] sm:$0xff] }
 0x5cc   :  { %11516 = vmatprep.subr.bf16.mxu1 %v13558_v1  ;;  %v13606_v1 = vcombine.high %v7979_v24, %v7983_v2  ;;  %v8023_v55 = vld [vmem:[#allocation8 + $0x4b8] sm:$0xff] }
 0x5ce   :  { %11345 = vmatpush1.bf16.msra.mxu0 %v13555_v13  ;;  %v13603_v13 = vcombine.low %v7978_v51, %v7982_v47  ;;  %v8026_v51 = vld [vmem:[#allocation8 + $0x4d0] sm:$0xff] }
 0x5cf   :  { %11517 = vmatpush1.bf16.msra.mxu1 %v13557_v16  ;;  %11346 = vmatprep.subr.bf16.mxu0 %v13564_v19  ;;  %v13605_v16 = vcombine.low %v7979_v24, %v7983_v2  ;;  %v13612_v19 = vcombine.high %v7986_v50, %v7990_v46  ;;  %v8030_v47 = vld [vmem:[#allocation8 + $0x4f0] sm:$0xff]  ;;  %v8027_v24 = vld [vmem:[#allocation8 + $0x4d8] sm:$0xff] }
 0x5d0   :  { %11518 = vmatprep.subr.bf16.mxu1 %v13566_v20  ;;  %v13614_v20 = vcombine.high %v7987_v57, %v7991_v59  ;;  %v8031_v2 = vld [vmem:[#allocation8 + $0x4f8] sm:$0xff] }
 0x5d2   :  { %11347 = vmatpush1.bf16.msra.mxu0 %v13563_v26  ;;  %v13611_v26 = vcombine.low %v7986_v50, %v7990_v46  ;;  %v8038_v50 = vld [vmem:[#allocation8 + $0x530] sm:$0xff]  ;;  %v8035_v46 = vld [vmem:[#allocation8 + $0x518] sm:$0xff] }
 0x5d3   :  { %11519 = vmatpush1.bf16.msra.mxu1 %v13565_v28  ;;  %11348 = vmatprep.subr.bf16.mxu0 %v13572_v31  ;;  %v13613_v28 = vcombine.low %v7987_v57, %v7991_v59  ;;  %v13620_v31 = vcombine.high %v7994_v63, %v7998_v53  ;;  %v8039_v57 = vld [vmem:[#allocation8 + $0x538] sm:$0xff]  ;;  %v13653_v59 = vcombine.low %v8027_v24, %v8031_v2 }
 0x5d4   :  { %11520 = vmatprep.subr.bf16.mxu1 %v13574_v33  ;;  %v13622_v33 = vcombine.high %v7995_v22, %v7999_v25 }
 0x5d6   :  { %11349 = vmatpush1.bf16.msra.mxu0 %v13571_v44  ;;  %v13619_v44 = vcombine.low %v7994_v63, %v7998_v53  ;;  %v8043_v63 = vld [vmem:[#allocation8 + $0x558] sm:$0xff] }
 0x5d7   :  { %11521 = vmatpush1.bf16.msra.mxu1 %v13573_v0  ;;  %11350 = vmatprep.subr.bf16.mxu0 %v13580_v35  ;;  %v13621_v0 = vcombine.low %v7995_v22, %v7999_v25  ;;  %v13628_v35 = vcombine.high %v8002_v34, %v8006_v48  ;;  %v8047_v53 = vld [vmem:[#allocation8 + $0x578] sm:$0xff]  ;;  %v13661_v25 = vcombine.low %v8035_v46, %v8039_v57 }
 0x5d8   :  { %11522 = vmatprep.subr.bf16.mxu1 %v13582_v17  ;;  %v13630_v17 = vcombine.high %v8003_v10, %v8007_v62  ;;  %v8051_v34 = vld [vmem:[#allocation8 + $0x598] sm:$0xff] }
 0x5d9   :  { %v8055_v48 = vld [vmem:[#allocation8 + $0x5b8] sm:$0xff] }
 0x5da   :  { %11351 = vmatpush1.bf16.msra.mxu0 %v13579_v49  ;;  %v8015_v49 = vld [vmem:[#allocation8 + $0x478] sm:$0xff] }
 0x5db   :  { %11523 = vmatpush1.bf16.msra.mxu1 %v13581_v27  ;;  %11352 = vmatprep.subr.bf16.mxu0 %v13588_v29  ;;  %v13629_v27 = vcombine.low %v8003_v10, %v8007_v62  ;;  %v13636_v29 = vcombine.high %v8010_v11, %v8014_v41  ;;  %v13638_v43 = vcombine.high %v8011_v30, %v8015_v49 }
 0x5dc   :  { %11524 = vmatprep.subr.bf16.mxu1 %v13590_v37  ;;  %v8018_v37 = vld [vmem:[#allocation8 + $0x490] sm:$0xff]  ;;  %v13669_v62 = vcombine.low %v8043_v63, %v8047_v53 }
 0x5de   :  { %11353 = vmatpush1.bf16.msra.mxu0 %v13587_v56  ;;  %v13635_v56 = vcombine.low %v8010_v11, %v8014_v41  ;;  %v8059_v11 = vld [vmem:[#allocation8 + $0x5d8] sm:$0xff] }
 0x5df   :  { %11525 = vmatpush1.bf16.msra.mxu1 %v13589_v39  ;;  %11354 = vmatprep.subr.bf16.mxu0 %v13596_v60  ;;  %v13637_v39 = vcombine.low %v8011_v30, %v8015_v49  ;;  %v13644_v60 = vcombine.high %v8018_v37, %v8022_v38  ;;  %v8063_v41 = vld [vmem:[#allocation8 + $0x5f8] sm:$0xff]  ;;  %v13677_v30 = vcombine.low %v8051_v34, %v8055_v48 }
 0x5e0   :  { %11526 = vmatprep.subr.bf16.mxu1 %v13598_v61  ;;  %v13646_v61 = vcombine.high %v8019_v52, %v8023_v55 }
 0x5e2   :  { %11355 = vmatpush1.bf16.msra.mxu0 %v13595_v3  ;;  %v13643_v3 = vcombine.low %v8018_v37, %v8022_v38  ;;  %v8070_v37 = vld [vmem:[#allocation8 + $0x630] sm:$0xff]  ;;  %v8067_v38 = vld [vmem:[#allocation8 + $0x618] sm:$0xff] }
 0x5e3   :  { %11527 = vmatpush1.bf16.msra.mxu1 %v13597_v4  ;;  %11356 = vmatprep.subr.bf16.mxu0 %v13604_v5  ;;  %v13652_v4 = vcombine.high %v8026_v51, %v8030_v47  ;;  %v13654_v5 = vcombine.high %v8027_v24, %v8031_v2 }
 0x5e4   :  { %11528 = vmatprep.subr.bf16.mxu1 %v13606_v1  ;;  %v8034_v1 = vld [vmem:[#allocation8 + $0x510] sm:$0xff] }
 0x5e5   :  { %v13659_v22 = vcombine.low %v8034_v1, %v8038_v50 }
 0x5e6   :  { %11357 = vmatpush1.bf16.msra.mxu0 %v13603_v13  ;;  %v13660_v13 = vcombine.high %v8034_v1, %v8038_v50  ;;  %v8083_v1 = vld [vmem:[#allocation8 + $0x698] sm:$0xff] }
 0x5e7   :  { %11529 = vmatpush1.bf16.msra.mxu1 %v13605_v16  ;;  %11358 = vmatprep.subr.bf16.mxu0 %v13612_v19  ;;  %v13662_v16 = vcombine.high %v8035_v46, %v8039_v57  ;;  %v8042_v19 = vld [vmem:[#allocation8 + $0x550] sm:$0xff]  ;;  %v8087_v50 = vld [vmem:[#allocation8 + $0x6b8] sm:$0xff] }
 0x5e8   :  { %11530 = vmatprep.subr.bf16.mxu1 %v13614_v20  ;;  %v8046_v20 = vld [vmem:[#allocation8 + $0x570] sm:$0xff] }
 0x5e9   :  { %v13667_v10 = vcombine.low %v8042_v19, %v8046_v20 }
 0x5ea   :  { %11359 = vmatpush1.bf16.msra.mxu0 %v13611_v26  ;;  %v13668_v26 = vcombine.high %v8042_v19, %v8046_v20  ;;  %v8091_v19 = vld [vmem:[#allocation8 + $0x6d8] sm:$0xff] }
 0x5eb   :  { %11531 = vmatpush1.bf16.msra.mxu1 %v13613_v28  ;;  %11360 = vmatprep.subr.bf16.mxu0 %v13620_v31  ;;  %v13670_v28 = vcombine.high %v8043_v63, %v8047_v53  ;;  %v8050_v31 = vld [vmem:[#allocation8 + $0x590] sm:$0xff]  ;;  %v8095_v20 = vld [vmem:[#allocation8 + $0x6f8] sm:$0xff]  ;;  %v13709_v53 = vcombine.low %v8083_v1, %v8087_v50 }
 0x5ec   :  { %11532 = vmatprep.subr.bf16.mxu1 %v13622_v33  ;;  %v8054_v33 = vld [vmem:[#allocation8 + $0x5b0] sm:$0xff] }
 0x5ee   :  { %11361 = vmatpush1.bf16.msra.mxu0 %v13619_v44  ;;  %v13676_v44 = vcombine.high %v8050_v31, %v8054_v33 }
 0x5ef   :  { %11533 = vmatpush1.bf16.msra.mxu1 %v13621_v0  ;;  %11373 = vmatprep.subr.bf16.mxu0 %v13628_v35  ;;  %v13678_v0 = vcombine.high %v8051_v34, %v8055_v48  ;;  %v8058_v35 = vld [vmem:[#allocation8 + $0x5d0] sm:$0xff]  ;;  %v13717_v48 = vcombine.low %v8091_v19, %v8095_v20 }
 0x5f0   :  { %11545 = vmatprep.subr.bf16.mxu1 %v13630_v17  ;;  %v8062_v17 = vld [vmem:[#allocation8 + $0x5f0] sm:$0xff] }
 0x5f1   :  { %11363 = vmatmul.mubr.bf16.vlgmr.msra.gmra.mrb[12].mxu0 %v15019_v23  ;;  %v13684_v49 = vcombine.high %v8058_v35, %v8062_v17 }
 0x5f2   :  { %11535 = vmatmul.mubr.bf16.vlgmr.msra.gmra.mrb[12].mxu1 %v15019_v23  ;;  %11374 = vmatpush1.bf16.msra.mxu0 %v13627_v42  ;;  %v13645_v23 = vcombine.low %v8019_v52, %v8023_v55  ;;  %v13675_v42 = vcombine.low %v8050_v31, %v8054_v33  ;;  %v13683_v52 = vcombine.low %v8058_v35, %v8062_v17  ;;  %v8099_v31 = vld [vmem:[#allocation8 + $0x718] sm:$0xff] }
 0x5f3   :  { %11405 = vmatprep.mubr.bf16.mxu0 %v15025_v40  ;;  %11546 = vmatpush1.bf16.msra.mxu1 %v13629_v27  ;;  %v13686_v27 = vcombine.high %v8059_v11, %v8063_v41  ;;  %v13685_v55 = vcombine.low %v8059_v11, %v8063_v41  ;;  %v8103_v33 = vld [vmem:[#allocation8 + $0x738] sm:$0xff] }
 0x5f4   :  { %11577 = vmatprep.mubr.bf16.mxu1 %v15025_v40  ;;  %11375 = vmatprep.subr.bf16.mxu0 %v13636_v29  ;;  %v13651_v40 = vcombine.low %v8026_v51, %v8030_v47  ;;  %v8066_v29 = vld [vmem:[#allocation8 + $0x610] sm:$0xff]  ;;  %v8075_v51 = vld [vmem:[#allocation8 + $0x658] sm:$0xff]  ;;  %v13725_v41 = vcombine.low %v8099_v31, %v8103_v33 }
 0x5f5   :  { %11547 = vmatprep.subr.bf16.mxu1 %v13638_v43  ;;  %v8071_v43 = vld [vmem:[#allocation8 + $0x638] sm:$0xff]  ;;  %v13691_v24 = vcombine.low %v8066_v29, %v8070_v37 }
 0x5f6   :  { %11376 = vmatpush1.bf16.msra.mxu0 %v13635_v56  ;;  %v13692_v56 = vcombine.high %v8066_v29, %v8070_v37  ;;  %v8079_v47 = vld [vmem:[#allocation8 + $0x678] sm:$0xff]  ;;  %v13693_v2 = vcombine.low %v8067_v38, %v8071_v43 }
 0x5f7   :  { %11548 = vmatpush1.bf16.msra.mxu1 %v13637_v39  ;;  %11377 = vmatprep.subr.bf16.mxu0 %v13644_v60  ;;  %v13694_v39 = vcombine.high %v8067_v38, %v8071_v43  ;;  %v8074_v60 = vld [vmem:[#allocation8 + $0x650] sm:$0xff]  ;;  %v13701_v57 = vcombine.low %v8075_v51, %v8079_v47  ;;  %v8107_v35 = vld [vmem:[#allocation8 + $0x758] sm:$0xff] }
 0x5f8   :  { %11549 = vmatprep.subr.bf16.mxu1 %v13646_v61  ;;  %v8078_v61 = vld [vmem:[#allocation8 + $0x670] sm:$0xff]  ;;  %v8111_v17 = vld [vmem:[#allocation8 + $0x778] sm:$0xff] }
 0x5f9   :  { %v13699_v46 = vcombine.low %v8074_v60, %v8078_v61  ;;  %v8115_v29 = vld [vmem:[#allocation8 + $0x798] sm:$0xff]  ;;  %v13733_v43 = vcombine.low %v8107_v35, %v8111_v17 }
 0x5fa   :  { %11378 = vmatpush1.bf16.msra.mxu0 %v13643_v3  ;;  %v13700_v3 = vcombine.high %v8074_v60, %v8078_v61  ;;  %v8119_v37 = vld [vmem:[#allocation8 + $0x7b8] sm:$0xff] }
 0x5fb   :  { %11550 = vmatpush1.bf16.msra.mxu1 %v13645_v23  ;;  %11379 = vmatprep.subr.bf16.mxu0 %v13652_v4  ;;  %v13702_v23 = vcombine.high %v8075_v51, %v8079_v47  ;;  %v8082_v4 = vld [vmem:[#allocation8 + $0x690] sm:$0xff]  ;;  %v8123_v60 = vld [vmem:[#allocation8 + $0x7d8] sm:$0xff]  ;;  %v13741_v47 = vcombine.low %v8115_v29, %v8119_v37 }
 0x5fc   :  { %11551 = vmatprep.subr.bf16.mxu1 %v13654_v5  ;;  %v8086_v5 = vld [vmem:[#allocation8 + $0x6b0] sm:$0xff]  ;;  %v8127_v61 = vld [vmem:[#allocation8 + $0x7f8] sm:$0xff] }
 0x5fd   :  { %v13707_v63 = vcombine.low %v8082_v4, %v8086_v5 }
 0x5fe   :  { %11380 = vmatpush1.bf16.msra.mxu0 %v13651_v40  ;;  %v13708_v40 = vcombine.high %v8082_v4, %v8086_v5  ;;  %v8131_v4 = vld [vmem:[#allocation8 + $0x818] sm:$0xff] }
 0x5ff   :  { %11552 = vmatpush1.bf16.msra.mxu1 %v13653_v59  ;;  %11381 = vmatprep.subr.bf16.mxu0 %v13660_v13  ;;  %v13710_v59 = vcombine.high %v8083_v1, %v8087_v50  ;;  %v8090_v13 = vld [vmem:[#allocation8 + $0x6d0] sm:$0xff]  ;;  %v8135_v5 = vld [vmem:[#allocation8 + $0x838] sm:$0xff]  ;;  %v13749_v50 = vcombine.low %v8123_v60, %v8127_v61 }
 0x600   :  { %11553 = vmatprep.subr.bf16.mxu1 %v13662_v16  ;;  %v8094_v16 = vld [vmem:[#allocation8 + $0x6f0] sm:$0xff] }
 0x601   :  { %v13715_v34 = vcombine.low %v8090_v13, %v8094_v16 }
 0x602   :  { %11382 = vmatpush1.bf16.msra.mxu0 %v13659_v22  ;;  %v13716_v22 = vcombine.high %v8090_v13, %v8094_v16  ;;  %v8139_v16 = vld [vmem:[#allocation8 + $0x858] sm:$0xff] }
 0x603   :  { %11554 = vmatpush1.bf16.msra.mxu1 %v13661_v25  ;;  %11383 = vmatprep.subr.bf16.mxu0 %v13668_v26  ;;  %v13718_v25 = vcombine.high %v8091_v19, %v8095_v20  ;;  %v8098_v26 = vld [vmem:[#allocation8 + $0x710] sm:$0xff]  ;;  %v8143_v19 = vld [vmem:[#allocation8 + $0x878] sm:$0xff]  ;;  %v13757_v20 = vcombine.low %v8131_v4, %v8135_v5 }
 0x604   :  { %11555 = vmatprep.subr.bf16.mxu1 %v13670_v28  ;;  %v8102_v28 = vld [vmem:[#allocation8 + $0x730] sm:$0xff] }
 0x605   :  { %v13723_v11 = vcombine.low %v8098_v26, %v8102_v28 }
 0x606   :  { %11384 = vmatpush1.bf16.msra.mxu0 %v13667_v10  ;;  %v13724_v10 = vcombine.high %v8098_v26, %v8102_v28  ;;  %v8147_v26 = vld [vmem:[#allocation8 + $0x898] sm:$0xff] }
 0x607   :  { %11556 = vmatpush1.bf16.msra.mxu1 %v13669_v62  ;;  %11385 = vmatprep.subr.bf16.mxu0 %v13676_v44  ;;  %v13726_v62 = vcombine.high %v8099_v31, %v8103_v33  ;;  %v8106_v44 = vld [vmem:[#allocation8 + $0x750] sm:$0xff]  ;;  %v8151_v28 = vld [vmem:[#allocation8 + $0x8b8] sm:$0xff]  ;;  %v13765_v33 = vcombine.low %v8139_v16, %v8143_v19 }
 0x608   :  { %11557 = vmatprep.subr.bf16.mxu1 %v13678_v0  ;;  %v8110_v0 = vld [vmem:[#allocation8 + $0x770] sm:$0xff] }
 0x609   :  { %v13731_v38 = vcombine.low %v8106_v44, %v8110_v0 }
 0x60a   :  { %11386 = vmatpush1.bf16.msra.mxu0 %v13675_v42  ;;  %v13732_v42 = vcombine.high %v8106_v44, %v8110_v0  ;;  %v8155_v44 = vld [vmem:[#allocation8 + $0x8d8] sm:$0xff] }
 0x60b   :  { %11558 = vmatpush1.bf16.msra.mxu1 %v13677_v30  ;;  %11387 = vmatprep.subr.bf16.mxu0 %v13684_v49  ;;  %v13734_v30 = vcombine.high %v8107_v35, %v8111_v17  ;;  %v8114_v49 = vld [vmem:[#allocation8 + $0x790] sm:$0xff]  ;;  %v8159_v0 = vld [vmem:[#allocation8 + $0x8f8] sm:$0xff] }
 0x60c   :  { %11559 = vmatprep.subr.bf16.mxu1 %v13686_v27  ;;  %v8118_v27 = vld [vmem:[#allocation8 + $0x7b0] sm:$0xff] }
 0x60d   :  { %v13739_v51 = vcombine.low %v8114_v49, %v8118_v27 }
 0x60e   :  { %11388 = vmatpush1.bf16.msra.mxu0 %v13683_v52  ;;  %v13740_v52 = vcombine.high %v8114_v49, %v8118_v27  ;;  %v8167_v49 = vld [vmem:[#allocation8 + $0x938] sm:$0xff]  ;;  %v13781_v27 = vcombine.low %v8155_v44, %v8159_v0 }
 0x60f   :  { %11560 = vmatpush1.bf16.msra.mxu1 %v13685_v55  ;;  %11389 = vmatprep.subr.bf16.mxu0 %v13692_v56  ;;  %v13742_v55 = vcombine.high %v8115_v29, %v8119_v37  ;;  %v8122_v56 = vld [vmem:[#allocation8 + $0x7d0] sm:$0xff] }
 0x610   :  { %11561 = vmatprep.subr.bf16.mxu1 %v13694_v39  ;;  %v8126_v39 = vld [vmem:[#allocation8 + $0x7f0] sm:$0xff] }
 0x611   :  { %v13747_v1 = vcombine.low %v8122_v56, %v8126_v39 }
 0x612   :  { %11390 = vmatpush1.bf16.msra.mxu0 %v13691_v24  ;;  %v13748_v24 = vcombine.high %v8122_v56, %v8126_v39 }
 0x613   :  { %11562 = vmatpush1.bf16.msra.mxu1 %v13693_v2  ;;  %11391 = vmatprep.subr.bf16.mxu0 %v13700_v3  ;;  %v13750_v2 = vcombine.high %v8123_v60, %v8127_v61  ;;  %v8130_v3 = vld [vmem:[#allocation8 + $0x810] sm:$0xff] }
 0x614   :  { %11563 = vmatprep.subr.bf16.mxu1 %v13702_v23  ;;  %v8134_v23 = vld [vmem:[#allocation8 + $0x830] sm:$0xff] }
 0x615   :  { %v13755_v13 = vcombine.low %v8130_v3, %v8134_v23 }
 0x616   :  { %11392 = vmatpush1.bf16.msra.mxu0 %v13699_v46  ;;  %v13756_v46 = vcombine.high %v8130_v3, %v8134_v23 }
 0x617   :  { %11564 = vmatpush1.bf16.msra.mxu1 %v13701_v57  ;;  %11393 = vmatprep.subr.bf16.mxu0 %v13708_v40  ;;  %v13758_v57 = vcombine.high %v8131_v4, %v8135_v5  ;;  %v8138_v40 = vld [vmem:[#allocation8 + $0x850] sm:$0xff] }
 0x618   :  { %11565 = vmatprep.subr.bf16.mxu1 %v13710_v59  ;;  %v8142_v59 = vld [vmem:[#allocation8 + $0x870] sm:$0xff] }
 0x619   :  { %v13763_v31 = vcombine.low %v8138_v40, %v8142_v59 }
 0x61a   :  { %11394 = vmatpush1.bf16.msra.mxu0 %v13707_v63  ;;  %v13764_v63 = vcombine.high %v8138_v40, %v8142_v59 }
 0x61b   :  { %11566 = vmatpush1.bf16.msra.mxu1 %v13709_v53  ;;  %11395 = vmatprep.subr.bf16.mxu0 %v13716_v22  ;;  %v8146_v53 = vld [vmem:[#allocation8 + $0x890] sm:$0xff] }
 0x61c   :  { %11567 = vmatprep.subr.bf16.mxu1 %v13718_v25  ;;  %v8150_v22 = vld [vmem:[#allocation8 + $0x8b0] sm:$0xff]  ;;  %v13766_v25 = vcombine.high %v8139_v16, %v8143_v19 }
 0x61d   :  { %v13771_v35 = vcombine.low %v8146_v53, %v8150_v22  ;;  %v8194_v19 = vld [vmem:[#allocation8 + $0xa10] sm:$0xff] }
 0x61e   :  { %11396 = vmatpush1.bf16.msra.mxu0 %v13715_v34  ;;  %v13772_v34 = vcombine.high %v8146_v53, %v8150_v22  ;;  %v8199_v53 = vld [vmem:[#allocation8 + $0xa38] sm:$0xff] }
 0x61f   :  { %11568 = vmatpush1.bf16.msra.mxu1 %v13717_v48  ;;  %11397 = vmatprep.subr.bf16.mxu0 %v13724_v10  ;;  %v13774_v48 = vcombine.high %v8147_v26, %v8151_v28  ;;  %v8154_v10 = vld [vmem:[#allocation8 + $0x8d0] sm:$0xff] }
 0x620   :  { %11569 = vmatprep.subr.bf16.mxu1 %v13726_v62  ;;  %v8158_v62 = vld [vmem:[#allocation8 + $0x8f0] sm:$0xff] }
 0x621   :  { %v13780_v17 = vcombine.high %v8154_v10, %v8158_v62 }
 0x622   :  { %11398 = vmatpush1.bf16.msra.mxu0 %v13723_v11  ;;  %v13782_v11 = vcombine.high %v8155_v44, %v8159_v0 }
 0x623   :  { %11570 = vmatpush1.bf16.msra.mxu1 %v13725_v41  ;;  %11399 = vmatprep.subr.bf16.mxu0 %v13732_v42  ;;  %v8162_v41 = vld [vmem:[#allocation8 + $0x910] sm:$0xff] }
 0x624   :  { %11571 = vmatprep.subr.bf16.mxu1 %v13734_v30  ;;  %v8166_v42 = vld [vmem:[#allocation8 + $0x930] sm:$0xff]  ;;  %v8163_v30 = vld [vmem:[#allocation8 + $0x918] sm:$0xff] }
 0x625   :  { %v13788_v29 = vcombine.high %v8162_v41, %v8166_v42  ;;  %v13790_v37 = vcombine.high %v8163_v30, %v8167_v49  ;;  %v13787_v56 = vcombine.low %v8162_v41, %v8166_v42  ;;  %v13789_v39 = vcombine.low %v8163_v30, %v8167_v49 }
 0x626   :  { %11400 = vmatpush1.bf16.msra.mxu0 %v13731_v38  ;;  %v8170_v38 = vld [vmem:[#allocation8 + $0x950] sm:$0xff] }
 0x627   :  { %11572 = vmatpush1.bf16.msra.mxu1 %v13733_v43  ;;  %11401 = vmatprep.subr.bf16.mxu0 %v13740_v52  ;;  %v8174_v43 = vld [vmem:[#allocation8 + $0x970] sm:$0xff]  ;;  %v8171_v52 = vld [vmem:[#allocation8 + $0x958] sm:$0xff] }
 0x628   :  { %11573 = vmatprep.subr.bf16.mxu1 %v13742_v55  ;;  %v8175_v55 = vld [vmem:[#allocation8 + $0x978] sm:$0xff]  ;;  %v13796_v60 = vcombine.high %v8170_v38, %v8174_v43  ;;  %v13795_v3 = vcombine.low %v8170_v38, %v8174_v43 }
 0x629   :  { %v13798_v61 = vcombine.high %v8171_v52, %v8175_v55  ;;  %v13797_v23 = vcombine.low %v8171_v52, %v8175_v55 }
 0x62a   :  { %11402 = vmatpush1.bf16.msra.mxu0 %v13739_v51  ;;  %v8178_v51 = vld [vmem:[#allocation8 + $0x990] sm:$0xff] }
 0x62b   :  { %11574 = vmatpush1.bf16.msra.mxu1 %v13741_v47  ;;  %11403 = vmatprep.subr.bf16.mxu0 %v13748_v24  ;;  %v8182_v47 = vld [vmem:[#allocation8 + $0x9b0] sm:$0xff]  ;;  %v8179_v24 = vld [vmem:[#allocation8 + $0x998] sm:$0xff] }
 0x62c   :  { %11575 = vmatprep.subr.bf16.mxu1 %v13750_v2  ;;  %v8183_v2 = vld [vmem:[#allocation8 + $0x9b8] sm:$0xff]  ;;  %v13804_v4 = vcombine.high %v8178_v51, %v8182_v47  ;;  %v13803_v40 = vcombine.low %v8178_v51, %v8182_v47 }
 0x62d   :  { %v13806_v5 = vcombine.high %v8179_v24, %v8183_v2  ;;  %v13805_v59 = vcombine.low %v8179_v24, %v8183_v2 }
 0x62e   :  { %11404 = vmatpush1.bf16.msra.mxu0 %v13747_v1  ;;  %v8186_v1 = vld [vmem:[#allocation8 + $0x9d0] sm:$0xff] }
 0x62f   :  { %11576 = vmatpush1.bf16.msra.mxu1 %v13749_v50  ;;  %11416 = vmatprep.subr.bf16.mxu0 %v13756_v46  ;;  %v8190_v50 = vld [vmem:[#allocation8 + $0x9f0] sm:$0xff]  ;;  %v8187_v46 = vld [vmem:[#allocation8 + $0x9d8] sm:$0xff] }
 0x630   :  { %11588 = vmatprep.subr.bf16.mxu1 %v13758_v57  ;;  %v8191_v57 = vld [vmem:[#allocation8 + $0x9f8] sm:$0xff]  ;;  %v13811_v22 = vcombine.low %v8186_v1, %v8190_v50 }
 0x631   :  { %11406 = vmatmul.mubr.bf16.vlgmr.msra.gmra.mrb[12].mxu0 %v15021_v58  ;;  %v13814_v16 = vcombine.high %v8187_v46, %v8191_v57 }
 0x632   :  { %11578 = vmatmul.mubr.bf16.vlgmr.msra.gmra.mrb[12].mxu1 %v15021_v58  ;;  %11417 = vmatpush1.bf16.msra.mxu0 %v13755_v13  ;;  %v13773_v58 = vcombine.low %v8147_v26, %v8151_v28  ;;  %v13812_v13 = vcombine.high %v8186_v1, %v8190_v50 }
 0x633   :  { %11448 = vmatprep.mubr.bf16.mxu0 %v15065_v21  ;;  %11589 = vmatpush1.bf16.msra.mxu1 %v13757_v20  ;;  %v8198_v20 = vld [vmem:[#allocation8 + $0xa30] sm:$0xff] }
 0x634   :  { %11620 = vmatprep.mubr.bf16.mxu1 %v15065_v21  ;;  %11418 = vmatprep.subr.bf16.mxu0 %v13764_v63  ;;  %v13779_v21 = vcombine.low %v8154_v10, %v8158_v62  ;;  %v8195_v63 = vld [vmem:[#allocation8 + $0xa18] sm:$0xff]  ;;  %v13820_v26 = vcombine.high %v8194_v19, %v8198_v20  ;;  %v13819_v10 = vcombine.low %v8194_v19, %v8198_v20 }
 0x635   :  { %11590 = vmatprep.subr.bf16.mxu1 %v13766_v25  ;;  %v13813_v25 = vcombine.low %v8187_v46, %v8191_v57  ;;  %v13822_v28 = vcombine.high %v8195_v63, %v8199_v53  ;;  %v13821_v62 = vcombine.low %v8195_v63, %v8199_v53 }
 0x636   :  { %11419 = vmatpush1.bf16.msra.mxu0 %v13763_v31  ;;  %v8202_v31 = vld [vmem:[#allocation8 + $0xa50] sm:$0xff] }
 0x637   :  { %11591 = vmatpush1.bf16.msra.mxu1 %v13765_v33  ;;  %11420 = vmatprep.subr.bf16.mxu0 %v13772_v34  ;;  %v8206_v33 = vld [vmem:[#allocation8 + $0xa70] sm:$0xff]  ;;  %v8203_v34 = vld [vmem:[#allocation8 + $0xa58] sm:$0xff] }
 0x638   :  { %11592 = vmatprep.subr.bf16.mxu1 %v13774_v48  ;;  %v8207_v48 = vld [vmem:[#allocation8 + $0xa78] sm:$0xff]  ;;  %v13828_v44 = vcombine.high %v8202_v31, %v8206_v33  ;;  %v13827_v41 = vcombine.low %v8202_v31, %v8206_v33 }
 0x639   :  { %v13830_v0 = vcombine.high %v8203_v34, %v8207_v48  ;;  %v13829_v42 = vcombine.low %v8203_v34, %v8207_v48 }
 0x63a   :  { %11421 = vmatpush1.bf16.msra.mxu0 %v13771_v35  ;;  %v8210_v35 = vld [vmem:[#allocation8 + $0xa90] sm:$0xff] }
 0x63b   :  { %11593 = vmatpush1.bf16.msra.mxu1 %v13773_v58  ;;  %11422 = vmatprep.subr.bf16.mxu0 %v13780_v17  ;;  %v8214_v58 = vld [vmem:[#allocation8 + $0xab0] sm:$0xff]  ;;  %v8211_v17 = vld [vmem:[#allocation8 + $0xa98] sm:$0xff] }
 0x63c   :  { %11594 = vmatprep.subr.bf16.mxu1 %v13782_v11  ;;  %v8215_v11 = vld [vmem:[#allocation8 + $0xab8] sm:$0xff]  ;;  %v13836_v30 = vcombine.high %v8210_v35, %v8214_v58  ;;  %v13835_v38 = vcombine.low %v8210_v35, %v8214_v58 }
 0x63d   :  { %v13838_v49 = vcombine.high %v8211_v17, %v8215_v11  ;;  %v13837_v43 = vcombine.low %v8211_v17, %v8215_v11 }
 0x63e   :  { %11423 = vmatpush1.bf16.msra.mxu0 %v13779_v21  ;;  %v8218_v21 = vld [vmem:[#allocation8 + $0xad0] sm:$0xff] }
 0x63f   :  { %11595 = vmatpush1.bf16.msra.mxu1 %v13781_v27  ;;  %11424 = vmatprep.subr.bf16.mxu0 %v13788_v29  ;;  %v8222_v27 = vld [vmem:[#allocation8 + $0xaf0] sm:$0xff]  ;;  %v8219_v29 = vld [vmem:[#allocation8 + $0xad8] sm:$0xff] }
 0x640   :  { %11596 = vmatprep.subr.bf16.mxu1 %v13790_v37  ;;  %v8223_v37 = vld [vmem:[#allocation8 + $0xaf8] sm:$0xff]  ;;  %v13844_v52 = vcombine.high %v8218_v21, %v8222_v27  ;;  %v13843_v51 = vcombine.low %v8218_v21, %v8222_v27 }
 0x641   :  { %v13846_v55 = vcombine.high %v8219_v29, %v8223_v37  ;;  %v13845_v47 = vcombine.low %v8219_v29, %v8223_v37  ;;  %v8271_v21 = vld [vmem:[#allocation8 + $0xc78] sm:$0xff]  ;;  %v8274_v37 = vld [vmem:[#allocation8 + $0xc90] sm:$0xff] }
 0x642   :  { %11425 = vmatpush1.bf16.msra.mxu0 %v13787_v56  ;;  %v8226_v56 = vld [vmem:[#allocation8 + $0xb10] sm:$0xff] }
 0x643   :  { %11597 = vmatpush1.bf16.msra.mxu1 %v13789_v39  ;;  %11426 = vmatprep.subr.bf16.mxu0 %v13796_v60  ;;  %v8230_v39 = vld [vmem:[#allocation8 + $0xb30] sm:$0xff]  ;;  %v8227_v60 = vld [vmem:[#allocation8 + $0xb18] sm:$0xff] }
 0x644   :  { %11598 = vmatprep.subr.bf16.mxu1 %v13798_v61  ;;  %v8231_v61 = vld [vmem:[#allocation8 + $0xb38] sm:$0xff]  ;;  %v13852_v24 = vcombine.high %v8226_v56, %v8230_v39  ;;  %v13851_v1 = vcombine.low %v8226_v56, %v8230_v39 }
 0x645   :  { %v13854_v2 = vcombine.high %v8227_v60, %v8231_v61  ;;  %v13853_v50 = vcombine.low %v8227_v60, %v8231_v61 }
 0x646   :  { %11427 = vmatpush1.bf16.msra.mxu0 %v13795_v3  ;;  %v8234_v3 = vld [vmem:[#allocation8 + $0xb50] sm:$0xff] }
 0x647   :  { %11599 = vmatpush1.bf16.msra.mxu1 %v13797_v23  ;;  %11428 = vmatprep.subr.bf16.mxu0 %v13804_v4  ;;  %v8238_v23 = vld [vmem:[#allocation8 + $0xb70] sm:$0xff]  ;;  %v8235_v4 = vld [vmem:[#allocation8 + $0xb58] sm:$0xff] }
 0x648   :  { %11600 = vmatprep.subr.bf16.mxu1 %v13806_v5  ;;  %v8239_v5 = vld [vmem:[#allocation8 + $0xb78] sm:$0xff]  ;;  %v13860_v46 = vcombine.high %v8234_v3, %v8238_v23  ;;  %v13859_v19 = vcombine.low %v8234_v3, %v8238_v23 }
 0x649   :  { %v13862_v57 = vcombine.high %v8235_v4, %v8239_v5  ;;  %v13861_v20 = vcombine.low %v8235_v4, %v8239_v5  ;;  %v8290_v5 = vld [vmem:[#allocation8 + $0xd10] sm:$0xff] }
 0x64a   :  { %11429 = vmatpush1.bf16.msra.mxu0 %v13803_v40  ;;  %v8242_v40 = vld [vmem:[#allocation8 + $0xb90] sm:$0xff] }
 0x64b   :  { %11601 = vmatpush1.bf16.msra.mxu1 %v13805_v59  ;;  %11430 = vmatprep.subr.bf16.mxu0 %v13812_v13  ;;  %v8246_v59 = vld [vmem:[#allocation8 + $0xbb0] sm:$0xff]  ;;  %v8243_v13 = vld [vmem:[#allocation8 + $0xb98] sm:$0xff] }
 0x64c   :  { %11602 = vmatprep.subr.bf16.mxu1 %v13814_v16  ;;  %v8247_v16 = vld [vmem:[#allocation8 + $0xbb8] sm:$0xff]  ;;  %v13868_v63 = vcombine.high %v8242_v40, %v8246_v59  ;;  %v13867_v31 = vcombine.low %v8242_v40, %v8246_v59 }
 0x64d   :  { %v13870_v53 = vcombine.high %v8243_v13, %v8247_v16  ;;  %v13869_v33 = vcombine.low %v8243_v13, %v8247_v16  ;;  %v8298_v13 = vld [vmem:[#allocation8 + $0xd50] sm:$0xff] }
 0x64e   :  { %11431 = vmatpush1.bf16.msra.mxu0 %v13811_v22  ;;  %v8250_v22 = vld [vmem:[#allocation8 + $0xbd0] sm:$0xff] }
 0x64f   :  { %11603 = vmatpush1.bf16.msra.mxu1 %v13813_v25  ;;  %11432 = vmatprep.subr.bf16.mxu0 %v13820_v26  ;;  %v8254_v25 = vld [vmem:[#allocation8 + $0xbf0] sm:$0xff]  ;;  %v8251_v26 = vld [vmem:[#allocation8 + $0xbd8] sm:$0xff] }
 0x650   :  { %11604 = vmatprep.subr.bf16.mxu1 %v13822_v28  ;;  %v8255_v28 = vld [vmem:[#allocation8 + $0xbf8] sm:$0xff]  ;;  %v13876_v34 = vcombine.high %v8250_v22, %v8254_v25  ;;  %v13875_v35 = vcombine.low %v8250_v22, %v8254_v25  ;;  %v8302_v16 = vld [vmem:[#allocation8 + $0xd70] sm:$0xff] }
 0x651   :  { %v13878_v48 = vcombine.high %v8251_v26, %v8255_v28  ;;  %v13877_v58 = vcombine.low %v8251_v26, %v8255_v28  ;;  %v13924_v25 = vcombine.high %v8298_v13, %v8302_v16  ;;  %v8306_v28 = vld [vmem:[#allocation8 + $0xd90] sm:$0xff] }
 0x652   :  { %11433 = vmatpush1.bf16.msra.mxu0 %v13819_v10  ;;  %v8258_v10 = vld [vmem:[#allocation8 + $0xc10] sm:$0xff] }
 0x653   :  { %11605 = vmatpush1.bf16.msra.mxu1 %v13821_v62  ;;  %11434 = vmatprep.subr.bf16.mxu0 %v13828_v44  ;;  %v8262_v62 = vld [vmem:[#allocation8 + $0xc30] sm:$0xff]  ;;  %v8259_v44 = vld [vmem:[#allocation8 + $0xc18] sm:$0xff] }
 0x654   :  { %11606 = vmatprep.subr.bf16.mxu1 %v13830_v0  ;;  %v8263_v0 = vld [vmem:[#allocation8 + $0xc38] sm:$0xff]  ;;  %v13884_v17 = vcombine.high %v8258_v10, %v8262_v62 }
 0x655   :  { %v13886_v11 = vcombine.high %v8259_v44, %v8263_v0  ;;  %v13885_v27 = vcombine.low %v8259_v44, %v8263_v0  ;;  %v13923_v0 = vcombine.low %v8298_v13, %v8302_v16 }
 0x656   :  { %11435 = vmatpush1.bf16.msra.mxu0 %v13827_v41  ;;  %v8266_v41 = vld [vmem:[#allocation8 + $0xc50] sm:$0xff] }
 0x657   :  { %11607 = vmatpush1.bf16.msra.mxu1 %v13829_v42  ;;  %11436 = vmatprep.subr.bf16.mxu0 %v13836_v30  ;;  %v8270_v42 = vld [vmem:[#allocation8 + $0xc70] sm:$0xff]  ;;  %v13883_v30 = vcombine.low %v8258_v10, %v8262_v62  ;;  %v8311_v10 = vld [vmem:[#allocation8 + $0xdb8] sm:$0xff] }
 0x658   :  { %11608 = vmatprep.subr.bf16.mxu1 %v13838_v49  ;;  %v8267_v49 = vld [vmem:[#allocation8 + $0xc58] sm:$0xff]  ;;  %v13892_v29 = vcombine.high %v8266_v41, %v8270_v42  ;;  %v13891_v56 = vcombine.low %v8266_v41, %v8270_v42 }
 0x659   :  { %v13893_v39 = vcombine.low %v8267_v49, %v8271_v21 }
 0x65a   :  { %11437 = vmatpush1.bf16.msra.mxu0 %v13835_v38  ;;  %v8278_v38 = vld [vmem:[#allocation8 + $0xcb0] sm:$0xff] }
 0x65b   :  { %11609 = vmatpush1.bf16.msra.mxu1 %v13837_v43  ;;  %11438 = vmatprep.subr.bf16.mxu0 %v13844_v52  ;;  %v13894_v43 = vcombine.high %v8267_v49, %v8271_v21  ;;  %v8275_v52 = vld [vmem:[#allocation8 + $0xc98] sm:$0xff]  ;;  %v13900_v60 = vcombine.high %v8274_v37, %v8278_v38  ;;  %v13899_v3 = vcombine.low %v8274_v37, %v8278_v38 }
 0x65c   :  { %11610 = vmatprep.subr.bf16.mxu1 %v13846_v55  ;;  %v8279_v55 = vld [vmem:[#allocation8 + $0xcb8] sm:$0xff] }
 0x65d   :  { %v13902_v61 = vcombine.high %v8275_v52, %v8279_v55 }
 0x65e   :  { %11439 = vmatpush1.bf16.msra.mxu0 %v13843_v51  ;;  %v8282_v51 = vld [vmem:[#allocation8 + $0xcd0] sm:$0xff] }
 0x65f   :  { %11611 = vmatpush1.bf16.msra.mxu1 %v13845_v47  ;;  %11440 = vmatprep.subr.bf16.mxu0 %v13852_v24  ;;  %v8286_v47 = vld [vmem:[#allocation8 + $0xcf0] sm:$0xff]  ;;  %v8283_v24 = vld [vmem:[#allocation8 + $0xcd8] sm:$0xff] }
 0x660   :  { %11612 = vmatprep.subr.bf16.mxu1 %v13854_v2  ;;  %v8287_v2 = vld [vmem:[#allocation8 + $0xcf8] sm:$0xff]  ;;  %v13908_v23 = vcombine.high %v8282_v51, %v8286_v47 }
 0x661   :  { %v13910_v4 = vcombine.high %v8283_v24, %v8287_v2 }
 0x662   :  { %11441 = vmatpush1.bf16.msra.mxu0 %v13851_v1  ;;  %v8294_v1 = vld [vmem:[#allocation8 + $0xd30] sm:$0xff] }
 0x663   :  { %11613 = vmatpush1.bf16.msra.mxu1 %v13853_v50  ;;  %11442 = vmatprep.subr.bf16.mxu0 %v13860_v46  ;;  %v8291_v50 = vld [vmem:[#allocation8 + $0xd18] sm:$0xff]  ;;  %v13916_v40 = vcombine.high %v8290_v5, %v8294_v1 }
 0x664   :  { %11614 = vmatprep.subr.bf16.mxu1 %v13862_v57  ;;  %v8295_v46 = vld [vmem:[#allocation8 + $0xd38] sm:$0xff]  ;;  %v13909_v57 = vcombine.low %v8283_v24, %v8287_v2 }
 0x665   :  { %v13918_v59 = vcombine.high %v8291_v50, %v8295_v46  ;;  %v13917_v22 = vcombine.low %v8291_v50, %v8295_v46  ;;  %v8323_v50 = vld [vmem:[#allocation8 + $0xe18] sm:$0xff] }
 0x666   :  { %11443 = vmatpush1.bf16.msra.mxu0 %v13859_v19  ;;  %v8299_v19 = vld [vmem:[#allocation8 + $0xd58] sm:$0xff] }
 0x667   :  { %11615 = vmatpush1.bf16.msra.mxu1 %v13861_v20  ;;  %11444 = vmatprep.subr.bf16.mxu0 %v13868_v63  ;;  %v8303_v20 = vld [vmem:[#allocation8 + $0xd78] sm:$0xff]  ;;  %v13915_v63 = vcombine.low %v8290_v5, %v8294_v1  ;;  %v8326_v5 = vld [vmem:[#allocation8 + $0xe30] sm:$0xff] }
 0x668   :  { %11616 = vmatprep.subr.bf16.mxu1 %v13870_v53  ;;  %v15095_v53 = vld [vmem:[#allocation10] sm:$0xff]  ;;  %v13926_v26 = vcombine.high %v8299_v19, %v8303_v20  ;;  %v8327_v46 = vld [vmem:[#allocation8 + $0xe38] sm:$0xff] }
 0x669   :  { %v8393_v62 = vrot.slane %v15095_v53, %v7750_v15  ;;  %v8401_v44 = vrot.slane %v15095_v53, %v7758_v18 }
 0x66a   :  { %11445 = vmatpush1.bf16.msra.mxu0 %v13867_v31  ;;  %v8310_v31 = vld [vmem:[#allocation8 + $0xdb0] sm:$0xff] }
 0x66b   :  { %11617 = vmatpush1.bf16.msra.mxu1 %v13869_v33  ;;  %11446 = vmatprep.subr.bf16.mxu0 %v13876_v34  ;;  %v8389_v33 = vrot.slane %v15095_v53, %v7746_v32  ;;  %v8397_v34 = vrot.slane %v15095_v53, %v7754_v36  ;;  %v13925_v32 = vcombine.low %v8299_v19, %v8303_v20  ;;  %v8315_v36 = vld [vmem:[#allocation8 + $0xdd8] sm:$0xff]  ;;  %v8330_v20 = vld [vmem:[#allocation8 + $0xe50] sm:$0xff] }
 0x66c   :  { %11618 = vmatprep.subr.bf16.mxu1 %v13878_v48  ;;  %v8307_v48 = vld [vmem:[#allocation8 + $0xd98] sm:$0xff]  ;;  %v13950_v19 = vcombine.high %v8323_v50, %v8327_v46 }
 0x66d   :  { %v13933_v18 = vcombine.low %v8307_v48, %v8311_v10 }
 0x66e   :  { %11447 = vmatpush1.bf16.msra.mxu0 %v13875_v35  ;;  %v15109_v35 = vld [vmem:[#allocation8 + $0xdd0] sm:$0xff] }
 0x66f   :  { %11619 = vmatpush1.bf16.msra.mxu1 %v13877_v58  ;;  %11459 = vmatprep.subr.bf16.mxu0 %v13884_v17  ;;  %v13932_v58 = vcombine.high %v8306_v28, %v8310_v31  ;;  %v8318_v17 = vld [vmem:[#allocation8 + $0xdf0] sm:$0xff] }
 0x670   :  { %11631 = vmatprep.subr.bf16.mxu1 %v13886_v11  ;;  %v8319_v11 = vld [vmem:[#allocation8 + $0xdf8] sm:$0xff] }
 0x671   :  { %11449 = vmatmul.mubr.bf16.vlgmr.msra.gmra.mrb[12].mxu0 %v15061_v12 }
 0x672   :  { %11621 = vmatmul.mubr.bf16.vlgmr.msra.gmra.mrb[12].mxu1 %v15061_v12  ;;  %11460 = vmatpush1.bf16.msra.mxu0 %v13883_v30  ;;  %v13901_v12 = vcombine.low %v8275_v52, %v8279_v55  ;;  %v13934_v30 = vcombine.high %v8307_v48, %v8311_v10  ;;  %v13940_v55 = vcombine.high %v15109_v35, %v8318_v17  ;;  %v8342_v48 = vld [vmem:[#allocation8 + $0xeb0] sm:$0xff]  ;;  %v8339_v10 = vld [vmem:[#allocation8 + $0xe98] sm:$0xff] }
 0x673   :  { %11491 = vmatprep.mubr.bf16.mxu0 %v15071_v14  ;;  %11632 = vmatpush1.bf16.msra.mxu1 %v13885_v27 }
 0x674   :  { %11663 = vmatprep.mubr.bf16.mxu1 %v15071_v14  ;;  %11461 = vmatprep.subr.bf16.mxu0 %v13892_v29  ;;  %v13907_v14 = vcombine.low %v8282_v51, %v8286_v47  ;;  %v13931_v29 = vcombine.low %v8306_v28, %v8310_v31  ;;  %v13949_v28 = vcombine.low %v8323_v50, %v8327_v46 }
 0x675   :  { %11633 = vmatprep.subr.bf16.mxu1 %v13894_v43 }
 0x676   :  { %11462 = vmatpush1.bf16.msra.mxu0 %v13891_v56  ;;  %v13942_v56 = vcombine.high %v8315_v36, %v8319_v11 }
 0x677   :  { %11634 = vmatpush1.bf16.msra.mxu1 %v13893_v39  ;;  %11463 = vmatprep.subr.bf16.mxu0 %v13900_v60 }
 0x678   :  { %11635 = vmatprep.subr.bf16.mxu1 %v13902_v61 }
 0x67a   :  { %11464 = vmatpush1.bf16.msra.mxu0 %v13899_v3 }
 0x67b   :  { %11636 = vmatpush1.bf16.msra.mxu1 %v13901_v12  ;;  %11465 = vmatprep.subr.bf16.mxu0 %v13908_v23 }
 0x67c   :  { %11637 = vmatprep.subr.bf16.mxu1 %v13910_v4  ;;  %v8322_v4 = vld [vmem:[#allocation8 + $0xe10] sm:$0xff] }
 0x67d   :  { %v13948_v13 = vcombine.high %v8322_v4, %v8326_v5 }
 0x67e   :  { %11466 = vmatpush1.bf16.msra.mxu0 %v13907_v14 }
 0x67f   :  { %11638 = vmatpush1.bf16.msra.mxu1 %v13909_v57  ;;  %11467 = vmatprep.subr.bf16.mxu0 %v13916_v40  ;;  %v13939_v57 = vcombine.low %v15109_v35, %v8318_v17 }
 0x680   :  { %11639 = vmatprep.subr.bf16.mxu1 %v13918_v59  ;;  %v13941_v59 = vcombine.low %v8315_v36, %v8319_v11  ;;  %v8346_v36 = vld [vmem:[#allocation8 + $0xed0] sm:$0xff] }
 0x681   :  { %v8350_v11 = vld [vmem:[#allocation8 + $0xef0] sm:$0xff] }
 0x682   :  { %11468 = vmatpush1.bf16.msra.mxu0 %v13915_v63  ;;  %v8334_v63 = vld [vmem:[#allocation8 + $0xe70] sm:$0xff] }
 0x683   :  { %11640 = vmatpush1.bf16.msra.mxu1 %v13917_v22  ;;  %11469 = vmatprep.subr.bf16.mxu0 %v13924_v25  ;;  %v8331_v22 = vld [vmem:[#allocation8 + $0xe58] sm:$0xff]  ;;  %v13956_v31 = vcombine.high %v8330_v20, %v8334_v63 }
 0x684   :  { %v11149_v41 = vpop.f32.mrb[8].mxu0  ;;  %v11321_v42 = vpop.f32.mrb[8].mxu1  ;;  %11641 = vmatprep.subr.bf16.mxu1 %v13926_v26  ;;  %v8335_v25 = vld [vmem:[#allocation8 + $0xe78] sm:$0xff]  ;;  %v13947_v26 = vcombine.low %v8322_v4, %v8326_v5 }
 0x685   :  { %v14160_v49 = vadd.f32 %v11149_v41, %v8389_v33  ;;  %v14164_v15 = vadd.f32 %v11321_v42, %v8397_v34  ;;  %v11151_v21 = vpop.f32.mrb[9].mxu0  ;;  %v11323_v27 = vpop.f32.mrb[9].mxu1  ;;  %v13957_v35 = vcombine.low %v8331_v22, %v8335_v25  ;;  %v8347_v42 = vld [vmem:[#allocation8 + $0xed8] sm:$0xff] }
 0x686   :  { %v14161_v37 = vadd.f32 %v11151_v21, %v8393_v62  ;;  %v14165_v38 = vadd.f32 %v11323_v27, %v8401_v44  ;;  %v11153_v43 = vpop.f32.mrb[10].mxu0  ;;  %v11325_v52 = vpop.f32.mrb[10].mxu1  ;;  %11470 = vmatpush1.bf16.msra.mxu0 %v13923_v0 }
 0x687   :  { %v11674_v39 = vmul.f32 0.5, %v14160_v49  ;;  %v11676_v60 = vmul.f32 0.5, %v14164_v15  ;;  %v14162_v61 = vadd.f32 %v11153_v43, %v8389_v33  ;;  %v14166_v51 = vadd.f32 %v11325_v52, %v8397_v34  ;;  %11642 = vmatpush1.bf16.msra.mxu1 %v13925_v32  ;;  %v11155_v47 = vpop.f32.mrb[11].mxu0  ;;  %v11327_v24 = vpop.f32.mrb[11].mxu1  ;;  %11471 = vmatprep.subr.bf16.mxu0 %v13932_v58  ;;  %v8338_v34 = vld [vmem:[#allocation8 + $0xe90] sm:$0xff] }
 0x688   :  { %v11675_v2 = vmul.f32 0.5, %v14161_v37  ;;  %v11677_v3 = vmul.f32 0.5, %v14165_v38  ;;  %v14163_v12 = vadd.f32 %v11155_v47, %v8393_v62  ;;  %v14167_v23 = vadd.f32 %v11327_v24, %v8401_v44  ;;  %11643 = vmatprep.subr.bf16.mxu1 %v13934_v30  ;;  %v8343_v62 = vld [vmem:[#allocation8 + $0xeb8] sm:$0xff] }
 0x689   :  { %14443 = vtanh.f32 %v11674_v39  ;;  %v11682_v1 = vmul.f32 0.5, %v14162_v61  ;;  %v11684_v14 = vmul.f32 0.5, %v14166_v51  ;;  %v13958_v33 = vcombine.high %v8331_v22, %v8335_v25  ;;  %v8351_v30 = vld [vmem:[#allocation8 + $0xef8] sm:$0xff]  ;;  %v8358_v39 = vld [vmem:[#allocation8 + $0xf30] sm:$0xff] }
 0x68a   :  { %14445 = vtanh.f32 %v11676_v60  ;;  %11472 = vmatpush1.bf16.msra.mxu0 %v13931_v29  ;;  %v11683_v40 = vmul.f32 0.5, %v14163_v12  ;;  %v11685_v16 = vmul.f32 0.5, %v14167_v23  ;;  %v13955_v44 = vcombine.low %v8330_v20, %v8334_v63  ;;  %v8355_v24 = vld [vmem:[#allocation8 + $0xf18] sm:$0xff] }
 0x68b   :  { %14447 = vtanh.f32 %v11675_v2  ;;  %11644 = vmatpush1.bf16.msra.mxu1 %v13933_v18  ;;  %11473 = vmatprep.subr.bf16.mxu0 %v13940_v55  ;;  %v13964_v32 = vcombine.high %v8338_v34, %v8342_v48  ;;  %v13966_v17 = vcombine.high %v8339_v10, %v8343_v62  ;;  %v13963_v21 = vcombine.low %v8338_v34, %v8342_v48  ;;  %v8359_v2 = vld [vmem:[#allocation8 + $0xf38] sm:$0xff] }
 0x68c   :  { %14449 = vtanh.f32 %v11677_v3  ;;  %11645 = vmatprep.subr.bf16.mxu1 %v13942_v56  ;;  %v13965_v18 = vcombine.low %v8339_v10, %v8343_v62  ;;  %v13972_v37 = vcombine.high %v8346_v36, %v8350_v11  ;;  %v13974_v55 = vcombine.high %v8347_v42, %v8351_v30  ;;  %v8354_v56 = vld [vmem:[#allocation8 + $0xf10] sm:$0xff]  ;;  %v8363_v25 = vld [vmem:[#allocation8 + $0xf58] sm:$0xff] }
 0x68d   :  { %14451 = vtanh.f32 %v11682_v1  ;;  %v13971_v47 = vcombine.low %v8346_v36, %v8350_v11  ;;  %v13973_v5 = vcombine.low %v8347_v42, %v8351_v30  ;;  %v8370_v62 = vld [vmem:[#allocation8 + $0xf90] sm:$0xff]  ;;  %v8379_v42 = vld [vmem:[#allocation8 + $0xfd8] sm:$0xff] }
 0x68e   :  { %14453 = vtanh.f32 %v11684_v14  ;;  %11474 = vmatpush1.bf16.msra.mxu0 %v13939_v57  ;;  %v13980_v14 = vcombine.high %v8354_v56, %v8358_v39  ;;  %v8378_v11 = vld [vmem:[#allocation8 + $0xfd0] sm:$0xff]  ;;  %v8383_v30 = vld [vmem:[#allocation8 + $0xff8] sm:$0xff] }
 0x68f   :  { %14455 = vtanh.f32 %v11683_v40  ;;  %11646 = vmatpush1.bf16.msra.mxu1 %v13941_v59  ;;  %11475 = vmatprep.subr.bf16.mxu0 %v13948_v13  ;;  %v13982_v13 = vcombine.high %v8355_v24, %v8359_v2 }
 0x690   :  { %14457 = vtanh.f32 %v11685_v16  ;;  %11647 = vmatprep.subr.bf16.mxu1 %v13950_v19  ;;  %v8362_v16 = vld [vmem:[#allocation8 + $0xf50] sm:$0xff] }
 0x691   :  { %v8366_v19 = vld [vmem:[#allocation8 + $0xf70] sm:$0xff] }
 0x692   :  { %11476 = vmatpush1.bf16.msra.mxu0 %v13947_v26  ;;  %v8367_v26 = vld [vmem:[#allocation8 + $0xf78] sm:$0xff]  ;;  %v13988_v34 = vcombine.high %v8362_v16, %v8366_v19 }
 0x693   :  { %v14444_v0 = vpop.eup %14443  ;;  %11648 = vmatpush1.bf16.msra.mxu1 %v13949_v28  ;;  %11477 = vmatprep.subr.bf16.mxu0 %v13956_v31  ;;  %v13979_v28 = vcombine.low %v8354_v56, %v8358_v39  ;;  %v13990_v10 = vcombine.high %v8363_v25, %v8367_v26  ;;  %v14352_v56 = vld [vmem:[#allocation11 + $0xc8] sm:$0xff]  }
 0x694   :  { %v14446_v58 = vpop.eup %14445  ;;  %11649 = vmatprep.subr.bf16.mxu1 %v13958_v33  ;;  %v11706_v15 = vmul.f32 0.5, %v14444_v0  ;;  %v13981_v33 = vcombine.low %v8355_v24, %v8359_v2  ;;  %v8371_v0 = vld [vmem:[#allocation8 + $0xf98] sm:$0xff]  ;;  %v14353_v39 = vld [vmem:[#allocation11 + $0x8] sm:$0xff]   ;;  %v14359_v2 = vld [vmem:[#allocation11 + $0x58] sm:$0xff]  }
 0x695   :  { %v14448_v41 = vpop.eup %14447  ;;  %v11708_v29 = vmul.f32 0.5, %v14446_v58  ;;  %v13989_v58 = vcombine.low %v8363_v25, %v8367_v26  ;;  %v14358_v24 = vld [vmem:[#allocation11 + $0x90] sm:$0xff]  }
 0x696   :  { %v14450_v49 = vpop.eup %14449  ;;  %11478 = vmatpush1.bf16.msra.mxu0 %v13955_v44  ;;  %v11707_v43 = vmul.f32 0.5, %v14448_v41  ;;  %v15113_v12 = vadd.f32 0.5, %v11706_v15  ;;  %v8374_v44 = vld [vmem:[#allocation8 + $0xfb0] sm:$0xff]  ;;  %v14373_v25 = vld [vmem:[#allocation11 + $0x30] sm:$0xff]  }
 0x697   :  { %v14452_v27 = vpop.eup %14451  ;;  %11650 = vmatpush1.bf16.msra.mxu1 %v13957_v35  ;;  %11479 = vmatprep.subr.bf16.mxu0 %v13964_v32  ;;  %v11709_v61 = vmul.f32 0.5, %v14450_v49  ;;  %v15117_v1 = vadd.f32 0.5, %v11708_v29  ;;  %v8375_v35 = vld [vmem:[#allocation8 + $0xfb8] sm:$0xff]  ;;  %v13987_v32 = vcombine.low %v8362_v16, %v8366_v19  ;;  %v8382_v41 = vld [vmem:[#allocation8 + $0xff0] sm:$0xff]  ;;  %v13995_v49 = vcombine.low %v8370_v62, %v8374_v44 }
 0x698   :  { %v14454_v38 = vpop.eup %14453  ;;  %v11714_v52 = vmul.f32 0.5, %v14452_v27  ;;  %11651 = vmatprep.subr.bf16.mxu1 %v13966_v17  ;;  %v15121_v57 = vadd.f32 0.5, %v11707_v43  ;;  %v13996_v17 = vcombine.high %v8370_v62, %v8374_v44  ;;  %v13998_v36 = vcombine.high %v8371_v0, %v8375_v35  ;;  %v14349_v43 = vld [vmem:[#allocation11] sm:$0xff]   ;;  %v14369_v16 = vld [vmem:[#allocation11 + $0x28] sm:$0xff]   ;;  %v14374_v26 = vld [vmem:[#allocation11 + $0xb0] sm:$0xff]  }
 0x699   :  { %v14456_v60 = vpop.eup %14455  ;;  %v11716_v51 = vmul.f32 0.5, %v14454_v38  ;;  %v15127_v20 = vadd.f32 0.5, %v11709_v61  ;;  %v13997_v15 = vcombine.low %v8371_v0, %v8375_v35  ;;  %v14006_v27 = vcombine.high %v8379_v42, %v8383_v30  ;;  %v14348_v38 = vld [vmem:[#allocation11 + $0xc0] sm:$0xff]   ;;  %v14355_v61 = vld [vmem:[#allocation11 + $0x50] sm:$0xff]   ;;  %v14370_v19 = vld [vmem:[#allocation11 + $0xa8] sm:$0xff]  }
 0x69a   :  { %v14458_v3 = vpop.eup %14457  ;;  %v15115_v23 = vadd.f32 0.5, %v11714_v52  ;;  %v11715_v4 = vmul.f32 0.5, %v14456_v60  ;;  %11480 = vmatpush1.bf16.msra.mxu0 %v13963_v21  ;;  %v14004_v21 = vcombine.high %v8378_v11, %v8382_v41  ;;  %v14003_v29 = vcombine.low %v8378_v11, %v8382_v41  ;;  %v14350_v52 = vld [vmem:[#allocation11 + $0x80] sm:$0xff]   ;;  %v14354_v60 = vld [vmem:[#allocation11 + $0x88] sm:$0xff]   ;;  %v14389_v11 = vld [vmem:[#allocation11 + $0x110] sm:$0xff]  }
 0x69b   :  { %v15119_v50 = vadd.f32 0.5, %v11716_v51  ;;  %v11717_v46 = vmul.f32 0.5, %v14458_v3  ;;  %11652 = vmatpush1.bf16.msra.mxu1 %v13965_v18  ;;  %11481 = vmatprep.subr.bf16.mxu0 %v13972_v37  ;;  %v14005_v18 = vcombine.low %v8379_v42, %v8383_v30  ;;  %v14347_v37 = vld [vmem:[#allocation11 + $0x40] sm:$0xff]   ;;  %v14356_v51 = vld [vmem:[#allocation11 + $0xd0] sm:$0xff]   ;;  %v14360_v3 = vld [vmem:[#allocation11 + $0xd8] sm:$0xff]  }
 0x69c   :  { %v11738_v40 = vpack.c.bf16 %v15115_v23, %v15113_v12  ;;  %v15125_v59 = vadd.f32 0.5, %v11715_v4  ;;  %11653 = vmatprep.subr.bf16.mxu1 %v13974_v55  ;;  %v14351_v55 = vld [vmem:[#allocation11 + $0x48] sm:$0xff]   ;;  %v14362_v4 = vld [vmem:[#allocation11 + $0x98] sm:$0xff]   ;;  %v14381_v62 = vld [vmem:[#allocation11 + $0x100] sm:$0xff]  }
 0x69d   :  { %v11740_v63 = vpack.c.bf16 %v15119_v50, %v15117_v1  ;;  %v11733_v22 = vadd.f32 0.5, %v11717_v46  ;;  %v14364_v46 = vld [vmem:[#allocation11 + $0xe0] sm:$0xff]   ;;  %v14383_v0 = vld [vmem:[#allocation11 + $0x148] sm:$0xff]   ;;  %v14390_v41 = vld [vmem:[#allocation11 + $0x190] sm:$0xff]  }
 0x69e   :  { %11482 = vmatpush1.bf16.msra.mxu0 %v13971_v47  ;;  %v11739_v31 = vpack.c.bf16 %v15125_v59, %v15121_v57  ;;  %v14357_v47 = vld [vmem:[#allocation11 + $0x10] sm:$0xff]   ;;  %v14366_v57 = vld [vmem:[#allocation11 + $0xa0] sm:$0xff]   ;;  %v14367_v59 = vld [vmem:[#allocation11 + $0x68] sm:$0xff]  }
 0x69f   :  { %11654 = vmatpush1.bf16.msra.mxu1 %v13973_v5  ;;  %11483 = vmatprep.subr.bf16.mxu0 %v13980_v14  ;;  %v11741_v48 = vpack.c.bf16 %v11733_v22, %v15127_v20  ;;  %v14363_v5 = vld [vmem:[#allocation11 + $0x60] sm:$0xff]   ;;  %v14371_v20 = vld [vmem:[#allocation11 + $0x70] sm:$0xff]   ;;  %v14384_v35 = vld [vmem:[#allocation11 + $0x1c8] sm:$0xff]  }
 0x6a0   :  { %11655 = vmatprep.subr.bf16.mxu1 %v13982_v13  ;;  %v14365_v14 = vld [vmem:[#allocation11 + $0x20] sm:$0xff]   ;;  %v14368_v13 = vld [vmem:[#allocation11 + $0xe8] sm:$0xff]   ;;  %v14372_v22 = vld [vmem:[#allocation11 + $0xf0] sm:$0xff]  }
 0x6a1   :  { %v14382_v44 = vld [vmem:[#allocation11 + $0x180] sm:$0xff]   ;;  %v14391_v12 = vld [vmem:[#allocation11 + $0x158] sm:$0xff]  }
 0x6a2   :  { %11484 = vmatpush1.bf16.msra.mxu0 %v13979_v28  ;;  %v14375_v28 = vld [vmem:[#allocation11 + $0x78] sm:$0xff]   ;;  %v14397_v42 = vld [vmem:[#allocation11 + $0x120] sm:$0xff]  }
 0x6a3   :  { %11656 = vmatpush1.bf16.msra.mxu1 %v13981_v33  ;;  %11485 = vmatprep.subr.bf16.mxu0 %v13988_v34  ;;  %v14377_v33 = vld [vmem:[#allocation11 + $0x38] sm:$0xff]   ;;  %v14398_v30 = vld [vmem:[#allocation11 + $0x1a0] sm:$0xff]  }
 0x6a4   :  { %11657 = vmatprep.subr.bf16.mxu1 %v13990_v10  ;;  %v14378_v34 = vld [vmem:[#allocation11 + $0xb8] sm:$0xff]   ;;  %v14380_v10 = vld [vmem:[#allocation11 + $0x1c0] sm:$0xff]  }
 0x6a5   :  { %v14392_v23 = vld [vmem:[#allocation11 + $0x1d8] sm:$0xff]  }
 0x6a6   :  { %11486 = vmatpush1.bf16.msra.mxu0 %v13987_v32  ;;  %v14385_v32 = vld [vmem:[#allocation11 + $0x108] sm:$0xff]   ;;  %v14393_v1 = vld [vmem:[#allocation11 + $0x118] sm:$0xff]  }
 0x6a7   :  { %11658 = vmatpush1.bf16.msra.mxu1 %v13989_v58  ;;  %11487 = vmatprep.subr.bf16.mxu0 %v13996_v17  ;;  %v14386_v58 = vld [vmem:[#allocation11 + $0x188] sm:$0xff]   ;;  %v14387_v17 = vld [vmem:[#allocation11 + $0x150] sm:$0xff]   ;;  %v14394_v50 = vld [vmem:[#allocation11 + $0x198] sm:$0xff]  }
 0x6a8   :  { %11659 = vmatprep.subr.bf16.mxu1 %v13998_v36  ;;  %v14388_v36 = vld [vmem:[#allocation11 + $0x1d0] sm:$0xff]  }
 0x6aa   :  { %11488 = vmatpush1.bf16.msra.mxu0 %v13995_v49  ;;  %v14399_v49 = vld [vmem:[#allocation11 + $0x168] sm:$0xff]  }
 0x6ab   :  { %11660 = vmatpush1.bf16.msra.mxu1 %v13997_v15  ;;  %11489 = vmatprep.subr.bf16.mxu0 %v14004_v21  ;;  %v14400_v15 = vld [vmem:[#allocation11 + $0x1e8] sm:$0xff]  }
 0x6ac   :  { %11661 = vmatprep.subr.bf16.mxu1 %v14006_v27  ;;  %v14401_v21 = vld [vmem:[#allocation11 + $0x128] sm:$0xff]  }
 0x6ad   :  { %v14402_v27 = vld [vmem:[#allocation11 + $0x1a8] sm:$0xff]  }
 0x6ae   :  { %11490 = vmatpush1.bf16.msra.mxu0 %v14003_v29  ;;  %v14403_v29 = vld [vmem:[#allocation11 + $0x170] sm:$0xff]  }
 0x6af   :  { %11662 = vmatpush1.bf16.msra.mxu1 %v14005_v18  ;;  %14072 = vmatprep.subr.bf16.mxu0 %v14347_v37  ;;  %v14404_v18 = vld [vmem:[#allocation11 + $0x1f0] sm:$0xff]  }
 0x6b0   :  { %14094 = vmatprep.subr.bf16.mxu1 %v14348_v38  ;;  %v14405_v37 = vld [vmem:[#allocation11 + $0x130] sm:$0xff]  }
 0x6b1   :  { %11492 = vmatmul.mubr.bf16.vlgmr.msra.gmra.mrb[12].mxu0 %v15063_v8  ;;  %v14406_v38 = vld [vmem:[#allocation11 + $0x1b0] sm:$0xff]  }
 0x6b2   :  { %11664 = vmatmul.mubr.bf16.vlgmr.msra.gmra.mrb[12].mxu1 %v15063_v8  ;;  %14073 = vmatpush3.bf16.msra.mxu0 %v14349_v43  ;;  %v14361_v8 = vld [vmem:[#allocation11 + $0x18] sm:$0xff]  }
 0x6b3   :  { %12313 = vmatprep.mubr.bf16.mxu0 %v11739_v31  ;;  %14095 = vmatpush3.bf16.msra.mxu1 %v14350_v52  ;;  %v14376_v31 = vld [vmem:[#allocation11 + $0xf8] sm:$0xff]  }
 0x6b4   :  { %12354 = vmatprep.mubr.bf16.mxu1 %v11741_v48  ;;  %14074 = vmatprep.subr.bf16.mxu0 %v14351_v55  ;;  %v14379_v48 = vld [vmem:[#allocation11 + $0x140] sm:$0xff]   ;;  %v14407_v43 = vld [vmem:[#allocation11 + $0x178] sm:$0xff]  }
 0x6b5   :  { %14096 = vmatprep.subr.bf16.mxu1 %v14352_v56  ;;  %v14408_v52 = vld [vmem:[#allocation11 + $0x1f8] sm:$0xff]  }
 0x6b6   :  { %14075 = vmatpush3.bf16.msra.mxu0 %v14353_v39  ;;  %v14409_v55 = vld [vmem:[#allocation11 + $0x138] sm:$0xff]   ;;  %v8405_v39 = vrot.slane %v15095_v53, %v7762_v6 }
 0x6b7   :  { %14097 = vmatpush3.bf16.msra.mxu1 %v14354_v60  ;;  %14076 = vmatprep.subr.bf16.mxu0 %v14355_v61  ;;  %v14410_v56 = vld [vmem:[#allocation11 + $0x1b8] sm:$0xff]   ;;  %v8413_v60 = vrot.slane %v15095_v53, %v7770_v7  ;;  %v8409_v61 = vrot.slane %v15095_v53, %v7766_v9 }
 0x6b8   :  { %14098 = vmatprep.subr.bf16.mxu1 %v14356_v51  ;;  %v8417_v51 = vrot.slane %v15095_v53, %v7774_v45 }
 0x6ba   :  { %14077 = vmatpush3.bf16.msra.mxu0 %v14357_v47 }
 0x6bb   :  { %14099 = vmatpush3.bf16.msra.mxu1 %v14358_v24  ;;  %14078 = vmatprep.subr.bf16.mxu0 %v14359_v2 }
 0x6bc   :  { %14100 = vmatprep.subr.bf16.mxu1 %v14360_v3 }
 0x6be   :  { %14079 = vmatpush3.bf16.msra.mxu0 %v14361_v8 }
 0x6bf   :  { %14101 = vmatpush3.bf16.msra.mxu1 %v14362_v4  ;;  %14080 = vmatprep.subr.bf16.mxu0 %v14363_v5 }
 0x6c0   :  { %14102 = vmatprep.subr.bf16.mxu1 %v14364_v46 }
 0x6c2   :  { %14081 = vmatpush3.bf16.msra.mxu0 %v14365_v14 }
 0x6c3   :  { %14103 = vmatpush3.bf16.msra.mxu1 %v14366_v57  ;;  %14082 = vmatprep.subr.bf16.mxu0 %v14367_v59 }
 0x6c4   :  { %14104 = vmatprep.subr.bf16.mxu1 %v14368_v13 }
 0x6c6   :  { %14083 = vmatpush3.bf16.msra.mxu0 %v14369_v16 }
 0x6c7   :  { %14105 = vmatpush3.bf16.msra.mxu1 %v14370_v19  ;;  %14084 = vmatprep.subr.bf16.mxu0 %v14371_v20 }
 0x6c8   :  { %14106 = vmatprep.subr.bf16.mxu1 %v14372_v22 }
 0x6ca   :  { %14085 = vmatpush3.bf16.msra.mxu0 %v14373_v25 }
 0x6cb   :  { %14107 = vmatpush3.bf16.msra.mxu1 %v14374_v26  ;;  %14086 = vmatprep.subr.bf16.mxu0 %v14375_v28 }
 0x6cc   :  { %14108 = vmatprep.subr.bf16.mxu1 %v14376_v31 }
 0x6ce   :  { %14087 = vmatpush3.bf16.msra.mxu0 %v14377_v33 }
 0x6cf   :  { %14109 = vmatpush3.bf16.msra.mxu1 %v14378_v34  ;;  %14116 = vmatprep.subr.bf16.mxu0 %v14379_v48 }
 0x6d0   :  { %14138 = vmatprep.subr.bf16.mxu1 %v14380_v10 }
 0x6d1   :  { %12314 = vmatmul.mubr.bf16.vlgmr.msra.gmra.mrb[16].mxu0 %v11738_v40  ;;  %v14395_v40 = vld [vmem:[#allocation11 + $0x160] sm:$0xff]  }
 0x6d2   :  { %12355 = vmatmul.mubr.bf16.vlgmr.msra.gmra.mrb[16].mxu1 %v11740_v63  ;;  %14117 = vmatpush3.bf16.msra.mxu0 %v14381_v62  ;;  %v14396_v63 = vld [vmem:[#allocation11 + $0x1e0] sm:$0xff]  }
 0x6d3   :  { %14139 = vmatpush3.bf16.msra.mxu1 %v14382_v44  ;;  %14118 = vmatprep.subr.bf16.mxu0 %v14383_v0 }
 0x6d4   :  { %14140 = vmatprep.subr.bf16.mxu1 %v14384_v35 }
 0x6d6   :  { %14119 = vmatpush3.bf16.msra.mxu0 %v14385_v32 }
 0x6d7   :  { %14141 = vmatpush3.bf16.msra.mxu1 %v14386_v58  ;;  %14120 = vmatprep.subr.bf16.mxu0 %v14387_v17 }
 0x6d8   :  { %14142 = vmatprep.subr.bf16.mxu1 %v14388_v36 }
 0x6da   :  { %14121 = vmatpush3.bf16.msra.mxu0 %v14389_v11 }
 0x6db   :  { %14143 = vmatpush3.bf16.msra.mxu1 %v14390_v41  ;;  %14122 = vmatprep.subr.bf16.mxu0 %v14391_v12 }
 0x6dc   :  { %14144 = vmatprep.subr.bf16.mxu1 %v14392_v23 }
 0x6de   :  { %14123 = vmatpush3.bf16.msra.mxu0 %v14393_v1 }
 0x6df   :  { %14145 = vmatpush3.bf16.msra.mxu1 %v14394_v50  ;;  %14124 = vmatprep.subr.bf16.mxu0 %v14395_v40 }
 0x6e0   :  { %14146 = vmatprep.subr.bf16.mxu1 %v14396_v63 }
 0x6e2   :  { %14125 = vmatpush3.bf16.msra.mxu0 %v14397_v42 }
 0x6e3   :  { %14147 = vmatpush3.bf16.msra.mxu1 %v14398_v30  ;;  %14126 = vmatprep.subr.bf16.mxu0 %v14399_v49 }
 0x6e4   :  { %14148 = vmatprep.subr.bf16.mxu1 %v14400_v15 }
 0x6e6   :  { %14127 = vmatpush3.bf16.msra.mxu0 %v14401_v21 }
 0x6e7   :  { %14149 = vmatpush3.bf16.msra.mxu1 %v14402_v27  ;;  %14128 = vmatprep.subr.bf16.mxu0 %v14403_v29 }
 0x6e8   :  { %14150 = vmatprep.subr.bf16.mxu1 %v14404_v18 }
 0x6ea   :  { %14129 = vmatpush3.bf16.msra.mxu0 %v14405_v37  ;;  %v14007_v37 = vld [vmem:[#allocation13] ss:$0 sm:$0xff] }
 0x6eb   :  { %14151 = vmatpush3.bf16.msra.mxu1 %v14406_v38  ;;  %14130 = vmatprep.subr.bf16.mxu0 %v14407_v43 }
 0x6ec   :  { %14152 = vmatprep.subr.bf16.mxu1 %v14408_v52 }
 0x6ee   :  { %14131 = vmatpush3.bf16.msra.mxu0 %v14409_v55 }
 0x6ef   :  { %14153 = vmatpush3.bf16.msra.mxu1 %v14410_v56 }
 0x784   :  { %v11493_v47 = vpop.f32.mrb[12].mxu0 }
 0x785   :  { %v14168_v24 = vadd.f32 %v11493_v47, %v8405_v39  ;;  %v11665_v2 = vpop.f32.mrb[12].mxu1  ;;  %v11495_v3 = vpop.f32.mrb[13].mxu0 }
 0x786   :  { %v14172_v8 = vadd.f32 %v11665_v2, %v8413_v60  ;;  %v14169_v4 = vadd.f32 %v11495_v3, %v8409_v61  ;;  %v11667_v5 = vpop.f32.mrb[13].mxu1  ;;  %v11497_v6 = vpop.f32.mrb[14].mxu0 }
 0x787   :  { %v11678_v46 = vmul.f32 0.5, %v14168_v24  ;;  %v14173_v14 = vadd.f32 %v11667_v5, %v8417_v51  ;;  %v14170_v57 = vadd.f32 %v11497_v6, %v8405_v39  ;;  %v11669_v7 = vpop.f32.mrb[14].mxu1  ;;  %v11499_v59 = vpop.f32.mrb[15].mxu0 }
 0x788   :  { %v11680_v13 = vmul.f32 0.5, %v14172_v8  ;;  %v11679_v16 = vmul.f32 0.5, %v14169_v4  ;;  %v14174_v9 = vadd.f32 %v11669_v7, %v8413_v60  ;;  %v14171_v19 = vadd.f32 %v11499_v59, %v8409_v61  ;;  %v11671_v54 = vpop.f32.mrb[15].mxu1 }
 0x789   :  { %14459 = vtanh.f32 %v11678_v46  ;;  %v11681_v45 = vmul.f32 0.5, %v14173_v14  ;;  %v11686_v53 = vmul.f32 0.5, %v14170_v57  ;;  %v14175_v20 = vadd.f32 %v11671_v54, %v8417_v51 }
 0x78a   :  { %14461 = vtanh.f32 %v11680_v13  ;;  %v11688_v22 = vmul.f32 0.5, %v14174_v9  ;;  %v11687_v25 = vmul.f32 0.5, %v14171_v19 }
 0x78b   :  { %14463 = vtanh.f32 %v11679_v16  ;;  %v11689_v26 = vmul.f32 0.5, %v14175_v20 }
 0x78c   :  { %14465 = vtanh.f32 %v11681_v45 }
 0x78d   :  { %14467 = vtanh.f32 %v11686_v53 }
 0x78e   :  { %14469 = vtanh.f32 %v11688_v22 }
 0x78f   :  { %14471 = vtanh.f32 %v11687_v25 }
 0x790   :  { %14473 = vtanh.f32 %v11689_v26 }
 0x793   :  { %v14460_v28 = vpop.eup %14459 }
 0x794   :  { %v14462_v31 = vpop.eup %14461  ;;  %v11710_v48 = vmul.f32 0.5, %v14460_v28 }
 0x795   :  { %v14464_v33 = vpop.eup %14463  ;;  %v11712_v62 = vmul.f32 0.5, %v14462_v31 }
 0x796   :  { %v14466_v34 = vpop.eup %14465  ;;  %v11711_v0 = vmul.f32 0.5, %v14464_v33  ;;  %v11726_v11 = vadd.f32 0.5, %v11710_v48 }
 0x797   :  { %v14468_v10 = vpop.eup %14467  ;;  %v11713_v58 = vmul.f32 0.5, %v14466_v34  ;;  %v11728_v23 = vadd.f32 0.5, %v11712_v62 }
 0x798   :  { %v14470_v44 = vpop.eup %14469  ;;  %v11718_v35 = vmul.f32 0.5, %v14468_v10  ;;  %v11727_v40 = vadd.f32 0.5, %v11711_v0 }
 0x799   :  { %v14472_v32 = vpop.eup %14471  ;;  %v11720_v17 = vmul.f32 0.5, %v14470_v44  ;;  %v11729_v30 = vadd.f32 0.5, %v11713_v58 }
 0x79a   :  { %v14474_v36 = vpop.eup %14473  ;;  %v11734_v41 = vadd.f32 0.5, %v11718_v35  ;;  %v11719_v12 = vmul.f32 0.5, %v14472_v32 }
 0x79b   :  { %v11736_v1 = vadd.f32 0.5, %v11720_v17  ;;  %v11721_v50 = vmul.f32 0.5, %v14474_v36 }
 0x79c   :  { %v11742_v63 = vpack.c.bf16 %v11734_v41, %v11726_v11  ;;  %v11735_v42 = vadd.f32 0.5, %v11719_v12 }
 0x79d   :  { %v11744_v49 = vpack.c.bf16 %v11736_v1, %v11728_v23  ;;  %v11737_v15 = vadd.f32 0.5, %v11721_v50 }
 0x79e   :  { %v11743_v21 = vpack.c.bf16 %v11735_v42, %v11727_v40 }
 0x79f   :  { %v11745_v27 = vpack.c.bf16 %v11737_v15, %v11729_v30 }
 0x7a0   :  { %12395 = vmatprep.mubr.bf16.mxu0 %v11743_v21 }
 0x7a1   :  { %12436 = vmatprep.mubr.bf16.mxu1 %v11745_v27  ;;  %12396 = vmatmul.mubr.bf16.vlgmr.msra.gmra.mrb[20].mxu0 %v11742_v63 }
 0x7a2   :  { %12437 = vmatmul.mubr.bf16.vlgmr.msra.gmra.mrb[20].mxu1 %v11744_v49 }
 0x7a4   :  { %v14088_v29 = vpop.f32.mrb[16].mxu0 }
 0x7a5   :  { %v14110_v18 = vpop.f32.mrb[16].mxu1  ;;  %v14089_v38 = vpop.f32.mrb[17].mxu0 }
 0x7a6   :  { %v14090_v43 = vadd.f32 %v14089_v38, %v14088_v29  ;;  %v14111_v52 = vpop.f32.mrb[17].mxu1  ;;  %v14091_v55 = vpop.f32.mrb[18].mxu0 }
 0x7a7   :  { %v14112_v56 = vadd.f32 %v14111_v52, %v14110_v18  ;;  %v14113_v39 = vpop.f32.mrb[18].mxu1  ;;  %v14092_v60 = vpop.f32.mrb[19].mxu0 }
 0x7a8   :  { %v12316_v61 = vadd.f32 %v14090_v43, %v14007_v37  ;;  %v14093_v51 = vadd.f32 %v14092_v60, %v14091_v55  ;;  %v14114_v47 = vpop.f32.mrb[19].mxu1 }
 0x7a9   :  { %v14115_v24 = vadd.f32 %v14114_v47, %v14113_v39 }
 0x7aa   :  { %v12357_v2 = vadd.f32 %v14112_v56, %v12316_v61  ;;  %v12319_v3 = vadd.f32 %v14093_v51, %v14007_v37 }
 0x7ac   :  { %v12360_v8 = vadd.f32 %v14115_v24, %v12319_v3 }
 0x874   :  { %v14132_v4 = vpop.f32.mrb[20].mxu0 }
 0x875   :  { %v14154_v5 = vpop.f32.mrb[20].mxu1  ;;  %v14133_v6 = vpop.f32.mrb[21].mxu0 }
 0x876   :  { %v14134_v46 = vadd.f32 %v14133_v6, %v14132_v4  ;;  %v14155_v14 = vpop.f32.mrb[21].mxu1  ;;  %v14135_v57 = vpop.f32.mrb[22].mxu0 }
 0x877   :  { %v14156_v7 = vadd.f32 %v14155_v14, %v14154_v5  ;;  %v14157_v59 = vpop.f32.mrb[22].mxu1  ;;  %v14136_v13 = vpop.f32.mrb[23].mxu0 }
 0x878   :  { %v12398_v16 = vadd.f32 %v14134_v46, %v12357_v2  ;;  %v14137_v9 = vadd.f32 %v14136_v13, %v14135_v57  ;;  %v14158_v19 = vpop.f32.mrb[23].mxu1 }
 0x879   :  { %v14159_v54 = vadd.f32 %v14158_v19, %v14157_v59 }
 0x87a   :  { %v12439_v45 = vadd.f32 %v14156_v7, %v12398_v16  ;;  %v12401_v53 = vadd.f32 %v14137_v9, %v12360_v8 }
 0x87c   :  { %12445 = vst [vmem:[%s15169_s9] sm:$0xff] %v12439_v45  ;;  %v12442_v20 = vadd.f32 %v14159_v54, %v12401_v53 }
 0x87e   :  { %12446 = vst [vmem:[%s15169_s9 + $0x8] sm:$0xff] %v12442_v20 }
 0x87f   :  { %12451 = vsyncpa [#allocation4], 1 }
 0x880   :  { %12452 = vsyncpa [#allocation6], 1 }
 0x881   :  { %12453 = vsyncpa [#allocation9], 1 }
 0x882   :  { %12454 = vsyncpa [#allocation12], 1 }

</bundles_post_ra>
